<compile_context>
chip_gen: v5e
topology: v5e:2x2
jax: 0.10.0
libtpu: 0.0.40
codegen_flags: <defaults>
</compile_context>

<pallas_src>
import math
import functools

import numpy as np
import jax
import jax.numpy as jnp
from jax.experimental import pallas as pl
from jax.experimental.pallas import tpu as pltpu


# ----------------------------- Pallas kernel --------------------------------

def _siren_kernel(coords_ref, lat_ref, w0c_ref, wmid_ref, bmid_ref,
                  wlast_ref, blast_ref, o_ref, *, num_mid, coord_dim):
    """Fused SIREN MLP, feature-major orientation.

    coords_ref: (C, tile_m)        current tile of points (transposed)
    lat_ref:    (B, H, 1)          whole array, = w0*(lat_vecs[idx] @ W0[:L] + b0)
    w0c_ref:    (H, C)             = (w0 * W0[L:]).T
    wmid_ref:   (num_mid, H, H)    = (w0 * W_i).T stacked
    bmid_ref:   (num_mid, H, 1)    = (w0 * b_i).T stacked
    wlast_ref:  (out, H)           last (linear) layer, NOT scaled by w0
    blast_ref:  (out, 1)
    o_ref:      (out, tile_m)      lane-dense output tile
    """
    b = pl.program_id(0)
    coords = coords_ref[...]                       # (C, tile_m) f32
    w0c = w0c_ref[...]                             # (H, C)

    # Layer 0 (split, w0 pre-folded): z = lat_contrib + (w0*W0_coord) @ coords.
    # coord_dim == 2 -> two VPU broadcast mul-adds instead of a tiny-K matmul.
    z = lat_ref[b]                                 # (H, 1)
    for c in range(coord_dim):
        z = z + w0c[:, c:c + 1] * coords[c:c + 1, :]
    h = jnp.sin(z)                                 # (H, tile_m)

    # Hidden sine layers (H -> H); weights/biases already transposed & w0-scaled.
    for li in range(num_mid):
        w = wmid_ref[li]                           # (H, H)
        bias = bmid_ref[li]                        # (H, 1)
        h = jnp.sin(jnp.dot(w, h, preferred_element_type=jnp.float32) + bias)

    # Outermost linear layer (H -> out), unscaled.
    out = jnp.dot(wlast_ref[...], h, preferred_element_type=jnp.float32) + blast_ref[...]
    o_ref[...] = out.astype(o_ref.dtype)


def siren_pallas(coords_T, lat_contrib, w0c_T, Wmid_T, bmid_T, Wlast_T, blast_T,
                 *, num_mid, tile_m):
    """coords_T: (B, C, N_pad) f32 with N_pad % tile_m == 0, tile_m % 128 == 0."""
    B, C, N_pad = coords_T.shape
    H = w0c_T.shape[0]
    out_dim = Wlast_T.shape[0]
    assert N_pad % tile_m == 0 and tile_m % 128 == 0
    grid = (B, N_pad // tile_m)

    # Whole-array VMEM-resident operands (weights / biases / per-batch latent):
    # no per-grid-step DMA, no double buffers.
    vmem_full = pl.BlockSpec(memory_space=pltpu.MemorySpace.VMEM)

    kernel = functools.partial(_siren_kernel, num_mid=num_mid, coord_dim=C)

    # Advisory cost hint for the XLA scheduler.
    flops = 2 * B * N_pad * (C * H + num_mid * H * H + H * out_dim)
    transc = B * N_pad * H * (1 + num_mid)
    bytes_acc = 4 * (coords_T.size + lat_contrib.size + w0c_T.size
                     + Wmid_T.size + bmid_T.size + Wlast_T.size + blast_T.size
                     + B * N_pad * out_dim)

    return pl.pallas_call(
        kernel,
        out_shape=jax.ShapeDtypeStruct((B, out_dim, N_pad), jnp.float32),
        grid=grid,
        in_specs=[
            pl.BlockSpec((None, C, tile_m), lambda b, i: (b, 0, i)),   # coords tile
            vmem_full,   # lat_contrib (B, H, 1), program_id-indexed in kernel
            vmem_full,   # w0c_T   (H, C)
            vmem_full,   # Wmid_T  (num_mid, H, H)
            vmem_full,   # bmid_T  (num_mid, H, 1)
            vmem_full,   # Wlast_T (out, H)
            vmem_full,   # blast_T (out, 1)
        ],
        out_specs=pl.BlockSpec((None, out_dim, tile_m), lambda b, i: (b, 0, i)),
        compiler_params=pltpu.CompilerParams(
            dimension_semantics=("parallel", "parallel")),
        cost_estimate=pl.CostEstimate(flops=int(flops),
                                      transcendentals=int(transc),
                                      bytes_accessed=int(bytes_acc)),
    )(coords_T, lat_contrib, w0c_T, Wmid_T, bmid_T, Wlast_T, blast_T)


# --------------------------- parameter construction --------------------------

def init_params(key, *, latent_size, in_features, hidden_features,
                num_hidden_layers, out_features, dataset_size, w0=60.0):
    """Deterministic init mirroring the PyTorch module's init scheme:
       - lat_vecs ~ Normal(0, 1/sqrt(latent_size))
       - first Linear weight ~ U(-1/fan_in, 1/fan_in)           (first_layer_sine_init)
       - other Linear weights ~ U(-sqrt(6/fan_in)/w0, +...)     (sine_init)
       - biases ~ U(-1/sqrt(fan_in), 1/sqrt(fan_in))            (nn.Linear default)
    """
    dims = [in_features] + [hidden_features] * (num_hidden_layers + 1) + [out_features]
    n_layers = len(dims) - 1
    keys = jax.random.split(key, 1 + 2 * n_layers)

    lat_vecs = (jax.random.normal(keys[0], (dataset_size, latent_size),
                                  dtype=jnp.float32)
                / math.sqrt(latent_size))

    Ws, Bs = [], []
    k = 1
    for li in range(n_layers):
        fan_in, fan_out = dims[li], dims[li + 1]
        if li == 0:
            w_bound = 1.0 / fan_in
        else:
            w_bound = math.sqrt(6.0 / fan_in) / w0
        W = jax.random.uniform(keys[k], (fan_in, fan_out), dtype=jnp.float32,
                               minval=-w_bound, maxval=w_bound)
        k += 1
        b_bound = 1.0 / math.sqrt(fan_in)
        b = jax.random.uniform(keys[k], (1, fan_out), dtype=jnp.float32,
                               minval=-b_bound, maxval=b_bound)
        k += 1
        Ws.append(W)
        Bs.append(b)

    return {"lat_vecs": lat_vecs, "Ws": Ws, "Bs": Bs}


# ------------------------------ forward (wrapper) ----------------------------

def _round_up(x, m):
    return -(-x // m) * m


def _choose_tile_m(N, B, max_tile_m):
    """Lane-aligned point tile: big enough to amortize per-step overhead,
    capped so padding waste stays small and megacore gets >= 2 blocks."""
    n128 = _round_up(N, 128)
    tile_m = min(max_tile_m, n128)
    if B * (n128 // tile_m) < 2 and tile_m > 128:
        tile_m = max(128, _round_up(tile_m // 2, 128))
    return tile_m


def coordinate_net_autodecoder_forward(params, model_input, *, w0=60.0,
                                       max_tile_m=1024):
    """Semantics of CoordinateNet_autodecoder.forward (nl='sine', use_pe=False)."""
    coords = model_input["coords"]                 # (B, N, 2) f32
    idx = model_input["idx"]                       # (B,) int32
    B, N, C = coords.shape

    lat_vecs = params["lat_vecs"]
    Ws, Bs = params["Ws"], params["Bs"]
    L = lat_vecs.shape[-1]
    H = Ws[0].shape[-1]
    out_dim = Ws[-1].shape[-1]
    num_mid = len(Ws) - 2

    # Embedding lookup (glue, plain JAX).
    lat = lat_vecs[idx]                            # (B, L)
    # batch_vecs returned for output-dict parity with the PyTorch module.
    batch_vecs = jnp.broadcast_to(lat[:, None, :], (B, N, L))

    # Split layer 0 and fold w0 into all sine-layer params (exact transforms):
    #   sin(w0*(cat([lat, coords]) @ W0 + b0))
    #     == sin( w0*(lat @ W0[:L] + b0)  +  coords @ (w0*W0[L:]) )
    W0, b0 = Ws[0], Bs[0]
    lat_contrib = (w0 * (lat @ W0[:L] + b0))[:, :, None]          # (B, H, 1)
    w0c_T = (w0 * W0[L:]).T                                       # (H, C)

    if num_mid > 0:
        Wmid_T = jnp.stack([(w0 * W).T for W in Ws[1:-1]])        # (num_mid, H, H)
        bmid_T = jnp.stack([(w0 * b).reshape(H, 1) for b in Bs[1:-1]])
    else:  # dummy operands (never read when num_mid == 0)
        Wmid_T = jnp.zeros((1, H, H), jnp.float32)
        bmid_T = jnp.zeros((1, H, 1), jnp.float32)
    Wlast_T = Ws[-1].T                                            # (out, H)
    blast_T = Bs[-1].reshape(out_dim, 1)                          # (out, 1)

    # Feature-major layout; pad the points axis up to a tile multiple.
    tile_m = _choose_tile_m(N, B, max_tile_m)
    N_pad = _round_up(N, tile_m)
    coords_T = jnp.transpose(coords, (0, 2, 1))                   # (B, C, N)
    if N_pad != N:
        coords_T = jnp.pad(coords_T, ((0, 0), (0, 0), (0, N_pad - N)))

    out_T = siren_pallas(coords_T, lat_contrib, w0c_T, Wmid_T, bmid_T,
                         Wlast_T, blast_T, num_mid=num_mid, tile_m=tile_m)
    out = jnp.transpose(out_T, (0, 2, 1))[:, :N, :]               # (B, N, out)

    return {
        "model_in": coords,
        "model_out": out,
        "batch_vecs": batch_vecs,
        "meta": model_input,
    }


# pure-JAX reference for verification (unsplit layer 0, repeat + concat, no folding)
def _reference_forward(params, model_input, *, w0=60.0):
    coords = model_input["coords"]
    idx = model_input["idx"]
    B, N, _ = coords.shape
    batch_vecs = jnp.repeat(params["lat_vecs"][idx][:, None, :], N, axis=1)
    h = jnp.concatenate([batch_vecs, coords], axis=-1)
    Ws, Bs = params["Ws"], params["Bs"]
    for li in range(len(Ws)):
        z = h @ Ws[li] + Bs[li]
        h = jnp.sin(w0 * z) if li < len(Ws) - 1 else z
    return h


# ----------------------------------- main ------------------------------------

if __name__ == "__main__":
    # Small, module-consistent shapes.
    latent_size = 32
    coord_dim = 2
    in_features = latent_size + coord_dim      # 34
    hidden_features = 64
    num_hidden_layers = 3
    out_features = 1
    dataset_size = 16
    w0 = 60.0

    B, N = 2, 8                                # batch=2, points=8

    key = jax.random.PRNGKey(0)
    k_params, k_coords = jax.random.split(key)

    params = init_params(
        k_params,
        latent_size=latent_size,
        in_features=in_features,
        hidden_features=hidden_features,
        num_hidden_layers=num_hidden_layers,
        out_features=out_features,
        dataset_size=dataset_size,
        w0=w0,
    )

    coords = jax.random.uniform(k_coords, (B, N, coord_dim), dtype=jnp.float32,
                                minval=-1.0, maxval=1.0)
    idx = jnp.array([0, 1], dtype=jnp.int32)
    model_input = {"coords": coords, "idx": idx}

    result = coordinate_net_autodecoder_forward(params, model_input,
                                                w0=w0, max_tile_m=1024)
    jax.block_until_ready(result["model_out"])

    # correctness check vs pure-JAX reference (w0-folding / transposed matmuls
    # change fp rounding order slightly, hence the modest tolerance)
    ref = _reference_forward(params, model_input, w0=w0)
    np.testing.assert_allclose(np.asarray(result["model_out"]), np.asarray(ref),
                               rtol=2e-4, atol=2e-4)

    assert result["model_out"].shape == (B, N, out_features)
    assert result["batch_vecs"].shape == (B, N, latent_size)

    # TODO(synk): coords.requires_grad_(True) (autograd input tracking) has no
    # Pallas-forward equivalent; gradients would be handled by jax.grad outside.
    print("KERNEL_OK")
</pallas_src>

<mosaic_0001>
module attributes {stable_mosaic.version = 11 : i64} {
  func.func @_siren_kernel(%arg0: i32, %arg1: i32, %arg2: memref<1x2x128xf32, #tpu.memory_space<vmem>>, %arg3: memref<2x64x1xf32, #tpu.memory_space<vmem>>, %arg4: memref<64x2xf32, #tpu.memory_space<vmem>>, %arg5: memref<3x64x64xf32, #tpu.memory_space<vmem>>, %arg6: memref<3x64x1xf32, #tpu.memory_space<vmem>>, %arg7: memref<1x64xf32, #tpu.memory_space<vmem>>, %arg8: memref<1x1xf32, #tpu.memory_space<vmem>>, %arg9: memref<1x1x128xf32, #tpu.memory_space<vmem>>) attributes {dimension_semantics = [#tpu.dimension_semantics<parallel>, #tpu.dimension_semantics<parallel>], iteration_bounds = array<i64: 2, 1>, scalar_prefetch = 0 : i64, scratch_operands = 0 : i64, tpu.core_type = #tpu.core_type<tc>, window_params = [{transform_indices = @transform_0, window_bounds = array<i64: 1, 2, 128>}, {pipeline_mode = #tpu.pipeline_mode<synchronous>, transform_indices = @transform_1, window_bounds = array<i64: 2, 64, 1>}, {pipeline_mode = #tpu.pipeline_mode<synchronous>, transform_indices = @transform_2, window_bounds = array<i64: 64, 2>}, {pipeline_mode = #tpu.pipeline_mode<synchronous>, transform_indices = @transform_3, window_bounds = array<i64: 3, 64, 64>}, {pipeline_mode = #tpu.pipeline_mode<synchronous>, transform_indices = @transform_4, window_bounds = array<i64: 3, 64, 1>}, {pipeline_mode = #tpu.pipeline_mode<synchronous>, transform_indices = @transform_5, window_bounds = array<i64: 1, 64>}, {pipeline_mode = #tpu.pipeline_mode<synchronous>, transform_indices = @transform_6, window_bounds = array<i64: 1, 1>}, {transform_indices = @transform_7, window_bounds = array<i64: 1, 1, 128>}]} {
    %c0 = arith.constant 0 : index
    %c0_0 = arith.constant 0 : index
    %c0_1 = arith.constant 0 : index
    %0 = vector.load %arg2[%c0, %c0_0, %c0_1] : memref<1x2x128xf32, #tpu.memory_space<vmem>>, vector<1x2x128xf32>
    %1 = vector.shape_cast %0 : vector<1x2x128xf32> to vector<2x128xf32>
    %c0_2 = arith.constant 0 : index
    %c0_3 = arith.constant 0 : index
    %2 = vector.load %arg4[%c0_2, %c0_3] : memref<64x2xf32, #tpu.memory_space<vmem>>, vector<64x2xf32>
    %3 = arith.index_cast %arg0 : i32 to index
    %c0_4 = arith.constant 0 : index
    %c0_5 = arith.constant 0 : index
    %4 = vector.load %arg3[%3, %c0_4, %c0_5] : memref<2x64x1xf32, #tpu.memory_space<vmem>>, vector<1x64x1xf32>
    %5 = vector.shape_cast %4 : vector<1x64x1xf32> to vector<64x1xf32>
    %6 = vector.extract_strided_slice %2 {offsets = [0, 0], sizes = [64, 1], strides = [1, 1]} : vector<64x2xf32> to vector<64x1xf32>
    %7 = vector.extract_strided_slice %1 {offsets = [0, 0], sizes = [1, 128], strides = [1, 1]} : vector<2x128xf32> to vector<1x128xf32>
    %8 = vector.broadcast %6 : vector<64x1xf32> to vector<64x128xf32>
    %9 = vector.broadcast %7 : vector<1x128xf32> to vector<64x128xf32>
    %10 = arith.mulf %8, %9 : vector<64x128xf32>
    %11 = vector.broadcast %5 : vector<64x1xf32> to vector<64x128xf32>
    %12 = arith.addf %11, %10 : vector<64x128xf32>
    %13 = vector.extract_strided_slice %2 {offsets = [0, 1], sizes = [64, 1], strides = [1, 1]} : vector<64x2xf32> to vector<64x1xf32>
    %14 = vector.extract_strided_slice %1 {offsets = [1, 0], sizes = [1, 128], strides = [1, 1]} : vector<2x128xf32> to vector<1x128xf32>
    %15 = vector.broadcast %13 : vector<64x1xf32> to vector<64x128xf32>
    %16 = vector.broadcast %14 : vector<1x128xf32> to vector<64x128xf32>
    %17 = arith.mulf %15, %16 : vector<64x128xf32>
    %18 = arith.addf %12, %17 : vector<64x128xf32>
    %19 = math.sin %18 : vector<64x128xf32>
    %c0_6 = arith.constant 0 : index
    %c0_7 = arith.constant 0 : index
    %c0_8 = arith.constant 0 : index
    %20 = vector.load %arg5[%c0_6, %c0_7, %c0_8] : memref<3x64x64xf32, #tpu.memory_space<vmem>>, vector<1x64x64xf32>
    %21 = vector.shape_cast %20 : vector<1x64x64xf32> to vector<64x64xf32>
    %c0_9 = arith.constant 0 : index
    %c0_10 = arith.constant 0 : index
    %c0_11 = arith.constant 0 : index
    %22 = vector.load %arg6[%c0_9, %c0_10, %c0_11] : memref<3x64x1xf32, #tpu.memory_space<vmem>>, vector<1x64x1xf32>
    %23 = vector.shape_cast %22 : vector<1x64x1xf32> to vector<64x1xf32>
    %cst = arith.constant dense<0.000000e+00> : vector<64x128xf32>
    %24 = tpu.matmul %21, %19, %cst {dimension_numbers = #tpu.dot_dimension_numbers<[1], [0], [0], [1], [0, 0, 1, 1], [], []>} : vector<64x64xf32>, vector<64x128xf32>, vector<64x128xf32> -> vector<64x128xf32>
    %25 = vector.broadcast %23 : vector<64x1xf32> to vector<64x128xf32>
    %26 = arith.addf %24, %25 : vector<64x128xf32>
    %27 = math.sin %26 : vector<64x128xf32>
    %c1 = arith.constant 1 : index
    %c0_12 = arith.constant 0 : index
    %c0_13 = arith.constant 0 : index
    %28 = vector.load %arg5[%c1, %c0_12, %c0_13] : memref<3x64x64xf32, #tpu.memory_space<vmem>>, vector<1x64x64xf32>
    %29 = vector.shape_cast %28 : vector<1x64x64xf32> to vector<64x64xf32>
    %c1_14 = arith.constant 1 : index
    %c0_15 = arith.constant 0 : index
    %c0_16 = arith.constant 0 : index
    %30 = vector.load %arg6[%c1_14, %c0_15, %c0_16] : memref<3x64x1xf32, #tpu.memory_space<vmem>>, vector<1x64x1xf32>
    %31 = vector.shape_cast %30 : vector<1x64x1xf32> to vector<64x1xf32>
    %cst_17 = arith.constant dense<0.000000e+00> : vector<64x128xf32>
    %32 = tpu.matmul %29, %27, %cst_17 {dimension_numbers = #tpu.dot_dimension_numbers<[1], [0], [0], [1], [0, 0, 1, 1], [], []>} : vector<64x64xf32>, vector<64x128xf32>, vector<64x128xf32> -> vector<64x128xf32>
    %33 = vector.broadcast %31 : vector<64x1xf32> to vector<64x128xf32>
    %34 = arith.addf %32, %33 : vector<64x128xf32>
    %35 = math.sin %34 : vector<64x128xf32>
    %c2 = arith.constant 2 : index
    %c0_18 = arith.constant 0 : index
    %c0_19 = arith.constant 0 : index
    %36 = vector.load %arg5[%c2, %c0_18, %c0_19] : memref<3x64x64xf32, #tpu.memory_space<vmem>>, vector<1x64x64xf32>
    %37 = vector.shape_cast %36 : vector<1x64x64xf32> to vector<64x64xf32>
    %c2_20 = arith.constant 2 : index
    %c0_21 = arith.constant 0 : index
    %c0_22 = arith.constant 0 : index
    %38 = vector.load %arg6[%c2_20, %c0_21, %c0_22] : memref<3x64x1xf32, #tpu.memory_space<vmem>>, vector<1x64x1xf32>
    %39 = vector.shape_cast %38 : vector<1x64x1xf32> to vector<64x1xf32>
    %cst_23 = arith.constant dense<0.000000e+00> : vector<64x128xf32>
    %40 = tpu.matmul %37, %35, %cst_23 {dimension_numbers = #tpu.dot_dimension_numbers<[1], [0], [0], [1], [0, 0, 1, 1], [], []>} : vector<64x64xf32>, vector<64x128xf32>, vector<64x128xf32> -> vector<64x128xf32>
    %41 = vector.broadcast %39 : vector<64x1xf32> to vector<64x128xf32>
    %42 = arith.addf %40, %41 : vector<64x128xf32>
    %43 = math.sin %42 : vector<64x128xf32>
    %c0_24 = arith.constant 0 : index
    %c0_25 = arith.constant 0 : index
    %44 = vector.load %arg7[%c0_24, %c0_25] : memref<1x64xf32, #tpu.memory_space<vmem>>, vector<1x64xf32>
    %cst_26 = arith.constant dense<0.000000e+00> : vector<1x128xf32>
    %45 = tpu.matmul %44, %43, %cst_26 {dimension_numbers = #tpu.dot_dimension_numbers<[1], [0], [0], [1], [0, 0, 1, 1], [], []>} : vector<1x64xf32>, vector<64x128xf32>, vector<1x128xf32> -> vector<1x128xf32>
    %c0_27 = arith.constant 0 : index
    %c0_28 = arith.constant 0 : index
    %46 = vector.load %arg8[%c0_27, %c0_28] : memref<1x1xf32, #tpu.memory_space<vmem>>, vector<1x1xf32>
    %47 = vector.broadcast %46 : vector<1x1xf32> to vector<1x128xf32>
    %48 = arith.addf %45, %47 : vector<1x128xf32>
    %c0_29 = arith.constant 0 : index
    %c0_30 = arith.constant 0 : index
    %c0_31 = arith.constant 0 : index
    %49 = vector.load %arg9[%c0_29, %c0_30, %c0_31] : memref<1x1x128xf32, #tpu.memory_space<vmem>>, vector<1x1x128xf32>
    %50 = vector.shape_cast %49 : vector<1x1x128xf32> to vector<1x128xf32>
    %51 = vector.shape_cast %48 : vector<1x128xf32> to vector<1x1x128xf32>
    tpu.vector_store %arg9[%c0_29, %c0_30, %c0_31], %51 {strides = array<i32>} : memref<1x1x128xf32, #tpu.memory_space<vmem>>, vector<1x1x128xf32>,
    return
  }
  func.func @transform_0(%arg0: i32, %arg1: i32) -> (i32, i32, i32) {
    %c0_i32 = arith.constant 0 : i32
    %c0_i32_0 = arith.constant 0 : i32
    return %arg0, %c0_i32, %arg1 : i32, i32, i32
  }
  func.func @transform_1(%arg0: i32, %arg1: i32) -> (i32, i32, i32) {
    %c0_i32 = arith.constant 0 : i32
    %c0_i32_0 = arith.constant 0 : i32
    %c0_i32_1 = arith.constant 0 : i32
    %c0_i32_2 = arith.constant 0 : i32
    return %c0_i32, %c0_i32_0, %c0_i32_1 : i32, i32, i32
  }
  func.func @transform_2(%arg0: i32, %arg1: i32) -> (i32, i32) {
    %c0_i32 = arith.constant 0 : i32
    %c0_i32_0 = arith.constant 0 : i32
    %c0_i32_1 = arith.constant 0 : i32
    return %c0_i32, %c0_i32_0 : i32, i32
  }
  func.func @transform_3(%arg0: i32, %arg1: i32) -> (i32, i32, i32) {
    %c0_i32 = arith.constant 0 : i32
    %c0_i32_0 = arith.constant 0 : i32
    %c0_i32_1 = arith.constant 0 : i32
    %c0_i32_2 = arith.constant 0 : i32
    return %c0_i32, %c0_i32_0, %c0_i32_1 : i32, i32, i32
  }
  func.func @transform_4(%arg0: i32, %arg1: i32) -> (i32, i32, i32) {
    %c0_i32 = arith.constant 0 : i32
    %c0_i32_0 = arith.constant 0 : i32
    %c0_i32_1 = arith.constant 0 : i32
    %c0_i32_2 = arith.constant 0 : i32
    return %c0_i32, %c0_i32_0, %c0_i32_1 : i32, i32, i32
  }
  func.func @transform_5(%arg0: i32, %arg1: i32) -> (i32, i32) {
    %c0_i32 = arith.constant 0 : i32
    %c0_i32_0 = arith.constant 0 : i32
    %c0_i32_1 = arith.constant 0 : i32
    return %c0_i32, %c0_i32_0 : i32, i32
  }
  func.func @transform_6(%arg0: i32, %arg1: i32) -> (i32, i32) {
    %c0_i32 = arith.constant 0 : i32
    %c0_i32_0 = arith.constant 0 : i32
    %c0_i32_1 = arith.constant 0 : i32
    return %c0_i32, %c0_i32_0 : i32, i32
  }
  func.func @transform_7(%arg0: i32, %arg1: i32) -> (i32, i32, i32) {
    %c0_i32 = arith.constant 0 : i32
    %c0_i32_0 = arith.constant 0 : i32
    return %arg0, %c0_i32, %arg1 : i32, i32, i32
  }
}

</mosaic_0001>

<bundles_post_ra>
// kernel: tpu_custom_call.1
= control target key start
LH: loop header
LB: loop body
LE: loop exit
PB: predicated region body
PF: predicated region fallthrough
CT: control target
= control target key end

     0   :  { %s10999_s0 = inlined_call_operand.vmem [shape: f32[2,2,128], index: 0, kind: input, shape index: {}]   ;;  %s11000_s1 = inlined_call_operand.vmem [shape: f32[2,64,1], index: 1, kind: input, shape index: {}]   ;;  %s11001_s2 = inlined_call_operand.vmem [shape: f32[64,2], index: 2, kind: input, shape index: {}]   ;;  %s11002_s3 = inlined_call_operand.vmem [shape: f32[3,64,64], index: 3, kind: input, shape index: {}]   ;;  %s11003_s4 = inlined_call_operand.vmem [shape: f32[3,64,1], index: 4, kind: input, shape index: {}]   ;;  %s11004_s5 = inlined_call_operand.vmem [shape: f32[1,64], index: 5, kind: input, shape index: {}]   ;;  %s11005_s6 = inlined_call_operand.<no memory space> [shape: f32[1,1], index: 6, kind: input, shape index: {}]   ;;  %s11006_s7 = inlined_call_operand.hbm [shape: f32[2,1,128], index: 7, kind: output, shape index: {}]  }
   0x1   :  { %v12_v0 = vstv %s11005_s6 }
   0x2   :  { %13 = vst [vmem:[#allocation2] sm:$0x1] %v12_v0 }
   0x3   :  { %14 = vsyncpa [#allocation4], 0 }
   0x4   :  { %16 = vsyncpa [#allocation4 + $0x1], 0  ;;  %s6276_s26 = smov 0   ;;  %s6278_s27 = smov 0  }
   0x5   :  { %s6280_s28 = smov 0   ;;  %s6282_s29 = smov 0  }
   0x6   :  { %s6284_s30 = smov 0   ;;  %s6286_s8 = smov 0  }
   0x7 LB: > { %s5908_s6 = sadd.s32 4294967295, %s6223_s8   ;;  %s5909_s9 = sadd.s32 4294967294, %s6223_s8   ;;  %s6223_s8 = sphi %s6286_s8, %s22_s8   ;;  %s6219_s30 = sphi %s6284_s30, %s11383_s30   ;;  %s6215_s29 = sphi %s6282_s29, %s11382_s29   ;;  %s6211_s28 = sphi %s6280_s28, %s11381_s28   ;;  %s6207_s27 = sphi %s6278_s27, %s11380_s27   ;;  %s6203_s26 = sphi %s6276_s26, %s11379_s26  }
   0x8   : > { %s34_s10 = sadd.s32 1, %s6219_s30  ;;  %s197_s11 = sadd.s32 1, %s6211_s28 }
   0x9   : > { %p36_p0 = scmp.ge.s32.totalorder %s34_s10, 2  ;;  %p207_p1 = scmp.ne.s32.totalorder %s6211_s28, %s6207_s27 }
   0xa   : > { %p208_p2 = scmp.eq.s32.totalorder %s5908_s6, 1  ;;  %p213_p3 = scmp.ne.s32.totalorder %s6207_s27, %s6203_s26 }
   0xb   : > { %s11385_s10 = smov (%p36_p0, %s34_s10), 0  ;;  %p214_p5 = scmp.eq.s32.totalorder %s5909_s9, 1 }
   0xc   : > { %p6316_p4 = por %p208_p2, %p207_p1  ;;  %s192_s13 = ssub.s32 %s6219_s30, %s11385_s10 }
   0xd   : > { %p5912_p6 = scmp.ge.s32.totalorder %s6223_s8, 1  ;;  %p195_p7 = scmp.eq.s32.totalorder %s192_s13, 0 }
   0xe   : > { %p6323_p8 = por %p214_p5, %p213_p3  ;;  %p260_p9 = scmp.lt.s32.totalorder %s6223_s8, 3 }
   0xf   : > { %s6329_s15 = scalar_select %p195_p7, %s6211_s28, %s197_s11  }
  0x10   : > { %p261_p10 = pnand %p5912_p6, %p260_p9 }
  0x12   : > { %264 = sbr.rel (%p261_p10) target bundleno = 2173 (0x87d), region = 48 }
  0x17   : > { %v307_v1 = vld [vmem:[%s11001_s2 + $0x30] sm:$0xff]  ;;  %s5914_s18 = sshll.u32 %s6215_s29, 6  ;;  %v306_v2 = vld [vmem:[%s11001_s2 + $0x28] sm:$0xff]  ;;  %v6225_v3 = vmov 1   ;;  %v11010_v4 = vmov 0   ;;  %v308_v6 = vld [vmem:[%s11001_s2 + $0x38] sm:$0xff]  ;;  %s5835_s16 = scalar_lea.hbm %s11006_s7, %s6215_s29 }
  0x18   : > { %6136 = vset.pattern.permute.xlu0 %v6225_v3  ;;  %6133 = vset.pattern.permute.xlu1 %v11010_v4  ;;  %s6342_s23 = scalar_lea.vmem %s11000_s1, %s5914_s18  ;;  %v305_v9 = vld [vmem:[%s11001_s2 + $0x20] sm:$0xff]  ;;  %v304_v11 = vld [vmem:[%s11001_s2 + $0x18] sm:$0xff]  ;;  %v302_v12 = vld [vmem:[%s11001_s2 + $0x8] sm:$0xff]  ;;  %p293_p11 = scmp.lt.s32.totalorder %s6215_s29, 1  ;;  %v11033_v62 = vmov 2475754826  }
  0x19   : > { %441 = vperm.xlu0 %6136, %v307_v1   ;;  %v318_v5 = vld [vmem:[%s6342_s23 + $0x38] sm:$0xff]  ;;  %6135 = vset.pattern.permute.xlu2 %v11010_v4  ;;  %v317_v7 = vld [vmem:[%s6342_s23 + $0x30] sm:$0xff]  ;;  %v316_v8 = vld [vmem:[%s6342_s23 + $0x28] sm:$0xff]  ;;  %v11012_v0 = vmov 2131351028   ;;  %s291_s11 = sand.u32 1, %s6207_s27  }
  0x1a   : > { %405 = vperm.xlu1 %6133, %v318_v5   ;;  %346 = vperm.xlu2 %6135, %v306_v2   ;;  %v315_v10 = vld [vmem:[%s6342_s23 + $0x20] sm:$0xff]  ;;  %v303_v13 = vld [vmem:[%s11001_s2 + $0x10] sm:$0xff]  ;;  %v314_v15 = vld [vmem:[%s6342_s23 + $0x18] sm:$0xff]  ;;  %s294_s22 = scalar_select %p293_p11, %s6215_s29, 1 }
  0x1b   : > { %v301_v14 = vld [vmem:[%s11001_s2] sm:$0xff]  ;;  %v313_v17 = vld [vmem:[%s6342_s23 + $0x10] sm:$0xff]  ;;  %v312_v19 = vld [vmem:[%s6342_s23 + $0x8] sm:$0xff]  ;;  %s292_s17 = scalar_lea.vmem [#allocation3], %s291_s11  ;;  %s5839_s19 = sshll.u32 %s5835_s16, 4  ;;  %s5840_s19 = int_to_ptr.hbm [resolvable:$true] %s5839_s19 }
  0x1c   : > { %v311_v16 = vld [vmem:[%s6342_s23] sm:$0xff]  ;;  %v1719_v18 = vld [vmem:[%s11003_s4 + $0x30] sm:$0xff]  ;;  %v1716_v20 = vld [vmem:[%s11003_s4 + $0x18] sm:$0xff]  ;;  %s5913_s6 = sshll.u32 %s294_s22, 1  ;;  %s5837_s18 = sshll.u32 %s292_s17, 4  ;;  %s5838_s18 = int_to_ptr.vmem [resolvable:$true] %s5837_s18 }
  0x1d   : > { %v1713_v21 = vld [vmem:[%s11003_s4] sm:$0xff]  ;;  %v5984_v22 = vld [vmem:[%s11003_s4 + $0x68] sm:$0xff]  ;;  %v5981_v23 = vld [vmem:[%s11003_s4 + $0x50] sm:$0xff]  ;;  %s299_s13 = scalar_lea.vmem %s10999_s0, %s5913_s6  ;;  %s5826_s20 = scalar_lea.sflag [#allocation4], %s291_s11 }
  0x1e   : > { %v6034_v24 = vld [vmem:[%s11003_s4 + $0xb8] sm:$0xff]  ;;  %v6031_v26 = vld [vmem:[%s11003_s4 + $0xa0] sm:$0xff]  ;;  %v6028_v27 = vld [vmem:[%s11003_s4 + $0x88] sm:$0xff]  ;;  %s6159_s21 = sshra.s32 %s5840_s19, 4  ;;  %s6165_s25 = scalar_lea.hbm %s11006_s7, 2  ;;  %s6160_s21 = int_to_ptr.hbm [resolvable:$true] %s6159_s21 }
  0x1f   : > { %v300_v31 = vld [vmem:[%s299_s13] sm:$0x3]  ;;  %s6161_s22 = scalar_lea.hbm %s6160_s21, 1  ;;  %p6166_p1 = scmp.lt.s32.totalorder %s6160_s21, %s11006_s7 }
  0x20   : > { %v6407_v32 = vperm.slane %v300_v31, 0  ;;  %v6409_v33 = vperm.slane %v300_v31, 1  ;;  %p6162_p12 = scmp.ne.s32.totalorder %s6160_s21, %s6161_s22  ;;  %p6167_p2 = scmp.lt.s32.totalorder %s6165_s25, %s6161_s22 }
  0x21   : > { %6137 = vset.pattern.permute.xlu0 %v11010_v4 }
  0x22   : > { %6134 = vset.pattern.permute.xlu1 %v6225_v3  ;;  %356 = vperm.xlu0 %6137, %v308_v6   ;;  %p6163_p13 = pnand %p6162_p12, %p6316_p4  ;;  %p6168_p3 = por %p6167_p2, %p6166_p1 }
  0x23   : > { %445 = vperm.xlu1 %6134, %v308_v6   ;;  %400 = vperm.xlu2 %6135, %v317_v7   ;;  %v11019_v6 = vmov 2102212464  }
  0x24   : > { %p6164_p0 = pneg %p6163_p13 }
  0x26   : > { %p6169_p5 = pnand %p6168_p3, %p6164_p0 }
  0x2a   : > { %351 = vperm.xlu0 %6137, %v307_v1  }
  0x2b   : > { %6138 = vset.pattern.permute.xlu1 %v11010_v4  ;;  %395 = vperm.xlu2 %6135, %v316_v8   ;;  %v11027_v8 = vmov 920167782  }
  0x2c   : > { %341 = vperm.xlu1 %6138, %v305_v9  }
  0x32   : > { %390 = vperm.xlu0 %6137, %v315_v10  }
  0x33   : > { %336 = vperm.xlu2 %6135, %v304_v11  }
  0x34   : > { %6139 = vset.pattern.permute.xlu1 %v6225_v3 }
  0x35   : > { %437 = vperm.xlu1 %6139, %v306_v2   ;;  %v11031_v2 = vmov 683565275  }
  0x3a   : > { %326 = vperm.xlu0 %6137, %v302_v12  }
  0x3b   : > { %331 = vperm.xlu2 %6135, %v303_v13  }
  0x3d   : > { %433 = vperm.xlu1 %6139, %v305_v9  }
  0x42   : > { %321 = vperm.xlu0 %6137, %v301_v14  }
  0x43   : > { %6141 = vset.pattern.permute.xlu2 %v6225_v3 }
  0x44   : > { %429 = vperm.xlu2 %6141, %v304_v11  }
  0x45   : > { %6140 = vset.pattern.permute.xlu1 %v11010_v4 }
  0x46   : > { %385 = vperm.xlu1 %6140, %v314_v15  }
  0x4a   : > { %370 = vperm.xlu0 %6137, %v311_v16  }
  0x4c   : > { %425 = vperm.xlu2 %6141, %v303_v13   ;;  %v11025_v13 = vmov 1326507024  }
  0x4e   : > { %380 = vperm.xlu1 %6140, %v313_v17  }
  0x52   : > { %1753 = vperm.xlu0 %6137, %v1719_v18  }
  0x54   : > { %421 = vperm.xlu2 %6141, %v302_v12  }
  0x56   : > { %375 = vperm.xlu1 %6140, %v312_v19  }
  0x5a   : > { %1738 = vperm.xlu0 %6137, %v1716_v20  }
  0x5c   : > { %6143 = vset.pattern.permute.xlu2 %v11010_v4 }
  0x5e   : > { %6142 = vset.pattern.permute.xlu1 %v6225_v3 }
  0x5f   : > { %417 = vperm.xlu1 %6142, %v301_v14  }
  0x62   : > { %1723 = vperm.xlu0 %6137, %v1713_v21  }
  0x67   : > { %6144 = vset.pattern.permute.xlu1 %v11010_v4 }
  0x6a   : > { %3112 = vperm.xlu0 %6137, %v5984_v22  }
  0x72   : > { %3097 = vperm.xlu0 %6137, %v5981_v23  }
  0x74   : > { %v6394_v25 = vpop.permute.xlu2 %346 }
  0x75   : > { %v365_v21 = vmul.f32 %v6407_v32, %v6394_v25 }
  0x7a   : > { %4485 = vperm.xlu0 %6137, %v6034_v24  }
  0x7d   : > { %v401_v28 = vpop.permute.xlu2 %400 }
  0x82   : > { %4470 = vperm.xlu0 %6137, %v6031_v26  }
  0x85   : > { %v6411_v34 = vpop.permute.xlu2 %395 }
  0x86   : > { %v413_v31 = vadd.f32 %v6411_v34, %v365_v21 }
  0x8a   : > { %4455 = vperm.xlu0 %6137, %v6028_v27  }
  0x8b   : > { %v442_v29 = vpop.permute.xlu0 %441 }
  0x8c   : > { %v406_v30 = vpop.permute.xlu1 %405  ;;  %v455_v43 = vmul.f32 %v6409_v33, %v442_v29 }
  0x8d   : > { %v337_v44 = vpop.permute.xlu2 %336 }
  0x94   : > { %v357_v35 = vpop.permute.xlu0 %356 }
  0x95   : > { %v367_v36 = vmul.f32 %v6407_v32, %v357_v35  ;;  %v446_v37 = vpop.permute.xlu1 %445  ;;  %v332_v57 = vpop.permute.xlu2 %331 }
  0x96   : > { %v456_v38 = vmul.f32 %v6409_v33, %v446_v37 }
  0x97   : > { %v415_v39 = vadd.f32 %v406_v30, %v367_v36 }
  0x99   : > { %v6415_v40 = vadd.f32 %v456_v38, %v415_v39  ;;  %v363_v39 = vmul.f32 %v6407_v32, %v337_v44 }
  0x9b   : > { %v1553_v41 = vand.u32 2139095040, %v6415_v40  ;;  %v1550_v53 = vand.u32 2147483647, %v6415_v40 }
  0x9c   : > { %v352_v42 = vpop.permute.xlu0 %351 }
  0x9d   : > { %v1554_v45 = vshrl.u32 %v1553_v41, 23  ;;  %v366_v46 = vmul.f32 %v6407_v32, %v352_v42  ;;  %v1557_v59 = vand.u32 8388607, %v1550_v53 }
  0x9e   : > { %v342_v47 = vpop.permute.xlu1 %341  ;;  %v430_v24 = vpop.permute.xlu2 %429 }
  0x9f   : > { %v5936_v48 = vadd.s32 4294967169, %v1554_v45  ;;  %v414_v49 = vadd.f32 %v401_v28, %v366_v46  ;;  %v1558_v15 = vor.u32 8388608, %v1557_v59  ;;  %v364_v41 = vmul.f32 %v6407_v32, %v342_v47 }
  0xa1   : > { %v1560_v50 = vadd.s32 1, %v5936_v48  ;;  %v6420_v51 = vadd.f32 %v455_v43, %v414_v49  ;;  %v6460_v28 = vshll.u32 %v1558_v15, 8 }
  0xa3   : > { %vm1561_vm0 = vcmp.gt.s32.totalorder %v1560_v50, 0  ;;  %v1398_v55 = vand.u32 2139095040, %v6420_v51  ;;  %v1599_v46 = vand.u32 65535, %v6460_v28 }
  0xa4   : > { %v1562_v52 = vsel %vm1561_vm0, %v1560_v50, 0  ;;  %v391_v42 = vpop.permute.xlu0 %390  ;;  %v362_v50 = vmul.f32 %v6407_v32, %v332_v57 }
  0xa5   : > { %v1564_v54 = vand.u32 31, %v1562_v52  ;;  %v6428_v60 = vshrl.u32 %v1562_v52, 5  ;;  %v1399_v61 = vshrl.u32 %v1398_v55, 23  ;;  %v1600_v52 = vshrl.u32 %v6460_v28, 16 }
  0xa6   : > { %v412_v47 = vadd.f32 %v391_v42, %v364_v41  ;;  %v452_v55 = vmul.f32 %v6409_v33, %v430_v24 }
  0xa7   : > { %v6424_v56 = vsub.s32 32, %v1564_v54  ;;  %v438_v58 = vpop.permute.xlu1 %437  ;;  %v1567_v3 = vshll.u32 %v11031_v2, %v1564_v54  ;;  %v1570_v5 = vshll.u32 %v11033_v62, %v1564_v54  ;;  %v1573_v10 = vshll.u32 %v11012_v0, %v1564_v54 }
  0xa8   : > { %v1576_v11 = vshll.u32 %v11019_v6, %v1564_v54  ;;  %v1579_v12 = vshll.u32 %v11027_v8, %v1564_v54  ;;  %v5933_v22 = vadd.s32 4294967169, %v1399_v61  ;;  %vm1582_vm1 = vcmp.lt.s32.totalorder %v6428_v60, 1 }
  0xa9   : > { %v1568_v63 = vshrl.u32 %v11033_v62, %v6424_v56  ;;  %v1571_v1 = vshrl.u32 %v11012_v0, %v6424_v56  ;;  %v1574_v7 = vshrl.u32 %v11019_v6, %v6424_v56  ;;  %v1577_v9 = vshrl.u32 %v11027_v8, %v6424_v56 }
  0xaa   : > { %v1580_v14 = vshrl.u32 %v11025_v13, %v6424_v56  ;;  %v454_v26 = vmul.f32 %v6409_v33, %v438_v58  ;;  %vm1585_vm2 = vcmp.lt.s32.totalorder %v6428_v60, 4  ;;  %vm1584_vm3 = vcmp.lt.s32.totalorder %v6428_v60, 3 }
  0xab   : > { %v6445_v16 = vor.u32 %v1568_v63, %v1567_v3  ;;  %v6447_v17 = vor.u32 %v1571_v1, %v1570_v5  ;;  %v6449_v18 = vor.u32 %v1574_v7, %v1573_v10  ;;  %v1578_v19 = vor.u32 %v1577_v9, %v1576_v11  ;;  %v426_v7 = vpop.permute.xlu2 %425 }
  0xac   : > { %v1581_v20 = vor.u32 %v1580_v14, %v1579_v12  ;;  %vm1583_vm4 = vcmp.lt.s32.totalorder %v6428_v60, 2  ;;  %v1405_v36 = vadd.s32 1, %v5933_v22  ;;  %v6482_v43 = vadd.f32 %v454_v26, %v413_v31 }
  0xad   : > { %v1590_v27 = vsel %vm1582_vm1, %v6445_v16, %v6447_v17  ;;  %v1591_v25 = vsel %vm1585_vm2, %v1578_v19, 920167782  ;;  %v1594_v29 = vsel %vm1582_vm1, %v6447_v17, %v6449_v18  ;;  %v1395_v3 = vand.u32 2147483647, %v6420_v51 }
  0xae   : > { %v1595_v30 = vsel %vm1585_vm2, %v1581_v20, 1326507024  ;;  %v1592_v35 = vsel %vm1584_vm3, %v6449_v18, %v1591_v25  ;;  %vm1406_vm5 = vcmp.gt.s32.totalorder %v1405_v36, 0  ;;  %v1243_v59 = vand.u32 2139095040, %v6482_v43 }
  0xaf   : > { %v434_v23 = vpop.permute.xlu1 %433  ;;  %v1593_v37 = vsel %vm1583_vm4, %v1590_v27, %v1592_v35  ;;  %v1596_v38 = vsel %vm1584_vm3, %v1578_v19, %v1595_v30  ;;  %v1407_v11 = vsel %vm1406_vm5, %v1405_v36, 0  ;;  %v451_v12 = vmul.f32 %v6409_v33, %v426_v7 }
  0xb0   : > { %v1597_v34 = vsel %vm1583_vm4, %v1594_v29, %v1596_v38  ;;  %v453_v45 = vmul.f32 %v6409_v33, %v434_v23  ;;  %v1623_v54 = vand.u32 65535, %v1593_v37  ;;  %v1624_v44 = vshrl.u32 %v1593_v37, 16 }
  0xb1   : > { %v1601_v48 = vand.u32 65535, %v1597_v34  ;;  %v1602_v49 = vshrl.u32 %v1597_v34, 16  ;;  %v1244_v22 = vshrl.u32 %v1243_v59, 23  ;;  %v1566_v23 = vshrl.u32 %v11031_v2, %v6424_v56 }
  0xb2   : > { %v1626_v1 = vmul.u32 %v1624_v44, %v1599_v46  ;;  %v6493_v5 = vadd.f32 %v453_v45, %v412_v47  ;;  %v1627_v15 = vmul.u32 %v1623_v54, %v1600_v52  ;;  %v6501_v27 = vand.u32 31, %v1407_v11 }
  0xb3   : > { %v1604_v58 = vmul.u32 %v1602_v49, %v1599_v46  ;;  %v1605_v63 = vmul.u32 %v1601_v48, %v1600_v52  ;;  %v1603_v9 = vmul.u32 %v1601_v48, %v1599_v46  ;;  %v1606_v14 = vmul.u32 %v1602_v49, %v1600_v52  ;;  %v327_v49 = vpop.permute.xlu0 %326 }
  0xb4   : > { %v1629_v21 = vshll.u32 %v1626_v1, 16  ;;  %v1088_v25 = vand.u32 2139095040, %v6493_v5  ;;  %v1625_v30 = vmul.u32 %v1623_v54, %v1599_v46  ;;  %v1587_v31 = vsel %vm1585_vm2, %v6449_v18, 2102212464 }
  0xb5   : > { %v1607_v10 = vshll.u32 %v1604_v58, 16  ;;  %v1609_v24 = vshll.u32 %v1605_v63, 16  ;;  %v1628_v35 = vmul.u32 %v1624_v44, %v1600_v52  ;;  %v1631_v36 = vshll.u32 %v1627_v15, 16 }
  0xb6   : > { %vm1633_vm8 = vc.u32 %v1625_v30, %v1629_v21  ;;  %v1635_v38 = vadd.s32 %v1629_v21, %v1625_v30  ;;  %v1608_v42 = vshrl.u32 %v1604_v58, 16  ;;  %v1089_v46 = vshrl.u32 %v1088_v25, 23 }
  0xb7   : > { %vm1611_vm6 = vc.u32 %v1603_v9, %v1607_v10  ;;  %v1613_v20 = vadd.s32 %v1607_v10, %v1603_v9  ;;  %v1634_v45 = vsel %vm1633_vm8, 1, %v11010_v4  ;;  %v1586_v18 = vsel %vm1582_vm1, %v1566_v23, %v6445_v16 }
  0xb8   : > { %v386_v61 = vpop.permute.xlu1 %385  ;;  %v1612_v26 = vsel %vm1611_vm6, 1, %v11010_v4  ;;  %v1636_v48 = vadd.s32 %v1634_v45, %v1628_v35  ;;  %vm1637_vm9 = vc.u32 %v1635_v38, %v1631_v36  ;;  %v1588_v52 = vsel %vm1584_vm3, %v6447_v17, %v1587_v31 }
  0xb9   : > { %v411_v57 = vadd.f32 %v386_v61, %v363_v39  ;;  %v1614_v29 = vadd.s32 %v1612_v26, %v1606_v14  ;;  %vm1615_vm7 = vc.u32 %v1613_v20, %v1609_v24  ;;  %v5930_v39 = vadd.s32 4294967169, %v1244_v22 }
  0xba   : > { %v1616_v56 = vsel %vm1615_vm7, 1, %v11010_v4  ;;  %v1610_v54 = vshrl.u32 %v1605_v63, 16  ;;  %v1638_v47 = vsel %vm1637_vm9, 1, %v11010_v4  ;;  %v1630_v59 = vshrl.u32 %v1626_v1, 16 }
  0xbb   : > { %v6496_v19 = vadd.f32 %v452_v55, %v411_v57  ;;  %v1618_v34 = vadd.s32 %v1616_v56, %v1614_v29  ;;  %v1640_v61 = vadd.s32 %v1638_v47, %v1636_v48  ;;  %v6518_v7 = vsub.s32 32, %v6501_v27 }
  0xbc   : > { %v1250_v57 = vadd.s32 1, %v5930_v39  ;;  %v5927_v9 = vadd.s32 4294967169, %v1089_v46  ;;  %v1589_v10 = vsel %vm1583_vm4, %v1586_v18, %v1588_v52  ;;  %v1632_v14 = vshrl.u32 %v1627_v15, 16  ;;  %v422_v46 = vpop.permute.xlu2 %421 }
  0xbd   : > { %v933_v37 = vand.u32 2139095040, %v6496_v19  ;;  %v1619_v44 = vadd.s32 %v1618_v34, %v1608_v42  ;;  %v1641_v17 = vadd.s32 %v1640_v61, %v1630_v59  ;;  %v6524_v63 = vadd.s32 %v1635_v38, %v1631_v36 }
  0xbe   : > { %v1402_v20 = vand.u32 8388607, %v1395_v3  ;;  %v1643_v23 = vmul.u32 %v6460_v28, %v1589_v10  ;;  %v1416_v60 = vshrl.u32 %v11012_v0, %v6518_v7  ;;  %v1419_v15 = vshrl.u32 %v11019_v6, %v6518_v7 }
  0xbf   : > { %v934_v55 = vshrl.u32 %v933_v37, 23  ;;  %v6520_v16 = vadd.s32 %v1619_v44, %v1610_v54  ;;  %v1642_v22 = vadd.s32 %v1641_v17, %v1632_v14  ;;  %vm1251_vm11 = vcmp.gt.s32.totalorder %v1250_v57, 0  ;;  %v322_v37 = vpop.permute.xlu0 %321 }
  0xc0   : > { %v381_v41 = vpop.permute.xlu1 %380  ;;  %v1095_v24 = vadd.s32 1, %v5927_v9  ;;  %v1418_v28 = vshll.u32 %v11012_v0, %v6501_v27  ;;  %v1424_v25 = vshll.u32 %v11027_v8, %v6501_v27  ;;  %v1425_v29 = vshrl.u32 %v11025_v13, %v6518_v7 }
  0xc1   : > { %v410_v58 = vadd.f32 %v381_v41, %v362_v50  ;;  %v6528_v50 = vshrl.u32 %v1407_v11, 5  ;;  %v5924_v1 = vadd.s32 4294967169, %v934_v55  ;;  %vm1645_vm10 = vc.u32 %v6520_v16, %v6524_v63 }
  0xc2   : > { %v1646_v26 = vadd.s32 1, %v1642_v22  ;;  %v1422_v11 = vshrl.u32 %v11027_v8, %v6518_v7  ;;  %v1421_v36 = vshll.u32 %v11019_v6, %v6501_v27  ;;  %v6554_v39 = vor.u32 %v1419_v15, %v1418_v28 }
  0xc3   : > { %v6530_v21 = vadd.f32 %v451_v12, %v410_v58  ;;  %v1415_v12 = vshll.u32 %v11033_v62, %v6501_v27  ;;  %v940_v30 = vadd.s32 1, %v5924_v1  ;;  %v1426_v41 = vor.u32 %v1425_v29, %v1424_v25 }
  0xc4   : > { %v1647_v35 = vsel %vm1645_vm10, %v1646_v26, %v1642_v22  ;;  %v1252_v42 = vsel %vm1251_vm11, %v1250_v57, 0  ;;  %v1403_v34 = vor.u32 8388608, %v1402_v20  ;;  %v1423_v45 = vor.u32 %v1422_v11, %v1421_v36 }
  0xc5   : > { %v778_v31 = vand.u32 2139095040, %v6530_v21  ;;  %v1648_v56 = vadd.s32 %v1647_v35, %v1643_v23  ;;  %v6552_v38 = vor.u32 %v1416_v60, %v1415_v12  ;;  %vm1096_vm12 = vcmp.gt.s32.totalorder %v1095_v24, 0 }
  0xc6   : > { %v1412_v48 = vshll.u32 %v11031_v2, %v6501_v27  ;;  %v1413_v52 = vshrl.u32 %v11033_v62, %v6518_v7  ;;  %vm941_vm13 = vcmp.gt.s32.totalorder %v940_v30, 0  ;;  %vm1427_vm14 = vcmp.lt.s32.totalorder %v6528_v50, 1 }
  0xc7   : > { %v1649_v18 = vadd.s32 536870912, %v1648_v56  ;;  %v779_v54 = vshrl.u32 %v778_v31, 23  ;;  %vm1430_vm15 = vcmp.lt.s32.totalorder %v6528_v50, 4  ;;  %vm1429_vm0 = vcmp.lt.s32.totalorder %v6528_v50, 3  ;;  %v371_v28 = vpop.permute.xlu0 %370 }
  0xc8   : > { %v1439_v47 = vsel %vm1427_vm14, %v6552_v38, %v6554_v39  ;;  %v1440_v27 = vsel %vm1430_vm15, %v1426_v41, 1326507024  ;;  %v361_v55 = vmul.f32 %v6407_v32, %v327_v49  ;;  %v450_v58 = vmul.f32 %v6409_v33, %v422_v46  ;;  %v376_v59 = vpop.permute.xlu1 %375 }
  0xc9   : > { %v6563_v44 = vshrl.u32 %v1649_v18, 30  ;;  %v1441_v61 = vsel %vm1429_vm0, %v1423_v45, %v1440_v27  ;;  %v1097_v57 = vsel %vm1096_vm12, %v1095_v24, 0  ;;  %v1414_v10 = vor.u32 %v1413_v52, %v1412_v48 }
  0xca   : > { %vm1428_vm1 = vcmp.lt.s32.totalorder %v6528_v50, 2  ;;  %v6579_v14 = vand.u32 31, %v1252_v42  ;;  %v942_v17 = vsel %vm941_vm13, %v940_v30, 0  ;;  %v6584_v20 = vshll.u32 %v1403_v34, 8 }
  0xcb   : > { %v1651_v9 = vshll.u32 %v6563_v44, 30  ;;  %v1442_v49 = vsel %vm1428_vm1, %v1439_v47, %v1441_v61  ;;  %v5921_v1 = vadd.s32 4294967169, %v779_v54  ;;  %v409_v22 = vadd.f32 %v376_v59, %v361_v55 }
  0xcc   : > { %v1436_v60 = vsel %vm1430_vm15, %v1423_v45, 920167782  ;;  %v6588_v15 = vshrl.u32 %v1252_v42, 5  ;;  %v6590_v24 = vand.u32 31, %v1097_v57  ;;  %v360_v26 = vmul.f32 %v6407_v32, %v322_v37 }
  0xcd   : > { %v1652_v23 = vsub.s32 %v1648_v56, %v1651_v9  ;;  %v1446_v11 = vand.u32 65535, %v1442_v49  ;;  %v6593_v12 = vand.u32 31, %v942_v17  ;;  %v1435_v29 = vsel %vm1427_vm14, %v1414_v10, %v6552_v38 }
  0xce   : > { %v1437_v30 = vsel %vm1429_vm0, %v6554_v39, %v1436_v60  ;;  %v1444_v31 = vand.u32 65535, %v6584_v20  ;;  %v1445_v35 = vshrl.u32 %v6584_v20, 16  ;;  %v1447_v36 = vshrl.u32 %v1442_v49, 16 }
  0xcf   : > { %vm1653_vm2 = vcmp.lt.s32.totalorder %v1652_v23, 0  ;;  %v1654_v25 = vsub.s32 0, %v1652_v23  ;;  %v6604_v32 = vsub.s32 32, %v6579_v14  ;;  %v785_v37 = vadd.s32 1, %v5921_v1 }
  0xd0   : > { %v6606_v56 = vadd.f32 %v450_v58, %v409_v22  ;;  %v6608_v42 = vadd.f32 %v371_v28, %v360_v26  ;;  %vm1552_vm3 = vcmp.lt.s32.totalorder %v6415_v40, 0  ;;  %v1449_v45 = vmul.u32 %v1447_v36, %v1444_v31 }
  0xd1   : > { %v1655_v41 = vsel %vm1653_vm2, %v1654_v25, %v1652_v23  ;;  %v6611_v46 = vmul.u32 %v1446_v11, %v1445_v35  ;;  %v6613_v18 = vshrl.u32 %v1097_v57, 5  ;;  %v6616_v48 = vsub.s32 32, %v6590_v24 }
  0xd2   : > { %v1656_v34 = vclz %v1655_v41  ;;  %v1411_v52 = vshrl.u32 %v11031_v2, %v6518_v7  ;;  %v1438_v54 = vsel %vm1428_vm1, %v1435_v29, %v1437_v30  ;;  %v6622_v47 = vshrl.u32 %v942_v17, 5 }
  0xd3   : > { %v6625_v27 = vsub.s32 32, %v6593_v12  ;;  %v1644_v55 = vadd.s32 %v6524_v63, %v6520_v16  ;;  %vm786_vm4 = vcmp.gt.s32.totalorder %v785_v37, 0  ;;  %v623_v59 = vand.u32 2139095040, %v6606_v56 }
  0xd4   : > { %v5937_v58 = vadd.s32 4294967294, %v1656_v34  ;;  %vm6632_vm5 = vcmp.le.f32.partialorder %v1550_v53, 0.7853982  ;;  %v1448_v7 = vmul.u32 %v1446_v11, %v1444_v31  ;;  %v1452_v57 = vshll.u32 %v1449_v45, 16 }
  0xd5   : > { %v1674_v9 = vsub.s32 4, %v6563_v44  ;;  %v1454_v17 = vshll.u32 %v6611_v46, 16  ;;  %v1468_v49 = vand.u32 65535, %v1438_v54  ;;  %v1469_v63 = vshrl.u32 %v1438_v54, 16 }
  0xd6   : > { %vm5938_vm6 = vcmp.lt.s32.totalorder %v5937_v58, 0  ;;  %vm1456_vm7 = vc.u32 %v1448_v7, %v1452_v57  ;;  %v1458_v16 = vadd.s32 %v1452_v57, %v1448_v7  ;;  %v1431_v53 = vsel %vm1427_vm14, %v1411_v52, %v1414_v10 }
  0xd7   : > { %v1659_v1 = vsel %vm5938_vm6, 0, %v5937_v58  ;;  %v1451_v26 = vmul.u32 %v1447_v36, %v1445_v35  ;;  %v1432_v11 = vsel %vm1430_vm15, %v6554_v39, 2102212464  ;;  %v1457_v25 = vsel %vm1456_vm7, 1, %v11010_v4 }
  0xd8   : > { %v1660_v22 = vsub.s32 32, %v1659_v1  ;;  %v1664_v60 = vsub.s32 4294967266, %v1659_v1  ;;  %v1661_v28 = vshll.u32 %v1652_v23, %v1659_v1  ;;  %vm1460_vm8 = vc.u32 %v1458_v16, %v1454_v17 }
  0xd9   : > { %v1459_v41 = vadd.s32 %v1457_v25, %v1451_v26  ;;  %v1461_v34 = vsel %vm1460_vm8, 1, %v11010_v4  ;;  %v787_v54 = vsel %vm786_vm4, %v785_v37, 0  ;;  %v1675_v10 = vsel %vm1552_vm3, %v1674_v9, %v6563_v44 }
  0xda   : > { %v1662_v29 = vshrl.u32 %v1644_v55, %v1660_v22  ;;  %v1665_v30 = vadd.s32 127, %v1664_v60  ;;  %v1471_v36 = vmul.u32 %v1469_v63, %v1444_v31  ;;  %v1472_v23 = vmul.u32 %v1468_v49, %v1445_v35 }
  0xdb   : > { %v1433_v39 = vsel %vm1429_vm0, %v6552_v38, %v1432_v11  ;;  %v1463_v7 = vadd.s32 %v1461_v34, %v1459_v41  ;;  %v1453_v55 = vshrl.u32 %v1449_v45, 16  ;;  %v1470_v57 = vmul.u32 %v1468_v49, %v1444_v31 }
  0xdc   : > { %v1663_v52 = vor.u32 %v1662_v29, %v1661_v28  ;;  %v1666_v58 = vshll.u32 %v1665_v30, 23  ;;  %v1474_v17 = vshll.u32 %v1471_v36, 16  ;;  %v1240_v1 = vand.u32 2147483647, %v6482_v43 }
  0xdd   : > { %v6653_v16 = vshrl.u32 %v787_v54, 5  ;;  %v1677_v44 = vsel %vm6632_vm5, 0, %v1675_v10  ;;  %v1473_v9 = vmul.u32 %v1469_v63, %v1445_v35  ;;  %v1464_v22 = vadd.s32 %v1463_v7, %v1453_v55 }
  0xde   : > { %v1667_v37 = vor.u32 4788187, %v1666_v58  ;;  %v1476_v60 = vshll.u32 %v1472_v23, 16  ;;  %vm1478_vm9 = vc.u32 %v1470_v57, %v1474_v17  ;;  %v1480_v26 = vadd.s32 %v1474_v17, %v1470_v57 }
  0xdf   : > { %v1670_v25 = vcvt.s32.f32 %v1663_v52  ;;  %v1479_v38 = vsel %vm1478_vm9, 1, %v11010_v4  ;;  %v1247_v31 = vand.u32 8388607, %v1240_v1  ;;  %v6660_v45 = vand.u32 31, %v787_v54 }
  0xe0   : > { %v1668_v28 = vand.u32 2147483647, %v1667_v37  ;;  %v1455_v49 = vshrl.u32 %v6611_v46, 16  ;;  %v1481_v11 = vadd.s32 %v1479_v38, %v1473_v9  ;;  %vm1482_vm10 = vc.u32 %v1480_v26, %v1476_v60 }
  0xe1   : > { %v1694_v30 = vadd.s32 3, %v1677_v44  ;;  %v1434_v35 = vsel %vm1428_vm1, %v1431_v53, %v1433_v39  ;;  %v1483_v63 = vsel %vm1482_vm10, 1, %v11010_v4  ;;  %v1475_v34 = vshrl.u32 %v1471_v36, 16 }
  0xe2   : > { %v1671_v29 = vmul.f32 %v1670_v25, %v1668_v28  ;;  %v6666_v41 = vadd.s32 %v1464_v22, %v1455_v49  ;;  %v1477_v10 = vshrl.u32 %v1472_v23, 16  ;;  %v1485_v52 = vadd.s32 %v1483_v63, %v1481_v11 }
  0xe3   : > { %v6668_v7 = vadd.s32 %v1480_v26, %v1476_v60  ;;  %v1248_v54 = vor.u32 8388608, %v1247_v31  ;;  %v1258_v46 = vshrl.u32 %v11033_v62, %v6604_v32  ;;  %v1261_v57 = vshrl.u32 %v11012_v0, %v6604_v32 }
  0xe4   : > { %v1672_v58 = vxor.u32 2147483648, %v1671_v29  ;;  %v1486_v55 = vadd.s32 %v1485_v52, %v1475_v34  ;;  %v1264_v50 = vshrl.u32 %v11019_v6, %v6604_v32  ;;  %v1267_v53 = vshrl.u32 %v11027_v8, %v6604_v32 }
  0xe5   : > { %v1260_v23 = vshll.u32 %v11033_v62, %v6579_v14  ;;  %v1266_v39 = vshll.u32 %v11019_v6, %v6579_v14  ;;  %v1270_v17 = vshrl.u32 %v11025_v13, %v6604_v32  ;;  %v1263_v9 = vshll.u32 %v11012_v0, %v6579_v14 }
  0xe6   : > { %v1673_v36 = vsel %vm1552_vm3, %v1672_v58, %v1671_v29  ;;  %v1487_v44 = vadd.s32 %v1486_v55, %v1477_v10  ;;  %v1269_v22 = vshll.u32 %v11027_v8, %v6579_v14  ;;  %vm1490_vm11 = vc.u32 %v6666_v41, %v6668_v7 }
  0xe7   : > { %v1676_v37 = vsel %vm6632_vm5, %v6415_v40, %v1673_v36  ;;  %v1257_v26 = vshll.u32 %v11031_v2, %v6579_v14  ;;  %v1268_v28 = vor.u32 %v1267_v53, %v1266_v39  ;;  %v6697_v38 = vor.u32 %v1261_v57, %v1260_v23 }
  0xe8   : > { %v1678_v60 = vmul.f32 %v1676_v37, %v1676_v37  ;;  %v1491_v25 = vadd.s32 1, %v1487_v44  ;;  %v6699_v61 = vor.u32 %v1264_v50, %v1263_v9  ;;  %v1271_v31 = vor.u32 %v1270_v17, %v1269_v22 }
  0xe9   : > { %v6703_v49 = vshrl.u32 %v623_v59, 23  ;;  %v1488_v63 = vmul.u32 %v6584_v20, %v1434_v35  ;;  %v6706_v10 = vor.u32 %v1258_v46, %v1257_v26  ;;  %vm1272_vm12 = vcmp.lt.s32.totalorder %v6588_v15, 1 }
  0xea   : > { %v1679_v11 = vmul.f32 -0.001358992, %v1678_v60  ;;  %v1686_v29 = vmul.f32 -0.00019511016, %v1678_v60  ;;  %v1492_v34 = vsel %vm1490_vm11, %v1491_v25, %v1487_v44  ;;  %vm1275_vm13 = vcmp.lt.s32.totalorder %v6588_v15, 4 }
  0xeb   : > { %v1493_v58 = vadd.s32 %v1492_v34, %v1488_v63  ;;  %v1281_v55 = vsel %vm1275_vm13, %v1268_v28, 920167782  ;;  %v1695_v57 = vand.u32 3, %v1694_v30  ;;  %v1284_v59 = vsel %vm1272_vm12, %v6697_v38, %v6699_v61 }
  0xec   : > { %v1680_v14 = vadd.f32 0.041655596, %v1679_v11  ;;  %v1687_v52 = vadd.f32 0.008332121, %v1686_v29  ;;  %v1285_v20 = vsel %vm1275_vm13, %v1271_v31, 1326507024  ;;  %v1280_v30 = vsel %vm1272_vm12, %v6706_v10, %v6697_v38 }
  0xed   : > { %v6718_v35 = vshll.u32 %v1248_v54, 8  ;;  %v1494_v53 = vadd.s32 536870912, %v1493_v58  ;;  %vm1274_vm14 = vcmp.lt.s32.totalorder %v6588_v15, 3  ;;  %vm1273_vm15 = vcmp.lt.s32.totalorder %v6588_v15, 2 }
  0xee   : > { %v1681_v46 = vmul.f32 %v1680_v14, %v1678_v60  ;;  %v1688_v50 = vmul.f32 %v1687_v52, %v1678_v60  ;;  %v1282_v36 = vsel %vm1274_vm14, %v6699_v61, %v1281_v55  ;;  %v1286_v54 = vsel %vm1274_vm14, %v1268_v28, %v1285_v20 }
  0xef   : > { %v6731_v17 = vshrl.u32 %v1494_v53, 30  ;;  %v1287_v44 = vsel %vm1273_vm15, %v1284_v59, %v1286_v54  ;;  %v1289_v9 = vand.u32 65535, %v6718_v35  ;;  %v1290_v22 = vshrl.u32 %v6718_v35, 16 }
  0xf0   : > { %v1682_v23 = vadd.f32 -0.4999988, %v1681_v46  ;;  %v1689_v39 = vadd.f32 -0.16666654, %v1688_v50  ;;  %v1291_v26 = vand.u32 65535, %v1287_v44  ;;  %v1292_v25 = vshrl.u32 %v1287_v44, 16 }
  0xf1   : > { %v1496_v29 = vshll.u32 %v6731_v17, 30  ;;  %v1283_v28 = vsel %vm1273_vm15, %v1280_v30, %v1282_v36  ;;  %vm1693_vm0 = vweird.f32 %v6415_v40  ;;  %vm1696_vm1 = vcmp.lt.s32.totalorder %v1695_v57, 2 }
  0xf2   : > { %v1683_v31 = vmul.f32 %v1682_v23, %v1678_v60  ;;  %v1690_v11 = vmul.f32 %v1689_v39, %v1678_v60  ;;  %vm1697_vm2 = vcmp.eq.s32.totalorder %v1695_v57, 0  ;;  %v1294_v63 = vmul.u32 %v1292_v25, %v1289_v9 }
  0xf3   : > { %v6741_v34 = vmul.u32 %v1291_v26, %v1290_v22  ;;  %vm1700_vm3 = vcmp.eq.s32.totalorder %v1695_v57, 2  ;;  %v1497_v55 = vsub.s32 %v1493_v58, %v1496_v29  ;;  %v1256_v59 = vshrl.u32 %v11031_v2, %v6604_v32 }
  0xf4   : > { %v1684_v14 = vadd.f32 1.0, %v1683_v31  ;;  %v1691_v52 = vadd.f32 1.0, %v1690_v11  ;;  %v1293_v60 = vmul.u32 %v1291_v26, %v1289_v9  ;;  %v1297_v20 = vshll.u32 %v1294_v63, 16 }
  0xf5   : > { %v1314_v46 = vshrl.u32 %v1283_v28, 16  ;;  %vm1498_vm4 = vcmp.lt.s32.totalorder %v1497_v55, 0  ;;  %v1499_v30 = vsub.s32 0, %v1497_v55  ;;  %v1296_v36 = vmul.u32 %v1292_v25, %v1290_v22 }
  0xf6   : > { %v1692_v50 = vmul.f32 %v1691_v52, %v1676_v37  ;;  %v1701_v53 = vxor.u32 2147483648, %v1684_v14  ;;  %v1299_v54 = vshll.u32 %v6741_v34, 16  ;;  %vm1301_vm5 = vc.u32 %v1293_v60, %v1297_v20 }
  0xf7   : > { %v1303_v23 = vadd.s32 %v1297_v20, %v1293_v60  ;;  %v1500_v44 = vsel %vm1498_vm4, %v1499_v30, %v1497_v55  ;;  %v1302_v31 = vsel %vm1301_vm5, 1, %v11010_v4  ;;  %v1313_v58 = vand.u32 65535, %v1283_v28 }
  0xf8   : > { %v1698_v39 = vxor.u32 2147483648, %v1692_v50  ;;  %vm1397_vm6 = vcmp.lt.s32.totalorder %v6420_v51, 0  ;;  %v1501_v32 = vclz %v1500_v44  ;;  %v1277_v37 = vsel %vm1275_vm13, %v6699_v61, 2102212464 }
  0xf9   : > { %v1304_v26 = vadd.s32 %v1302_v31, %v1296_v36  ;;  %vm1305_vm7 = vc.u32 %v1303_v23, %v1299_v54  ;;  %v1702_v11 = vsel %vm1700_vm3, %v1701_v53, %v1692_v50  ;;  %v1316_v52 = vmul.u32 %v1314_v46, %v1289_v9 }
  0xfa   : > { %v1699_v25 = vsel %vm1697_vm2, %v1684_v14, %v1698_v39  ;;  %v1306_v29 = vsel %vm1305_vm7, 1, %v11010_v4  ;;  %v1489_v28 = vadd.s32 %v6668_v7, %v6666_v41  ;;  %v5934_v20 = vadd.s32 4294967294, %v1501_v32 }
  0xfb   : > { %v1703_v60 = vsel %vm1696_vm1, %v1699_v25, %v1702_v11  ;;  %v1276_v30 = vsel %vm1272_vm12, %v1256_v59, %v6706_v10  ;;  %vm6764_vm8 = vcmp.le.f32.partialorder %v1395_v3, 0.7853982  ;;  %v1298_v50 = vshrl.u32 %v1294_v63, 16 }
  0xfc   : > { %v1704_v61 = vsel %vm1693_vm0, nan, %v1703_v60  ;;  %v1308_v57 = vadd.s32 %v1306_v29, %v1304_v26  ;;  %v1317_v53 = vmul.u32 %v1313_v58, %v1290_v22  ;;  %vm5935_vm9 = vcmp.lt.s32.totalorder %v5934_v20, 0 }
  0xfd   : > { %1794 = vmatpush.msra.mxu0 %v1704_v61  ;;  %v1278_v41 = vsel %vm1274_vm14, %v6697_v38, %v1277_v37  ;;  %v1315_v7 = vmul.u32 %v1313_v58, %v1289_v9  ;;  %v1319_v10 = vshll.u32 %v1316_v52, 16  ;;  %v1504_v59 = vsel %vm5935_vm9, 0, %v5934_v20 }
  0xfe   : > { %v1519_v40 = vsub.s32 4, %v6731_v17  ;;  %v1300_v36 = vshrl.u32 %v6741_v34, 16  ;;  %v1309_v3 = vadd.s32 %v1308_v57, %v1298_v50  ;;  %v1505_v54 = vsub.s32 32, %v1504_v59 }
  0xff   : > { %v1509_v23 = vsub.s32 4294967266, %v1504_v59  ;;  %v1318_v39 = vmul.u32 %v1314_v46, %v1290_v22  ;;  %vm1323_vm10 = vc.u32 %v1315_v7, %v1319_v10  ;;  %v1506_v63 = vshll.u32 %v1497_v55, %v1504_v59 }
 0x100   : > { %v1321_v44 = vshll.u32 %v1317_v53, 16  ;;  %v1324_v31 = vsel %vm1323_vm10, 1, %v11010_v4  ;;  %v1325_v32 = vadd.s32 %v1319_v10, %v1315_v7  ;;  %v1507_v26 = vshrl.u32 %v1489_v28, %v1505_v54 }
 0x101   : > { %v1510_v25 = vadd.s32 127, %v1509_v23  ;;  %v1326_v38 = vadd.s32 %v1324_v31, %v1318_v39  ;;  %v1085_v9 = vand.u32 2147483647, %v6493_v5  ;;  %v6776_v58 = vsub.s32 32, %v6660_v45 }
 0x102   : > { %v1520_v34 = vsel %vm1397_vm6, %v1519_v40, %v6731_v17  ;;  %v6781_v37 = vadd.s32 %v1309_v3, %v1300_v36  ;;  %vm1327_vm11 = vc.u32 %v1325_v32, %v1321_v44  ;;  %v6784_v22 = vadd.s32 4294967169, %v6703_v49  ;;  %v418_v3 = vpop.permute.xlu1 %417 }
 0x103   : > { %v1508_v55 = vor.u32 %v1507_v26, %v1506_v63  ;;  %v1511_v46 = vshll.u32 %v1510_v25, 23  ;;  %v1328_v11 = vsel %vm1327_vm11, 1, %v11010_v4  ;;  %v1279_v29 = vsel %vm1273_vm15, %v1276_v30, %v1278_v41 }
 0x104   : > { %v1320_v60 = vshrl.u32 %v1316_v52, 16  ;;  %v6789_v28 = vadd.s32 %v1325_v32, %v1321_v44  ;;  %v1330_v20 = vadd.s32 %v1328_v11, %v1326_v38  ;;  %v1522_v17 = vsel %vm6764_vm8, 0, %v1520_v34 }
 0x105   : > { %v1512_v61 = vor.u32 4788187, %v1511_v46  ;;  %v1322_v50 = vshrl.u32 %v1317_v53, 16  ;;  %v1092_v49 = vand.u32 8388607, %v1085_v9  ;;  %v1515_v57 = vcvt.s32.f32 %v1508_v55 }
 0x106   : > { %v1331_v7 = vadd.s32 %v1330_v20, %v1320_v60  ;;  %vm1335_vm12 = vc.u32 %v6781_v37, %v6789_v28  ;;  %v1106_v15 = vshrl.u32 %v11012_v0, %v6616_v48  ;;  %v1103_v30 = vshrl.u32 %v11033_v62, %v6616_v48 }
 0x107   : > { %v1513_v52 = vand.u32 2147483647, %v1512_v61  ;;  %v1105_v41 = vshll.u32 %v11033_v62, %v6590_v24  ;;  %v1109_v53 = vshrl.u32 %v11019_v6, %v6616_v48  ;;  %v1108_v59 = vshll.u32 %v11012_v0, %v6590_v24 }
 0x108   : > { %v1332_v10 = vadd.s32 %v1331_v7, %v1322_v50  ;;  %v1111_v40 = vshll.u32 %v11019_v6, %v6590_v24  ;;  %v1112_v36 = vshrl.u32 %v11027_v8, %v6616_v48  ;;  %v1102_v23 = vshll.u32 %v11031_v2, %v6590_v24 }
 0x109   : > { %v1516_v54 = vmul.f32 %v1515_v57, %v1513_v52  ;;  %v1114_v39 = vshll.u32 %v11027_v8, %v6590_v24  ;;  %v1115_v63 = vshrl.u32 %v11025_v13, %v6616_v48  ;;  %v6817_v31 = vor.u32 %v1106_v15, %v1105_v41 }
 0x10a   : > { %v1336_v44 = vadd.s32 1, %v1332_v10  ;;  %v1110_v32 = vor.u32 %v1109_v53, %v1108_v59  ;;  %v1113_v26 = vor.u32 %v1112_v36, %v1111_v40  ;;  %v1333_v38 = vmul.u32 %v6718_v35, %v1279_v29 }
 0x10b   : > { %v1517_v25 = vxor.u32 2147483648, %v1516_v54  ;;  %v1093_v34 = vor.u32 8388608, %v1092_v49  ;;  %v1116_v55 = vor.u32 %v1115_v63, %v1114_v39  ;;  %v6821_v46 = vmul.f32 %v6409_v33, %v418_v3 }
 0x10c   : > { %v1337_v24 = vsel %vm1335_vm12, %v1336_v44, %v1332_v10  ;;  %v6826_v11 = vor.u32 %v1103_v30, %v1102_v23  ;;  %vm1120_vm13 = vcmp.lt.s32.totalorder %v6613_v18, 4  ;;  %vm1117_vm14 = vcmp.lt.s32.totalorder %v6613_v18, 1 }
 0x10d   : > { %v1518_v60 = vsel %vm1397_vm6, %v1517_v25, %v1516_v54  ;;  %v1338_v20 = vadd.s32 %v1337_v24, %v1333_v38  ;;  %v1126_v35 = vsel %vm1120_vm13, %v1113_v26, 920167782  ;;  %v1539_v29 = vadd.s32 3, %v1522_v17 }
 0x10e   : > { %v6837_v33 = vsel %vm6764_vm8, %v6420_v51, %v1518_v60  ;;  %vm1119_vm15 = vcmp.lt.s32.totalorder %v6613_v18, 3  ;;  %v1129_v61 = vsel %vm1117_vm14, %v6817_v31, %v1110_v32  ;;  %v1130_v57 = vsel %vm1120_vm13, %v1116_v55, 1326507024 }
 0x10f   : > { %v1523_v50 = vmul.f32 %v6837_v33, %v6837_v33  ;;  %v1339_v49 = vadd.s32 536870912, %v1338_v20  ;;  %v6847_v7 = vshll.u32 %v1093_v34, 8  ;;  %vm1118_vm0 = vcmp.lt.s32.totalorder %v6613_v18, 2 }
 0x110   : > { %v1125_v14 = vsel %vm1117_vm14, %v6826_v11, %v6817_v31  ;;  %v1127_v17 = vsel %vm1119_vm15, %v1110_v32, %v1126_v35  ;;  %v1131_v15 = vsel %vm1119_vm15, %v1113_v26, %v1130_v57  ;;  %v6871_v63 = vadd.s32 1, %v6784_v22 }
 0x111   : > { %v1524_v52 = vmul.f32 -0.001358992, %v1523_v50  ;;  %v1531_v30 = vmul.f32 -0.00019511016, %v1523_v50  ;;  %v1340_v41 = vshrl.u32 %v1339_v49, 30  ;;  %v1132_v53 = vsel %vm1118_vm0, %v1129_v61, %v1131_v15 }
 0x112   : > { %v6861_v10 = vand.u32 65535, %v6847_v7  ;;  %v6864_v59 = vshrl.u32 %v6847_v7, 16  ;;  %v1136_v40 = vand.u32 65535, %v1132_v53  ;;  %v1137_v36 = vshrl.u32 %v1132_v53, 16 }
 0x113   : > { %v1525_v3 = vadd.f32 0.041655596, %v1524_v52  ;;  %v1532_v54 = vadd.f32 0.008332121, %v1531_v30  ;;  %v1341_v23 = vshll.u32 %v1340_v41, 30  ;;  %v6868_v39 = vsel %vm1118_vm0, %v1125_v14, %v1127_v17 }
 0x114   : > { %v6873_v44 = vand.u32 3, %v1539_v29  ;;  %v1139_v26 = vmul.u32 %v1137_v36, %v6861_v10  ;;  %v6877_v25 = vmul.u32 %v1136_v40, %v6864_v59  ;;  %vm1242_vm1 = vcmp.lt.s32.totalorder %v6482_v43, 0 }
 0x115   : > { %v1526_v38 = vmul.f32 %v1525_v3, %v1523_v50  ;;  %v1533_v34 = vmul.f32 %v1532_v54, %v1523_v50  ;;  %v6880_v55 = vsub.s32 %v1338_v20, %v1341_v23  ;;  %v1101_v24 = vshrl.u32 %v11031_v2, %v6616_v48 }
 0x116   : > { %v1122_v22 = vsel %vm1120_vm13, %v1110_v32, 2102212464  ;;  %v1138_v60 = vmul.u32 %v1136_v40, %v6861_v10  ;;  %v1142_v35 = vshll.u32 %v1139_v26, 16  ;;  %v1159_v29 = vshrl.u32 %v6868_v39, 16 }
 0x117   : > { %v1527_v61 = vadd.f32 -0.4999988, %v1526_v38  ;;  %v1534_v49 = vadd.f32 -0.16666654, %v1533_v34  ;;  %vm1343_vm2 = vcmp.lt.s32.totalorder %v6880_v55, 0  ;;  %v1344_v57 = vsub.s32 0, %v6880_v55 }
 0x118   : > { %vm1542_vm3 = vcmp.eq.s32.totalorder %v6873_v44, 0  ;;  %v1141_v20 = vmul.u32 %v1137_v36, %v6864_v59  ;;  %v1144_v48 = vshll.u32 %v6877_v25, 16  ;;  %vm1146_vm4 = vc.u32 %v1138_v60, %v1142_v35 }
 0x119   : > { %v1148_v14 = vadd.s32 %v1142_v35, %v1138_v60  ;;  %v1528_v32 = vmul.f32 %v1527_v61, %v1523_v50  ;;  %v1535_v17 = vmul.f32 %v1534_v49, %v1523_v50  ;;  %vm1541_vm5 = vcmp.lt.s32.totalorder %v6873_v44, 2 }
 0x11a   : > { %v1345_v15 = vsel %vm1343_vm2, %v1344_v57, %v6880_v55  ;;  %v1147_v52 = vsel %vm1146_vm4, 1, %v11010_v4  ;;  %vm1538_vm6 = vweird.f32 %v6420_v51  ;;  %v1364_v53 = vsub.s32 4, %v1340_v41 }
 0x11b   : > { %v1346_v30 = vclz %v1345_v15  ;;  %v1149_v40 = vadd.s32 %v1147_v52, %v1141_v20  ;;  %vm1150_vm7 = vc.u32 %v1148_v14, %v1144_v48  ;;  %vm631_vm8 = vcmp.gt.s32.totalorder %v6871_v63, 0 }
 0x11c   : > { %v1529_v36 = vadd.f32 1.0, %v1528_v32  ;;  %v1536_v3 = vadd.f32 1.0, %v1535_v17  ;;  %vm6900_vm9 = vcmp.le.f32.partialorder %v1240_v1, 0.7853982  ;;  %v1151_v54 = vsel %vm1150_vm7, 1, %v11010_v4 }
 0x11d   : > { %v1158_v23 = vand.u32 65535, %v6868_v39  ;;  %vm1545_vm10 = vcmp.eq.s32.totalorder %v6873_v44, 2  ;;  %v1334_v38 = vadd.s32 %v6789_v28, %v6781_v37  ;;  %v5931_v34 = vadd.s32 4294967294, %v1346_v30 }
 0x11e   : > { %v1121_v60 = vsel %vm1117_vm14, %v1101_v24, %v6826_v11  ;;  %v1537_v35 = vmul.f32 %v1536_v3, %v6837_v33  ;;  %v1546_v1 = vxor.u32 2147483648, %v1529_v36  ;;  %v1153_v61 = vadd.s32 %v1151_v54, %v1149_v40 }
 0x11f   : > { %v1161_v49 = vmul.u32 %v1159_v29, %v6861_v10  ;;  %vm5932_vm11 = vcmp.lt.s32.totalorder %v5931_v34, 0  ;;  %v1365_v39 = vsel %vm1242_vm1, %v1364_v53, %v1340_v41  ;;  %v1123_v57 = vsel %vm1119_vm15, %v6817_v31, %v1122_v22 }
 0x120   : > { %v1143_v37 = vshrl.u32 %v1139_v26, 16  ;;  %v1543_v28 = vxor.u32 2147483648, %v1537_v35  ;;  %v1349_v20 = vsel %vm5932_vm11, 0, %v5931_v34  ;;  %v1145_v48 = vshrl.u32 %v6877_v25, 16 }
 0x121   : > { %v1162_v11 = vmul.u32 %v1158_v23, %v6864_v59  ;;  %v1350_v33 = vsub.s32 32, %v1349_v20  ;;  %v1354_v24 = vsub.s32 4294967266, %v1349_v20  ;;  %v1160_v14 = vmul.u32 %v1158_v23, %v6861_v10 }
 0x122   : > { %v1164_v32 = vshll.u32 %v1161_v49, 16  ;;  %v1544_v17 = vsel %vm1542_vm3, %v1529_v36, %v1543_v28  ;;  %v1547_v41 = vsel %vm1545_vm10, %v1546_v1, %v1537_v35  ;;  %v1154_v15 = vadd.s32 %v1153_v61, %v1143_v37 }
 0x123   : > { %v1163_v31 = vmul.u32 %v1159_v29, %v6864_v59  ;;  %v1548_v26 = vsel %vm1541_vm5, %v1544_v17, %v1547_v41  ;;  %v1351_v25 = vshll.u32 %v6880_v55, %v1349_v20  ;;  %v1352_v22 = vshrl.u32 %v1334_v38, %v1350_v33 }
 0x124   : > { %v1355_v52 = vadd.s32 127, %v1354_v24  ;;  %v1549_v10 = vsel %vm1538_vm6, nan, %v1548_v26  ;;  %v1166_v30 = vshll.u32 %v1162_v11, 16  ;;  %vm1168_vm12 = vc.u32 %v1160_v14, %v1164_v32 }
 0x125   : > { %v1170_v53 = vadd.s32 %v1164_v32, %v1160_v14  ;;  %1795 = vmatpush.msra.mxu0 %v1549_v10  ;;  %v1353_v40 = vor.u32 %v1352_v22, %v1351_v25  ;;  %v1367_v3 = vsel %vm6900_vm9, 0, %v1365_v39  ;;  %v1169_v59 = vsel %vm1168_vm12, 1, %v11010_v4 }
 0x126   : > { %v1356_v36 = vshll.u32 %v1355_v52, 23  ;;  %v6935_v44 = vadd.s32 %v1154_v15, %v1145_v48  ;;  %v1171_v29 = vadd.s32 %v1169_v59, %v1163_v31  ;;  %v930_v55 = vand.u32 2147483647, %v6496_v19 }
 0x127   : > { %vm1172_vm13 = vc.u32 %v1170_v53, %v1166_v30  ;;  %v6941_v51 = vsel %vm631_vm8, %v6871_v63, 0  ;;  %v6945_v54 = vadd.f32 %v6821_v46, %v6608_v42  ;;  %v1124_v34 = vsel %vm1118_vm0, %v1121_v60, %v1123_v57 }
 0x128   : > { %v1357_v23 = vor.u32 4788187, %v1356_v36  ;;  %v1173_v38 = vsel %vm1172_vm13, 1, %v11010_v4  ;;  %v1165_v35 = vshrl.u32 %v1161_v49, 16  ;;  %v6950_v1 = vadd.s32 %v1170_v53, %v1166_v30 }
 0x129   : > { %v1175_v61 = vadd.s32 %v1173_v38, %v1171_v29  ;;  %v1360_v37 = vcvt.s32.f32 %v1353_v40  ;;  %v1384_v28 = vadd.s32 3, %v1367_v3  ;;  %v1167_v20 = vshrl.u32 %v1162_v11, 16 }
 0x12a   : > { %v1358_v39 = vand.u32 2147483647, %v1357_v23  ;;  %vm1180_vm14 = vc.u32 %v6935_v44, %v6950_v1  ;;  %v937_v42 = vand.u32 8388607, %v930_v55  ;;  %v951_v46 = vshrl.u32 %v11012_v0, %v6625_v27 }
 0x12b   : > { %v1176_v63 = vadd.s32 %v1175_v61, %v1165_v35  ;;  %v948_v60 = vshrl.u32 %v11033_v62, %v6625_v27  ;;  %v950_v49 = vshll.u32 %v11033_v62, %v6593_v12  ;;  %v954_v57 = vshrl.u32 %v11019_v6, %v6625_v27 }
 0x12c   : > { %v1361_v18 = vmul.f32 %v1360_v37, %v1358_v39  ;;  %v953_v11 = vshll.u32 %v11012_v0, %v6593_v12  ;;  %v956_v33 = vshll.u32 %v11019_v6, %v6593_v12  ;;  %v957_v24 = vshrl.u32 %v11027_v8, %v6625_v27 }
 0x12d   : > { %v1177_v48 = vadd.s32 %v1176_v63, %v1167_v20  ;;  %v947_v32 = vshll.u32 %v11031_v2, %v6593_v12  ;;  %v959_v17 = vshll.u32 %v11027_v8, %v6593_v12  ;;  %v960_v41 = vshrl.u32 %v11025_v13, %v6625_v27 }
 0x12e   : > { %v1362_v14 = vxor.u32 2147483648, %v1361_v18  ;;  %v6976_v31 = vor.u32 %v951_v46, %v950_v49  ;;  %v6978_v26 = vor.u32 %v954_v57, %v953_v11  ;;  %v958_v25 = vor.u32 %v957_v24, %v956_v33 }
 0x12f   : > { %v1181_v15 = vadd.s32 1, %v1177_v48  ;;  %v1178_v52 = vmul.u32 %v6847_v7, %v1124_v34  ;;  %v938_v10 = vor.u32 8388608, %v937_v42  ;;  %v961_v30 = vor.u32 %v960_v41, %v959_v17 }
 0x130   : > { %v1363_v22 = vsel %vm1242_vm1, %v1362_v14, %v1361_v18  ;;  %v6991_v40 = vor.u32 %v948_v60, %v947_v32  ;;  %vm965_vm15 = vcmp.lt.s32.totalorder %v6622_v47, 4  ;;  %vm962_vm0 = vcmp.lt.s32.totalorder %v6622_v47, 1 }
 0x131   : > { %v6986_v12 = vsel %vm6900_vm9, %v6482_v43, %v1363_v22  ;;  %v1182_v53 = vsel %vm1180_vm14, %v1181_v15, %v1177_v48  ;;  %v971_v7 = vsel %vm965_vm15, %v958_v25, 920167782  ;;  %v6999_v50 = vand.u32 3, %v1384_v28 }
 0x132   : > { %v1368_v36 = vmul.f32 %v6986_v12, %v6986_v12  ;;  %v1183_v3 = vadd.s32 %v1182_v53, %v1178_v52  ;;  %vm963_vm1 = vcmp.lt.s32.totalorder %v6622_v47, 2  ;;  %v974_v59 = vsel %vm962_vm0, %v6976_v31, %v6978_v26 }
 0x133   : > { %v975_v29 = vsel %vm965_vm15, %v961_v30, 1326507024  ;;  %vm964_vm2 = vcmp.lt.s32.totalorder %v6622_v47, 3  ;;  %v970_v35 = vsel %vm962_vm0, %v6991_v40, %v6976_v31  ;;  %v7018_v37 = vshll.u32 %v938_v10, 8 }
 0x134   : > { %v1369_v23 = vmul.f32 -0.001358992, %v1368_v36  ;;  %v1376_v38 = vmul.f32 -0.00019511016, %v1368_v36  ;;  %v1184_v34 = vadd.s32 536870912, %v1183_v3  ;;  %v972_v61 = vsel %vm964_vm2, %v6978_v26, %v971_v7 }
 0x135   : > { %v976_v39 = vsel %vm964_vm2, %v958_v25, %v975_v29  ;;  %v7023_v46 = vand.u32 65535, %v7018_v37  ;;  %v7026_v18 = vshrl.u32 %v7018_v37, 16  ;;  %v973_v33 = vsel %vm963_vm1, %v970_v35, %v972_v61 }
 0x136   : > { %v1370_v28 = vadd.f32 0.041655596, %v1369_v23  ;;  %v1377_v20 = vadd.f32 0.008332121, %v1376_v38  ;;  %v1185_v63 = vshrl.u32 %v1184_v34, 30  ;;  %v977_v42 = vsel %vm963_vm1, %v974_v59, %v976_v39 }
 0x137   : > { %v981_v60 = vand.u32 65535, %v977_v42  ;;  %v982_v49 = vshrl.u32 %v977_v42, 16  ;;  %v7031_v24 = vshrl.u32 %v6941_v51, 5  ;;  %v468_v14 = vand.u32 2139095040, %v6945_v54 }
 0x138   : > { %v1371_v57 = vmul.f32 %v1370_v28, %v1368_v36  ;;  %v1378_v48 = vmul.f32 %v1377_v20, %v1368_v36  ;;  %v1186_v11 = vshll.u32 %v1185_v63, 30  ;;  %vm1087_vm3 = vcmp.lt.s32.totalorder %v6493_v5, 0 }
 0x139   : > { %v984_v32 = vmul.u32 %v982_v49, %v7023_v46  ;;  %v7036_v17 = vmul.u32 %v981_v60, %v7026_v18  ;;  %vm1387_vm4 = vcmp.eq.s32.totalorder %v6999_v50, 0  ;;  %v946_v22 = vshrl.u32 %v11031_v2, %v6625_v27 }
 0x13a   : > { %v1372_v41 = vadd.f32 -0.4999988, %v1371_v57  ;;  %v1379_v15 = vadd.f32 -0.16666654, %v1378_v48  ;;  %v7039_v25 = vsub.s32 %v1183_v3, %v1186_v11  ;;  %v983_v52 = vmul.u32 %v981_v60, %v7023_v46 }
 0x13b   : > { %v987_v10 = vshll.u32 %v984_v32, 16  ;;  %v1004_v30 = vshrl.u32 %v973_v33, 16  ;;  %vm1386_vm5 = vcmp.lt.s32.totalorder %v6999_v50, 2  ;;  %vm1383_vm7 = vweird.f32 %v6482_v43 }
 0x13c   : > { %v1373_v53 = vmul.f32 %v1372_v41, %v1368_v36  ;;  %v1380_v7 = vmul.f32 %v1379_v15, %v1368_v36  ;;  %vm1188_vm6 = vcmp.lt.s32.totalorder %v7039_v25, 0  ;;  %v1189_v59 = vsub.s32 0, %v7039_v25 }
 0x13d   : > { %v986_v3 = vmul.u32 %v982_v49, %v7026_v18  ;;  %v989_v29 = vshll.u32 %v7036_v17, 16  ;;  %vm991_vm8 = vc.u32 %v983_v52, %v987_v10  ;;  %v993_v27 = vadd.s32 %v987_v10, %v983_v52 }
 0x13e   : > { %v1374_v23 = vadd.f32 1.0, %v1373_v53  ;;  %v1381_v38 = vadd.f32 1.0, %v1380_v7  ;;  %v1190_v34 = vsel %vm1188_vm6, %v1189_v59, %v7039_v25  ;;  %v992_v36 = vsel %vm991_vm8, 1, %v11010_v4 }
 0x13f   : > { %v1191_v35 = vclz %v1190_v34  ;;  %v1209_v61 = vsub.s32 4, %v1185_v63  ;;  %v994_v39 = vadd.s32 %v992_v36, %v986_v3  ;;  %vm995_vm9 = vc.u32 %v993_v27, %v989_v29 }
 0x140   : > { %v1382_v28 = vmul.f32 %v1381_v38, %v6986_v12  ;;  %v1391_v20 = vxor.u32 2147483648, %v1374_v23  ;;  %v996_v42 = vsel %vm995_vm9, 1, %v11010_v4  ;;  %v1003_v60 = vand.u32 65535, %v973_v33 }
 0x141   : > { %vm1390_vm10 = vcmp.eq.s32.totalorder %v6999_v50, 2  ;;  %vm7058_vm11 = vcmp.le.f32.partialorder %v1085_v9, 0.7853982  ;;  %v1179_v57 = vadd.s32 %v6950_v1, %v6935_v44  ;;  %v5928_v48 = vadd.s32 4294967294, %v1191_v35 }
 0x142   : > { %v966_v12 = vsel %vm962_vm0, %v946_v22, %v6991_v40  ;;  %v1388_v11 = vxor.u32 2147483648, %v1382_v28  ;;  %v967_v33 = vsel %vm965_vm15, %v6978_v26, 2102212464  ;;  %v998_v41 = vadd.s32 %v996_v42, %v994_v39 }
 0x143   : > { %v1006_v15 = vmul.u32 %v1004_v30, %v7023_v46  ;;  %v1392_v9 = vsel %vm1390_vm10, %v1391_v20, %v1382_v28  ;;  %vm5929_vm12 = vcmp.lt.s32.totalorder %v5928_v48, 0  ;;  %v1210_v52 = vsel %vm1087_vm3, %v1209_v61, %v1185_v63 }
 0x144   : > { %v988_v10 = vshrl.u32 %v984_v32, 16  ;;  %v1389_v44 = vsel %vm1387_vm4, %v1374_v23, %v1388_v11  ;;  %v1194_v1 = vsel %vm5929_vm12, 0, %v5928_v48  ;;  %v1007_v40 = vmul.u32 %v1003_v60, %v7026_v18 }
 0x145   : > { %v1009_v22 = vshll.u32 %v1006_v15, 16  ;;  %v1393_v53 = vsel %vm1386_vm5, %v1389_v44, %v1392_v9  ;;  %v1195_v26 = vsub.s32 32, %v1194_v1  ;;  %v1199_v7 = vsub.s32 4294967266, %v1194_v1 }
 0x146   : > { %v1005_v59 = vmul.u32 %v1003_v60, %v7023_v46  ;;  %v1394_v3 = vsel %vm1383_vm7, nan, %v1393_v53  ;;  %v990_v63 = vshrl.u32 %v7036_v17, 16  ;;  %v999_v32 = vadd.s32 %v998_v41, %v988_v10 }
 0x147   : > { %v1008_v29 = vmul.u32 %v1004_v30, %v7026_v18  ;;  %1796 = vmatpush.msra.mxu0 %v1394_v3  ;;  %v1196_v27 = vshll.u32 %v7039_v25, %v1194_v1  ;;  %v1197_v23 = vshrl.u32 %v1179_v57, %v1195_v26  ;;  %v1200_v38 = vadd.s32 127, %v1199_v7 }
 0x148   : > { %vm1013_vm13 = vc.u32 %v1005_v59, %v1009_v22  ;;  %v1011_v50 = vshll.u32 %v1007_v40, 16  ;;  %v1015_v36 = vadd.s32 %v1009_v22, %v1005_v59  ;;  %v775_v46 = vand.u32 2147483647, %v6530_v21 }
 0x149   : > { %v1014_v34 = vsel %vm1013_vm13, 1, %v11010_v4  ;;  %v1198_v35 = vor.u32 %v1197_v23, %v1196_v27  ;;  %v1201_v43 = vshll.u32 %v1200_v38, 23  ;;  %v968_v17 = vsel %vm964_vm2, %v6976_v31, %v967_v33 }
 0x14a   : > { %v1016_v61 = vadd.s32 %v1014_v34, %v1008_v29  ;;  %v7090_v18 = vand.u32 31, %v6941_v51  ;;  %v1212_v25 = vsel %vm7058_vm11, 0, %v1210_v52  ;;  %v7094_v30 = vadd.s32 %v999_v32, %v990_v63 }
 0x14b   : > { %vm1017_vm14 = vc.u32 %v1015_v36, %v1011_v50  ;;  %v469_v39 = vshrl.u32 %v468_v14, 23  ;;  %v1202_v28 = vor.u32 4788187, %v1201_v43  ;;  %v782_v42 = vand.u32 8388607, %v775_v46 }
 0x14c   : > { %v1018_v20 = vsel %vm1017_vm14, 1, %v11010_v4  ;;  %v969_v31 = vsel %vm963_vm1, %v966_v12, %v968_v17  ;;  %v1010_v51 = vshrl.u32 %v1006_v15, 16  ;;  %v7103_v60 = vadd.s32 %v1015_v36, %v1011_v50 }
 0x14d   : > { %v1020_v57 = vadd.s32 %v1018_v20, %v1016_v61  ;;  %v1203_v48 = vand.u32 2147483647, %v1202_v28  ;;  %v1205_v11 = vcvt.s32.f32 %v1198_v35  ;;  %v1229_v33 = vadd.s32 3, %v1212_v25 }
 0x14e   : > { %v1012_v41 = vshrl.u32 %v1007_v40, 16  ;;  %vm1025_vm15 = vc.u32 %v7094_v30, %v7103_v60  ;;  %v796_v14 = vshrl.u32 %v11012_v0, %v6776_v58  ;;  %v799_v52 = vshrl.u32 %v11019_v6, %v6776_v58 }
 0x14f   : > { %v1021_v9 = vadd.s32 %v1020_v57, %v1010_v51  ;;  %v1206_v47 = vmul.f32 %v1205_v11, %v1203_v48  ;;  %v783_v12 = vor.u32 8388608, %v782_v42  ;;  %v801_v15 = vshll.u32 %v11019_v6, %v6660_v45 }
 0x150   : > { %v802_v10 = vshrl.u32 %v11027_v8, %v6776_v58  ;;  %v793_v1 = vshrl.u32 %v11033_v62, %v6776_v58  ;;  %v795_v40 = vshll.u32 %v11033_v62, %v6660_v45  ;;  %v798_v22 = vshll.u32 %v11012_v0, %v6660_v45 }
 0x151   : > { %v1022_v44 = vadd.s32 %v1021_v9, %v1012_v41  ;;  %v1207_v53 = vxor.u32 2147483648, %v1206_v47  ;;  %v804_v7 = vshll.u32 %v11027_v8, %v6660_v45  ;;  %v805_v59 = vshrl.u32 %v11025_v13, %v6776_v58 }
 0x152   : > { %v803_v26 = vor.u32 %v802_v10, %v801_v15  ;;  %v792_v63 = vshll.u32 %v11031_v2, %v6660_v45  ;;  %v7127_v32 = vor.u32 %v796_v14, %v795_v40  ;;  %v800_v29 = vor.u32 %v799_v52, %v798_v22 }
 0x153   : > { %v1026_v3 = vadd.s32 1, %v1022_v44  ;;  %v5915_v27 = vadd.s32 4294967169, %v469_v39  ;;  %v1208_v23 = vsel %vm1087_vm3, %v1207_v53, %v1206_v47  ;;  %v1023_v38 = vmul.u32 %v7018_v37, %v969_v31 }
 0x154   : > { %v806_v50 = vor.u32 %v805_v59, %v804_v7  ;;  %v7135_v34 = vsel %vm7058_vm11, %v6493_v5, %v1208_v23  ;;  %v7140_v45 = vor.u32 %v793_v1, %v792_v63  ;;  %vm810_vm0 = vcmp.lt.s32.totalorder %v6653_v16, 4 }
 0x155   : > { %v1027_v36 = vsel %vm1025_vm15, %v1026_v3, %v1022_v44  ;;  %v1213_v35 = vmul.f32 %v7135_v34, %v7135_v34  ;;  %vm807_vm1 = vcmp.lt.s32.totalorder %v6653_v16, 1  ;;  %v816_v37 = vsel %vm810_vm0, %v803_v26, 920167782 }
 0x156   : > { %v1028_v43 = vadd.s32 %v1027_v36, %v1023_v38  ;;  %v7148_v49 = vand.u32 3, %v1229_v33  ;;  %v819_v17 = vsel %vm807_vm1, %v7127_v32, %v800_v29  ;;  %v820_v61 = vsel %vm810_vm0, %v806_v50, 1326507024 }
 0x157   : > { %v7155_v25 = vshll.u32 %v783_v12, 8  ;;  %v1214_v39 = vmul.f32 -0.001358992, %v1213_v35  ;;  %v1221_v28 = vmul.f32 -0.00019511016, %v1213_v35  ;;  %vm809_vm2 = vcmp.lt.s32.totalorder %v6653_v16, 3 }
 0x158   : > { %v1029_v20 = vadd.s32 536870912, %v1028_v43  ;;  %vm808_vm3 = vcmp.lt.s32.totalorder %v6653_v16, 2  ;;  %v815_v42 = vsel %vm807_vm1, %v7140_v45, %v7127_v32  ;;  %v817_v31 = vsel %vm809_vm2, %v800_v29, %v816_v37 }
 0x159   : > { %v821_v51 = vsel %vm809_vm2, %v803_v26, %v820_v61  ;;  %v1215_v57 = vadd.f32 0.041655596, %v1214_v39  ;;  %v1222_v48 = vadd.f32 0.008332121, %v1221_v28  ;;  %v824_v41 = vand.u32 65535, %v7155_v25 }
 0x15a   : > { %v7167_v11 = vshrl.u32 %v1029_v20, 30  ;;  %v822_v33 = vsel %vm808_vm3, %v819_v17, %v821_v51  ;;  %v825_v9 = vshrl.u32 %v7155_v25, 16  ;;  %v818_v10 = vsel %vm808_vm3, %v815_v42, %v817_v31 }
 0x15b   : > { %v826_v14 = vand.u32 65535, %v822_v33  ;;  %v827_v52 = vshrl.u32 %v822_v33, 16  ;;  %v1216_v47 = vmul.f32 %v1215_v57, %v1213_v35  ;;  %v1223_v12 = vmul.f32 %v1222_v48, %v1213_v35 }
 0x15c   : > { %v1031_v15 = vshll.u32 %v7167_v11, 30  ;;  %v7176_v44 = vadd.s32 1, %v5915_v27  ;;  %v791_v1 = vshrl.u32 %v11031_v2, %v6776_v58  ;;  %v812_v59 = vsel %vm810_vm0, %v800_v29, 2102212464 }
 0x15d   : > { %v829_v40 = vmul.u32 %v827_v52, %v824_v41  ;;  %v7180_v22 = vmul.u32 %v826_v14, %v825_v9  ;;  %v1217_v53 = vadd.f32 -0.4999988, %v1216_v47  ;;  %v1224_v26 = vadd.f32 -0.16666654, %v1223_v12 }
 0x15e   : > { %v7182_v7 = vsub.s32 %v1028_v43, %v1031_v15  ;;  %vm1232_vm4 = vcmp.eq.s32.totalorder %v7148_v49, 0  ;;  %vm1235_vm5 = vcmp.eq.s32.totalorder %v7148_v49, 2  ;;  %v828_v3 = vmul.u32 %v826_v14, %v824_v41 }
 0x15f   : > { %v832_v63 = vshll.u32 %v829_v40, 16  ;;  %v848_v27 = vand.u32 65535, %v818_v10  ;;  %v849_v23 = vshrl.u32 %v818_v10, 16  ;;  %v1218_v38 = vmul.f32 %v1217_v53, %v1213_v35 }
 0x160   : > { %v1225_v58 = vmul.f32 %v1224_v26, %v1213_v35  ;;  %vm1231_vm6 = vcmp.lt.s32.totalorder %v7148_v49, 2  ;;  %vm1033_vm7 = vcmp.lt.s32.totalorder %v7182_v7, 0  ;;  %v1034_v50 = vsub.s32 0, %v7182_v7 }
 0x161   : > { %vm1228_vm8 = vweird.f32 %v6493_v5  ;;  %v831_v36 = vmul.u32 %v827_v52, %v825_v9  ;;  %v834_v29 = vshll.u32 %v7180_v22, 16  ;;  %vm836_vm9 = vc.u32 %v828_v3, %v832_v63 }
 0x162   : > { %v838_v43 = vadd.s32 %v832_v63, %v828_v3  ;;  %v1219_v37 = vadd.f32 1.0, %v1218_v38  ;;  %v1226_v17 = vadd.f32 1.0, %v1225_v58  ;;  %v1035_v61 = vsel %vm1033_vm7, %v1034_v50, %v7182_v7 }
 0x163   : > { %v837_v39 = vsel %vm836_vm9, 1, %v11010_v4  ;;  %vm476_vm10 = vcmp.gt.s32.totalorder %v7176_v44, 0  ;;  %vm932_vm11 = vcmp.lt.s32.totalorder %v6496_v19, 0  ;;  %v1024_v35 = vadd.s32 %v7103_v60, %v7094_v30 }
 0x164   : > { %v1036_v28 = vclz %v1035_v61  ;;  %v839_v20 = vadd.s32 %v837_v39, %v831_v36  ;;  %vm840_vm12 = vc.u32 %v838_v43, %v834_v29  ;;  %v1227_v42 = vmul.f32 %v1226_v17, %v7135_v34 }
 0x165   : > { %v1236_v31 = vxor.u32 2147483648, %v1219_v37  ;;  %v841_v51 = vsel %vm840_vm12, 1, %v11010_v4  ;;  %v851_v57 = vmul.u32 %v849_v23, %v824_v41  ;;  %v811_v33 = vsel %vm807_vm1, %v791_v1, %v7140_v45 }
 0x166   : > { %v5925_v48 = vadd.s32 4294967294, %v1036_v28  ;;  %v813_v14 = vsel %vm809_vm2, %v7127_v32, %v812_v59  ;;  %v850_v52 = vmul.u32 %v848_v27, %v824_v41  ;;  %v1233_v30 = vxor.u32 2147483648, %v1227_v42 }
 0x167   : > { %v1054_v60 = vsub.s32 4, %v7167_v11  ;;  %v843_v47 = vadd.s32 %v841_v51, %v839_v20  ;;  %v852_v12 = vmul.u32 %v848_v27, %v825_v9  ;;  %v833_v34 = vshrl.u32 %v829_v40, 16 }
 0x168   : > { %vm5926_vm13 = vcmp.lt.s32.totalorder %v5925_v48, 0  ;;  %v835_v15 = vshrl.u32 %v7180_v22, 16  ;;  %v854_v10 = vshll.u32 %v851_v57, 16  ;;  %v1234_v53 = vsel %vm1232_vm4, %v1219_v37, %v1233_v30 }
 0x169   : > { %v1237_v45 = vsel %vm1235_vm5, %v1236_v31, %v1227_v42  ;;  %v1039_v1 = vsel %vm5926_vm13, 0, %v5925_v48  ;;  %v853_v26 = vmul.u32 %v849_v23, %v825_v9  ;;  %v844_v3 = vadd.s32 %v843_v47, %v833_v34 }
 0x16a   : > { %v1238_v32 = vsel %vm1231_vm6, %v1234_v53, %v1237_v45  ;;  %v1040_v41 = vsub.s32 32, %v1039_v1  ;;  %v1044_v59 = vsub.s32 4294967266, %v1039_v1  ;;  %v1041_v22 = vshll.u32 %v7182_v7, %v1039_v1 }
 0x16b   : > { %v1239_v40 = vsel %vm1228_vm8, nan, %v1238_v32  ;;  %v856_v63 = vshll.u32 %v852_v12, 16  ;;  %vm858_vm14 = vc.u32 %v850_v52, %v854_v10  ;;  %v860_v50 = vadd.s32 %v854_v10, %v850_v52 }
 0x16c   : > { %1797 = vmatpush.msra.mxu0 %v1239_v40  ;;  %v1042_v27 = vshrl.u32 %v1024_v35, %v1040_v41  ;;  %v1045_v38 = vadd.s32 127, %v1044_v59  ;;  %v859_v58 = vsel %vm858_vm14, 1, %v11010_v4  ;;  %v7220_v9 = vsub.s32 32, %v7090_v18 }
 0x16d   : > { %v1055_v49 = vsel %vm932_vm11, %v1054_v60, %v7167_v11  ;;  %v861_v23 = vadd.s32 %v859_v58, %v853_v26  ;;  %v620_v5 = vand.u32 2147483647, %v6606_v56  ;;  %v7226_v29 = vadd.s32 %v844_v3, %v835_v15 }
 0x16e   : > { %v1043_v36 = vor.u32 %v1042_v27, %v1041_v22  ;;  %v1046_v7 = vshll.u32 %v1045_v38, 23  ;;  %vm862_vm15 = vc.u32 %v860_v50, %v856_v63  ;;  %v7231_v43 = vsel %vm476_vm10, %v7176_v44, 0 }
 0x16f   : > { %vm7235_vm0 = vcmp.le.f32.partialorder %v930_v55, 0.7853982  ;;  %v814_v11 = vsel %vm808_vm3, %v811_v33, %v813_v14  ;;  %v863_v17 = vsel %vm862_vm15, 1, %v11010_v4  ;;  %v855_v39 = vshrl.u32 %v851_v57, 16 }
 0x170   : > { %v1047_v61 = vor.u32 4788187, %v1046_v7  ;;  %v7242_v35 = vadd.s32 %v860_v50, %v856_v63  ;;  %v865_v28 = vadd.s32 %v863_v17, %v861_v23  ;;  %v1050_v20 = vcvt.s32.f32 %v1043_v36 }
 0x171   : > { %v1057_v44 = vsel %vm7235_vm0, 0, %v1055_v49  ;;  %v857_v42 = vshrl.u32 %v852_v12, 16  ;;  %v627_v55 = vand.u32 8388607, %v620_v5  ;;  %v638_v16 = vshrl.u32 %v11033_v62, %v7220_v9 }
 0x172   : > { %v1048_v31 = vand.u32 2147483647, %v1047_v61  ;;  %v866_v51 = vadd.s32 %v865_v28, %v855_v39  ;;  %vm870_vm1 = vc.u32 %v7226_v29, %v7242_v35  ;;  %v640_v57 = vshll.u32 %v11033_v62, %v7090_v18 }
 0x173   : > { %v641_v48 = vshrl.u32 %v11012_v0, %v7220_v9  ;;  %v643_v33 = vshll.u32 %v11012_v0, %v7090_v18  ;;  %v644_v14 = vshrl.u32 %v11019_v6, %v7220_v9  ;;  %v646_v60 = vshll.u32 %v11019_v6, %v7090_v18 }
 0x174   : > { %v1051_v52 = vmul.f32 %v1050_v20, %v1048_v31  ;;  %v867_v30 = vadd.s32 %v866_v51, %v857_v42  ;;  %v647_v47 = vshrl.u32 %v11027_v8, %v7220_v9  ;;  %v637_v12 = vshll.u32 %v11031_v2, %v7090_v18 }
 0x175   : > { %v7266_v34 = vor.u32 %v641_v48, %v640_v57  ;;  %v649_v15 = vshll.u32 %v11027_v8, %v7090_v18  ;;  %v650_v10 = vshrl.u32 %v11025_v13, %v7220_v9  ;;  %v7272_v1 = vor.u32 %v644_v14, %v643_v33 }
 0x176   : > { %v1052_v53 = vxor.u32 2147483648, %v1051_v52  ;;  %v871_v45 = vadd.s32 1, %v867_v30  ;;  %v648_v26 = vor.u32 %v647_v47, %v646_v60  ;;  %v7275_v32 = vand.u32 31, %v7231_v43 }
 0x177   : > { %v868_v41 = vmul.u32 %v7155_v25, %v814_v11  ;;  %v628_v59 = vor.u32 8388608, %v627_v55  ;;  %v651_v3 = vor.u32 %v650_v10, %v649_v15  ;;  %v1074_v22 = vadd.s32 3, %v1057_v44 }
 0x178   : > { %v1053_v40 = vsel %vm932_vm11, %v1052_v53, %v1051_v52  ;;  %v872_v18 = vsel %vm870_vm1, %v871_v45, %v867_v30  ;;  %v7283_v63 = vor.u32 %v638_v16, %v637_v12  ;;  %vm652_vm2 = vcmp.lt.s32.totalorder %v7031_v24, 1 }
 0x179   : > { %v1056_v27 = vsel %vm7235_vm0, %v6496_v19, %v1053_v40  ;;  %v873_v38 = vadd.s32 %v872_v18, %v868_v41  ;;  %vm655_vm3 = vcmp.lt.s32.totalorder %v7031_v24, 4  ;;  %vm653_vm4 = vcmp.lt.s32.totalorder %v7031_v24, 2 }
 0x17a   : > { %v1058_v25 = vmul.f32 %v1056_v27, %v1056_v27  ;;  %v661_v58 = vsel %vm655_vm3, %v648_v26, 920167782  ;;  %v664_v50 = vsel %vm652_vm2, %v7266_v34, %v7272_v1  ;;  %vm654_vm5 = vcmp.lt.s32.totalorder %v7031_v24, 3 }
 0x17b   : > { %v874_v49 = vadd.s32 536870912, %v873_v38  ;;  %v665_v23 = vsel %vm655_vm3, %v651_v3, 1326507024  ;;  %v7300_v36 = vshll.u32 %v628_v59, 8  ;;  %v660_v11 = vsel %vm652_vm2, %v7283_v63, %v7266_v34 }
 0x17c   : > { %v1059_v7 = vmul.f32 -0.001358992, %v1058_v25  ;;  %v1066_v37 = vmul.f32 -0.00019511016, %v1058_v25  ;;  %v666_v17 = vsel %vm654_vm5, %v648_v26, %v665_v23  ;;  %v662_v39 = vsel %vm654_vm5, %v7272_v1, %v661_v58 }
 0x17d   : > { %v7308_v61 = vshrl.u32 %v874_v49, 30  ;;  %v667_v28 = vsel %vm653_vm4, %v664_v50, %v666_v17  ;;  %v669_v20 = vand.u32 65535, %v7300_v36  ;;  %v1075_v51 = vand.u32 3, %v1074_v22 }
 0x17e   : > { %v1060_v44 = vadd.f32 0.041655596, %v1059_v7  ;;  %v1067_v42 = vadd.f32 0.008332121, %v1066_v37  ;;  %v671_v55 = vand.u32 65535, %v667_v28  ;;  %v672_v31 = vshrl.u32 %v667_v28, 16 }
 0x17f   : > { %v876_v16 = vshll.u32 %v7308_v61, 30  ;;  %v670_v57 = vshrl.u32 %v7300_v36, 16  ;;  %v663_v30 = vsel %vm653_vm4, %v660_v11, %v662_v39  ;;  %v7325_v47 = vsub.s32 32, %v7275_v32 }
 0x180   : > { %v1061_v48 = vmul.f32 %v1060_v44, %v1058_v25  ;;  %v1068_v33 = vmul.f32 %v1067_v42, %v1058_v25  ;;  %v674_v14 = vmul.u32 %v672_v31, %v669_v20  ;;  %vm1077_vm6 = vcmp.eq.s32.totalorder %v1075_v51, 0 }
 0x181   : > { %v7318_v52 = vsub.s32 %v873_v38, %v876_v16  ;;  %v7322_v60 = vmul.u32 %v671_v55, %v670_v57  ;;  %v673_v45 = vmul.u32 %v671_v55, %v669_v20  ;;  %vm1076_vm8 = vcmp.lt.s32.totalorder %v1075_v51, 2 }
 0x182   : > { %v1062_v12 = vadd.f32 -0.4999988, %v1061_v48  ;;  %v1069_v15 = vadd.f32 -0.16666654, %v1068_v33  ;;  %v677_v10 = vshll.u32 %v674_v14, 16  ;;  %v676_v59 = vmul.u32 %v672_v31, %v670_v57 }
 0x183   : > { %vm878_vm7 = vcmp.lt.s32.totalorder %v7318_v52, 0  ;;  %v879_v53 = vsub.s32 0, %v7318_v52  ;;  %v694_v3 = vshrl.u32 %v663_v30, 16  ;;  %vm1073_vm9 = vweird.f32 %v6496_v19 }
 0x184   : > { %v1063_v26 = vmul.f32 %v1062_v12, %v1058_v25  ;;  %v1070_v41 = vmul.f32 %v1069_v15, %v1058_v25  ;;  %v679_v22 = vshll.u32 %v7322_v60, 16  ;;  %vm681_vm10 = vc.u32 %v673_v45, %v677_v10 }
 0x185   : > { %v880_v40 = vsel %vm878_vm7, %v879_v53, %v7318_v52  ;;  %v683_v18 = vadd.s32 %v677_v10, %v673_v45  ;;  %v682_v49 = vsel %vm681_vm10, 1, %v11010_v4  ;;  %vm1080_vm11 = vcmp.eq.s32.totalorder %v1075_v51, 2 }
 0x186   : > { %v1064_v38 = vadd.f32 1.0, %v1063_v26  ;;  %v1071_v58 = vadd.f32 1.0, %v1070_v41  ;;  %v881_v50 = vclz %v880_v40  ;;  %v869_v25 = vadd.s32 %v7242_v35, %v7226_v29 }
 0x187   : > { %v684_v23 = vadd.s32 %v682_v49, %v676_v59  ;;  %v693_v7 = vand.u32 65535, %v663_v30  ;;  %vm777_vm12 = vcmp.lt.s32.totalorder %v6530_v21, 0  ;;  %vm685_vm13 = vc.u32 %v683_v18, %v679_v22 }
 0x188   : > { %v1072_v37 = vmul.f32 %v1071_v58, %v1056_v27  ;;  %v1081_v11 = vxor.u32 2147483648, %v1064_v38  ;;  %v5922_v17 = vadd.s32 4294967294, %v881_v50  ;;  %v899_v39 = vsub.s32 4, %v7308_v61 }
 0x189   : > { %v657_v28 = vsel %vm655_vm3, %v7272_v1, 2102212464  ;;  %v686_v44 = vsel %vm685_vm13, 1, %v11010_v4  ;;  %v696_v42 = vmul.u32 %v694_v3, %v669_v20  ;;  %v678_v29 = vshrl.u32 %v674_v14, 16 }
 0x18a   : > { %v1078_v55 = vxor.u32 2147483648, %v1072_v37  ;;  %vm5923_vm14 = vcmp.lt.s32.totalorder %v5922_v17, 0  ;;  %v688_v35 = vadd.s32 %v686_v44, %v684_v23  ;;  %v695_v27 = vmul.u32 %v693_v7, %v669_v20 }
 0x18b   : > { %v884_v31 = vsel %vm5923_vm14, 0, %v5922_v17  ;;  %v697_v16 = vmul.u32 %v693_v7, %v670_v57  ;;  %v699_v48 = vshll.u32 %v696_v42, 16  ;;  %v1082_v30 = vsel %vm1080_vm11, %v1081_v11, %v1072_v37 }
 0x18c   : > { %v1079_v33 = vsel %vm1077_vm6, %v1064_v38, %v1078_v55  ;;  %v885_v12 = vsub.s32 32, %v884_v31  ;;  %v889_v15 = vsub.s32 4294967266, %v884_v31  ;;  %v886_v1 = vshll.u32 %v7318_v52, %v884_v31 }
 0x18d   : > { %v1083_v10 = vsel %vm1076_vm8, %v1079_v33, %v1082_v30  ;;  %v689_v53 = vadd.s32 %v688_v35, %v678_v29  ;;  %v698_v45 = vmul.u32 %v694_v3, %v670_v57  ;;  %vm703_vm15 = vc.u32 %v695_v27, %v699_v48 }
 0x18e   : > { %v1084_v14 = vsel %vm1073_vm9, nan, %v1083_v10  ;;  %v887_v26 = vshrl.u32 %v869_v25, %v885_v12  ;;  %v890_v41 = vadd.s32 127, %v889_v15  ;;  %v636_v20 = vshrl.u32 %v11031_v2, %v7220_v9 }
 0x18f   : > { %1798 = vmatpush.msra.mxu0 %v1084_v14  ;;  %v701_v59 = vshll.u32 %v697_v16, 16  ;;  %v704_v40 = vsel %vm703_vm15, 1, %v11010_v4  ;;  %v705_v22 = vadd.s32 %v699_v48, %v695_v27  ;;  %v680_v52 = vshrl.u32 %v7322_v60, 16 }
 0x190   : > { %v888_v51 = vor.u32 %v887_v26, %v886_v1  ;;  %v891_v18 = vshll.u32 %v890_v41, 23  ;;  %v706_v38 = vadd.s32 %v704_v40, %v698_v45  ;;  %v900_v19 = vsel %vm777_vm12, %v899_v39, %v7308_v61 }
 0x191   : > { %v656_v57 = vsel %vm652_vm2, %v636_v20, %v7283_v63  ;;  %v658_v9 = vsel %vm654_vm5, %v7266_v34, %v657_v28  ;;  %vm707_vm0 = vc.u32 %v705_v22, %v701_v59  ;;  %v7360_v58 = vadd.s32 %v689_v53, %v680_v52 }
 0x192   : > { %v892_v3 = vor.u32 4788187, %v891_v18  ;;  %v708_v50 = vsel %vm707_vm0, 1, %v11010_v4  ;;  %v465_v60 = vand.u32 2147483647, %v6945_v54  ;;  %v7365_v49 = vshrl.u32 %v7231_v43, 5 }
 0x193   : > { %vm7369_vm1 = vcmp.le.f32.partialorder %v775_v46, 0.7853982  ;;  %v700_v63 = vshrl.u32 %v696_v42, 16  ;;  %v710_v25 = vadd.s32 %v708_v50, %v706_v38  ;;  %v895_v23 = vcvt.s32.f32 %v888_v51 }
 0x194   : > { %v893_v34 = vand.u32 2147483647, %v892_v3  ;;  %v659_v7 = vsel %vm653_vm4, %v656_v57, %v658_v9  ;;  %v7375_v37 = vadd.s32 %v705_v22, %v701_v59  ;;  %v902_v11 = vsel %vm7369_vm1, 0, %v900_v19 }
 0x195   : > { %v702_v43 = vshrl.u32 %v697_v16, 16  ;;  %v711_v17 = vadd.s32 %v710_v25, %v700_v63  ;;  %v486_v46 = vshrl.u32 %v11012_v0, %v7325_v47  ;;  %v472_v28 = vand.u32 8388607, %v465_v60 }
 0x196   : > { %v896_v39 = vmul.f32 %v895_v23, %v893_v34  ;;  %vm715_vm2 = vc.u32 %v7360_v58, %v7375_v37  ;;  %v489_v24 = vshrl.u32 %v11019_v6, %v7325_v47  ;;  %v485_v42 = vshll.u32 %v11033_v62, %v7275_v32 }
 0x197   : > { %v712_v44 = vadd.s32 %v711_v17, %v702_v43  ;;  %v488_v55 = vshll.u32 %v11012_v0, %v7275_v32  ;;  %v492_v29 = vshrl.u32 %v11027_v8, %v7325_v47  ;;  %v483_v31 = vshrl.u32 %v11033_v62, %v7325_v47 }
 0x198   : > { %v897_v35 = vxor.u32 2147483648, %v896_v39  ;;  %v494_v27 = vshll.u32 %v11027_v8, %v7275_v32  ;;  %v495_v16 = vshrl.u32 %v11025_v13, %v7325_v47  ;;  %v7399_v33 = vor.u32 %v486_v46, %v485_v42 }
 0x199   : > { %v716_v48 = vadd.s32 1, %v712_v44  ;;  %v7401_v30 = vor.u32 %v489_v24, %v488_v55  ;;  %v491_v12 = vshll.u32 %v11019_v6, %v7275_v32  ;;  %v713_v10 = vmul.u32 %v7300_v36, %v659_v7 }
 0x19a   : > { %v898_v15 = vsel %vm777_vm12, %v897_v35, %v896_v39  ;;  %v482_v1 = vshll.u32 %v11031_v2, %v7275_v32  ;;  %v496_v53 = vor.u32 %v495_v16, %v494_v27  ;;  %v473_v26 = vor.u32 8388608, %v472_v28 }
 0x19b   : > { %v901_v45 = vsel %vm7369_vm1, %v6530_v21, %v898_v15  ;;  %v717_v14 = vsel %vm715_vm2, %v716_v48, %v712_v44  ;;  %v493_v41 = vor.u32 %v492_v29, %v491_v12  ;;  %vm497_vm3 = vcmp.lt.s32.totalorder %v7365_v49, 1 }
 0x19c   : > { %v903_v20 = vmul.f32 %v901_v45, %v901_v45  ;;  %v718_v59 = vadd.s32 %v717_v14, %v713_v10  ;;  %vm500_vm4 = vcmp.lt.s32.totalorder %v7365_v49, 4  ;;  %v919_v36 = vadd.s32 3, %v902_v11 }
 0x19d   : > { %v7418_v40 = vor.u32 %v483_v31, %v482_v1  ;;  %v509_v32 = vsel %vm497_vm3, %v7399_v33, %v7401_v30  ;;  %v510_v22 = vsel %vm500_vm4, %v496_v53, 1326507024  ;;  %vm499_vm5 = vcmp.lt.s32.totalorder %v7365_v49, 3 }
 0x19e   : > { %v904_v51 = vmul.f32 -0.001358992, %v903_v20  ;;  %v911_v18 = vmul.f32 -0.00019511016, %v903_v20  ;;  %v719_v52 = vadd.s32 536870912, %v718_v59  ;;  %vm498_vm6 = vcmp.lt.s32.totalorder %v7365_v49, 2 }
 0x19f   : > { %v506_v38 = vsel %vm500_vm4, %v493_v41, 920167782  ;;  %v511_v19 = vsel %vm499_vm5, %v493_v41, %v510_v22  ;;  %v7432_v57 = vshll.u32 %v473_v26, 8  ;;  %v505_v17 = vsel %vm497_vm3, %v7418_v40, %v7399_v33 }
 0x1a0   : > { %v905_v9 = vadd.f32 0.041655596, %v904_v51  ;;  %v912_v3 = vadd.f32 0.008332121, %v911_v18  ;;  %v7434_v50 = vshrl.u32 %v719_v52, 30  ;;  %v512_v61 = vsel %vm498_vm6, %v509_v32, %v511_v19 }
 0x1a1   : > { %v514_v63 = vand.u32 65535, %v7432_v57  ;;  %v515_v25 = vshrl.u32 %v7432_v57, 16  ;;  %v516_v34 = vand.u32 65535, %v512_v61  ;;  %v517_v23 = vshrl.u32 %v512_v61, 16 }
 0x1a2   : > { %v906_v7 = vmul.f32 %v905_v9, %v903_v20  ;;  %v913_v11 = vmul.f32 %v912_v3, %v903_v20  ;;  %v721_v43 = vshll.u32 %v7434_v50, 30  ;;  %v507_v42 = vsel %vm499_vm5, %v7401_v30, %v506_v38 }
 0x1a3   : > { %v519_v46 = vmul.u32 %v517_v23, %v514_v63  ;;  %v7445_v39 = vmul.u32 %v516_v34, %v515_v25  ;;  %v920_v55 = vand.u32 3, %v919_v36  ;;  %v518_v29 = vmul.u32 %v516_v34, %v514_v63 }
 0x1a4   : > { %v907_v28 = vadd.f32 -0.4999988, %v906_v7  ;;  %v914_v24 = vadd.f32 -0.16666654, %v913_v11  ;;  %v722_v44 = vsub.s32 %v718_v59, %v721_v43  ;;  %v508_v48 = vsel %vm498_vm6, %v505_v17, %v507_v42 }
 0x1a5   : > { %v522_v35 = vshll.u32 %v519_v46, 16  ;;  %v524_v12 = vshll.u32 %v7445_v39, 16  ;;  %v521_v41 = vmul.u32 %v517_v23, %v515_v25  ;;  %vm918_vm10 = vweird.f32 %v6530_v21 }
 0x1a6   : > { %v908_v31 = vmul.f32 %v907_v28, %v903_v20  ;;  %v915_v27 = vmul.f32 %v914_v24, %v903_v20  ;;  %vm723_vm7 = vcmp.lt.s32.totalorder %v722_v44, 0  ;;  %v724_v16 = vsub.s32 0, %v722_v44 }
 0x1a7   : > { %vm526_vm8 = vc.u32 %v518_v29, %v522_v35  ;;  %v528_v15 = vadd.s32 %v522_v35, %v518_v29  ;;  %v538_v20 = vand.u32 65535, %v508_v48  ;;  %vm921_vm11 = vcmp.lt.s32.totalorder %v920_v55, 2 }
 0x1a8   : > { %v909_v10 = vadd.f32 1.0, %v908_v31  ;;  %v916_v1 = vadd.f32 1.0, %v915_v27  ;;  %v725_v53 = vsel %vm723_vm7, %v724_v16, %v722_v44  ;;  %v527_v14 = vsel %vm526_vm8, 1, %v11010_v4 }
 0x1a9   : > { %v726_v26 = vclz %v725_v53  ;;  %vm530_vm9 = vc.u32 %v528_v15, %v524_v12  ;;  %v529_v22 = vadd.s32 %v527_v14, %v521_v41  ;;  %vm925_vm12 = vcmp.eq.s32.totalorder %v920_v55, 2 }
 0x1aa   : > { %v917_v59 = vmul.f32 %v916_v1, %v901_v45  ;;  %v926_v36 = vxor.u32 2147483648, %v909_v10  ;;  %v531_v18 = vsel %vm530_vm9, 1, %v11010_v4  ;;  %v539_v52 = vshrl.u32 %v508_v48, 16 }
 0x1ab   : > { %v5919_v32 = vadd.s32 4294967294, %v726_v26  ;;  %vm922_vm13 = vcmp.eq.s32.totalorder %v920_v55, 0  ;;  %v714_v19 = vadd.s32 %v7375_v37, %v7360_v58  ;;  %v542_v61 = vmul.u32 %v538_v20, %v515_v25 }
 0x1ac   : > { %v923_v51 = vxor.u32 2147483648, %v917_v59  ;;  %v927_v38 = vsel %vm925_vm12, %v926_v36, %v917_v59  ;;  %v541_v3 = vmul.u32 %v539_v52, %v514_v63  ;;  %v533_v11 = vadd.s32 %v531_v18, %v529_v22  ;;  %v1718_v22 = vld [vmem:[%s11003_s4 + $0x28] sm:$0xff] }
 0x1ad   : > { %vm5920_vm14 = vcmp.lt.s32.totalorder %v5919_v32, 0  ;;  %v540_v17 = vmul.u32 %v538_v20, %v514_v63  ;;  %v523_v29 = vshrl.u32 %v519_v46, 16  ;;  %v543_v58 = vmul.u32 %v539_v52, %v515_v25  ;;  %1748 = vperm.xlu1 %6144, %v1718_v22  }
 0x1ae   : > { %v924_v9 = vsel %vm922_vm13, %v909_v10, %v923_v51  ;;  %v729_v45 = vsel %vm5920_vm14, 0, %v5919_v32  ;;  %v544_v28 = vshll.u32 %v541_v3, 16  ;;  %v546_v37 = vshll.u32 %v542_v61, 16 }
 0x1af   : > { %v928_v34 = vsel %vm921_vm11, %v924_v9, %v927_v38  ;;  %v730_v23 = vsub.s32 32, %v729_v45  ;;  %v734_v7 = vsub.s32 4294967266, %v729_v45  ;;  %v731_v24 = vshll.u32 %v722_v44, %v729_v45 }
 0x1b0   : > { %v929_v43 = vsel %vm918_vm10, nan, %v928_v34  ;;  %vm548_vm15 = vc.u32 %v540_v17, %v544_v28  ;;  %v550_v35 = vadd.s32 %v544_v28, %v540_v17  ;;  %v534_v16 = vadd.s32 %v533_v11, %v523_v29 }
 0x1b1   : > { %1799 = vmatpush.msra.mxu0 %v929_v43  ;;  %v732_v42 = vshrl.u32 %v714_v19, %v730_v23  ;;  %v735_v55 = vadd.s32 127, %v734_v7  ;;  %v549_v48 = vsel %vm548_vm15, 1, %v11010_v4  ;;  %v481_v21 = vshrl.u32 %v11031_v2, %v7325_v47 }
 0x1b2   : > { %v502_v63 = vsel %vm500_vm4, %v7401_v30, 2102212464  ;;  %v551_v44 = vadd.s32 %v549_v48, %v543_v58  ;;  %vm552_vm0 = vc.u32 %v550_v35, %v546_v37  ;;  %v525_v25 = vshrl.u32 %v7445_v39, 16 }
 0x1b3   : > { %v733_v31 = vor.u32 %v732_v42, %v731_v24  ;;  %v736_v27 = vshll.u32 %v735_v55, 23  ;;  %v553_v46 = vsel %vm552_vm0, 1, %v11010_v4  ;;  %v501_v15 = vsel %vm497_vm3, %v481_v21, %v7418_v40 }
 0x1b4   : > { %v545_v10 = vshrl.u32 %v541_v3, 16  ;;  %v555_v1 = vadd.s32 %v553_v46, %v551_v44  ;;  %v503_v47 = vsel %vm499_vm5, %v7399_v33, %v502_v63  ;;  %v535_v30 = vadd.s32 %v534_v16, %v525_v25 }
 0x1b5   : > { %v737_v12 = vor.u32 4788187, %v736_v27  ;;  %v740_v14 = vcvt.s32.f32 %v733_v31  ;;  %v547_v26 = vshrl.u32 %v542_v61, 16  ;;  %v554_v36 = vadd.s32 %v550_v35, %v546_v37 }
 0x1b6   : > { %v556_v41 = vadd.s32 %v555_v1, %v545_v10  ;;  %v504_v39 = vsel %vm498_vm6, %v501_v15, %v503_v47  ;;  %vm622_vm2 = vcmp.lt.s32.totalorder %v6606_v56, 0  ;;  %vm7479_vm3 = vcmp.le.f32.partialorder %v620_v5, 0.7853982 }
 0x1b7   : > { %v738_v53 = vand.u32 2147483647, %v737_v12  ;;  %vm560_vm1 = vc.u32 %v535_v30, %v554_v36  ;;  %v558_v51 = vmul.u32 %v7432_v57, %v504_v39  ;;  %v744_v18 = vsub.s32 4, %v7434_v50 }
 0x1b8   : > { %v557_v20 = vadd.s32 %v556_v41, %v547_v26  ;;  %vm763_vm5 = vweird.f32 %v6606_v56  ;;  %v559_v15 = vadd.s32 %v554_v36, %v535_v30  ;;  %vm467_vm10 = vcmp.lt.s32.totalorder %v6945_v54, 0 }
 0x1b9   : > { %v741_v59 = vmul.f32 %v740_v14, %v738_v53  ;;  %v745_v5 = vsel %vm622_vm2, %v744_v18, %v7434_v50  ;;  %vm7495_vm11 = vcmp.le.f32.partialorder %v465_v60, 0.7853982  ;;  %vm608_vm15 = vweird.f32 %v6945_v54 }
 0x1ba   : > { %v561_v40 = vadd.s32 1, %v557_v20  ;;  %v747_v57 = vsel %vm7479_vm3, 0, %v745_v5  ;;  %v1715_v5 = vld [vmem:[%s11003_s4 + $0x10] sm:$0xff]  ;;  %vm1761_vm0 = vcmask 523264  }
 0x1bb   : > { %v742_v32 = vxor.u32 2147483648, %v741_v59  ;;  %v764_v42 = vadd.s32 3, %v747_v57  ;;  %1733 = vperm.xlu1 %6144, %v1715_v5  }
 0x1bc   : > { %v562_v52 = vsel %vm560_vm1, %v561_v40, %v557_v20 }
 0x1bd   : > { %v743_v33 = vsel %vm622_vm2, %v742_v32, %v741_v59  ;;  %v563_v19 = vadd.s32 %v562_v52, %v558_v51  ;;  %v765_v31 = vand.u32 3, %v764_v42 }
 0x1be   : > { %v746_v49 = vsel %vm7479_vm3, %v6606_v56, %v743_v33 }
 0x1bf   : > { %v748_v38 = vmul.f32 %v746_v49, %v746_v49  ;;  %v564_v3 = vadd.s32 536870912, %v563_v19  ;;  %vm767_vm6 = vcmp.eq.s32.totalorder %v765_v31, 0  ;;  %vm770_vm7 = vcmp.eq.s32.totalorder %v765_v31, 2 }
 0x1c0   : > { %vm766_vm9 = vcmp.lt.s32.totalorder %v765_v31, 2  ;;  %v1705_v31 = vld [vmem:[%s11002_s3] sm:$0xff] }
 0x1c1   : > { %v749_v9 = vmul.f32 -0.001358992, %v748_v38  ;;  %v756_v45 = vmul.f32 -0.00019511016, %v748_v38  ;;  %v565_v23 = vshrl.u32 %v564_v3, 30 }
 0x1c3   : > { %v750_v61 = vadd.f32 0.041655596, %v749_v9  ;;  %v757_v34 = vadd.f32 0.008332121, %v756_v45  ;;  %v566_v43 = vshll.u32 %v565_v23, 30  ;;  %v589_v33 = vsub.s32 4, %v565_v23 }
 0x1c5   : > { %v751_v7 = vmul.f32 %v750_v61, %v748_v38  ;;  %v758_v11 = vmul.f32 %v757_v34, %v748_v38  ;;  %v567_v24 = vsub.s32 %v563_v19, %v566_v43  ;;  %v1720_v61 = vld [vmem:[%s11003_s4 + $0x38] sm:$0xff] }
 0x1c6   : > { %1758 = vperm.xlu2 %6143, %v1720_v61  }
 0x1c7   : > { %v752_v17 = vadd.f32 -0.4999988, %v751_v7  ;;  %v759_v28 = vadd.f32 -0.16666654, %v758_v11  ;;  %vm568_vm4 = vcmp.lt.s32.totalorder %v567_v24, 0  ;;  %v569_v58 = vsub.s32 0, %v567_v24 }
 0x1c9   : > { %v753_v55 = vmul.f32 %v752_v17, %v748_v38  ;;  %v760_v29 = vmul.f32 %v759_v28, %v748_v38  ;;  %v570_v50 = vsel %vm568_vm4, %v569_v58, %v567_v24  ;;  %v590_v38 = vsel %vm467_vm10, %v589_v33, %v565_v23 }
 0x1ca   : > { %v571_v27 = vclz %v570_v50  ;;  %v592_v9 = vsel %vm7495_vm11, 0, %v590_v38 }
 0x1cb   : > { %v754_v37 = vadd.f32 1.0, %v753_v55  ;;  %v761_v35 = vadd.f32 1.0, %v760_v29  ;;  %v609_v23 = vadd.s32 3, %v592_v9  ;;  %v5986_v55 = vld [vmem:[%s11003_s4 + $0x78] sm:$0xff]  ;;  %v1717_v29 = vld [vmem:[%s11003_s4 + $0x20] sm:$0xff] }
 0x1cc   : > { %v5916_v21 = vadd.s32 4294967294, %v571_v27  ;;  %3122 = vperm.xlu1 %6144, %v5986_v55  }
 0x1cd   : > { %v762_v16 = vmul.f32 %v761_v35, %v746_v49  ;;  %v771_v48 = vxor.u32 2147483648, %v754_v37  ;;  %v610_v28 = vand.u32 3, %v609_v23 }
 0x1ce   : > { %vm5917_vm8 = vcmp.lt.s32.totalorder %v5916_v21, 0  ;;  %1743 = vperm.xlu2 %6143, %v1717_v29  }
 0x1cf   : > { %v768_v63 = vxor.u32 2147483648, %v762_v16  ;;  %v772_v12 = vsel %vm770_vm7, %v771_v48, %v762_v16  ;;  %v574_v25 = vsel %vm5917_vm8, 0, %v5916_v21  ;;  %vm612_vm12 = vcmp.eq.s32.totalorder %v610_v28, 0  ;;  %v5983_v16 = vld [vmem:[%s11003_s4 + $0x60] sm:$0xff]  ;;  %v1714_v48 = vld [vmem:[%s11003_s4 + $0x8] sm:$0xff] }
 0x1d0   : > { %v575_v10 = vsub.s32 32, %v574_v25  ;;  %v579_v1 = vsub.s32 4294967266, %v574_v25  ;;  %v576_v14 = vshll.u32 %v567_v24, %v574_v25  ;;  %vm615_vm13 = vcmp.eq.s32.totalorder %v610_v28, 2  ;;  %v5980_v21 = vld [vmem:[%s11003_s4 + $0x48] sm:$0xff]  ;;  %v5982_v25 = vld [vmem:[%s11003_s4 + $0x58] sm:$0xff] }
 0x1d1   : > { %v769_v44 = vsel %vm767_vm6, %v754_v37, %v768_v63  ;;  %vm611_vm14 = vcmp.lt.s32.totalorder %v610_v28, 2  ;;  %v5985_v63 = vld [vmem:[%s11003_s4 + $0x70] sm:$0xff] }
 0x1d2   : > { %v773_v46 = vsel %vm766_vm9, %v769_v44, %v772_v12  ;;  %v577_v47 = vshrl.u32 %v559_v15, %v575_v10  ;;  %v580_v26 = vadd.s32 127, %v579_v1  ;;  %v1707_v44 = vld [vmem:[%s11002_s3 + $0x10] sm:$0xff]  ;;  %v6030_v15 = vld [vmem:[%s11003_s4 + $0x98] sm:$0xff]  ;;  %v5979_v10 = vld [vmem:[%s11003_s4 + $0x40] sm:$0xff] }
 0x1d3   : > { %v774_v53 = vsel %vm763_vm5, nan, %v773_v46  ;;  %v6033_v12 = vld [vmem:[%s11003_s4 + $0xb0] sm:$0xff]  ;;  %v1708_v46 = vld [vmem:[%s11002_s3 + $0x18] sm:$0xff]  ;;  %v1709_v1 = vld [vmem:[%s11002_s3 + $0x20] sm:$0xff] }
 0x1d4   : > { %1800 = vmatpush.msra.mxu0 %v774_v53  ;;  %v578_v41 = vor.u32 %v577_v47, %v576_v14  ;;  %v581_v59 = vshll.u32 %v580_v26, 23  ;;  %3107 = vperm.xlu1 %6144, %v5983_v16   ;;  %v6027_v53 = vld [vmem:[%s11003_s4 + $0x80] sm:$0xff]  ;;  %v6032_v14 = vld [vmem:[%s11003_s4 + $0xa8] sm:$0xff]  ;;  %v6029_v26 = vld [vmem:[%s11003_s4 + $0x90] sm:$0xff] }
 0x1d5   : > { %v1710_v47 = vld [vmem:[%s11002_s3 + $0x28] sm:$0xff] }
 0x1d6   : > { %v582_v39 = vor.u32 4788187, %v581_v59  ;;  %v585_v20 = vcvt.s32.f32 %v578_v41  ;;  %1728 = vperm.xlu2 %6143, %v1714_v48   ;;  %v1711_v41 = vld [vmem:[%s11002_s3 + $0x30] sm:$0xff]  ;;  %v5794_v59 = vld [vmem:[#allocation2] sm:$0x1] }
 0x1d8   : > { %v583_v56 = vand.u32 2147483647, %v582_v39  ;;  %v1712_v39 = vld [vmem:[%s11002_s3 + $0x38] sm:$0xff] }
 0x1da   : > { %v586_v32 = vmul.f32 %v585_v20, %v583_v56  ;;  %v7585_v56 = vpop.permute.xlu0 %1753 }
 0x1dc   : > { %v587_v40 = vxor.u32 2147483648, %v586_v32  ;;  %3092 = vperm.xlu1 %6144, %v5980_v21  }
 0x1de   : > { %v588_v36 = vsel %vm467_vm10, %v587_v40, %v586_v32  ;;  %3117 = vperm.xlu2 %6143, %v5985_v63  }
 0x1df   : > { %v591_v51 = vsel %vm7495_vm11, %v6945_v54, %v588_v36  ;;  %v1706_v54 = vld [vmem:[%s11002_s3 + $0x8] sm:$0xff] }
 0x1e0   : > { %v593_v18 = vmul.f32 %v591_v51, %v591_v51 }
 0x1e2   : > { %v594_v49 = vmul.f32 -0.001358992, %v593_v18  ;;  %v601_v52 = vmul.f32 -0.00019511016, %v593_v18  ;;  %v1739_v40 = vpop.permute.xlu0 %1738 }
 0x1e4   : > { %v595_v19 = vadd.f32 0.041655596, %v594_v49  ;;  %v602_v60 = vadd.f32 0.008332121, %v601_v52  ;;  %4480 = vperm.xlu1 %6144, %v6033_v12  }
 0x1e6   : > { %v596_v45 = vmul.f32 %v595_v19, %v593_v18  ;;  %v603_v3 = vmul.f32 %v602_v60, %v593_v18  ;;  %3102 = vperm.xlu2 %6143, %v5982_v25  }
 0x1e8   : > { %v597_v34 = vadd.f32 -0.4999988, %v596_v45  ;;  %v604_v57 = vadd.f32 -0.16666654, %v603_v3 }
 0x1ea   : > { %v598_v7 = vmul.f32 %v597_v34, %v593_v18  ;;  %v605_v11 = vmul.f32 %v604_v57, %v593_v18  ;;  %v1724_v33 = vpop.permute.xlu0 %1723 }
 0x1ec   : > { %v599_v43 = vadd.f32 1.0, %v598_v7  ;;  %v606_v17 = vadd.f32 1.0, %v605_v11  ;;  %4465 = vperm.xlu1 %6144, %v6030_v15  }
 0x1ee   : > { %v607_v24 = vmul.f32 %v606_v17, %v591_v51  ;;  %v616_v42 = vxor.u32 2147483648, %v599_v43  ;;  %3087 = vperm.xlu2 %6143, %v5979_v10  }
 0x1f0   : > { %v613_v58 = vxor.u32 2147483648, %v607_v24  ;;  %v617_v35 = vsel %vm615_vm13, %v616_v42, %v607_v24 }
 0x1f2   : > { %v614_v37 = vsel %vm612_vm12, %v599_v43, %v613_v58 }
 0x1f3   : > { %v618_v50 = vsel %vm611_vm14, %v614_v37, %v617_v35 }
 0x1f4   : > { %v619_v27 = vsel %vm608_vm15, nan, %v618_v50  ;;  %4450 = vperm.xlu1 %6144, %v6027_v53  }
 0x1f5   : > { %1801 = vmatpush.msra.mxu0 %v619_v27 }
 0x1f6   : > { %5939 = vmatmul.msk.f32.vlgmr.msra.gmra.mxu0 %vm1761_vm0, %v1705_v31  ;;  %4475 = vperm.xlu2 %6143, %v6032_v14  }
 0x1fe   : > { %5940 = vmatmul.msk.f32.gmra.mxu0 %vm1761_vm0, %v1706_v54  ;;  %4460 = vperm.xlu2 %6143, %v6029_v26  }
 0x206   : > { %5941 = vmatmul.msk.f32.gmra.mxu0 %vm1761_vm0, %v1707_v44  ;;  %5797 = vperm.xlu2 %6143, %v5794_v59  }
 0x20e   : > { %5942 = vmatmul.msk.f32.gmra.mxu0 %vm1761_vm0, %v1708_v46 }
 0x216   : > { %5943 = vmatmul.msk.f32.gmra.mxu0 %vm1761_vm0, %v1709_v1 }
 0x21e   : > { %5944 = vmatmul.msk.f32.gmra.mxu0 %vm1761_vm0, %v1710_v47 }
 0x21f   : > { %v1749_v36 = vpop.permute.xlu1 %1748 }
 0x220   : > { %v7587_v20 = vpop.permute.xlu2 %1758 }
 0x226   : > { %5945 = vmatmul.msk.f32.gmra.mxu0 %vm1761_vm0, %v1711_v41 }
 0x228   : > { %v1744_v30 = vpop.permute.xlu2 %1743 }
 0x22d   : > { %v1734_v38 = vpop.permute.xlu1 %1733 }
 0x22e   : > { %5946 = vmatmul.msk.f32.gmra.mxu0 %vm1761_vm0, %v1712_v39 }
 0x230   : > { %v1729_v18 = vpop.permute.xlu2 %1728 }
 0x273   : > { %v1803_v32 = vpop.f32.mrf.mxu0 }
 0x274   : > { %v7589_v51 = vadd.f32 %v1803_v32, %v1724_v33 }
 0x276   : > { %11149 = vst [vmem:[#allocation6_spill] sm:$0xff] %v7589_v51  ;;  %v1830_v60 = vand.u32 2139095040, %v7589_v51 }
 0x278   : > { %v1831_v3 = vshrl.u32 %v1830_v60, 23 }
 0x27a   : > { %v5947_v23 = vadd.s32 4294967169, %v1831_v3 }
 0x27b   : > { %v1806_v22 = vpop.f32.mrf.mxu0 }
 0x27c   : > { %v7591_v49 = vadd.f32 %v1806_v22, %v1729_v18  ;;  %v1837_v28 = vadd.s32 1, %v5947_v23 }
 0x27e   : > { %11150 = vst [vmem:[#allocation7_spill] sm:$0xff] %v7591_v49  ;;  %v1985_v9 = vand.u32 2139095040, %v7591_v49  ;;  %vm1838_vm1 = vcmp.gt.s32.totalorder %v1837_v28, 0 }
 0x27f   : > { %v1839_v50 = vsel %vm1838_vm1, %v1837_v28, 0 }
 0x280   : > { %v1986_v5 = vshrl.u32 %v1985_v9, 23  ;;  %v7604_v54 = vand.u32 31, %v1839_v50  ;;  %v7624_v26 = vshrl.u32 %v1839_v50, 5 }
 0x282   : > { %v5950_v11 = vadd.s32 4294967169, %v1986_v5  ;;  %11153 = vst [vmem:[#allocation10_spill] sm:$0xff] %v7604_v54  ;;  %v7616_v10 = vsub.s32 32, %v7604_v54  ;;  %v7628_v41 = vshll.u32 %v11019_v6, %v7604_v54 }
 0x283   : > { %v1809_v52 = vpop.f32.mrf.mxu0  ;;  %11161 = vst [vmem:[#allocation18_spill] sm:$0xff] %v7624_v26 }
 0x284   : > { %v7593_v19 = vadd.f32 %v1809_v52, %v1734_v38  ;;  %v1992_v24 = vadd.s32 1, %v5950_v11  ;;  %11158 = vst [vmem:[#allocation15_spill] sm:$0xff] %v7616_v10 }
 0x285   : > { %11162 = vst [vmem:[#allocation19_spill] sm:$0xff] %v7628_v41 }
 0x286   : > { %11151 = vst [vmem:[#allocation8_spill] sm:$0xff] %v7593_v19  ;;  %v2140_v45 = vand.u32 2139095040, %v7593_v19  ;;  %vm1993_vm2 = vcmp.gt.s32.totalorder %v1992_v24, 0 }
 0x287   : > { %v1994_v27 = vsel %vm1993_vm2, %v1992_v24, 0 }
 0x288   : > { %v2141_v57 = vshrl.u32 %v2140_v45, 23  ;;  %v7608_v44 = vand.u32 31, %v1994_v27 }
 0x28a   : > { %v5953_v17 = vadd.s32 4294967169, %v2141_v57  ;;  %11155 = vst [vmem:[#allocation12_spill] sm:$0xff] %v7608_v44  ;;  %v7619_v53 = vsub.s32 32, %v7608_v44  ;;  %v2008_v38 = vshll.u32 %v11019_v6, %v7608_v44  ;;  %v7654_v60 = vshll.u32 %v11027_v8, %v7608_v44 }
 0x28b   : > { %v1812_v61 = vpop.f32.mrf.mxu0 }
 0x28c   : > { %v7598_v34 = vadd.f32 %v1812_v61, %v1739_v40  ;;  %v2147_v58 = vadd.s32 1, %v5953_v17  ;;  %11159 = vst [vmem:[#allocation16_spill] sm:$0xff] %v7619_v53  ;;  %v7635_v40 = vshrl.u32 %v11027_v8, %v7616_v10  ;;  %v2009_v33 = vshrl.u32 %v11027_v8, %v7619_v53 }
 0x28d   : > { %11167 = vst [vmem:[#allocation24_spill] sm:$0xff] %v7654_v60  ;;  %v7658_v9 = vshrl.u32 %v11025_v13, %v7619_v53 }
 0x28e   : > { %11152 = vst [vmem:[#allocation9_spill] sm:$0xff] %v7598_v34  ;;  %v2295_v7 = vand.u32 2139095040, %v7598_v34  ;;  %vm2148_vm4 = vcmp.gt.s32.totalorder %v2147_v58, 0  ;;  %v7668_v11 = vor.u32 %v2009_v33, %v2008_v38 }
 0x28f   : > { %v2149_v21 = vsel %vm2148_vm4, %v2147_v58, 0  ;;  %11164 = vst [vmem:[#allocation21_spill] sm:$0xff] %v7635_v40  ;;  %v11176_v40 = vmov 2131351028  }
 0x290   : > { %v2296_v43 = vshrl.u32 %v2295_v7, 23  ;;  %v7613_v15 = vand.u32 31, %v2149_v21  ;;  %11168 = vst [vmem:[#allocation25_spill] sm:$0xff] %v7658_v9  ;;  %v7673_v24 = vshrl.u32 %v2149_v21, 5 }
 0x291   : > { %11170 = vst [vmem:[#allocation27_spill] sm:$0xff] %v7668_v11 }
 0x292   : > { %v5956_v42 = vadd.s32 4294967169, %v2296_v43  ;;  %11157 = vst [vmem:[#allocation14_spill] sm:$0xff] %v7613_v15  ;;  %v7631_v59 = vsub.s32 32, %v7613_v15  ;;  %v2163_v43 = vshll.u32 %v11019_v6, %v7613_v15 }
 0x293   : > { %v1815_v55 = vpop.f32.mrf.mxu0  ;;  %11171 = vst [vmem:[#allocation28_spill] sm:$0xff] %v7673_v24 }
 0x294   : > { %v7601_v29 = vadd.f32 %v1815_v55, %v1744_v30  ;;  %v2302_v37 = vadd.s32 1, %v5956_v42  ;;  %11163 = vst [vmem:[#allocation20_spill] sm:$0xff] %v7631_v59  ;;  %v7639_v30 = vshll.u32 %v11027_v8, %v7604_v54  ;;  %v2164_v45 = vshrl.u32 %v11027_v8, %v7631_v59 }
 0x295   : > { %v7677_v42 = vshll.u32 %v11027_v8, %v7613_v15 }
 0x296   : > { %v2450_v35 = vand.u32 2139095040, %v7601_v29  ;;  %vm2303_vm3 = vcmp.gt.s32.totalorder %v2302_v37, 0  ;;  %11165 = vst [vmem:[#allocation22_spill] sm:$0xff] %v7639_v30 }
 0x297   : > { %v2304_v16 = vsel %vm2303_vm3, %v2302_v37, 0  ;;  %11172 = vst [vmem:[#allocation29_spill] sm:$0xff] %v7677_v42  ;;  %v7681_v37 = vor.u32 %v2164_v45, %v2163_v43 }
 0x298   : > { %v2451_v31 = vshrl.u32 %v2450_v35, 23  ;;  %v7610_v12 = vand.u32 31, %v2304_v16  ;;  %v7663_v3 = vshrl.u32 %v2304_v16, 5  ;;  %v7685_v35 = vshrl.u32 %v11025_v13, %v7631_v59 }
 0x299   : > { %11173 = vst [vmem:[#allocation30_spill] sm:$0xff] %v7681_v37 }
 0x29a   : > { %11156 = vst [vmem:[#allocation13_spill] sm:$0xff] %v7610_v12  ;;  %v5959_v25 = vadd.s32 4294967169, %v2451_v31  ;;  %v7622_v14 = vsub.s32 32, %v7610_v12  ;;  %v2321_v5 = vshll.u32 %v11027_v8, %v7610_v12  ;;  %v7689_v50 = vshll.u32 %v11019_v6, %v7610_v12 }
 0x29b   : > { %v1818_v48 = vpop.f32.mrf.mxu0  ;;  %11169 = vst [vmem:[#allocation26_spill] sm:$0xff] %v7663_v3  ;;  %vm2327_vm7 = vcmp.lt.s32.totalorder %v7663_v3, 4 }
 0x29c   : > { %v7606_v63 = vadd.f32 %v1818_v48, %v1749_v36  ;;  %11160 = vst [vmem:[#allocation17_spill] sm:$0xff] %v7622_v14  ;;  %v2457_v47 = vadd.s32 1, %v5959_v25  ;;  %v7641_v36 = vshrl.u32 %v1994_v27, 5  ;;  %v2322_v18 = vshrl.u32 %v11025_v13, %v7622_v14 }
 0x29d   : > { %11174 = vst [vmem:[#allocation31_spill] sm:$0xff] %v7685_v35  ;;  %v7703_v25 = vshrl.u32 %v11027_v8, %v7622_v14 }
 0x29e   : > { %11154 = vst [vmem:[#allocation11_spill] sm:$0xff] %v7606_v63  ;;  %v2605_v46 = vand.u32 2139095040, %v7606_v63  ;;  %vm2458_vm5 = vcmp.gt.s32.totalorder %v2457_v47, 0  ;;  %v11007_v7 = vand.u32 2147483647, %v7606_v63  ;;  %v2323_v17 = vor.u32 %v2322_v18, %v2321_v5 }
 0x29f   : > { %11166 = vst [vmem:[#allocation23_spill] sm:$0xff] %v7641_v36  ;;  %v2459_v61 = vsel %vm2458_vm5, %v2457_v47, 0 }
 0x2a0   : > { %v2606_v1 = vshrl.u32 %v2605_v46, 23  ;;  %v7691_v31 = vand.u32 31, %v2459_v61  ;;  %v7699_v21 = vand.u32 8388607, %v11007_v7  ;;  %v7707_v46 = vsel %vm2327_vm7, %v2323_v17, 1326507024 }
 0x2a1   : > { %11175 = vst [vmem:[#allocation32_spill] sm:$0xff] %v7707_v46 }
 0x2a2   : > { %v5962_v39 = vadd.s32 4294967169, %v2606_v1  ;;  %v7709_v1 = vshrl.u32 %v2459_v61, 5  ;;  %v7721_v33 = vsub.s32 32, %v7691_v31  ;;  %v7725_v18 = vshll.u32 %v11019_v6, %v7691_v31 }
 0x2a3   : > { %v1821_v32 = vpop.f32.mrf.mxu0 }
 0x2a4   : > { %v7644_v22 = vadd.f32 %v1821_v32, %v7585_v56  ;;  %v2612_v52 = vadd.s32 1, %v5962_v39 }
 0x2a6   : > { %v2760_v56 = vand.u32 2139095040, %v7644_v22  ;;  %vm2613_vm6 = vcmp.gt.s32.totalorder %v2612_v52, 0  ;;  %v11008_v28 = vand.u32 2147483647, %v7644_v22 }
 0x2a7   : > { %v2614_v57 = vsel %vm2613_vm6, %v2612_v52, 0  ;;  %v7729_v52 = vshll.u32 %v11027_v8, %v7691_v31 }
 0x2a8   : > { %v2761_v23 = vshrl.u32 %v2760_v56, 23  ;;  %v7679_v55 = vand.u32 31, %v2614_v57  ;;  %v7713_v47 = vand.u32 8388607, %v11008_v28  ;;  %v7731_v56 = vshrl.u32 %v2614_v57, 5 }
 0x2aa   : > { %v5965_v58 = vadd.s32 4294967169, %v2761_v23  ;;  %v2628_v23 = vshll.u32 %v11019_v6, %v7679_v55  ;;  %v7738_v43 = vshll.u32 %v11027_v8, %v7679_v55 }
 0x2ab   : > { %v1824_v27 = vpop.f32.mrf.mxu0 }
 0x2ac   : > { %v2767_v16 = vadd.s32 1, %v5965_v58  ;;  %v7695_v48 = vadd.f32 %v1824_v27, %v7587_v20  ;;  %v7716_v20 = vsub.s32 32, %v7679_v55 }
 0x2ae   : > { %vm2768_vm8 = vcmp.gt.s32.totalorder %v2767_v16, 0  ;;  %v2915_v39 = vand.u32 2139095040, %v7695_v48  ;;  %v11009_v32 = vand.u32 2147483647, %v7695_v48  ;;  %v2629_v57 = vshrl.u32 %v11027_v8, %v7716_v20 }
 0x2af   : > { %v2769_v38 = vsel %vm2768_vm8, %v2767_v16, 0  ;;  %v7747_v27 = vshrl.u32 %v11025_v13, %v7716_v20 }
 0x2b0   : > { %v2771_v45 = vand.u32 31, %v2769_v38  ;;  %v2916_v5 = vshrl.u32 %v2915_v39, 23  ;;  %v2919_v17 = vand.u32 8388607, %v11009_v32  ;;  %v2619_v39 = vshll.u32 %v11031_v2, %v7679_v55 }
 0x2b1   : > { %v2620_v32 = vshrl.u32 %v11033_v62, %v7716_v20  ;;  %v7758_v51 = vshrl.u32 %v2769_v38, 5  ;;  %v7767_v44 = vor.u32 %v2629_v57, %v2628_v23  ;;  %v11177_v38 = vmov 2102212464  }
 0x2b2   : > { %v2772_v16 = vsub.s32 32, %v2771_v45  ;;  %v2783_v7 = vshll.u32 %v11019_v6, %v2771_v45  ;;  %v5968_v28 = vadd.s32 4294967169, %v2916_v5  ;;  %v2920_v61 = vor.u32 8388608, %v2919_v17 }
 0x2b3   : > { %v2786_v58 = vshll.u32 %v11027_v8, %v2771_v45  ;;  %v2774_v26 = vshll.u32 %v11031_v2, %v2771_v45  ;;  %v2777_v53 = vshll.u32 %v11033_v62, %v2771_v45  ;;  %vm2792_vm10 = vcmp.lt.s32.totalorder %v7758_v51, 4 }
 0x2b4   : > { %v2784_v4 = vshrl.u32 %v11027_v8, %v2772_v16  ;;  %v2787_v0 = vshrl.u32 %v11025_v13, %v2772_v16  ;;  %v2775_v54 = vshrl.u32 %v11033_v62, %v2772_v16  ;;  %v2922_v30 = vadd.s32 1, %v5968_v28 }
 0x2b5   : > { %v2778_v6 = vshrl.u32 %v11176_v40, %v2772_v16  ;;  %v7764_v41 = vshll.u32 %v2920_v61, 8  ;;  %v2781_v8 = vshrl.u32 %v11177_v38, %v2772_v16  ;;  %v2780_v23 = vshll.u32 %v11176_v40, %v2771_v45 }
 0x2b6   : > { %v7762_v5 = vor.u32 %v2784_v4, %v2783_v7  ;;  %v2788_v17 = vor.u32 %v2787_v0, %v2786_v58  ;;  %vm2923_vm9 = vcmp.gt.s32.totalorder %v2922_v30, 0  ;;  %v7772_v49 = vor.u32 %v2775_v54, %v2774_v26 }
 0x2b7   : > { %v2924_v28 = vsel %vm2923_vm9, %v2922_v30, 0  ;;  %v7774_v2 = vor.u32 %v2778_v6, %v2777_v53  ;;  %v7776_v4 = vor.u32 %v2620_v32, %v2619_v39  ;;  %v11178_v7 = vmov 683565275  }
 0x2b8   : > { %v2926_v0 = vand.u32 31, %v2924_v28  ;;  %v7780_v61 = vshrl.u32 %v11178_v7, %v2772_v16  ;;  %v2798_v58 = vsel %vm2792_vm10, %v7762_v5, 920167782  ;;  %v2802_v54 = vsel %vm2792_vm10, %v2788_v17, 1326507024 }
 0x2b9   : > { %v2961_v6 = vand.u32 65535, %v7764_v41  ;;  %v2962_v53 = vshrl.u32 %v7764_v41, 16  ;;  %v2925_v26 = vshrl.u32 %v2924_v28, 5  ;;  %v2782_v32 = vor.u32 %v2781_v8, %v2780_v23 }
 0x2ba   : > { %v2927_v30 = vsub.s32 32, %v2926_v0  ;;  %vm2789_vm11 = vcmp.lt.s32.totalorder %v7758_v51, 1  ;;  %v2938_v57 = vshll.u32 %v11177_v38, %v2926_v0  ;;  %v11179_v16 = vmov 920167782  }
 0x2bb   : > { %v2941_v45 = vshll.u32 %v11179_v16, %v2926_v0  ;;  %vm2791_vm12 = vcmp.lt.s32.totalorder %v7758_v51, 3  ;;  %v2797_v39 = vsel %vm2789_vm11, %v7772_v49, %v7774_v2  ;;  %v11180_v13 = vmov 1326507024  }
 0x2bc   : > { %v2939_v17 = vshrl.u32 %v11179_v16, %v2927_v30  ;;  %v2942_v62 = vshrl.u32 %v11180_v13, %v2927_v30  ;;  %v2929_v28 = vshll.u32 %v11178_v7, %v2926_v0  ;;  %v11181_v8 = vmov 2475754826  }
 0x2bd   : > { %v2930_v23 = vshrl.u32 %v11181_v8, %v2927_v30  ;;  %v2932_v11 = vshll.u32 %v11181_v8, %v2926_v0  ;;  %v2933_v36 = vshrl.u32 %v11176_v40, %v2927_v30  ;;  %v2935_v10 = vshll.u32 %v11176_v40, %v2926_v0 }
 0x2be   : > { %v2936_v9 = vshrl.u32 %v11177_v38, %v2927_v30  ;;  %v2940_v60 = vor.u32 %v2939_v17, %v2938_v57  ;;  %v2943_v59 = vor.u32 %v2942_v62, %v2941_v45  ;;  %vm2947_vm13 = vcmp.lt.s32.totalorder %v2925_v26, 4 }
 0x2bf   : > { %v2931_v15 = vor.u32 %v2930_v23, %v2929_v28  ;;  %v2928_v19 = vshrl.u32 %v11178_v7, %v2927_v30  ;;  %v2934_v37 = vor.u32 %v2933_v36, %v2932_v11  ;;  %vm2944_vm14 = vcmp.lt.s32.totalorder %v2925_v26, 1 }
 0x2c0   : > { %v2937_v35 = vor.u32 %v2936_v9, %v2935_v10  ;;  %v2953_v42 = vsel %vm2947_vm13, %v2940_v60, 920167782  ;;  %v2957_v46 = vsel %vm2947_vm13, %v2943_v59, 1326507024  ;;  %vm2945_vm15 = vcmp.lt.s32.totalorder %v2925_v26, 2 }
 0x2c1   : > { %vm2946_vm1 = vcmp.lt.s32.totalorder %v2925_v26, 3  ;;  %v2952_v12 = vsel %vm2944_vm14, %v2931_v15, %v2934_v37  ;;  %v2948_v0 = vsel %vm2944_vm14, %v2928_v19, %v2931_v15  ;;  %v2799_v62 = vsel %vm2791_vm12, %v2782_v32, %v2798_v58 }
 0x2c2   : > { %v2949_v3 = vsel %vm2947_vm13, %v2937_v35, 2102212464  ;;  %v2954_v14 = vsel %vm2946_vm1, %v2937_v35, %v2953_v42  ;;  %v2956_v24 = vsel %vm2944_vm14, %v2934_v37, %v2937_v35  ;;  %v2958_v57 = vsel %vm2946_vm1, %v2940_v60, %v2957_v46 }
 0x2c3   : > { %v2955_v34 = vsel %vm2945_vm15, %v2952_v12, %v2954_v14  ;;  %v2950_v45 = vsel %vm2946_vm1, %v2934_v37, %v2949_v3  ;;  %v2959_v36 = vsel %vm2945_vm15, %v2956_v24, %v2958_v57  ;;  %vm2790_vm2 = vcmp.lt.s32.totalorder %v7758_v51, 2 }
 0x2c4   : > { %v2985_v10 = vand.u32 65535, %v2955_v34  ;;  %v2986_v9 = vshrl.u32 %v2955_v34, 16  ;;  %v2963_v11 = vand.u32 65535, %v2959_v36  ;;  %v2964_v59 = vshrl.u32 %v2959_v36, 16 }
 0x2c5   : > { %v7814_v42 = vsel %vm2792_vm10, %v2782_v32, 2102212464  ;;  %v7818_v12 = vsel %vm2790_vm2, %v2797_v39, %v2799_v62  ;;  %v2801_v14 = vsel %vm2789_vm11, %v7774_v2, %v2782_v32  ;;  %v7824_v34 = vsel %vm2945_vm15, %v2948_v0, %v2950_v45 }
 0x2c6   : > { %v2988_v19 = vmul.u32 %v2986_v9, %v2961_v6  ;;  %v2989_v15 = vmul.u32 %v2985_v10, %v2962_v53  ;;  %v2966_v60 = vmul.u32 %v2964_v59, %v2961_v6  ;;  %v2967_v3 = vmul.u32 %v2963_v11, %v2962_v53 }
 0x2c7   : > { %v2803_v24 = vsel %vm2791_vm12, %v7762_v5, %v2802_v54  ;;  %v2965_v37 = vmul.u32 %v2963_v11, %v2961_v6  ;;  %v2987_v35 = vmul.u32 %v2985_v10, %v2961_v6  ;;  %v2990_v46 = vmul.u32 %v2986_v9, %v2962_v53 }
 0x2c8   : > { %v2991_v58 = vshll.u32 %v2988_v19, 16  ;;  %v2968_v30 = vmul.u32 %v2964_v59, %v2962_v53  ;;  %v2969_v39 = vshll.u32 %v2966_v60, 16  ;;  %v2992_v17 = vshrl.u32 %v2988_v19, 16 }
 0x2c9   : > { %v2993_v28 = vshll.u32 %v2989_v15, 16  ;;  %v2804_v26 = vsel %vm2790_vm2, %v2801_v14, %v2803_v24  ;;  %v11182_v32 = vor.u32 8388608, %v7713_v47  ;;  %v2971_v57 = vshll.u32 %v2967_v3, 16 }
 0x2ca   : > { %vm2995_vm3 = vc.u32 %v2987_v35, %v2991_v58  ;;  %v2997_v23 = vadd.s32 %v2991_v58, %v2987_v35  ;;  %vm2973_vm4 = vc.u32 %v2965_v37, %v2969_v39  ;;  %v2975_v5 = vadd.s32 %v2969_v39, %v2965_v37 }
 0x2cb   : > { %v7833_v0 = vshll.u32 %v11182_v32, 8  ;;  %v11183_v54 = vmov 0   ;;  %v2808_v45 = vand.u32 65535, %v2804_v26  ;;  %v2809_v19 = vshrl.u32 %v2804_v26, 16 }
 0x2cc   : > { %v2996_v6 = vsel %vm2995_vm3, 1, %v11183_v54  ;;  %v2974_v62 = vsel %vm2973_vm4, 1, %v11183_v54  ;;  %vm2999_vm5 = vc.u32 %v2997_v23, %v2993_v28  ;;  %vm2977_vm6 = vc.u32 %v2975_v5, %v2971_v57 }
 0x2cd   : > { %v2998_v53 = vadd.s32 %v2996_v6, %v2990_v46  ;;  %v2976_v36 = vadd.s32 %v2974_v62, %v2968_v30  ;;  %v3000_v10 = vsel %vm2999_vm5, 1, %v11183_v54  ;;  %v2806_v9 = vand.u32 65535, %v7833_v0 }
 0x2ce   : > { %v2978_v47 = vsel %vm2977_vm6, 1, %v11183_v54  ;;  %v2807_v59 = vshrl.u32 %v7833_v0, 16  ;;  %v2970_v14 = vshrl.u32 %v2966_v60, 16  ;;  %v2830_v37 = vand.u32 65535, %v7818_v12 }
 0x2cf   : > { %v3002_v11 = vadd.s32 %v3000_v10, %v2998_v53  ;;  %v2980_v24 = vadd.s32 %v2978_v47, %v2976_v36  ;;  %v2831_v35 = vshrl.u32 %v7818_v12, 16  ;;  %v2994_v46 = vshrl.u32 %v2989_v15, 16 }
 0x2d0   : > { %v2811_v30 = vmul.u32 %v2809_v19, %v2806_v9  ;;  %v2812_v39 = vmul.u32 %v2808_v45, %v2807_v59  ;;  %v2972_v32 = vshrl.u32 %v2967_v3, 16  ;;  %v3005_v5 = vmul.u32 %v7764_v41, %v7824_v34 }
 0x2d1   : > { %v3003_v58 = vadd.s32 %v3002_v11, %v2992_v17  ;;  %v2981_v57 = vadd.s32 %v2980_v24, %v2970_v14  ;;  %v2833_v6 = vmul.u32 %v2831_v35, %v2806_v9  ;;  %v2810_v53 = vmul.u32 %v2808_v45, %v2806_v9 }
 0x2d2   : > { %v2814_v10 = vshll.u32 %v2811_v30, 16  ;;  %v2834_v26 = vmul.u32 %v2830_v37, %v2807_v59  ;;  %v7847_v36 = vadd.s32 %v2997_v23, %v2993_v28  ;;  %v2813_v47 = vmul.u32 %v2809_v19, %v2807_v59 }
 0x2d3   : > { %v3004_v62 = vadd.s32 %v3003_v58, %v2994_v46  ;;  %v7845_v60 = vadd.s32 %v2981_v57, %v2972_v32  ;;  %v2836_v12 = vshll.u32 %v2833_v6, 16  ;;  %v2816_v17 = vshll.u32 %v2812_v39, 16 }
 0x2d4   : > { %vm2818_vm8 = vc.u32 %v2810_v53, %v2814_v10  ;;  %v2820_v11 = vadd.s32 %v2814_v10, %v2810_v53  ;;  %vm2637_vm9 = vcmp.lt.s32.totalorder %v7731_v56, 4  ;;  %v2832_v34 = vmul.u32 %v2830_v37, %v2806_v9 }
 0x2d5   : > { %v3008_v15 = vadd.s32 1, %v3004_v62  ;;  %vm3007_vm10 = vc.u32 %v7845_v60, %v7847_v36  ;;  %v2819_v41 = vsel %vm2818_vm8, 1, %v11183_v54  ;;  %v2835_v3 = vmul.u32 %v2831_v35, %v2807_v59 }
 0x2d6   : > { %v2821_v14 = vadd.s32 %v2819_v41, %v2813_v47  ;;  %vm2822_vm13 = vc.u32 %v2820_v11, %v2816_v17  ;;  %v2838_v28 = vshll.u32 %v2834_v26, 16  ;;  %vm2840_vm14 = vc.u32 %v2832_v34, %v2836_v12 }
 0x2d7   : > { %v3009_v45 = vsel %vm3007_vm10, %v3008_v15, %v3004_v62  ;;  %v2823_v19 = vsel %vm2822_vm13, 1, %v11183_v54  ;;  %v2842_v24 = vadd.s32 %v2836_v12, %v2832_v34  ;;  %v2815_v46 = vshrl.u32 %v2811_v30, 16 }
 0x2d8   : > { %v3010_v23 = vadd.s32 %v3009_v45, %v3005_v5  ;;  %v2817_v58 = vshrl.u32 %v2812_v39, 16  ;;  %v2825_v32 = vadd.s32 %v2823_v19, %v2821_v14  ;;  %v2841_v57 = vsel %vm2840_vm14, 1, %v11183_v54 }
 0x2d9   : > { %v2837_v10 = vshrl.u32 %v2833_v6, 16  ;;  %v2843_v63 = vadd.s32 %v2841_v57, %v2835_v3  ;;  %vm2844_vm15 = vc.u32 %v2842_v24, %v2838_v28  ;;  %v2622_v37 = vshll.u32 %v11181_v8, %v7679_v55 }
 0x2da   : > { %v3011_v53 = vadd.s32 536870912, %v3010_v23  ;;  %v2826_v9 = vadd.s32 %v2825_v32, %v2815_v46  ;;  %v2845_v59 = vsel %vm2844_vm15, 1, %v11183_v54  ;;  %v2623_v35 = vshrl.u32 %v11176_v40, %v7716_v20 }
 0x2db   : > { %v2847_v30 = vadd.s32 %v2845_v59, %v2843_v63  ;;  %v2625_v39 = vshll.u32 %v11176_v40, %v7679_v55  ;;  %v2626_v6 = vshrl.u32 %v11177_v38, %v7716_v20  ;;  %v2793_v62 = vsel %vm2789_vm11, %v7780_v61, %v7772_v49 }
 0x2dc   : > { %v7860_v5 = vshrl.u32 %v3011_v53, 30  ;;  %v2795_v47 = vsel %vm2791_vm12, %v7774_v2, %v7814_v42  ;;  %v2827_v12 = vadd.s32 %v2826_v9, %v2817_v58  ;;  %v7874_v15 = vor.u32 %v2623_v35, %v2622_v37 }
 0x2dd   : > { %v2839_v17 = vshrl.u32 %v2834_v26, 16  ;;  %v2848_v55 = vadd.s32 %v2847_v30, %v2837_v10  ;;  %v2627_v11 = vor.u32 %v2626_v6, %v2625_v39  ;;  %v2474_v41 = vshrl.u32 %v11179_v16, %v7721_v33 }
 0x2de   : > { %v3013_v63 = vshll.u32 %v7860_v5, 30  ;;  %v2643_v49 = vsel %vm2637_vm9, %v7767_v44, 920167782  ;;  %v11184_v61 = vor.u32 %v7747_v27, %v7738_v43  ;;  %v2846_v42 = vadd.s32 %v2842_v24, %v2838_v28 }
 0x2df   : > { %v2796_v26 = vsel %vm2790_vm2, %v2793_v62, %v2795_v47  ;;  %v2849_v3 = vadd.s32 %v2848_v55, %v2839_v17  ;;  %vm2634_vm11 = vcmp.lt.s32.totalorder %v7731_v56, 1  ;;  %vm2636_vm1 = vcmp.lt.s32.totalorder %v7731_v56, 3 }
 0x2e0   : > { %v2647_v2 = vsel %vm2637_vm9, %v11184_v61, 1326507024  ;;  %v3014_v34 = vsub.s32 %v3010_v23, %v3013_v63  ;;  %vm2852_vm12 = vc.u32 %v2827_v12, %v2846_v42  ;;  %v2642_v45 = vsel %vm2634_vm11, %v7776_v4, %v7874_v15 }
 0x2e1   : > { %v2646_v43 = vsel %vm2634_vm11, %v7874_v15, %v2627_v11  ;;  %v2853_v14 = vadd.s32 1, %v2849_v3  ;;  %v2644_v51 = vsel %vm2636_vm1, %v2627_v11, %v2643_v49  ;;  %v2850_v28 = vmul.u32 %v7833_v0, %v2796_v26 }
 0x2e2   : > { %vm3015_vm3 = vcmp.lt.s32.totalorder %v3014_v34, 0  ;;  %v3016_v27 = vsub.s32 0, %v3014_v34  ;;  %vm2635_vm2 = vcmp.lt.s32.totalorder %v7731_v56, 2  ;;  %v2648_v23 = vsel %vm2636_vm1, %v7767_v44, %v2647_v2 }
 0x2e3   : > { %v11185_v19 = vor.u32 8388608, %v7699_v21  ;;  %v7911_v46 = vshrl.u32 %v11180_v13, %v7721_v33  ;;  %v2854_v32 = vsel %vm2852_vm12, %v2853_v14, %v2849_v3  ;;  %v2649_v57 = vsel %vm2635_vm2, %v2646_v43, %v2648_v23 }
 0x2e4   : > { %v3017_v58 = vsel %vm3015_vm3, %v3016_v27, %v3014_v34  ;;  %v7916_v0 = vor.u32 %v2474_v41, %v7725_v18  ;;  %v2855_v10 = vadd.s32 %v2854_v32, %v2850_v28  ;;  %v7920_v44 = vsel %vm2635_vm2, %v2642_v45, %v2644_v51 }
 0x2e5   : > { %v7907_v24 = vshll.u32 %v11185_v19, 8  ;;  %v3018_v53 = vclz %v3017_v58  ;;  %vm2914_vm4 = vcmp.lt.s32.totalorder %v7695_v48, 0  ;;  %v3036_v21 = vsub.s32 4, %v7860_v5 }
 0x2e6   : > { %v2618_v9 = vshrl.u32 %v11178_v7, %v7716_v20  ;;  %v2653_v59 = vand.u32 65535, %v2649_v57  ;;  %v2856_v35 = vadd.s32 536870912, %v2855_v10  ;;  %v2654_v18 = vshrl.u32 %v2649_v57, 16 }
 0x2e7   : > { %v5969_v37 = vadd.s32 4294967294, %v3018_v53  ;;  %v2651_v30 = vand.u32 65535, %v7907_v24  ;;  %v11186_v39 = vand.u32 2147483647, %v7695_v48  ;;  %v3006_v62 = vadd.s32 %v7847_v36, %v7845_v60 }
 0x2e8   : > { %v2652_v47 = vshrl.u32 %v7907_v24, 16  ;;  %v2676_v63 = vshrl.u32 %v7920_v44, 16  ;;  %v7937_v20 = vadd.s32 %v2846_v42, %v2827_v12  ;;  %v7939_v17 = vshrl.u32 %v2856_v35, 30 }
 0x2e9   : > { %vm7929_vm5 = vcmp.le.f32.partialorder %v11186_v39, 0.7853982  ;;  %vm5970_vm6 = vcmp.lt.s32.totalorder %v5969_v37, 0  ;;  %v2656_v55 = vmul.u32 %v2654_v18, %v2651_v30  ;;  %v7944_v49 = vsel %vm2634_vm11, %v2618_v9, %v7776_v4 }
 0x2ea   : > { %v3021_v41 = vsel %vm5970_vm6, 0, %v5969_v37  ;;  %v7946_v61 = vmul.u32 %v2653_v59, %v2652_v47  ;;  %v2675_v60 = vand.u32 65535, %v7920_v44  ;;  %v3037_v12 = vsel %vm2914_vm4, %v3036_v21, %v7860_v5 }
 0x2eb   : > { %v3022_v36 = vsub.s32 32, %v3021_v41  ;;  %v3026_v2 = vsub.s32 4294967266, %v3021_v41  ;;  %v2858_v42 = vshll.u32 %v7939_v17, 30  ;;  %v2639_v26 = vsel %vm2637_vm9, %v2627_v11, 2102212464 }
 0x2ec   : > { %v2655_v3 = vmul.u32 %v2653_v59, %v2651_v30  ;;  %v2659_v45 = vshll.u32 %v2656_v55, 16  ;;  %v7955_v43 = vmul.u32 %v2676_v63, %v2651_v30  ;;  %v3023_v4 = vshll.u32 %v3014_v34, %v3021_v41 }
 0x2ed   : > { %v3024_v27 = vshrl.u32 %v3006_v62, %v3022_v36  ;;  %v3027_v14 = vadd.s32 127, %v3026_v2  ;;  %v2859_v51 = vsub.s32 %v2855_v10, %v2858_v42  ;;  %v2661_v28 = vshll.u32 %v7946_v61, 16 }
 0x2ee   : > { %vm2663_vm8 = vc.u32 %v2655_v3, %v2659_v45  ;;  %v2665_v23 = vadd.s32 %v2659_v45, %v2655_v3  ;;  %v7958_v19 = vmul.u32 %v2675_v60, %v2652_v47  ;;  %vm2759_vm10 = vcmp.lt.s32.totalorder %v7644_v22, 0 }
 0x2ef   : > { %v3025_v5 = vor.u32 %v3024_v27, %v3023_v4  ;;  %v3028_v58 = vshll.u32 %v3027_v14, 23  ;;  %vm2860_vm13 = vcmp.lt.s32.totalorder %v2859_v51, 0  ;;  %v2861_v11 = vsub.s32 0, %v2859_v51 }
 0x2f0   : > { %v2658_v32 = vmul.u32 %v2654_v18, %v2652_v47  ;;  %v2664_v57 = vsel %vm2663_vm8, 1, %v11183_v54  ;;  %vm2667_vm9 = vc.u32 %v2665_v23, %v2661_v28  ;;  %v2681_v34 = vshll.u32 %v7955_v43, 16 }
 0x2f1   : > { %v3029_v53 = vor.u32 4788187, %v3028_v58  ;;  %v3039_v10 = vsel %vm7929_vm5, 0, %v3037_v12  ;;  %v2862_v44 = vsel %vm2860_vm13, %v2861_v11, %v2859_v51  ;;  %v2677_v21 = vmul.u32 %v2675_v60, %v2651_v30 }
 0x2f2   : > { %v2863_v9 = vclz %v2862_v44  ;;  %v2881_v59 = vsub.s32 4, %v7939_v17  ;;  %v2666_v37 = vadd.s32 %v2664_v57, %v2658_v32  ;;  %v2668_v35 = vsel %vm2667_vm9, 1, %v11183_v54 }
 0x2f3   : > { %v3030_v39 = vand.u32 2147483647, %v3029_v53  ;;  %v3032_v62 = vcvt.s32.f32 %v3025_v5  ;;  %v2660_v18 = vshrl.u32 %v2656_v55, 16  ;;  %v2683_v41 = vshll.u32 %v7958_v19, 16 }
 0x2f4   : > { %v5966_v36 = vadd.s32 4294967294, %v2863_v9  ;;  %v2670_v2 = vadd.s32 %v2668_v35, %v2666_v37  ;;  %vm2685_vm14 = vc.u32 %v2677_v21, %v2681_v34  ;;  %v2687_v42 = vadd.s32 %v2681_v34, %v2677_v21 }
 0x2f5   : > { %v3033_v3 = vmul.f32 %v3032_v62, %v3030_v39  ;;  %v3056_v45 = vadd.s32 3, %v3039_v10  ;;  %v2640_v30 = vsel %vm2636_vm1, %v7874_v15, %v2639_v26  ;;  %v2680_v60 = vmul.u32 %v2676_v63, %v2652_v47 }
 0x2f6   : > { %vm5967_vm15 = vcmp.lt.s32.totalorder %v5966_v36, 0  ;;  %v2671_v12 = vadd.s32 %v2670_v2, %v2660_v18  ;;  %v2686_v4 = vsel %vm2685_vm14, 1, %v11183_v54  ;;  %vm2689_vm11 = vc.u32 %v2687_v42, %v2683_v41 }
 0x2f7   : > { %v3034_v27 = vxor.u32 2147483648, %v3033_v3  ;;  %v2866_v55 = vsel %vm5967_vm15, 0, %v5966_v36  ;;  %v2688_v14 = vadd.s32 %v2686_v4, %v2680_v60  ;;  %v2690_v28 = vsel %vm2689_vm11, 1, %v11183_v54 }
 0x2f8   : > { %vm2482_vm12 = vcmp.lt.s32.totalorder %v7709_v1, 4  ;;  %v2867_v23 = vsub.s32 32, %v2866_v55  ;;  %v2871_v5 = vsub.s32 4294967266, %v2866_v55  ;;  %v2882_v58 = vsel %vm2759_vm10, %v2881_v59, %v7939_v17 }
 0x2f9   : > { %v2662_v15 = vshrl.u32 %v7946_v61, 16  ;;  %v3035_v47 = vsel %vm2914_vm4, %v3034_v27, %v3033_v3  ;;  %v2868_v63 = vshll.u32 %v2859_v51, %v2866_v55  ;;  %v2682_v26 = vshrl.u32 %v7955_v43, 16 }
 0x2fa   : > { %v2692_v11 = vadd.s32 %v2690_v28, %v2688_v14  ;;  %v7984_v32 = vsel %vm7929_vm5, %v7695_v48, %v3035_v47  ;;  %v2869_v57 = vshrl.u32 %v7937_v20, %v2867_v23  ;;  %v2872_v34 = vadd.s32 127, %v2871_v5 }
 0x2fb   : > { %v7987_v53 = vadd.s32 %v2671_v12, %v2662_v15  ;;  %v3040_v17 = vmul.f32 %v7984_v32, %v7984_v32  ;;  %v11189_v61 = vand.u32 2147483647, %v7644_v22  ;;  %v2684_v43 = vshrl.u32 %v7958_v19, 16 }
 0x2fc   : > { %v2693_v10 = vadd.s32 %v2692_v11, %v2682_v26  ;;  %v2870_v6 = vor.u32 %v2869_v57, %v2868_v63  ;;  %v2873_v44 = vshll.u32 %v2872_v34, 23  ;;  %v8000_v21 = vadd.s32 %v2687_v42, %v2683_v41 }
 0x2fd   : > { %vm7993_vm1 = vcmp.le.f32.partialorder %v11189_v61, 0.7853982  ;;  %v3041_v9 = vmul.f32 -0.001358992, %v3040_v17  ;;  %v3048_v59 = vmul.f32 -0.00019511016, %v3040_v17  ;;  %v2641_v37 = vsel %vm2635_vm2, %v7944_v49, %v2640_v30 }
 0x2fe   : > { %v2884_v20 = vsel %vm7993_vm1, 0, %v2882_v58  ;;  %v2694_v35 = vadd.s32 %v2693_v10, %v2684_v43  ;;  %v2478_v39 = vor.u32 %v7911_v46, %v7729_v52  ;;  %v8007_v62 = vand.u32 3, %v3056_v45 }
 0x2ff   : > { %v2874_v19 = vor.u32 4788187, %v2873_v44  ;;  %vm2697_vm3 = vc.u32 %v7987_v53, %v8000_v21  ;;  %v3042_v18 = vadd.f32 0.041655596, %v3041_v9  ;;  %v3049_v36 = vadd.f32 0.008332121, %v3048_v59 }
 0x300   : > { %v2901_v41 = vadd.s32 3, %v2884_v20  ;;  %v2698_v2 = vadd.s32 1, %v2694_v35  ;;  %v2877_v3 = vcvt.s32.f32 %v2870_v6  ;;  %v2695_v60 = vmul.u32 %v7907_v24, %v2641_v37 }
 0x301   : > { %v2875_v42 = vand.u32 2147483647, %v2874_v19  ;;  %v2447_v56 = vand.u32 2147483647, %v7601_v29  ;;  %v2488_v52 = vsel %vm2482_vm12, %v7916_v0, 920167782  ;;  %v3043_v46 = vmul.f32 %v3042_v18, %v3040_v17 }
 0x302   : > { %v3050_v49 = vmul.f32 %v3049_v36, %v3040_v17  ;;  %v2699_v45 = vsel %vm2697_vm3, %v2698_v2, %v2694_v35  ;;  %v2492_v30 = vsel %vm2482_vm12, %v2478_v39, 1326507024  ;;  %v2465_v27 = vshrl.u32 %v11181_v8, %v7721_v33 }
 0x303   : > { %v2878_v12 = vmul.f32 %v2877_v3, %v2875_v42  ;;  %v2700_v4 = vadd.s32 %v2699_v45, %v2695_v60  ;;  %v3044_v55 = vadd.f32 -0.4999988, %v3043_v46  ;;  %v8020_v24 = vand.u32 3, %v2901_v41 }
 0x304   : > { %v3051_v14 = vadd.f32 -0.16666654, %v3050_v49  ;;  %v2468_v28 = vshrl.u32 %v11176_v40, %v7721_v33  ;;  %vm3059_vm2 = vcmp.eq.s32.totalorder %v8007_v62, 0  ;;  %vm3062_vm4 = vcmp.eq.s32.totalorder %v8007_v62, 2 }
 0x305   : > { %v2879_v23 = vxor.u32 2147483648, %v2878_v12  ;;  %v2701_v5 = vadd.s32 536870912, %v2700_v4  ;;  %v2454_v58 = vand.u32 8388607, %v2447_v56  ;;  %v2464_v15 = vshll.u32 %v11178_v7, %v7691_v31 }
 0x306   : > { %v3045_v47 = vmul.f32 %v3044_v55, %v3040_v17  ;;  %v3052_v63 = vmul.f32 %v3051_v14, %v3040_v17  ;;  %vm3058_vm5 = vcmp.lt.s32.totalorder %v8007_v62, 2  ;;  %v2467_v26 = vshll.u32 %v11181_v8, %v7691_v31 }
 0x307   : > { %v2471_v11 = vshrl.u32 %v11177_v38, %v7721_v33  ;;  %vm3055_vm6 = vweird.f32 %v7695_v48  ;;  %v2880_v57 = vsel %vm2759_vm10, %v2879_v23, %v2878_v12  ;;  %v8038_v34 = vshrl.u32 %v2701_v5, 30 }
 0x308   : > { %v2466_v61 = vor.u32 %v2465_v27, %v2464_v15  ;;  %v2470_v43 = vshll.u32 %v11176_v40, %v7691_v31  ;;  %v3046_v17 = vadd.f32 1.0, %v3045_v47  ;;  %v3053_v10 = vadd.f32 1.0, %v3052_v63  ;;  %v11192_v47 = vld [vmem:[#allocation11_spill] sm:$0xff] }
 0x309   : > { %v8045_v6 = vsel %vm7993_vm1, %v7644_v22, %v2880_v57  ;;  %v2469_v44 = vor.u32 %v2468_v28, %v2467_v26  ;;  %v2703_v9 = vshll.u32 %v8038_v34, 30  ;;  %v2455_v59 = vor.u32 8388608, %v2454_v58 }
 0x30a   : > { %v2885_v20 = vmul.f32 %v8045_v6, %v8045_v6  ;;  %v2463_v37 = vshrl.u32 %v11178_v7, %v7721_v33  ;;  %v3054_v35 = vmul.f32 %v3053_v10, %v7984_v32  ;;  %v3063_v31 = vxor.u32 2147483648, %v3046_v17 }
 0x30b   : > { %v2472_v39 = vor.u32 %v2471_v11, %v2470_v43  ;;  %vm2479_vm8 = vcmp.lt.s32.totalorder %v7709_v1, 1  ;;  %v8054_v18 = vsub.s32 %v2700_v4, %v2703_v9  ;;  %vm2481_vm10 = vcmp.lt.s32.totalorder %v7709_v1, 3 }
 0x30c   : > { %v2886_v19 = vmul.f32 -0.001358992, %v2885_v20  ;;  %v2893_v51 = vmul.f32 -0.00019511016, %v2885_v20  ;;  %v3060_v36 = vxor.u32 2147483648, %v3054_v35  ;;  %vm2480_vm13 = vcmp.lt.s32.totalorder %v7709_v1, 2 }
 0x30d   : > { %v2487_v41 = vsel %vm2479_vm8, %v2466_v61, %v2469_v44  ;;  %v2493_v33 = vsel %vm2481_vm10, %v7916_v0, %v2492_v30  ;;  %vm2705_vm9 = vcmp.lt.s32.totalorder %v8054_v18, 0  ;;  %v2706_v42 = vsub.s32 0, %v8054_v18  ;;  %v11197_v1 = vld [vmem:[#allocation28_spill] sm:$0xff] }
 0x30e   : > { %v2887_v32 = vadd.f32 0.041655596, %v2886_v19  ;;  %v2894_v2 = vadd.f32 0.008332121, %v2893_v51  ;;  %v3061_v3 = vsel %vm3059_vm2, %v3046_v17, %v3060_v36  ;;  %v3064_v60 = vsel %vm3062_vm4, %v3063_v31, %v3054_v35 }
 0x30f   : > { %v2489_v46 = vsel %vm2481_vm10, %v2472_v39, %v2488_v52  ;;  %v2491_v49 = vsel %vm2479_vm8, %v2469_v44, %v2472_v39  ;;  %v3065_v0 = vsel %vm3058_vm5, %v3061_v3, %v3064_v60  ;;  %v2707_v12 = vsel %vm2705_vm9, %v2706_v42, %v8054_v18 }
 0x310   : > { %v2888_v45 = vmul.f32 %v2887_v32, %v2885_v20  ;;  %v2895_v30 = vmul.f32 %v2894_v2, %v2885_v20  ;;  %v3066_v4 = vsel %vm3055_vm6, nan, %v3065_v0  ;;  %vm2907_vm14 = vcmp.eq.s32.totalorder %v8020_v24, 2 }
 0x311   : > { %v2708_v27 = vclz %v2707_v12  ;;  %v2494_v55 = vsel %vm2480_vm13, %v2491_v49, %v2493_v33  ;;  %v8081_v52 = vshll.u32 %v2455_v59, 8  ;;  %v8085_v14 = vor.u32 %v7703_v25, %v7689_v50  ;;  %3157 = vmatpush.msra.mxu1 %v3066_v4 }
 0x312   : > { %v2889_v62 = vadd.f32 -0.4999988, %v2888_v45  ;;  %v2896_v28 = vadd.f32 -0.16666654, %v2895_v30  ;;  %v2484_v23 = vsel %vm2482_vm12, %v2472_v39, 2102212464  ;;  %v2696_v48 = vadd.s32 %v8000_v21, %v7987_v53 }
 0x313   : > { %vm2904_vm15 = vcmp.eq.s32.totalorder %v8020_v24, 0  ;;  %v5963_v5 = vadd.s32 4294967294, %v2708_v27  ;;  %v8094_v58 = vsel %vm2479_vm8, %v2463_v37, %v2466_v61  ;;  %v2490_v50 = vsel %vm2480_vm13, %v2487_v41, %v2489_v46 }
 0x314   : > { %v2890_v25 = vmul.f32 %v2889_v62, %v2885_v20  ;;  %v2897_v15 = vmul.f32 %v2896_v28, %v2885_v20  ;;  %vm2903_vm11 = vcmp.lt.s32.totalorder %v8020_v24, 2  ;;  %vm2604_vm1 = vcmp.lt.s32.totalorder %v11192_v47, 0 }
 0x315   : > { %v2498_v63 = vand.u32 65535, %v2494_v55  ;;  %v2499_v26 = vshrl.u32 %v2494_v55, 16  ;;  %vm2900_vm12 = vweird.f32 %v7644_v22  ;;  %vm5964_vm3 = vcmp.lt.s32.totalorder %v5963_v5, 0 }
 0x316   : > { %v2726_v53 = vsub.s32 4, %v8038_v34  ;;  %v2485_v21 = vsel %vm2481_vm10, %v2469_v44, %v2484_v23  ;;  %v2496_v11 = vand.u32 65535, %v8081_v52  ;;  %v2891_v57 = vadd.f32 1.0, %v2890_v25 }
 0x317   : > { %v2898_v61 = vadd.f32 1.0, %v2897_v15  ;;  %v2711_v43 = vsel %vm5964_vm3, 0, %v5963_v5  ;;  %v2497_v17 = vshrl.u32 %v8081_v52, 16  ;;  %v2521_v59 = vshrl.u32 %v2490_v50, 16 }
 0x318   : > { %v2712_v10 = vsub.s32 32, %v2711_v43  ;;  %v2716_v20 = vsub.s32 4294967266, %v2711_v43  ;;  %v2501_v9 = vmul.u32 %v2499_v26, %v2496_v11  ;;  %v2908_v35 = vxor.u32 2147483648, %v2891_v57 }
 0x319   : > { %v2899_v37 = vmul.f32 %v2898_v61, %v8045_v6  ;;  %v2500_v31 = vmul.u32 %v2498_v63, %v2496_v11  ;;  %v2502_v39 = vmul.u32 %v2498_v63, %v2497_v17  ;;  %v2713_v19 = vshll.u32 %v8054_v18, %v2711_v43 }
 0x31a   : > { %v2714_v51 = vshrl.u32 %v2696_v48, %v2712_v10  ;;  %v2717_v44 = vadd.s32 127, %v2716_v20  ;;  %v2504_v36 = vshll.u32 %v2501_v9, 16  ;;  %v11193_v32 = vand.u32 2147483647, %v11192_v47 }
 0x31b   : > { %v2905_v41 = vxor.u32 2147483648, %v2899_v37  ;;  %v2909_v33 = vsel %vm2907_vm14, %v2908_v35, %v2899_v37  ;;  %v2503_v42 = vmul.u32 %v2499_v26, %v2497_v17  ;;  %v2520_v6 = vand.u32 65535, %v2490_v50 }
 0x31c   : > { %vm8112_vm2 = vcmp.le.f32.partialorder %v11193_v32, 0.7853982  ;;  %v2715_v3 = vor.u32 %v2714_v51, %v2713_v19  ;;  %v2718_v60 = vshll.u32 %v2717_v44, 23  ;;  %vm2508_vm4 = vc.u32 %v2500_v31, %v2504_v36 }
 0x31d   : > { %v2510_v46 = vadd.s32 %v2504_v36, %v2500_v31  ;;  %v2906_v18 = vsel %vm2904_vm15, %v2891_v57, %v2905_v41  ;;  %v2506_v49 = vshll.u32 %v2502_v39, 16  ;;  %v2509_v0 = vsel %vm2508_vm4, 1, %v11183_v54  ;;  %v11199_v41 = vld [vmem:[#allocation13_spill] sm:$0xff] }
 0x31e   : > { %v2523_v45 = vmul.u32 %v2521_v59, %v2496_v11  ;;  %v2910_v30 = vsel %vm2903_vm11, %v2906_v18, %v2909_v33  ;;  %v2719_v12 = vor.u32 4788187, %v2718_v60  ;;  %v2727_v4 = vsel %vm2604_vm1, %v2726_v53, %v8038_v34  ;;  %v11196_v53 = vld [vmem:[#allocation9_spill] sm:$0xff] }
 0x31f   : > { %v2511_v27 = vadd.s32 %v2509_v0, %v2503_v42  ;;  %v2911_v55 = vsel %vm2900_vm12, nan, %v2910_v30  ;;  %vm2512_vm5 = vc.u32 %v2510_v46, %v2506_v49  ;;  %v2522_v62 = vmul.u32 %v2520_v6, %v2496_v11 }
 0x320   : > { %v2524_v28 = vmul.u32 %v2520_v6, %v2497_v17  ;;  %3158 = vmatpush.msra.mxu1 %v2911_v55  ;;  %v2720_v23 = vand.u32 2147483647, %v2719_v12  ;;  %v2722_v48 = vcvt.s32.f32 %v2715_v3  ;;  %v2513_v5 = vsel %vm2512_vm5, 1, %v11183_v54 }
 0x321   : > { %v2526_v50 = vshll.u32 %v2523_v45, 16  ;;  %v2505_v24 = vshrl.u32 %v2501_v9, 16  ;;  %v2515_v25 = vadd.s32 %v2513_v5, %v2511_v27  ;;  %v2525_v15 = vmul.u32 %v2521_v59, %v2497_v17  ;;  %v11203_v5 = vld [vmem:[#allocation31_spill] sm:$0xff] }
 0x322   : > { %v2528_v63 = vshll.u32 %v2524_v28, 16  ;;  %v2723_v26 = vmul.f32 %v2722_v48, %v2720_v23  ;;  %v2292_v57 = vand.u32 2147483647, %v11196_v53  ;;  %v2486_v22 = vsel %vm2480_vm13, %v8094_v58, %v2485_v21  ;;  %v11202_v48 = vld [vmem:[#allocation29_spill] sm:$0xff] }
 0x323   : > { %vm2530_vm6 = vc.u32 %v2522_v62, %v2526_v50  ;;  %v2532_v34 = vadd.s32 %v2526_v50, %v2522_v62  ;;  %v2507_v11 = vshrl.u32 %v2502_v39, 16  ;;  %v2516_v61 = vadd.s32 %v2515_v25, %v2505_v24  ;;  %v11198_v39 = vld [vmem:[#allocation17_spill] sm:$0xff] }
 0x324   : > { %v2531_v43 = vsel %vm2530_vm6, 1, %v11183_v54  ;;  %v2724_v10 = vxor.u32 2147483648, %v2723_v26  ;;  %v2729_v20 = vsel %vm8112_vm2, 0, %v2727_v4  ;;  %v2527_v59 = vshrl.u32 %v2523_v45, 16  ;;  %v11200_v4 = vld [vmem:[#allocation26_spill] sm:$0xff] }
 0x325   : > { %v2533_v9 = vadd.s32 %v2531_v43, %v2525_v15  ;;  %vm2534_vm8 = vc.u32 %v2532_v34, %v2528_v63  ;;  %v8134_v17 = vadd.s32 %v2516_v61, %v2507_v11  ;;  %v2299_v35 = vand.u32 8388607, %v2292_v57  ;;  %v11204_v11 = vld [vmem:[#allocation30_spill] sm:$0xff] }
 0x326   : > { %v2535_v37 = vsel %vm2534_vm8, 1, %v11183_v54  ;;  %vm2172_vm10 = vcmp.lt.s32.totalorder %v11197_v1, 4  ;;  %v2725_v58 = vsel %vm2604_vm1, %v2724_v10, %v2723_v26  ;;  %v8142_v21 = vadd.s32 %v2532_v34, %v2528_v63 }
 0x327   : > { %v2537_v31 = vadd.s32 %v2535_v37, %v2533_v9  ;;  %v2310_v19 = vshrl.u32 %v11181_v8, %v11198_v39  ;;  %v2728_v51 = vsel %vm8112_vm2, %v11192_v47, %v2725_v58  ;;  %v2746_v44 = vadd.s32 3, %v2729_v20 }
 0x328   : > { %v2529_v36 = vshrl.u32 %v2524_v28, 16  ;;  %v2309_v33 = vshll.u32 %v11178_v7, %v11199_v41  ;;  %v2730_v32 = vmul.f32 %v2728_v51, %v2728_v51  ;;  %vm2542_vm13 = vc.u32 %v8134_v17, %v8142_v21  ;;  %v11201_v28 = vld [vmem:[#allocation32_spill] sm:$0xff] }
 0x329   : > { %v2538_v42 = vadd.s32 %v2537_v31, %v2527_v59  ;;  %v2300_v6 = vor.u32 8388608, %v2299_v35  ;;  %v2312_v3 = vshll.u32 %v11181_v8, %v11199_v41  ;;  %v2313_v60 = vshrl.u32 %v11176_v40, %v11198_v39 }
 0x32a   : > { %v2315_v2 = vshll.u32 %v11176_v40, %v11199_v41  ;;  %v2316_v46 = vshrl.u32 %v11177_v38, %v11198_v39  ;;  %v2731_v18 = vmul.f32 -0.001358992, %v2730_v32  ;;  %v2738_v49 = vmul.f32 -0.00019511016, %v2730_v32 }
 0x32b   : > { %v2539_v0 = vadd.s32 %v2538_v42, %v2529_v36  ;;  %v8161_v45 = vor.u32 %v2310_v19, %v2309_v33  ;;  %v8163_v30 = vor.u32 %v2313_v60, %v2312_v3  ;;  %vm2324_vm9 = vcmp.lt.s32.totalorder %v11200_v4, 1 }
 0x32c   : > { %v8165_v12 = vor.u32 %v2316_v46, %v2315_v2  ;;  %vm2326_vm14 = vcmp.lt.s32.totalorder %v11200_v4, 3  ;;  %v2732_v27 = vadd.f32 0.041655596, %v2731_v18  ;;  %v2739_v55 = vadd.f32 0.008332121, %v2738_v49 }
 0x32d   : > { %v2543_v62 = vadd.s32 1, %v2539_v0  ;;  %v2338_v23 = vsel %vm2326_vm14, %v8085_v14, %v11201_v28  ;;  %v2168_v50 = vor.u32 %v11203_v5, %v11202_v48  ;;  %v2333_v24 = vsel %vm2327_vm7, %v8085_v14, 920167782 }
 0x32e   : > { %v2540_v25 = vmul.u32 %v8081_v52, %v2486_v22  ;;  %v2336_v15 = vsel %vm2324_vm9, %v8163_v30, %v8165_v12  ;;  %v2733_v63 = vmul.f32 %v2732_v27, %v2730_v32  ;;  %v2740_v26 = vmul.f32 %v2739_v55, %v2730_v32 }
 0x32f   : > { %v2544_v34 = vsel %vm2542_vm13, %v2543_v62, %v2539_v0  ;;  %vm2325_vm15 = vcmp.lt.s32.totalorder %v11200_v4, 2  ;;  %v8190_v61 = vsel %vm2172_vm10, %v11204_v11, 920167782  ;;  %v2747_v14 = vand.u32 3, %v2746_v44 }
 0x330   : > { %v2545_v52 = vadd.s32 %v2544_v34, %v2540_v25  ;;  %v2339_v22 = vsel %vm2325_vm15, %v2336_v15, %v2338_v23  ;;  %v2734_v43 = vadd.f32 -0.4999988, %v2733_v63  ;;  %v2741_v10 = vadd.f32 -0.16666654, %v2740_v26 }
 0x331   : > { %v2332_v20 = vsel %vm2324_vm9, %v8161_v45, %v8163_v30  ;;  %v8198_v9 = vshll.u32 %v2300_v6, 8  ;;  %v2334_v37 = vsel %vm2326_vm14, %v8165_v12, %v2333_v24  ;;  %v2343_v35 = vand.u32 65535, %v2339_v22 }
 0x332   : > { %v2546_v59 = vadd.s32 536870912, %v2545_v52  ;;  %v2344_v58 = vshrl.u32 %v2339_v22, 16  ;;  %v8205_v31 = vsel %vm2172_vm10, %v2168_v50, 1326507024  ;;  %v2735_v19 = vmul.f32 %v2734_v43, %v2730_v32 }
 0x333   : > { %v2742_v44 = vmul.f32 %v2741_v10, %v2730_v32  ;;  %v2341_v36 = vand.u32 65535, %v8198_v9  ;;  %vm2745_vm11 = vweird.f32 %v11192_v47  ;;  %vm2748_vm1 = vcmp.lt.s32.totalorder %v2747_v14, 2 }
 0x334   : > { %v2547_v41 = vshrl.u32 %v2546_v59, 30  ;;  %v2342_v33 = vshrl.u32 %v8198_v9, 16  ;;  %v2736_v42 = vadd.f32 1.0, %v2735_v19  ;;  %v2335_v3 = vsel %vm2325_vm15, %v2332_v20, %v2334_v37  ;;  %v11205_v37 = vld [vmem:[#allocation8_spill] sm:$0xff] }
 0x335   : > { %v2743_v6 = vadd.f32 1.0, %v2742_v44  ;;  %v2346_v60 = vmul.u32 %v2344_v58, %v2341_v36  ;;  %vm2749_vm12 = vcmp.eq.s32.totalorder %v2747_v14, 0  ;;  %vm2752_vm3 = vcmp.eq.s32.totalorder %v2747_v14, 2 }
 0x336   : > { %v2548_v2 = vshll.u32 %v2547_v41, 30  ;;  %v8212_v46 = vmul.u32 %v2343_v35, %v2342_v33  ;;  %v2753_v18 = vxor.u32 2147483648, %v2736_v42  ;;  %vm2449_vm2 = vcmp.lt.s32.totalorder %v7601_v29, 0 }
 0x337   : > { %v2744_v32 = vmul.f32 %v2743_v6, %v2728_v51  ;;  %v2345_v49 = vmul.u32 %v2343_v35, %v2341_v36  ;;  %v2349_v0 = vshll.u32 %v2346_v60, 16  ;;  %v2541_v27 = vadd.s32 %v8142_v21, %v8134_v17 }
 0x338   : > { %v2549_v55 = vsub.s32 %v2545_v52, %v2548_v2  ;;  %v2308_v62 = vshrl.u32 %v11178_v7, %v11198_v39  ;;  %v2366_v28 = vshrl.u32 %v2335_v3, 16  ;;  %v2348_v48 = vmul.u32 %v2344_v58, %v2342_v33 }
 0x339   : > { %v2750_v23 = vxor.u32 2147483648, %v2744_v32  ;;  %vm2353_vm4 = vc.u32 %v2345_v49, %v2349_v0  ;;  %v2365_v5 = vand.u32 65535, %v2335_v3  ;;  %v2351_v51 = vshll.u32 %v8212_v46, 16 }
 0x33a   : > { %vm2550_vm5 = vcmp.lt.s32.totalorder %v2549_v55, 0  ;;  %v2551_v50 = vsub.s32 0, %v2549_v55  ;;  %v2354_v24 = vsel %vm2353_vm4, 1, %v11183_v54  ;;  %v2754_v15 = vsel %vm2752_vm3, %v2753_v18, %v2744_v32 }
 0x33b   : > { %v2751_v25 = vsel %vm2749_vm12, %v2736_v42, %v2750_v23  ;;  %v2355_v17 = vadd.s32 %v2349_v0, %v2345_v49  ;;  %v2356_v21 = vadd.s32 %v2354_v24, %v2348_v48  ;;  %v2571_v26 = vsub.s32 4, %v2547_v41 }
 0x33c   : > { %v2755_v63 = vsel %vm2748_vm1, %v2751_v25, %v2754_v15  ;;  %v2552_v39 = vsel %vm2550_vm5, %v2551_v50, %v2549_v55  ;;  %v2368_v34 = vmul.u32 %v2366_v28, %v2341_v36  ;;  %v2329_v43 = vsel %vm2327_vm7, %v8165_v12, 2102212464  ;;  %v11208_v25 = vld [vmem:[#allocation14_spill] sm:$0xff] }
 0x33d   : > { %v2756_v52 = vsel %vm2745_vm11, nan, %v2755_v63  ;;  %v2553_v22 = vclz %v2552_v39  ;;  %vm2357_vm6 = vc.u32 %v2355_v17, %v2351_v51  ;;  %v2350_v10 = vshrl.u32 %v2346_v60, 16 }
 0x33e   : > { %3159 = vmatpush.msra.mxu1 %v2756_v52  ;;  %v2358_v20 = vsel %vm2357_vm6, 1, %v11183_v54  ;;  %v2369_v59 = vmul.u32 %v2365_v5, %v2342_v33  ;;  %v2137_v14 = vand.u32 2147483647, %v11205_v37  ;;  %v2367_v19 = vmul.u32 %v2365_v5, %v2341_v36 }
 0x33f   : > { %v5960_v35 = vadd.s32 4294967294, %v2553_v22  ;;  %v2360_v58 = vadd.s32 %v2358_v20, %v2356_v21  ;;  %v2371_v44 = vshll.u32 %v2368_v34, 16  ;;  %vm8233_vm8 = vcmp.le.f32.partialorder %v2447_v56, 0.7853982  ;;  %v11209_v21 = vld [vmem:[#allocation20_spill] sm:$0xff] }
 0x340   : > { %v2572_v12 = vsel %vm2449_vm2, %v2571_v26, %v2547_v41  ;;  %v2328_v42 = vsel %vm2324_vm9, %v2308_v62, %v8161_v45  ;;  %v2330_v6 = vsel %vm2326_vm14, %v8163_v30, %v2329_v43  ;;  %v2370_v3 = vmul.u32 %v2366_v28, %v2342_v33 }
 0x341   : > { %vm5961_vm7 = vcmp.lt.s32.totalorder %v5960_v35, 0  ;;  %v2361_v36 = vadd.s32 %v2360_v58, %v2350_v10  ;;  %vm2375_vm13 = vc.u32 %v2367_v19, %v2371_v44  ;;  %v2377_v60 = vadd.s32 %v2371_v44, %v2367_v19 }
 0x342   : > { %v2556_v56 = vsel %vm5961_vm7, 0, %v5960_v35  ;;  %v2373_v2 = vshll.u32 %v2369_v59, 16  ;;  %v2376_v32 = vsel %vm2375_vm13, 1, %v11183_v54  ;;  %v2144_v41 = vand.u32 8388607, %v2137_v14 }
 0x343   : > { %v2557_v18 = vsub.s32 32, %v2556_v56  ;;  %v2561_v49 = vsub.s32 4294967266, %v2556_v56  ;;  %v2352_v45 = vshrl.u32 %v8212_v46, 16  ;;  %v2372_v0 = vshrl.u32 %v2368_v34, 16 }
 0x344   : > { %v2558_v62 = vshll.u32 %v2549_v55, %v2556_v56  ;;  %v2374_v23 = vshrl.u32 %v2369_v59, 16  ;;  %v2378_v30 = vadd.s32 %v2376_v32, %v2370_v3  ;;  %vm2379_vm9 = vc.u32 %v2377_v60, %v2373_v2  ;;  %v11211_v3 = vld [vmem:[#allocation25_spill] sm:$0xff] }
 0x345   : > { %v2559_v33 = vshrl.u32 %v2541_v27, %v2557_v18  ;;  %v2562_v28 = vadd.s32 127, %v2561_v49  ;;  %v8249_v48 = vadd.s32 %v2361_v36, %v2352_v45  ;;  %v2380_v5 = vsel %vm2379_vm9, 1, %v11183_v54 }
 0x346   : > { %v8252_v50 = vadd.s32 %v2377_v60, %v2373_v2  ;;  %v2382_v51 = vadd.s32 %v2380_v5, %v2378_v30  ;;  %v2145_v24 = vor.u32 8388608, %v2144_v41  ;;  %v2154_v15 = vshll.u32 %v11178_v7, %v11208_v25 }
 0x347   : > { %v2560_v17 = vor.u32 %v2559_v33, %v2558_v62  ;;  %v2563_v46 = vshll.u32 %v2562_v28, 23  ;;  %v2155_v55 = vshrl.u32 %v11181_v8, %v11209_v21  ;;  %v2157_v27 = vshll.u32 %v11181_v8, %v11208_v25  ;;  %v11212_v33 = vld [vmem:[#allocation15_spill] sm:$0xff] }
 0x348   : > { %v2383_v63 = vadd.s32 %v2382_v51, %v2372_v0  ;;  %v2158_v39 = vshrl.u32 %v11176_v40, %v11209_v21  ;;  %v2160_v26 = vshll.u32 %v11176_v40, %v11208_v25  ;;  %v2161_v34 = vshrl.u32 %v11177_v38, %v11209_v21 }
 0x349   : > { %v2564_v52 = vor.u32 4788187, %v2563_v46  ;;  %v2574_v22 = vsel %vm8233_vm8, 0, %v2572_v12  ;;  %v2331_v43 = vsel %vm2325_vm15, %v2328_v42, %v2330_v6  ;;  %v2156_v10 = vor.u32 %v2155_v55, %v2154_v15  ;;  %v11210_v6 = vld [vmem:[#allocation24_spill] sm:$0xff] }
 0x34a   : > { %v2384_v20 = vadd.s32 %v2383_v63, %v2374_v23  ;;  %vm2387_vm14 = vc.u32 %v8249_v48, %v8252_v50  ;;  %v8272_v59 = vor.u32 %v2158_v39, %v2157_v27  ;;  %v2162_v35 = vor.u32 %v2161_v34, %v2160_v26 }
 0x34b   : > { %v2565_v58 = vand.u32 2147483647, %v2564_v52  ;;  %v2567_v19 = vcvt.s32.f32 %v2560_v17  ;;  %vm2169_vm11 = vcmp.lt.s32.totalorder %v11197_v1, 1  ;;  %vm2171_vm1 = vcmp.lt.s32.totalorder %v11197_v1, 3  ;;  %v11214_v17 = vld [vmem:[#allocation27_spill] sm:$0xff] }
 0x34c   : > { %v2388_v44 = vadd.s32 1, %v2384_v20  ;;  %v2177_v4 = vsel %vm2169_vm11, %v2156_v10, %v8272_v59  ;;  %v2179_v12 = vsel %vm2171_vm1, %v2162_v35, %v8190_v61  ;;  %v8282_v42 = vshll.u32 %v2145_v24, 8 }
 0x34d   : > { %v2013_v36 = vor.u32 %v11211_v3, %v11210_v6  ;;  %v2568_v60 = vmul.f32 %v2567_v19, %v2565_v58  ;;  %v2385_v56 = vmul.u32 %v8198_v9, %v2331_v43  ;;  %v2181_v2 = vsel %vm2169_vm11, %v8272_v59, %v2162_v35 }
 0x34e   : > { %v2591_v32 = vadd.s32 3, %v2574_v22  ;;  %v2389_v41 = vsel %vm2387_vm14, %v2388_v44, %v2384_v20  ;;  %vm2170_vm15 = vcmp.lt.s32.totalorder %v11197_v1, 2  ;;  %v2183_v61 = vsel %vm2171_vm1, %v11204_v11, %v8205_v31  ;;  %v11213_v11 = vld [vmem:[#allocation23_spill] sm:$0xff] }
 0x34f   : > { %v2569_v18 = vxor.u32 2147483648, %v2568_v60  ;;  %v2390_v49 = vadd.s32 %v2389_v41, %v2385_v56  ;;  %v8300_v9 = vsel %vm2170_vm15, %v2177_v4, %v2179_v12  ;;  %v2184_v45 = vsel %vm2170_vm15, %v2181_v2, %v2183_v61 }
 0x350   : > { %v2186_v0 = vand.u32 65535, %v8282_v42  ;;  %v8306_v62 = vshrl.u32 %v8282_v42, 16  ;;  %v2188_v23 = vand.u32 65535, %v2184_v45  ;;  %v2189_v30 = vshrl.u32 %v2184_v45, 16 }
 0x351   : > { %v8310_v28 = vshrl.u32 %v11180_v13, %v11212_v33  ;;  %vm2017_vm12 = vcmp.lt.s32.totalorder %v11213_v11, 4  ;;  %v2570_v31 = vsel %vm2449_vm2, %v2569_v18, %v2568_v60  ;;  %v2391_v5 = vadd.s32 536870912, %v2390_v49 }
 0x352   : > { %v8318_v51 = vsel %vm8233_vm8, %v7601_v29, %v2570_v31  ;;  %v2191_v24 = vmul.u32 %v2189_v30, %v2186_v0  ;;  %v8321_v25 = vmul.u32 %v2188_v23, %v8306_v62  ;;  %v2211_v15 = vshrl.u32 %v8300_v9, 16 }
 0x353   : > { %v8327_v46 = vsel %vm2017_vm12, %v11214_v17, 920167782  ;;  %v8331_v55 = vsel %vm2017_vm12, %v2013_v36, 1326507024  ;;  %v2575_v47 = vmul.f32 %v8318_v51, %v8318_v51  ;;  %v8335_v27 = vshrl.u32 %v2391_v5, 30 }
 0x354   : > { %v8337_v63 = vand.u32 3, %v2591_v32  ;;  %v2174_v39 = vsel %vm2172_vm10, %v2162_v35, 2102212464  ;;  %v2190_v26 = vmul.u32 %v2188_v23, %v2186_v0  ;;  %v2194_v34 = vshll.u32 %v2191_v24, 16 }
 0x355   : > { %v2576_v52 = vmul.f32 -0.001358992, %v2575_v47  ;;  %v2583_v22 = vmul.f32 -0.00019511016, %v2575_v47  ;;  %v2393_v43 = vshll.u32 %v8335_v27, 30  ;;  %v2153_v20 = vshrl.u32 %v11178_v7, %v11209_v21 }
 0x356   : > { %v2196_v58 = vshll.u32 %v8321_v25, 16  ;;  %vm2198_vm3 = vc.u32 %v2190_v26, %v2194_v34  ;;  %v2200_v19 = vadd.s32 %v2194_v34, %v2190_v26  ;;  %v8345_v44 = vmul.u32 %v2211_v15, %v2186_v0 }
 0x357   : > { %v2577_v4 = vadd.f32 0.041655596, %v2576_v52  ;;  %v2584_v12 = vadd.f32 0.008332121, %v2583_v22  ;;  %v8347_v6 = vsub.s32 %v2390_v49, %v2393_v43  ;;  %v2210_v35 = vand.u32 65535, %v8300_v9 }
 0x358   : > { %v2173_v3 = vsel %vm2169_vm11, %v2153_v20, %v2156_v10  ;;  %v2193_v36 = vmul.u32 %v2189_v30, %v8306_v62  ;;  %v2199_v60 = vsel %vm2198_vm3, 1, %v11183_v54  ;;  %vm2202_vm10 = vc.u32 %v2200_v19, %v2196_v58 }
 0x359   : > { %v2578_v21 = vmul.f32 %v2577_v4, %v2575_v47  ;;  %v2585_v56 = vmul.f32 %v2584_v12, %v2575_v47  ;;  %vm2395_vm2 = vcmp.lt.s32.totalorder %v8347_v6, 0  ;;  %v2396_v2 = vsub.s32 0, %v8347_v6 }
 0x35a   : > { %v2175_v32 = vsel %vm2171_vm1, %v8272_v59, %v2174_v39  ;;  %v2201_v41 = vadd.s32 %v2199_v60, %v2193_v36  ;;  %v2203_v61 = vsel %vm2202_vm10, 1, %v11183_v54  ;;  %v2216_v10 = vshll.u32 %v8345_v44, 16  ;;  %v11217_v60 = vld [vmem:[#allocation7_spill] sm:$0xff] }
 0x35b   : > { %v2579_v18 = vadd.f32 -0.4999988, %v2578_v21  ;;  %v2586_v49 = vadd.f32 -0.16666654, %v2585_v56  ;;  %v2397_v9 = vsel %vm2395_vm2, %v2396_v2, %v8347_v6  ;;  %v2212_v45 = vmul.u32 %v2210_v35, %v2186_v0 }
 0x35c   : > { %vm2594_vm4 = vcmp.eq.s32.totalorder %v8337_v63, 0  ;;  %vm2597_vm5 = vcmp.eq.s32.totalorder %v8337_v63, 2  ;;  %v2386_v23 = vadd.s32 %v8252_v50, %v8249_v48  ;;  %v2398_v30 = vclz %v2397_v9 }
 0x35d   : > { %v2205_v31 = vadd.s32 %v2203_v61, %v2201_v41  ;;  %v2214_v59 = vmul.u32 %v2210_v35, %v8306_v62  ;;  %v2580_v5 = vmul.f32 %v2579_v18, %v2575_v47  ;;  %v2587_v39 = vmul.f32 %v2586_v49, %v2575_v47 }
 0x35e   : > { %vm2593_vm6 = vcmp.lt.s32.totalorder %v8337_v63, 2  ;;  %v2195_v26 = vshrl.u32 %v2191_v24, 16  ;;  %vm2220_vm8 = vc.u32 %v2212_v45, %v2216_v10  ;;  %vm2590_vm7 = vweird.f32 %v7601_v29 }
 0x35f   : > { %vm2294_vm13 = vcmp.lt.s32.totalorder %v11196_v53, 0  ;;  %v5957_v0 = vadd.s32 4294967294, %v2398_v30  ;;  %v2176_v34 = vsel %vm2170_vm15, %v2173_v3, %v2175_v32  ;;  %v2197_v48 = vshrl.u32 %v8321_v25, 16 }
 0x360   : > { %v2215_v50 = vmul.u32 %v2211_v15, %v8306_v62  ;;  %v2581_v52 = vadd.f32 1.0, %v2580_v5  ;;  %v2588_v22 = vadd.f32 1.0, %v2587_v39  ;;  %v2206_v43 = vadd.s32 %v2205_v31, %v2195_v26  ;;  %v11219_v39 = vld [vmem:[#allocation16_spill] sm:$0xff] }
 0x361   : > { %v2221_v47 = vsel %vm2220_vm8, 1, %v11183_v54  ;;  %vm5958_vm9 = vcmp.lt.s32.totalorder %v5957_v0, 0  ;;  %v2218_v24 = vshll.u32 %v2214_v59, 16  ;;  %v2222_v20 = vadd.s32 %v2216_v10, %v2212_v45 }
 0x362   : > { %v2223_v58 = vadd.s32 %v2221_v47, %v2215_v50  ;;  %v2589_v19 = vmul.f32 %v2588_v22, %v8318_v51  ;;  %v2598_v4 = vxor.u32 2147483648, %v2581_v52  ;;  %v2401_v12 = vsel %vm5958_vm9, 0, %v5957_v0 }
 0x363   : > { %v2416_v1 = vsub.s32 4, %v8335_v27  ;;  %vm8379_vm14 = vcmp.le.f32.partialorder %v2292_v57, 0.7853982  ;;  %v2402_v62 = vsub.s32 32, %v2401_v12  ;;  %v2406_v15 = vsub.s32 4294967266, %v2401_v12 }
 0x364   : > { %v2217_v35 = vshrl.u32 %v8345_v44, 16  ;;  %vm2224_vm11 = vc.u32 %v2222_v20, %v2218_v24  ;;  %v2595_v3 = vxor.u32 2147483648, %v2589_v19  ;;  %v8384_v36 = vadd.s32 %v2206_v43, %v2197_v48 }
 0x365   : > { %v2225_v51 = vsel %vm2224_vm11, 1, %v11183_v54  ;;  %v1982_v21 = vand.u32 2147483647, %v11217_v60  ;;  %v2403_v56 = vshll.u32 %v8347_v6, %v2401_v12  ;;  %v2404_v2 = vshrl.u32 %v2386_v23, %v2402_v62 }
 0x366   : > { %v2407_v32 = vadd.s32 127, %v2406_v15  ;;  %v2227_v57 = vadd.s32 %v2225_v51, %v2223_v58  ;;  %v2596_v41 = vsel %vm2594_vm4, %v2581_v52, %v2595_v3  ;;  %v2599_v61 = vsel %vm2597_vm5, %v2598_v4, %v2589_v19 }
 0x367   : > { %v2219_v44 = vshrl.u32 %v2214_v59, 16  ;;  %v8393_v10 = vadd.s32 %v2222_v20, %v2218_v24  ;;  %v2600_v18 = vsel %vm2593_vm6, %v2596_v41, %v2599_v61  ;;  %v2405_v49 = vor.u32 %v2404_v2, %v2403_v56  ;;  %v11218_v59 = vld [vmem:[#allocation12_spill] sm:$0xff]  ;;  %v11222_v56 = vld [vmem:[#allocation18_spill] sm:$0xff] }
 0x368   : > { %v2408_v9 = vshll.u32 %v2407_v32, 23  ;;  %v2228_v45 = vadd.s32 %v2227_v57, %v2217_v35  ;;  %v2601_v6 = vsel %vm2590_vm7, nan, %v2600_v18  ;;  %v2417_v23 = vsel %vm2294_vm13, %v2416_v1, %v8335_v27 }
 0x369   : > { %vm2232_vm1 = vc.u32 %v8384_v36, %v8393_v10  ;;  %v1989_v30 = vand.u32 8388607, %v1982_v21  ;;  %3160 = vmatpush.msra.mxu1 %v2601_v6  ;;  %v1999_v5 = vshll.u32 %v11178_v7, %v11218_v59  ;;  %v2000_v29 = vshrl.u32 %v11181_v8, %v11219_v39 }
 0x36a   : > { %v2409_v31 = vor.u32 4788187, %v2408_v9  ;;  %v2229_v63 = vadd.s32 %v2228_v45, %v2219_v44  ;;  %v2412_v26 = vcvt.s32.f32 %v2405_v49  ;;  %v2002_v27 = vshll.u32 %v11181_v8, %v11218_v59  ;;  %v11223_v45 = vld [vmem:[#allocation22_spill] sm:$0xff] }
 0x36b   : > { %v1990_v0 = vor.u32 8388608, %v1989_v30  ;;  %v2003_v48 = vshrl.u32 %v11176_v40, %v11219_v39  ;;  %v2005_v22 = vshll.u32 %v11176_v40, %v11218_v59  ;;  %v2006_v43 = vshrl.u32 %v11177_v38, %v11219_v39 }
 0x36c   : > { %v2410_v50 = vand.u32 2147483647, %v2409_v31  ;;  %v2233_v52 = vadd.s32 1, %v2229_v63  ;;  %v2419_v47 = vsel %vm8379_vm14, 0, %v2417_v23  ;;  %v2230_v24 = vmul.u32 %v8282_v42, %v2176_v34  ;;  %v11220_v42 = vld [vmem:[#allocation19_spill] sm:$0xff]  ;;  %v11221_v34 = vld [vmem:[#allocation21_spill] sm:$0xff] }
 0x36d   : > { %v2001_v20 = vor.u32 %v2000_v29, %v1999_v5  ;;  %v2004_v58 = vor.u32 %v2003_v48, %v2002_v27  ;;  %v2007_v12 = vor.u32 %v2006_v43, %v2005_v22  ;;  %vm2016_vm15 = vcmp.lt.s32.totalorder %v11213_v11, 3 }
 0x36e   : > { %v2413_v19 = vmul.f32 %v2412_v26, %v2410_v50  ;;  %v2234_v4 = vsel %vm2232_vm1, %v2233_v52, %v2229_v63  ;;  %vm2014_vm3 = vcmp.lt.s32.totalorder %v11213_v11, 1  ;;  %v2028_v62 = vsel %vm2016_vm15, %v11214_v17, %v8331_v55 }
 0x36f   : > { %v2235_v1 = vadd.s32 %v2234_v4, %v2230_v24  ;;  %v8430_v15 = vshll.u32 %v1990_v0, 8  ;;  %v8434_v35 = vor.u32 %v11221_v34, %v11220_v42  ;;  %vm2015_vm10 = vcmp.lt.s32.totalorder %v11213_v11, 2 }
 0x370   : > { %v2414_v3 = vxor.u32 2147483648, %v2413_v19  ;;  %v2026_v51 = vsel %vm2014_vm3, %v2004_v58, %v2007_v12  ;;  %vm1862_vm2 = vcmp.lt.s32.totalorder %v11222_v56, 4  ;;  %v2436_v2 = vadd.s32 3, %v2419_v47 }
 0x371   : > { %v2236_v32 = vadd.s32 536870912, %v2235_v1  ;;  %v2029_v57 = vsel %vm2015_vm10, %v2026_v51, %v2028_v62  ;;  %v2022_v55 = vsel %vm2014_vm3, %v2001_v20, %v2004_v58  ;;  %v2024_v41 = vsel %vm2016_vm15, %v2007_v12, %v8327_v46 }
 0x372   : > { %v2415_v17 = vsel %vm2294_vm13, %v2414_v3, %v2413_v19  ;;  %v8450_v61 = vand.u32 65535, %v8430_v15  ;;  %v2033_v49 = vand.u32 65535, %v2029_v57  ;;  %v2034_v9 = vshrl.u32 %v2029_v57, 16 }
 0x373   : > { %v2418_v44 = vsel %vm8379_vm14, %v11196_v53, %v2415_v17  ;;  %v8455_v18 = vshrl.u32 %v2236_v32, 30  ;;  %v1858_v6 = vor.u32 %v8310_v28, %v11223_v45  ;;  %v8462_v23 = vsel %vm1862_vm2, %v8434_v35, 920167782 }
 0x374   : > { %v2420_v46 = vmul.f32 %v2418_v44, %v2418_v44  ;;  %v1998_v30 = vshrl.u32 %v11178_v7, %v11219_v39  ;;  %v2019_v25 = vsel %vm2017_vm12, %v2007_v12, 2102212464  ;;  %v2032_v63 = vshrl.u32 %v8430_v15, 16 }
 0x375   : > { %v2238_v31 = vshll.u32 %v8455_v18, 30  ;;  %v2036_v59 = vmul.u32 %v2034_v9, %v8450_v61  ;;  %v8471_v29 = vand.u32 3, %v2436_v2  ;;  %v2025_v26 = vsel %vm2015_vm10, %v2022_v55, %v2024_v41 }
 0x376   : > { %v2421_v5 = vmul.f32 -0.001358992, %v2420_v46  ;;  %v2428_v28 = vmul.f32 -0.00019511016, %v2420_v46  ;;  %v2018_v39 = vsel %vm2014_vm3, %v1998_v30, %v2001_v20  ;;  %v8479_v27 = vmul.u32 %v2033_v49, %v2032_v63 }
 0x377   : > { %v8475_v0 = vsub.s32 %v2235_v1, %v2238_v31  ;;  %v2039_v48 = vshll.u32 %v2036_v59, 16  ;;  %v2020_v22 = vsel %vm2016_vm15, %v2004_v58, %v2019_v25  ;;  %v2035_v43 = vmul.u32 %v2033_v49, %v8450_v61 }
 0x378   : > { %v2422_v50 = vadd.f32 0.041655596, %v2421_v5  ;;  %v2429_v52 = vadd.f32 0.008332121, %v2428_v28  ;;  %v2038_v24 = vmul.u32 %v2034_v9, %v2032_v63  ;;  %v2055_v19 = vand.u32 65535, %v2025_v26 }
 0x379   : > { %vm2240_vm12 = vcmp.lt.s32.totalorder %v8475_v0, 0  ;;  %v2241_v47 = vsub.s32 0, %v8475_v0  ;;  %vm2043_vm4 = vc.u32 %v2035_v43, %v2039_v48  ;;  %v2045_v20 = vadd.s32 %v2039_v48, %v2035_v43 }
 0x37a   : > { %v2423_v4 = vmul.f32 %v2422_v50, %v2420_v46  ;;  %v2430_v12 = vmul.f32 %v2429_v52, %v2420_v46  ;;  %v2041_v62 = vshll.u32 %v8479_v27, 16  ;;  %v2044_v42 = vsel %vm2043_vm4, 1, %v11183_v54 }
 0x37b   : > { %v2242_v1 = vsel %vm2240_vm12, %v2241_v47, %v8475_v0  ;;  %v2056_v34 = vshrl.u32 %v2025_v26, 16  ;;  %v2046_v2 = vadd.s32 %v2044_v42, %v2038_v24  ;;  %v8491_v32 = vsel %vm1862_vm2, %v1858_v6, 1326507024 }
 0x37c   : > { %v2424_v58 = vadd.f32 -0.4999988, %v2423_v4  ;;  %v2431_v3 = vadd.f32 -0.16666654, %v2430_v12  ;;  %v2243_v51 = vclz %v2242_v1  ;;  %vm2439_vm5 = vcmp.eq.s32.totalorder %v8471_v29, 0  ;;  %v11224_v12 = vld [vmem:[#allocation6_spill] sm:$0xff] }
 0x37d   : > { %vm2442_vm6 = vcmp.eq.s32.totalorder %v8471_v29, 2  ;;  %vm2047_vm8 = vc.u32 %v2045_v20, %v2041_v62  ;;  %vm2438_vm7 = vcmp.lt.s32.totalorder %v8471_v29, 2  ;;  %vm2435_vm13 = vweird.f32 %v11196_v53 }
 0x37e   : > { %v2425_v57 = vmul.f32 %v2424_v58, %v2420_v46  ;;  %v2432_v17 = vmul.f32 %v2431_v3, %v2420_v46  ;;  %v5954_v55 = vadd.s32 4294967294, %v2243_v51  ;;  %v2048_v41 = vsel %vm2047_vm8, 1, %v11183_v54 }
 0x37f   : > { %v2231_v49 = vadd.s32 %v8393_v10, %v8384_v36  ;;  %v8502_v9 = vsel %vm2015_vm10, %v2018_v39, %v2020_v22  ;;  %v2050_v45 = vadd.s32 %v2048_v41, %v2046_v2  ;;  %v2058_v6 = vmul.u32 %v2056_v34, %v8450_v61  ;;  %v11227_v41 = vld [vmem:[#allocation10_spill] sm:$0xff] }
 0x380   : > { %v2426_v30 = vadd.f32 1.0, %v2425_v57  ;;  %v2433_v31 = vadd.f32 1.0, %v2432_v17  ;;  %vm5955_vm9 = vcmp.lt.s32.totalorder %v5954_v55, 0  ;;  %v2059_v46 = vmul.u32 %v2055_v19, %v2032_v63 }
 0x381   : > { %v2246_v25 = vsel %vm5955_vm9, 0, %v5954_v55  ;;  %v2040_v5 = vshrl.u32 %v2036_v59, 16  ;;  %v2042_v28 = vshrl.u32 %v8479_v27, 16  ;;  %v2061_v26 = vshll.u32 %v2058_v6, 16 }
 0x382   : > { %v2434_v48 = vmul.f32 %v2433_v31, %v2418_v44  ;;  %v2443_v50 = vxor.u32 2147483648, %v2426_v30  ;;  %v2247_v52 = vsub.s32 32, %v2246_v25  ;;  %v2057_v36 = vmul.u32 %v2055_v19, %v8450_v61 }
 0x383   : > { %v2248_v11 = vshll.u32 %v8475_v0, %v2246_v25  ;;  %v2251_v10 = vsub.s32 4294967266, %v2246_v25  ;;  %v2051_v39 = vadd.s32 %v2050_v45, %v2040_v5  ;;  %v2060_v22 = vmul.u32 %v2056_v34, %v2032_v63 }
 0x384   : > { %v2440_v43 = vxor.u32 2147483648, %v2434_v48  ;;  %v2249_v47 = vshrl.u32 %v2231_v49, %v2247_v52  ;;  %v2063_v24 = vshll.u32 %v2059_v46, 16  ;;  %vm2065_vm14 = vc.u32 %v2057_v36, %v2061_v26 }
 0x385   : > { %v2444_v59 = vsel %vm2442_vm6, %v2443_v50, %v2434_v48  ;;  %vm2139_vm11 = vcmp.lt.s32.totalorder %v11205_v37, 0  ;;  %v2252_v27 = vadd.s32 127, %v2251_v10  ;;  %v2066_v44 = vsel %vm2065_vm14, 1, %v11183_v54 }
 0x386   : > { %v2067_v4 = vadd.s32 %v2061_v26, %v2057_v36  ;;  %v2441_v61 = vsel %vm2439_vm5, %v2426_v30, %v2440_v43  ;;  %v2250_v0 = vor.u32 %v2249_v47, %v2248_v11  ;;  %v2068_v19 = vadd.s32 %v2066_v44, %v2060_v22 }
 0x387   : > { %v1827_v63 = vand.u32 2147483647, %v11224_v12  ;;  %v2445_v20 = vsel %vm2438_vm7, %v2441_v61, %v2444_v59  ;;  %v2253_v1 = vshll.u32 %v2252_v27, 23  ;;  %v2261_v62 = vsub.s32 4, %v8455_v18 }
 0x388   : > { %vm2069_vm1 = vc.u32 %v2067_v4, %v2063_v24  ;;  %v2446_v42 = vsel %vm2435_vm13, nan, %v2445_v20  ;;  %vm8522_vm15 = vcmp.le.f32.partialorder %v2137_v14, 0.7853982  ;;  %v8526_v58 = vadd.s32 %v2051_v39, %v2042_v28 }
 0x389   : > { %v2062_v3 = vshrl.u32 %v2058_v6, 16  ;;  %v2070_v51 = vsel %vm2069_vm1, 1, %v11183_v54  ;;  %3161 = vmatpush.msra.mxu1 %v2446_v42  ;;  %v2254_v29 = vor.u32 4788187, %v2253_v1  ;;  %v2064_v2 = vshrl.u32 %v2059_v46, 16 }
 0x38a   : > { %v8529_v57 = vadd.s32 %v2067_v4, %v2063_v24  ;;  %v2072_v17 = vadd.s32 %v2070_v51, %v2068_v19  ;;  %v2257_v55 = vcvt.s32.f32 %v2250_v0  ;;  %v1834_v53 = vand.u32 8388607, %v1827_v63 }
 0x38b   : > { %v1844_v14 = vshll.u32 %v11178_v7, %v11227_v41  ;;  %v1845_v49 = vshrl.u32 %v11181_v8, %v11212_v33  ;;  %v2255_v45 = vand.u32 2147483647, %v2254_v29  ;;  %v1847_v30 = vshll.u32 %v11181_v8, %v11227_v41 }
 0x38c   : > { %v2073_v6 = vadd.s32 %v2072_v17, %v2062_v3  ;;  %v1848_v31 = vshrl.u32 %v11176_v40, %v11212_v33  ;;  %v1835_v46 = vor.u32 8388608, %v1834_v53  ;;  %v1850_v5 = vshll.u32 %v11176_v40, %v11227_v41 }
 0x38d   : > { %v8541_v25 = vor.u32 %v1845_v49, %v1844_v14  ;;  %v1851_v28 = vshrl.u32 %v11177_v38, %v11212_v33  ;;  %v2258_v26 = vmul.f32 %v2257_v55, %v2255_v45  ;;  %v2075_v50 = vmul.u32 %v8430_v15, %v8502_v9 }
 0x38e   : > { %v2074_v48 = vadd.s32 %v2073_v6, %v2064_v2  ;;  %v8549_v52 = vor.u32 %v1848_v31, %v1847_v30  ;;  %v2262_v36 = vsel %vm2139_vm11, %v2261_v62, %v8455_v18  ;;  %vm2077_vm3 = vc.u32 %v8526_v58, %v8529_v57 }
 0x38f   : > { %v8556_v11 = vor.u32 %v1851_v28, %v1850_v5  ;;  %vm1861_vm10 = vcmp.lt.s32.totalorder %v11222_v56, 3  ;;  %v2259_v10 = vxor.u32 2147483648, %v2258_v26  ;;  %vm1859_vm12 = vcmp.lt.s32.totalorder %v11222_v56, 1 }
 0x390   : > { %v2078_v39 = vadd.s32 1, %v2074_v48  ;;  %v1873_v15 = vsel %vm1861_vm10, %v8434_v35, %v8491_v32  ;;  %v1867_v18 = vsel %vm1859_vm12, %v8541_v25, %v8549_v52  ;;  %v8576_v43 = vshll.u32 %v1835_v46, 8 }
 0x391   : > { %v1869_v9 = vsel %vm1861_vm10, %v8556_v11, %v8462_v23  ;;  %v1871_v22 = vsel %vm1859_vm12, %v8549_v52, %v8556_v11  ;;  %v2260_v35 = vsel %vm2139_vm11, %v2259_v10, %v2258_v26  ;;  %v2264_v32 = vsel %vm8522_vm15, 0, %v2262_v36 }
 0x392   : > { %v2079_v47 = vsel %vm2077_vm3, %v2078_v39, %v2074_v48  ;;  %vm1860_vm4 = vcmp.lt.s32.totalorder %v11222_v56, 2  ;;  %v2263_v23 = vsel %vm8522_vm15, %v11205_v37, %v2260_v35  ;;  %v2281_v61 = vadd.s32 3, %v2264_v32 }
 0x393   : > { %v2080_v24 = vadd.s32 %v2079_v47, %v2075_v50  ;;  %v1874_v59 = vsel %vm1860_vm4, %v1871_v22, %v1873_v15  ;;  %v2265_v27 = vmul.f32 %v2263_v23, %v2263_v23  ;;  %v8590_v44 = vsel %vm1860_vm4, %v1867_v18, %v1869_v9 }
 0x394   : > { %v1878_v4 = vand.u32 65535, %v1874_v59  ;;  %v1876_v19 = vand.u32 65535, %v8576_v43  ;;  %v1879_v20 = vshrl.u32 %v1874_v59, 16  ;;  %v1877_v42 = vshrl.u32 %v8576_v43, 16 }
 0x395   : > { %v2081_v0 = vadd.s32 536870912, %v2080_v24  ;;  %v2266_v1 = vmul.f32 -0.001358992, %v2265_v27  ;;  %v2273_v62 = vmul.f32 -0.00019511016, %v2265_v27  ;;  %v1901_v51 = vshrl.u32 %v8590_v44, 16 }
 0x396   : > { %v1881_v3 = vmul.u32 %v1879_v20, %v1876_v19  ;;  %v8597_v17 = vmul.u32 %v1878_v4, %v1877_v42  ;;  %v2282_v55 = vand.u32 3, %v2281_v61  ;;  %v1880_v41 = vmul.u32 %v1878_v4, %v1876_v19 }
 0x397   : > { %v8594_v34 = vshrl.u32 %v2081_v0, 30  ;;  %v2267_v29 = vadd.f32 0.041655596, %v2266_v1  ;;  %v2274_v2 = vadd.f32 0.008332121, %v2273_v62  ;;  %v1883_v6 = vmul.u32 %v1879_v20, %v1877_v42 }
 0x398   : > { %v1884_v14 = vshll.u32 %v1881_v3, 16  ;;  %v1900_v30 = vand.u32 65535, %v8590_v44  ;;  %v8601_v5 = vmul.u32 %v1901_v51, %v1876_v19  ;;  %v1886_v48 = vshll.u32 %v8597_v17, 16 }
 0x399   : > { %v2083_v53 = vshll.u32 %v8594_v34, 30  ;;  %v2268_v49 = vmul.f32 %v2267_v29, %v2265_v27  ;;  %v2275_v45 = vmul.f32 %v2274_v2, %v2265_v27  ;;  %vm2283_vm8 = vcmp.lt.s32.totalorder %v2282_v55, 2 }
 0x39a   : > { %vm1888_vm5 = vc.u32 %v1880_v41, %v1884_v14  ;;  %v1890_v46 = vadd.s32 %v1884_v14, %v1880_v41  ;;  %vm2280_vm13 = vweird.f32 %v11205_v37  ;;  %v1904_v22 = vmul.u32 %v1900_v30, %v1877_v42 }
 0x39b   : > { %v2084_v31 = vsub.s32 %v2080_v24, %v2083_v53  ;;  %v2269_v28 = vadd.f32 -0.4999988, %v2268_v49  ;;  %v2276_v26 = vadd.f32 -0.16666654, %v2275_v45  ;;  %v1889_v50 = vsel %vm1888_vm5, 1, %v11183_v54 }
 0x39c   : > { %v1891_v10 = vadd.s32 %v1889_v50, %v1883_v6  ;;  %vm1892_vm7 = vc.u32 %v1890_v46, %v1886_v48  ;;  %v1906_v35 = vshll.u32 %v8601_v5, 16  ;;  %vm2284_vm9 = vcmp.eq.s32.totalorder %v2282_v55, 0 }
 0x39d   : > { %vm2085_vm6 = vcmp.lt.s32.totalorder %v2084_v31, 0  ;;  %v2086_v36 = vsub.s32 0, %v2084_v31  ;;  %v2270_v39 = vmul.f32 %v2269_v28, %v2265_v27  ;;  %v2277_v15 = vmul.f32 %v2276_v26, %v2265_v27 }
 0x39e   : > { %v1893_v9 = vsel %vm1892_vm7, 1, %v11183_v54  ;;  %vm2287_vm14 = vcmp.eq.s32.totalorder %v2282_v55, 2  ;;  %v2076_v59 = vadd.s32 %v8529_v57, %v8526_v58  ;;  %v1902_v27 = vmul.u32 %v1900_v30, %v1876_v19 }
 0x39f   : > { %v2087_v18 = vsel %vm2085_vm6, %v2086_v36, %v2084_v31  ;;  %v2271_v32 = vadd.f32 1.0, %v2270_v39  ;;  %v2278_v47 = vadd.f32 1.0, %v2277_v15  ;;  %v1895_v44 = vadd.s32 %v1893_v9, %v1891_v10 }
 0x3a0   : > { %v2088_v24 = vclz %v2087_v18  ;;  %v1843_v20 = vshrl.u32 %v11178_v7, %v11212_v33  ;;  %v1885_v1 = vshrl.u32 %v1881_v3, 16  ;;  %v1908_v62 = vshll.u32 %v1904_v22, 16 }
 0x3a1   : > { %v2279_v4 = vmul.f32 %v2278_v47, %v2263_v23  ;;  %v2288_v61 = vxor.u32 2147483648, %v2271_v32  ;;  %vm1910_vm11 = vc.u32 %v1902_v27, %v1906_v35  ;;  %v1912_v29 = vadd.s32 %v1906_v35, %v1902_v27 }
 0x3a2   : > { %v5951_v0 = vadd.s32 4294967294, %v2088_v24  ;;  %v1864_v53 = vsel %vm1862_vm2, %v8556_v11, 2102212464  ;;  %v1905_v41 = vmul.u32 %v1901_v51, %v1877_v42  ;;  %v1896_v57 = vadd.s32 %v1895_v44, %v1885_v1 }
 0x3a3   : > { %v2285_v2 = vxor.u32 2147483648, %v2279_v4  ;;  %v1911_v23 = vsel %vm1910_vm11, 1, %v11183_v54  ;;  %vm1914_vm15 = vc.u32 %v1912_v29, %v1908_v62  ;;  %v2289_v33 = vsel %vm2287_vm14, %v2288_v61, %v2279_v4 }
 0x3a4   : > { %vm5952_vm1 = vcmp.lt.s32.totalorder %v5951_v0, 0  ;;  %v1887_v45 = vshrl.u32 %v8597_v17, 16  ;;  %v1913_v6 = vadd.s32 %v1911_v23, %v1905_v41  ;;  %v1915_v30 = vsel %vm1914_vm15, 1, %v11183_v54 }
 0x3a5   : > { %v2091_v58 = vsel %vm5952_vm1, 0, %v5951_v0  ;;  %v2286_v19 = vsel %vm2284_vm9, %v2271_v32, %v2285_v2  ;;  %v1863_v28 = vsel %vm1859_vm12, %v1843_v20, %v8541_v25  ;;  %v1907_v26 = vshrl.u32 %v8601_v5, 16 }
 0x3a6   : > { %v2092_v3 = vsub.s32 32, %v2091_v58  ;;  %v2096_v14 = vsub.s32 4294967266, %v2091_v58  ;;  %v2290_v49 = vsel %vm2283_vm8, %v2286_v19, %v2289_v33  ;;  %v2093_v42 = vshll.u32 %v2084_v31, %v2091_v58 }
 0x3a7   : > { %v2291_v11 = vsel %vm2280_vm13, nan, %v2290_v49  ;;  %v1917_v55 = vadd.s32 %v1915_v30, %v1913_v6  ;;  %v1865_v17 = vsel %vm1861_vm10, %v8549_v52, %v1864_v53  ;;  %v1897_v36 = vadd.s32 %v1896_v57, %v1887_v45 }
 0x3a8   : > { %v2094_v51 = vshrl.u32 %v2076_v59, %v2092_v3  ;;  %v2097_v46 = vadd.s32 127, %v2096_v14  ;;  %3162 = vmatpush.msra.mxu1 %v2291_v11  ;;  %v1909_v37 = vshrl.u32 %v1904_v22, 16  ;;  %v1916_v39 = vadd.s32 %v1912_v29, %v1908_v62 }
 0x3a9   : > { %v1918_v10 = vadd.s32 %v1917_v55, %v1907_v26  ;;  %v1866_v15 = vsel %vm1860_vm4, %v1863_v28, %v1865_v17  ;;  %vm1984_vm3 = vcmp.lt.s32.totalorder %v11217_v60, 0  ;;  %vm8636_vm10 = vcmp.le.f32.partialorder %v1982_v21, 0.7853982 }
 0x3aa   : > { %v2095_v48 = vor.u32 %v2094_v51, %v2093_v42  ;;  %v2098_v50 = vshll.u32 %v2097_v46, 23  ;;  %vm1922_vm2 = vc.u32 %v1897_v36, %v1916_v39  ;;  %v1920_v32 = vmul.u32 %v8576_v43, %v1866_v15 }
 0x3ab   : > { %v1919_v18 = vadd.s32 %v1918_v10, %v1909_v37  ;;  %v2106_v22 = vsub.s32 4, %v8594_v34  ;;  %v1921_v46 = vadd.s32 %v1916_v39, %v1897_v36  ;;  %vm2125_vm7 = vweird.f32 %v11217_v60 }
 0x3ac   : > { %v2099_v31 = vor.u32 4788187, %v2098_v50  ;;  %v2102_v25 = vcvt.s32.f32 %v2095_v48  ;;  %vm1829_vm13 = vcmp.lt.s32.totalorder %v11224_v12, 0  ;;  %vm1828_vm9 = vcmp.le.f32.partialorder %v1827_v63, 0.7853982 }
 0x3ad   : > { %v1923_v5 = vadd.s32 1, %v1919_v18  ;;  %v2107_v61 = vsel %vm1984_vm3, %v2106_v22, %v8594_v34  ;;  %vm1970_vm15 = vweird.f32 %v11224_v12 }
 0x3ae   : > { %v2100_v9 = vand.u32 2147483647, %v2099_v31  ;;  %v2109_v2 = vsel %vm8636_vm10, 0, %v2107_v61 }
 0x3af   : > { %v1924_v47 = vsel %vm1922_vm2, %v1923_v5, %v1919_v18  ;;  %v2126_v19 = vadd.s32 3, %v2109_v2 }
 0x3b0   : > { %v2103_v35 = vmul.f32 %v2102_v25, %v2100_v9  ;;  %v1925_v59 = vadd.s32 %v1924_v47, %v1920_v32 }
 0x3b1   : > { %v2127_v30 = vand.u32 3, %v2126_v19  ;;  %v5971_v19 = vld [vmem:[%s11002_s3 + $0x40] sm:$0xff] }
 0x3b2   : > { %v2104_v24 = vxor.u32 2147483648, %v2103_v35  ;;  %v1926_v44 = vadd.s32 536870912, %v1925_v59 }
 0x3b3   : > { %vm2129_vm5 = vcmp.eq.s32.totalorder %v2127_v30, 0  ;;  %vm2132_vm6 = vcmp.eq.s32.totalorder %v2127_v30, 2  ;;  %vm2128_vm8 = vcmp.lt.s32.totalorder %v2127_v30, 2 }
 0x3b4   : > { %v2105_v56 = vsel %vm1984_vm3, %v2104_v24, %v2103_v35  ;;  %v1927_v4 = vshrl.u32 %v1926_v44, 30 }
 0x3b5   : > { %v2108_v27 = vsel %vm8636_vm10, %v11217_v60, %v2105_v56 }
 0x3b6   : > { %v2110_v43 = vmul.f32 %v2108_v27, %v2108_v27  ;;  %v1928_v1 = vshll.u32 %v1927_v4, 30  ;;  %v1951_v47 = vsub.s32 4, %v1927_v4 }
 0x3b8   : > { %v2111_v0 = vmul.f32 -0.001358992, %v2110_v43  ;;  %v2118_v20 = vmul.f32 -0.00019511016, %v2110_v43  ;;  %v1929_v29 = vsub.s32 %v1925_v59, %v1928_v1  ;;  %v1952_v56 = vsel %vm1829_vm13, %v1951_v47, %v1927_v4 }
 0x3ba   : > { %v2112_v62 = vadd.f32 0.041655596, %v2111_v0  ;;  %v2119_v21 = vadd.f32 0.008332121, %v2118_v20  ;;  %vm1930_vm12 = vcmp.lt.s32.totalorder %v1929_v29, 0  ;;  %v1931_v58 = vsub.s32 0, %v1929_v29 }
 0x3bc   : > { %v2113_v53 = vmul.f32 %v2112_v62, %v2110_v43  ;;  %v2120_v41 = vmul.f32 %v2119_v21, %v2110_v43  ;;  %v1932_v33 = vsel %vm1930_vm12, %v1931_v58, %v1929_v29 }
 0x3bd   : > { %v1933_v3 = vclz %v1932_v33 }
 0x3be   : > { %v2114_v57 = vadd.f32 -0.4999988, %v2113_v53  ;;  %v2121_v23 = vadd.f32 -0.16666654, %v2120_v41 }
 0x3bf   : > { %v5948_v49 = vadd.s32 4294967294, %v1933_v3  ;;  %v5972_v3 = vld [vmem:[%s11002_s3 + $0x48] sm:$0xff] }
 0x3c0   : > { %v2115_v14 = vmul.f32 %v2114_v57, %v2110_v43  ;;  %v2122_v34 = vmul.f32 %v2121_v23, %v2110_v43 }
 0x3c1   : > { %vm5949_vm4 = vcmp.lt.s32.totalorder %v5948_v49, 0 }
 0x3c2   : > { %v2116_v45 = vadd.f32 1.0, %v2115_v14  ;;  %v2123_v6 = vadd.f32 1.0, %v2122_v34  ;;  %v1936_v51 = vsel %vm5949_vm4, 0, %v5948_v49  ;;  %v5973_v14 = vld [vmem:[%s11002_s3 + $0x50] sm:$0xff]  ;;  %v5975_v34 = vld [vmem:[%s11002_s3 + $0x60] sm:$0xff]  ;;  %v5976_v49 = vld [vmem:[%s11002_s3 + $0x68] sm:$0xff] }
 0x3c3   : > { %v1937_v28 = vsub.s32 32, %v1936_v51  ;;  %v1941_v26 = vsub.s32 4294967266, %v1936_v51  ;;  %v1938_v48 = vshll.u32 %v1929_v29, %v1936_v51 }
 0x3c4   : > { %v2124_v11 = vmul.f32 %v2123_v6, %v2108_v27  ;;  %v2133_v42 = vxor.u32 2147483648, %v2116_v45  ;;  %v1954_v27 = vsel %vm1828_vm9, 0, %v1952_v56  ;;  %v5978_v6 = vld [vmem:[%s11002_s3 + $0x78] sm:$0xff] }
 0x3c5   : > { %v1939_v50 = vshrl.u32 %v1921_v46, %v1937_v28  ;;  %v1942_v17 = vadd.s32 127, %v1941_v26  ;;  %v1971_v1 = vadd.s32 3, %v1954_v27  ;;  %v3118_v46 = vpop.permute.xlu2 %3117  ;;  %v3123_v28 = vpop.permute.xlu1 %3122 }
 0x3c6   : > { %v2130_v55 = vxor.u32 2147483648, %v2124_v11  ;;  %v2134_v10 = vsel %vm2132_vm6, %v2133_v42, %v2124_v11 }
 0x3c7   : > { %v1940_v15 = vor.u32 %v1939_v50, %v1938_v48  ;;  %v1943_v18 = vshll.u32 %v1942_v17, 23  ;;  %v1972_v2 = vand.u32 3, %v1971_v1  ;;  %v3113_v17 = vpop.permute.xlu0 %3112 }
 0x3c8   : > { %v2131_v37 = vsel %vm2129_vm5, %v2116_v45, %v2130_v55  ;;  %v5977_v45 = vld [vmem:[%s11002_s3 + $0x70] sm:$0xff] }
 0x3c9   : > { %v2135_v31 = vsel %vm2128_vm8, %v2131_v37, %v2134_v10  ;;  %v1944_v25 = vor.u32 4788187, %v1943_v18  ;;  %v1947_v39 = vcvt.s32.f32 %v1940_v15  ;;  %vm1974_vm14 = vcmp.eq.s32.totalorder %v1972_v2, 0 }
 0x3ca   : > { %v2136_v9 = vsel %vm2125_vm7, nan, %v2135_v31  ;;  %vm1977_vm11 = vcmp.eq.s32.totalorder %v1972_v2, 2  ;;  %vm1973_vm1 = vcmp.lt.s32.totalorder %v1972_v2, 2 }
 0x3cb   : > { %3163 = vmatpush.msra.mxu1 %v2136_v9  ;;  %v1945_v36 = vand.u32 2147483647, %v1944_v25 }
 0x3cd   : > { %v1948_v5 = vmul.f32 %v1947_v39, %v1945_v36  ;;  %v3103_v55 = vpop.permute.xlu2 %3102  ;;  %v3108_v48 = vpop.permute.xlu1 %3107 }
 0x3cf   : > { %v1949_v35 = vxor.u32 2147483648, %v1948_v5  ;;  %v3098_v36 = vpop.permute.xlu0 %3097 }
 0x3d1   : > { %v1950_v32 = vsel %vm1829_vm13, %v1949_v35, %v1948_v5 }
 0x3d2   : > { %v1953_v24 = vsel %vm1828_vm9, %v11224_v12, %v1950_v32  ;;  %v5974_v12 = vld [vmem:[%s11002_s3 + $0x58] sm:$0xff] }
 0x3d3   : > { %v1955_v60 = vmul.f32 %v1953_v24, %v1953_v24 }
 0x3d5   : > { %v1956_v59 = vmul.f32 -0.001358992, %v1955_v60  ;;  %v1963_v52 = vmul.f32 -0.00019511016, %v1955_v60  ;;  %v3088_v37 = vpop.permute.xlu2 %3087  ;;  %v3093_v10 = vpop.permute.xlu1 %3092 }
 0x3d7   : > { %v1957_v22 = vadd.f32 0.041655596, %v1956_v59  ;;  %v1964_v44 = vadd.f32 0.008332121, %v1963_v52 }
 0x3d9   : > { %v1958_v43 = vmul.f32 %v1957_v22, %v1955_v60  ;;  %v1965_v61 = vmul.f32 %v1964_v44, %v1955_v60 }
 0x3db   : > { %v1959_v0 = vadd.f32 -0.4999988, %v1958_v43  ;;  %v1966_v20 = vadd.f32 -0.16666654, %v1965_v61 }
 0x3dd   : > { %v1960_v62 = vmul.f32 %v1959_v0, %v1955_v60  ;;  %v1967_v21 = vmul.f32 %v1966_v20, %v1955_v60 }
 0x3df   : > { %v1961_v29 = vadd.f32 1.0, %v1960_v62  ;;  %v1968_v63 = vadd.f32 1.0, %v1967_v21 }
 0x3e1   : > { %v1969_v53 = vmul.f32 %v1968_v63, %v1953_v24  ;;  %v1978_v41 = vxor.u32 2147483648, %v1961_v29 }
 0x3e3   : > { %v1975_v58 = vxor.u32 2147483648, %v1969_v53  ;;  %v1979_v57 = vsel %vm1977_vm11, %v1978_v41, %v1969_v53 }
 0x3e5   : > { %v1976_v4 = vsel %vm1974_vm14, %v1961_v29, %v1975_v58 }
 0x3e6   : > { %v1980_v23 = vsel %vm1973_vm1, %v1976_v4, %v1979_v57 }
 0x3e7   : > { %v1981_v33 = vsel %vm1970_vm15, nan, %v1980_v23 }
 0x3e8   : > { %3164 = vmatpush.msra.mxu1 %v1981_v33 }
 0x3e9   : > { %5987 = vmatmul.msk.f32.vlgmr.msra.gmra.mxu1 %vm1761_vm0, %v5971_v19 }
 0x3f1   : > { %5988 = vmatmul.msk.f32.gmra.mxu1 %vm1761_vm0, %v5972_v3 }
 0x3f9   : > { %5989 = vmatmul.msk.f32.gmra.mxu1 %vm1761_vm0, %v5973_v14 }
 0x401   : > { %5990 = vmatmul.msk.f32.gmra.mxu1 %vm1761_vm0, %v5974_v12 }
 0x409   : > { %5991 = vmatmul.msk.f32.gmra.mxu1 %vm1761_vm0, %v5975_v34 }
 0x411   : > { %5992 = vmatmul.msk.f32.gmra.mxu1 %vm1761_vm0, %v5976_v49 }
 0x419   : > { %5993 = vmatmul.msk.f32.gmra.mxu1 %vm1761_vm0, %v5977_v45 }
 0x421   : > { %5994 = vmatmul.msk.f32.gmra.mxu1 %vm1761_vm0, %v5978_v6 }
 0x466   : > { %v3166_v30 = vpop.f32.mrf.mxu1 }
 0x467   : > { %v8685_v31 = vadd.f32 %v3166_v30, %v3088_v37 }
 0x469   : > { %11230 = vst [vmem:[#allocation11_spill] sm:$0xff] %v8685_v31  ;;  %v3193_v9 = vand.u32 2139095040, %v8685_v31 }
 0x46b   : > { %v3194_v5 = vshrl.u32 %v3193_v9, 23 }
 0x46d   : > { %v5995_v60 = vadd.s32 4294967169, %v3194_v5 }
 0x46e   : > { %v3169_v11 = vpop.f32.mrf.mxu1 }
 0x46f   : > { %v8687_v15 = vadd.f32 %v3169_v11, %v3093_v10  ;;  %v3200_v43 = vadd.s32 1, %v5995_v60 }
 0x471   : > { %11231 = vst [vmem:[#allocation9_spill] sm:$0xff] %v8687_v15  ;;  %v3348_v25 = vand.u32 2139095040, %v8687_v15  ;;  %vm3201_vm2 = vcmp.gt.s32.totalorder %v3200_v43, 0 }
 0x472   : > { %v8708_v23 = vsel %vm3201_vm2, %v3200_v43, 0 }
 0x473   : > { %v3349_v35 = vshrl.u32 %v3348_v25, 23 }
 0x475   : > { %v5998_v59 = vadd.s32 4294967169, %v3349_v35 }
 0x476   : > { %v3172_v42 = vpop.f32.mrf.mxu1 }
 0x477   : > { %v8691_v39 = vadd.f32 %v3172_v42, %v3098_v36  ;;  %v3355_v61 = vadd.s32 1, %v5998_v59 }
 0x479   : > { %11232 = vst [vmem:[#allocation28_spill] sm:$0xff] %v8691_v39  ;;  %v3503_v47 = vand.u32 2139095040, %v8691_v39  ;;  %vm3356_vm3 = vcmp.gt.s32.totalorder %v3355_v61, 0 }
 0x47a   : > { %v8710_v19 = vsel %vm3356_vm3, %v3355_v61, 0 }
 0x47b   : > { %v3504_v44 = vshrl.u32 %v3503_v47, 23 }
 0x47d   : > { %v6001_v21 = vadd.s32 4294967169, %v3504_v44 }
 0x47e   : > { %v3175_v51 = vpop.f32.mrf.mxu1 }
 0x47f   : > { %v8696_v52 = vadd.f32 %v3175_v51, %v3103_v55  ;;  %v3510_v58 = vadd.s32 1, %v6001_v21 }
 0x481   : > { %11233 = vst [vmem:[#allocation17_spill] sm:$0xff] %v8696_v52  ;;  %v3658_v0 = vand.u32 2139095040, %v8696_v52  ;;  %vm3511_vm12 = vcmp.gt.s32.totalorder %v3510_v58, 0 }
 0x483   : > { %v3659_v63 = vshrl.u32 %v3658_v0, 23 }
 0x485   : > { %v6004_v33 = vadd.s32 4294967169, %v3659_v63  ;;  %v8763_v63 = vand.u32 31, %v8710_v19 }
 0x486   : > { %v3178_v26 = vpop.f32.mrf.mxu1 }
 0x487   : > { %v8699_v22 = vadd.f32 %v3178_v26, %v3108_v48  ;;  %11238 = vst [vmem:[#allocation31_spill] sm:$0xff] %v8763_v63 }
 0x489   : > { %11234 = vst [vmem:[#allocation13_spill] sm:$0xff] %v8699_v22  ;;  %v3813_v20 = vand.u32 2139095040, %v8699_v22 }
 0x48b   : > { %v3814_v2 = vshrl.u32 %v3813_v20, 23 }
 0x48d   : > { %v6007_v3 = vadd.s32 4294967169, %v3814_v2 }
 0x48e   : > { %v3181_v50 = vpop.f32.mrf.mxu1 }
 0x48f   : > { %v8704_v53 = vadd.f32 %v3181_v50, %v3113_v17 }
 0x491   : > { %11235 = vst [vmem:[#allocation26_spill] sm:$0xff] %v8704_v53  ;;  %v3968_v14 = vand.u32 2139095040, %v8704_v53 }
 0x493   : > { %v3969_v60 = vshrl.u32 %v3968_v14, 23 }
 0x496   : > { %v3184_v18 = vpop.f32.mrf.mxu1 }
 0x497   : > { %v8715_v49 = vadd.f32 %v3184_v18, %v3118_v46 }
 0x499   : > { %11236 = vst [vmem:[#allocation32_spill] sm:$0xff] %v8715_v49  ;;  %v4123_v18 = vand.u32 2139095040, %v8715_v49 }
 0x49b   : > { %v4124_v20 = vshrl.u32 %v4123_v18, 23 }
 0x49e   : > { %v3187_v32 = vpop.f32.mrf.mxu1 }
 0x49f   : > { %v8694_v24 = vadd.f32 %v3187_v32, %v3123_v28 }
 0x4a1   : > { %v4278_v56 = vand.u32 2139095040, %v8694_v24  ;;  %v11057_v62 = vand.u32 2147483647, %v8694_v24 }
 0x4a3   : > { %v4279_v27 = vshrl.u32 %v4278_v56, 23  ;;  %v4282_v41 = vand.u32 8388607, %v11057_v62 }
 0x4a5   : > { %v6016_v1 = vadd.s32 4294967169, %v4279_v27  ;;  %v4283_v34 = vor.u32 8388608, %v4282_v41 }
 0x4a7   : > { %v4285_v29 = vadd.s32 1, %v6016_v1  ;;  %v8734_v10 = vshll.u32 %v4283_v34, 8 }
 0x4a9   : > { %vm4286_vm10 = vcmp.gt.s32.totalorder %v4285_v29, 0  ;;  %v4324_v44 = vand.u32 65535, %v8734_v10  ;;  %v4325_v43 = vshrl.u32 %v8734_v10, 16 }
 0x4aa   : > { %v4287_v4 = vsel %vm4286_vm10, %v4285_v29, 0  ;;  %v8760_v29 = vand.u32 31, %v8708_v23 }
 0x4ab   : > { %v4289_v57 = vand.u32 31, %v4287_v4  ;;  %v8717_v45 = vshrl.u32 %v4287_v4, 5  ;;  %v8766_v4 = vsel %vm3511_vm12, %v3510_v58, 0 }
 0x4ac   : > { %11237 = vst [vmem:[#allocation29_spill] sm:$0xff] %v8760_v29 }
 0x4ad   : > { %v8713_v12 = vsub.s32 32, %v4289_v57  ;;  %v4301_v6 = vshll.u32 %v11177_v38, %v4289_v57  ;;  %v4304_v30 = vshll.u32 %v11179_v16, %v4289_v57  ;;  %v4292_v51 = vshll.u32 %v11178_v7, %v4289_v57 }
 0x4ae   : > { %v4295_v46 = vshll.u32 %v11181_v8, %v4289_v57  ;;  %v4298_v55 = vshll.u32 %v11176_v40, %v4289_v57  ;;  %vm4310_vm4 = vcmp.lt.s32.totalorder %v8717_v45, 4  ;;  %vm4307_vm5 = vcmp.lt.s32.totalorder %v8717_v45, 1 }
 0x4af   : > { %v4302_v11 = vshrl.u32 %v11179_v16, %v8713_v12  ;;  %v4305_v42 = vshrl.u32 %v11180_v13, %v8713_v12  ;;  %v4293_v28 = vshrl.u32 %v11181_v8, %v8713_v12  ;;  %v4296_v26 = vshrl.u32 %v11176_v40, %v8713_v12 }
 0x4b0   : > { %v4299_v48 = vshrl.u32 %v11177_v38, %v8713_v12  ;;  %vm4309_vm6 = vcmp.lt.s32.totalorder %v8717_v45, 3  ;;  %vm4308_vm8 = vcmp.lt.s32.totalorder %v8717_v45, 2  ;;  %v3665_v57 = vadd.s32 1, %v6004_v33 }
 0x4b1   : > { %v4303_v50 = vor.u32 %v4302_v11, %v4301_v6  ;;  %v4306_v17 = vor.u32 %v4305_v42, %v4304_v30  ;;  %v4294_v37 = vor.u32 %v4293_v28, %v4292_v51  ;;  %v4297_v9 = vor.u32 %v4296_v26, %v4295_v46 }
 0x4b2   : > { %v4300_v25 = vor.u32 %v4299_v48, %v4298_v55  ;;  %v3820_v6 = vadd.s32 1, %v6007_v3  ;;  %v6010_v30 = vadd.s32 4294967169, %v3969_v60  ;;  %v6013_v51 = vadd.s32 4294967169, %v4124_v20 }
 0x4b3   : > { %v4316_v36 = vsel %vm4310_vm4, %v4303_v50, 920167782  ;;  %v4320_v5 = vsel %vm4310_vm4, %v4306_v17, 1326507024  ;;  %v4315_v35 = vsel %vm4307_vm5, %v4294_v37, %v4297_v9  ;;  %vm3666_vm11 = vcmp.gt.s32.totalorder %v3665_v57, 0 }
 0x4b4   : > { %v4317_v32 = vsel %vm4309_vm6, %v4300_v25, %v4316_v36  ;;  %v4319_v47 = vsel %vm4307_vm5, %v4297_v9, %v4300_v25  ;;  %v4321_v56 = vsel %vm4309_vm6, %v4303_v50, %v4320_v5  ;;  %v4312_v33 = vsel %vm4310_vm4, %v4300_v25, 2102212464 }
 0x4b5   : > { %v4318_v59 = vsel %vm4308_vm8, %v4315_v35, %v4317_v32  ;;  %v4322_v27 = vsel %vm4308_vm8, %v4319_v47, %v4321_v56  ;;  %v4291_v5 = vshrl.u32 %v11178_v7, %v8713_v12  ;;  %v3975_v47 = vadd.s32 1, %v6010_v30 }
 0x4b6   : > { %v4348_v61 = vand.u32 65535, %v4318_v59  ;;  %v4349_v0 = vshrl.u32 %v4318_v59, 16  ;;  %v4326_v1 = vand.u32 65535, %v4322_v27  ;;  %v4327_v21 = vshrl.u32 %v4322_v27, 16 }
 0x4b7   : > { %v4313_v25 = vsel %vm4309_vm6, %v4297_v9, %v4312_v33  ;;  %vm3821_vm1 = vcmp.gt.s32.totalorder %v3820_v6, 0  ;;  %vm3976_vm15 = vcmp.gt.s32.totalorder %v3975_v47, 0  ;;  %v3667_v30 = vsel %vm3666_vm11, %v3665_v57, 0 }
 0x4b8   : > { %v4351_v2 = vmul.u32 %v4349_v0, %v4324_v44  ;;  %v4352_v41 = vmul.u32 %v4348_v61, %v4325_v43  ;;  %v4329_v14 = vmul.u32 %v4327_v21, %v4324_v44  ;;  %v4330_v34 = vmul.u32 %v4326_v1, %v4325_v43 }
 0x4b9   : > { %v4350_v11 = vmul.u32 %v4348_v61, %v4324_v44  ;;  %v4328_v28 = vmul.u32 %v4326_v1, %v4324_v44  ;;  %v4353_v26 = vmul.u32 %v4349_v0, %v4325_v43  ;;  %v4331_v55 = vmul.u32 %v4327_v21, %v4325_v43 }
 0x4ba   : > { %v4354_v42 = vshll.u32 %v4351_v2, 16  ;;  %v4332_v46 = vshll.u32 %v4329_v14, 16  ;;  %v4356_v48 = vshll.u32 %v4352_v41, 16  ;;  %v4334_v17 = vshll.u32 %v4330_v34, 16 }
 0x4bb   : > { %v4355_v59 = vshrl.u32 %v4351_v2, 16  ;;  %v4311_v44 = vsel %vm4307_vm5, %v4291_v5, %v4294_v37  ;;  %v4333_v27 = vshrl.u32 %v4329_v14, 16  ;;  %v4357_v12 = vshrl.u32 %v4352_v41, 16 }
 0x4bc   : > { %vm4358_vm7 = vc.u32 %v4350_v11, %v4354_v42  ;;  %v4360_v50 = vadd.s32 %v4354_v42, %v4350_v11  ;;  %vm4336_vm13 = vc.u32 %v4328_v28, %v4332_v46  ;;  %v4338_v18 = vadd.s32 %v4332_v46, %v4328_v28 }
 0x4bd   : > { %v4359_v58 = vsel %vm4358_vm7, 1, %v11183_v54  ;;  %v4337_v3 = vsel %vm4336_vm13, 1, %v11183_v54  ;;  %v4130_v0 = vadd.s32 1, %v6013_v51  ;;  %v4335_v20 = vshrl.u32 %v4330_v34, 16 }
 0x4be   : > { %v4361_v36 = vadd.s32 %v4359_v58, %v4353_v26  ;;  %vm4362_vm9 = vc.u32 %v4360_v50, %v4356_v48  ;;  %v4339_v35 = vadd.s32 %v4337_v3, %v4331_v55  ;;  %vm4340_vm14 = vc.u32 %v4338_v18, %v4334_v17 }
 0x4bf   : > { %v4363_v32 = vsel %vm4362_vm9, 1, %v11183_v54  ;;  %v4341_v60 = vsel %vm4340_vm14, 1, %v11183_v54  ;;  %v8781_v21 = vand.u32 31, %v8766_v4  ;;  %v4314_v2 = vsel %vm4308_vm8, %v4311_v44, %v4313_v25 }
 0x4c0   : > { %v4365_v56 = vadd.s32 %v4363_v32, %v4361_v36  ;;  %v4343_v43 = vadd.s32 %v4341_v60, %v4339_v35  ;;  %v3822_v11 = vsel %vm3821_vm1, %v3820_v6, 0  ;;  %v8787_v14 = vadd.s32 %v4360_v50, %v4356_v48 }
 0x4c1   : > { %11239 = vst [vmem:[#allocation30_spill] sm:$0xff] %v8781_v21  ;;  %v8790_v41 = vsub.s32 32, %v8760_v29  ;;  %v8793_v34 = vsub.s32 32, %v8763_v63  ;;  %v3977_v51 = vsel %vm3976_vm15, %v3975_v47, 0  ;;  %vm4131_vm2 = vcmp.gt.s32.totalorder %v4130_v0, 0 }
 0x4c2   : > { %v4366_v61 = vadd.s32 %v4365_v56, %v4355_v59  ;;  %v4344_v1 = vadd.s32 %v4343_v43, %v4333_v27  ;;  %v4368_v28 = vmul.u32 %v8734_v10, %v4314_v2  ;;  %v8799_v45 = vsub.s32 32, %v8781_v21 }
 0x4c3   : > { %11240 = vst [vmem:[#allocation8_spill] sm:$0xff] %v8790_v41  ;;  %v8801_v57 = vand.u32 31, %v3667_v30  ;;  %v8803_v6 = vand.u32 31, %v3822_v11  ;;  %v8806_v55 = vshrl.u32 %v8708_v23, 5  ;;  %v8808_v48 = vand.u32 31, %v3977_v51 }
 0x4c4   : > { %v4367_v37 = vadd.s32 %v4366_v61, %v4357_v12  ;;  %v8785_v9 = vadd.s32 %v4344_v1, %v4335_v20  ;;  %11241 = vst [vmem:[#allocation14_spill] sm:$0xff] %v8793_v34  ;;  %v4132_v50 = vsel %vm4131_vm2, %v4130_v0, 0  ;;  %v8812_v10 = vshll.u32 %v11177_v38, %v8760_v29 }
 0x4c5   : > { %11242 = vst [vmem:[#allocation20_spill] sm:$0xff] %v8799_v45  ;;  %v8816_v17 = vshll.u32 %v11179_v16, %v8760_v29  ;;  %v3372_v18 = vshrl.u32 %v11179_v16, %v8793_v34  ;;  %v8822_v33 = vshrl.u32 %v11179_v16, %v8790_v41  ;;  %v3527_v23 = vshrl.u32 %v11179_v16, %v8799_v45 }
 0x4c6   : > { %v4371_v42 = vadd.s32 1, %v4367_v37  ;;  %vm4370_vm3 = vc.u32 %v8785_v9, %v8787_v14  ;;  %11243 = vst [vmem:[#allocation24_spill] sm:$0xff] %v8801_v57  ;;  %v8827_v3 = vsub.s32 32, %v8801_v57  ;;  %v8830_v36 = vsub.s32 32, %v8803_v6 }
 0x4c7   : > { %11244 = vst [vmem:[#allocation25_spill] sm:$0xff] %v8806_v55  ;;  %v8833_v5 = vshrl.u32 %v8710_v19, 5  ;;  %v3371_v35 = vshll.u32 %v11177_v38, %v8763_v63  ;;  %v8837_v32 = vand.u32 31, %v4132_v50  ;;  %v8841_v60 = vshll.u32 %v11179_v16, %v8763_v63 }
 0x4c8   : > { %v4372_v46 = vsel %vm4370_vm3, %v4371_v42, %v4367_v37  ;;  %11245 = vst [vmem:[#allocation15_spill] sm:$0xff] %v8812_v10  ;;  %v8845_v59 = vshrl.u32 %v11180_v13, %v8793_v34  ;;  %v3526_v56 = vshll.u32 %v11177_v38, %v8781_v21  ;;  %v8850_v19 = vsub.s32 32, %v8808_v48 }
 0x4c9   : > { %v4373_v26 = vadd.s32 %v4372_v46, %v4368_v28  ;;  %11246 = vst [vmem:[#allocation23_spill] sm:$0xff] %v8816_v17  ;;  %v8852_v44 = vor.u32 %v3372_v18, %v3371_v35  ;;  %v8855_v25 = vshrl.u32 %v8766_v4, 5  ;;  %v8859_v27 = vshll.u32 %v11179_v16, %v8781_v21 }
 0x4ca   : > { %11247 = vst [vmem:[#allocation27_spill] sm:$0xff] %v8822_v33  ;;  %v8861_v12 = vor.u32 %v3527_v23, %v3526_v56  ;;  %v8865_v61 = vshrl.u32 %v11180_v13, %v8799_v45  ;;  %v3682_v0 = vshrl.u32 %v11179_v16, %v8827_v3  ;;  %v3840_v20 = vshrl.u32 %v11180_v13, %v8830_v36 }
 0x4cb   : > { %v4374_v58 = vadd.s32 536870912, %v4373_v26  ;;  %11248 = vst [vmem:[#allocation7_spill] sm:$0xff] %v8827_v3  ;;  %v8871_v1 = vshrl.u32 %v3667_v30, 5  ;;  %v8873_v4 = vshrl.u32 %v3822_v11, 5  ;;  %v8876_v2 = vsub.s32 32, %v8837_v32 }
 0x4cc   : > { %11249 = vst [vmem:[#allocation12_spill] sm:$0xff] %v8833_v5  ;;  %v3681_v42 = vshll.u32 %v11177_v38, %v8801_v57  ;;  %v8882_v28 = vshll.u32 %v11179_v16, %v8801_v57  ;;  %v3839_v46 = vshll.u32 %v11179_v16, %v8803_v6  ;;  %v3992_v30 = vshrl.u32 %v11179_v16, %v8850_v19 }
 0x4cd   : > { %v4375_v47 = vshrl.u32 %v4374_v58, 30  ;;  %11250 = vst [vmem:[#allocation16_spill] sm:$0xff] %v8841_v60  ;;  %v8890_v11 = vshrl.u32 %v11180_v13, %v8827_v3  ;;  %v8896_v35 = vshrl.u32 %v3977_v51, 5  ;;  %v3991_v56 = vshll.u32 %v11177_v38, %v8808_v48 }
 0x4ce   : > { %11251 = vst [vmem:[#allocation19_spill] sm:$0xff] %v8845_v59  ;;  %v8894_v58 = vor.u32 %v3682_v0, %v3681_v42  ;;  %v3841_v23 = vor.u32 %v3840_v20, %v3839_v46  ;;  %vm3845_vm12 = vcmp.lt.s32.totalorder %v8873_v4, 4  ;;  %v4147_v62 = vshrl.u32 %v11179_v16, %v8876_v2 }
 0x4cf   : > { %11252 = vst [vmem:[#allocation21_spill] sm:$0xff] %v8852_v44  ;;  %v4376_v43 = vshll.u32 %v4375_v47, 30  ;;  %v8905_v31 = vor.u32 %v3992_v30, %v3991_v56  ;;  %v4399_v0 = vsub.s32 4, %v4375_v47  ;;  %v11068_v20 = vand.u32 2147483647, %v8704_v53 }
 0x4d0   : > { %11253 = vst [vmem:[#allocation18_spill] sm:$0xff] %v8855_v25  ;;  %v3837_v51 = vshrl.u32 %v11179_v16, %v8830_v36  ;;  %v4146_v46 = vshll.u32 %v11177_v38, %v8837_v32  ;;  %v4150_v17 = vshrl.u32 %v11180_v13, %v8876_v2  ;;  %v8916_v33 = vsel %vm3845_vm12, %v3841_v23, 1326507024 }
 0x4d1   : > { %11254 = vst [vmem:[#allocation22_spill] sm:$0xff] %v8859_v27  ;;  %v4377_v37 = vsub.s32 %v4373_v26, %v4376_v43  ;;  %v3995_v26 = vshrl.u32 %v11180_v13, %v8850_v19  ;;  %v3994_v43 = vshll.u32 %v11179_v16, %v8808_v48  ;;  %vm4000_vm4 = vcmp.lt.s32.totalorder %v8896_v35, 4 }
 0x4d2   : > { %11255 = vst [vmem:[#allocation6_spill] sm:$0xff] %v8861_v12  ;;  %v4149_v56 = vshll.u32 %v11179_v16, %v8837_v32  ;;  %vm4277_vm6 = vcmp.lt.s32.totalorder %v8694_v24, 0  ;;  %v8933_v23 = vsel %vm4000_vm4, %v8905_v31, 920167782  ;;  %v4369_v10 = vadd.s32 %v8787_v14, %v8785_v9 }
 0x4d3   : > { %11256 = vst [vmem:[#allocation10_spill] sm:$0xff] %v8865_v61  ;;  %vm4378_vm10 = vcmp.lt.s32.totalorder %v4377_v37, 0  ;;  %v4379_v18 = vsub.s32 0, %v4377_v37  ;;  %v3996_v42 = vor.u32 %v3995_v26, %v3994_v43  ;;  %v11257_v26 = vand.u32 2147483647, %v8694_v24 }
 0x4d4   : > { %v11260_v44 = vand.u32 2147483647, %v8699_v22 }
 0x4d5   : > { %v4380_v29 = vsel %vm4378_vm10, %v4379_v18, %v4377_v37  ;;  %v4148_v18 = vor.u32 %v4147_v62, %v4146_v46  ;;  %vm8925_vm5 = vcmp.le.f32.partialorder %v11257_v26, 0.7853982  ;;  %v4400_v62 = vsel %vm4277_vm6, %v4399_v0, %v4375_v47 }
 0x4d6   : > { %v4381_v55 = vclz %v4380_v29  ;;  %v8919_v29 = vshrl.u32 %v4132_v50, 5  ;;  %v8941_v50 = vsel %vm4000_vm4, %v3996_v42, 1326507024  ;;  %v4151_v46 = vor.u32 %v4150_v17, %v4149_v56 }
 0x4d7   : > { %v3836_v47 = vshll.u32 %v11177_v38, %v8803_v6  ;;  %v4402_v42 = vsel %vm8925_vm5, 0, %v4400_v62  ;;  %v11075_v17 = vand.u32 2147483647, %v8715_v49  ;;  %v8962_v13 = vand.u32 8388607, %v11260_v44 }
 0x4d8   : > { %v6017_v30 = vadd.s32 4294967294, %v4381_v55  ;;  %v3972_v55 = vand.u32 8388607, %v11068_v20  ;;  %vm4155_vm7 = vcmp.lt.s32.totalorder %v8919_v29, 4  ;;  %vm4154_vm13 = vcmp.lt.s32.totalorder %v8919_v29, 3 }
 0x4d9   : > { %v4161_v0 = vsel %vm4155_vm7, %v4148_v18, 920167782  ;;  %v8954_v15 = vor.u32 %v3837_v51, %v3836_v47  ;;  %v4165_v9 = vsel %vm4155_vm7, %v4151_v46, 1326507024  ;;  %v4127_v14 = vand.u32 8388607, %v11075_v17 }
 0x4da   : > { %vm6018_vm8 = vcmp.lt.s32.totalorder %v6017_v30, 0  ;;  %v3973_v16 = vor.u32 8388608, %v3972_v55  ;;  %v4137_v51 = vshll.u32 %v11178_v7, %v8837_v32  ;;  %v4138_v55 = vshrl.u32 %v11181_v8, %v8876_v2 }
 0x4db   : > { %v4384_v26 = vsel %vm6018_vm8, 0, %v6017_v30  ;;  %v4141_v46 = vshrl.u32 %v11176_v40, %v8876_v2  ;;  %vm4152_vm9 = vcmp.lt.s32.totalorder %v8919_v29, 1  ;;  %vm4153_vm14 = vcmp.lt.s32.totalorder %v8919_v29, 2 }
 0x4dc   : > { %v4385_v34 = vsub.s32 32, %v4384_v26  ;;  %v4389_v63 = vsub.s32 4294967266, %v4384_v26  ;;  %v4386_v30 = vshll.u32 %v4377_v37, %v4384_v26  ;;  %v8966_v37 = vshll.u32 %v11178_v7, %v8803_v6 }
 0x4dd   : > { %v8980_v26 = vshll.u32 %v3973_v16, 8  ;;  %v4139_v47 = vor.u32 %v4138_v55, %v4137_v51  ;;  %v4166_v16 = vsel %vm4154_vm13, %v4148_v18, %v4165_v9  ;;  %vm3997_vm8 = vcmp.lt.s32.totalorder %v8896_v35, 1 }
 0x4de   : > { %v4387_v56 = vshrl.u32 %v4369_v10, %v4385_v34  ;;  %v4390_v20 = vadd.s32 127, %v4389_v63  ;;  %v8970_v63 = vshll.u32 %v11181_v8, %v8803_v6  ;;  %v4419_v34 = vadd.s32 3, %v4402_v42 }
 0x4df   : > { %v4128_v10 = vor.u32 8388608, %v4127_v14  ;;  %v4143_v42 = vshll.u32 %v11176_v40, %v8837_v32  ;;  %v9021_v21 = vshrl.u32 %v8980_v26, 16 }
 0x4e0   : > { %v4388_v41 = vor.u32 %v4387_v56, %v4386_v30  ;;  %v4391_v62 = vshll.u32 %v4390_v20, 23  ;;  %v4140_v20 = vshll.u32 %v11181_v8, %v8837_v32  ;;  %v4144_v30 = vshrl.u32 %v11177_v38, %v8876_v2 }
 0x4e1   : > { %v8988_v56 = vshrl.u32 %v11181_v8, %v8830_v36  ;;  %v8994_v51 = vshll.u32 %v4128_v10, 8  ;;  %v8996_v55 = vand.u32 3, %v4419_v34 }
 0x4e2   : > { %v4392_v44 = vor.u32 4788187, %v4391_v62  ;;  %v4395_v62 = vcvt.s32.f32 %v4388_v41  ;;  %v4142_v17 = vor.u32 %v4141_v46, %v4140_v20  ;;  %v4145_v5 = vor.u32 %v4144_v30, %v4143_v42 }
 0x4e3   : > { %v4136_v41 = vshrl.u32 %v11178_v7, %v8876_v2  ;;  %v4169_v2 = vand.u32 65535, %v8994_v51  ;;  %v4170_v42 = vshrl.u32 %v8994_v51, 16  ;;  %vm4425_vm2 = vcmp.eq.s32.totalorder %v8996_v55, 2 }
 0x4e4   : > { %v4393_v14 = vand.u32 2147483647, %v4392_v44  ;;  %v4160_v59 = vsel %vm4152_vm9, %v4139_v47, %v4142_v17  ;;  %v9001_v44 = vand.u32 65535, %v8980_v26  ;;  %v4162_v20 = vsel %vm4154_vm13, %v4145_v5, %v4161_v0 }
 0x4e5   : > { %v4164_v18 = vsel %vm4152_vm9, %v4142_v17, %v4145_v5  ;;  %v4157_v34 = vsel %vm4155_vm7, %v4145_v5, 2102212464  ;;  %v4163_v10 = vsel %vm4153_vm14, %v4160_v59, %v4162_v20  ;;  %v4156_v59 = vsel %vm4152_vm9, %v4136_v41, %v4139_v47 }
 0x4e6   : > { %v4396_v32 = vmul.f32 %v4395_v62, %v4393_v14  ;;  %v4167_v46 = vsel %vm4153_vm14, %v4164_v18, %v4166_v16  ;;  %v4193_v62 = vand.u32 65535, %v4163_v10  ;;  %v4194_v60 = vshrl.u32 %v4163_v10, 16 }
 0x4e7   : > { %v4171_v30 = vand.u32 65535, %v4167_v46  ;;  %v4172_v14 = vshrl.u32 %v4167_v46, 16  ;;  %v3982_v10 = vshll.u32 %v11178_v7, %v8808_v48  ;;  %vm4422_vm3 = vcmp.eq.s32.totalorder %v8996_v55, 0 }
 0x4e8   : > { %v4397_v9 = vxor.u32 2147483648, %v4396_v32  ;;  %v4197_v47 = vmul.u32 %v4193_v62, %v4170_v42  ;;  %vm3999_vm7 = vcmp.lt.s32.totalorder %v8896_v35, 3 }
 0x4e9   : > { %v4174_v16 = vmul.u32 %v4172_v14, %v4169_v2  ;;  %v4175_v20 = vmul.u32 %v4171_v30, %v4170_v42  ;;  %v4173_v46 = vmul.u32 %v4171_v30, %v4169_v2  ;;  %v4176_v45 = vmul.u32 %v4172_v14, %v4170_v42 }
 0x4ea   : > { %v4398_v0 = vsel %vm4277_vm6, %v4397_v9, %v4396_v32  ;;  %v4158_v32 = vsel %vm4154_vm13, %v4142_v17, %v4157_v34  ;;  %v4196_v9 = vmul.u32 %v4194_v60, %v4169_v2  ;;  %v4198_v34 = vmul.u32 %v4194_v60, %v4170_v42 }
 0x4eb   : > { %v9026_v5 = vsel %vm8925_vm5, %v8694_v24, %v4398_v0  ;;  %v4177_v43 = vshll.u32 %v4174_v16, 16  ;;  %v4195_v0 = vmul.u32 %v4193_v62, %v4169_v2  ;;  %v4178_v12 = vshrl.u32 %v4174_v16, 16 }
 0x4ec   : > { %v4403_v18 = vmul.f32 %v9026_v5, %v9026_v5  ;;  %v4179_v41 = vshll.u32 %v4175_v20, 16  ;;  %v4199_v61 = vshll.u32 %v4196_v9, 16  ;;  %v4201_v52 = vshll.u32 %v4197_v47, 16 }
 0x4ed   : > { %vm4181_vm11 = vc.u32 %v4173_v46, %v4177_v43  ;;  %v4183_v25 = vadd.s32 %v4177_v43, %v4173_v46  ;;  %v3986_v60 = vshrl.u32 %v11176_v40, %v8850_v19  ;;  %vm4421_vm5 = vcmp.lt.s32.totalorder %v8996_v55, 2 }
 0x4ee   : > { %v4404_v39 = vmul.f32 -0.001358992, %v4403_v18  ;;  %v4411_v22 = vmul.f32 -0.00019511016, %v4403_v18  ;;  %v4182_v17 = vsel %vm4181_vm11, 1, %v11183_v54  ;;  %vm4203_vm15 = vc.u32 %v4195_v0, %v4199_v61 }
 0x4ef   : > { %v4184_v57 = vadd.s32 %v4182_v17, %v4176_v45  ;;  %vm4185_vm1 = vc.u32 %v4183_v25, %v4179_v41  ;;  %v4204_v16 = vsel %vm4203_vm15, 1, %v11183_v54  ;;  %v4205_v53 = vadd.s32 %v4199_v61, %v4195_v0 }
 0x4f0   : > { %v4405_v27 = vadd.f32 0.041655596, %v4404_v39  ;;  %v4412_v3 = vadd.f32 0.008332121, %v4411_v22  ;;  %v4186_v2 = vsel %vm4185_vm1, 1, %v11183_v54  ;;  %v4206_v49 = vadd.s32 %v4204_v16, %v4198_v34 }
 0x4f1   : > { %v4188_v62 = vadd.s32 %v4186_v2, %v4184_v57  ;;  %v3983_v39 = vshrl.u32 %v11181_v8, %v8850_v19  ;;  %v4180_v45 = vshrl.u32 %v4175_v20, 16  ;;  %v4200_v25 = vshrl.u32 %v4196_v9, 16 }
 0x4f2   : > { %v4406_v30 = vmul.f32 %v4405_v27, %v4403_v18  ;;  %v4413_v14 = vmul.f32 %v4412_v3, %v4403_v18  ;;  %vm4207_vm10 = vc.u32 %v4205_v53, %v4201_v52  ;;  %v3985_v57 = vshll.u32 %v11181_v8, %v8808_v48 }
 0x4f3   : > { %v4189_v3 = vadd.s32 %v4188_v62, %v4178_v12  ;;  %v4208_v42 = vsel %vm4207_vm10, 1, %v11183_v54  ;;  %v9049_v43 = vor.u32 %v3983_v39, %v3982_v10  ;;  %vm4418_vm6 = vweird.f32 %v8694_v24 }
 0x4f4   : > { %v4407_v22 = vadd.f32 -0.4999988, %v4406_v30  ;;  %v4414_v46 = vadd.f32 -0.16666654, %v4413_v14  ;;  %v4210_v20 = vadd.s32 %v4208_v42, %v4206_v49  ;;  %v9052_v0 = vor.u32 %v3986_v60, %v3985_v57 }
 0x4f5   : > { %v3988_v12 = vshll.u32 %v11176_v40, %v8808_v48  ;;  %v3989_v9 = vshrl.u32 %v11177_v38, %v8850_v19  ;;  %v9060_v34 = vadd.s32 %v4189_v3, %v4180_v45  ;;  %v4202_v10 = vshrl.u32 %v4197_v47, 16 }
 0x4f6   : > { %v4408_v27 = vmul.f32 %v4407_v22, %v4403_v18  ;;  %v4415_v61 = vmul.f32 %v4414_v46, %v4403_v18  ;;  %v4159_v18 = vsel %vm4153_vm14, %v4156_v59, %v4158_v32  ;;  %v9062_v30 = vadd.s32 %v4205_v53, %v4201_v52 }
 0x4f7   : > { %v4211_v14 = vadd.s32 %v4210_v20, %v4200_v25  ;;  %v3990_v49 = vor.u32 %v3989_v9, %v3988_v12  ;;  %vm3998_vm13 = vcmp.lt.s32.totalorder %v8896_v35, 2  ;;  %v4005_v29 = vsel %vm3997_vm8, %v9049_v43, %v9052_v0 }
 0x4f8   : > { %v4409_v41 = vadd.f32 1.0, %v4408_v27  ;;  %v4416_v17 = vadd.f32 1.0, %v4415_v61  ;;  %vm4215_vm9 = vc.u32 %v9060_v34, %v9062_v30  ;;  %v3981_v61 = vshrl.u32 %v11178_v7, %v8850_v19 }
 0x4f9   : > { %v4212_v48 = vadd.s32 %v4211_v14, %v4202_v10  ;;  %v4007_v52 = vsel %vm3999_vm7, %v3990_v49, %v8933_v23  ;;  %v4009_v62 = vsel %vm3997_vm8, %v9052_v0, %v3990_v49  ;;  %v4011_v23 = vsel %vm3999_vm7, %v8905_v31, %v8941_v50 }
 0x4fa   : > { %v4417_v2 = vmul.f32 %v4416_v17, %v9026_v5  ;;  %v4426_v16 = vxor.u32 2147483648, %v4409_v41  ;;  %v4213_v5 = vmul.u32 %v8994_v51, %v4159_v18  ;;  %v4008_v59 = vsel %vm3998_vm13, %v4005_v29, %v4007_v52 }
 0x4fb   : > { %v4216_v47 = vadd.s32 1, %v4212_v48  ;;  %v4012_v39 = vsel %vm3998_vm13, %v4009_v62, %v4011_v23  ;;  %v4038_v22 = vand.u32 65535, %v4008_v59  ;;  %v4039_v46 = vshrl.u32 %v4008_v59, 16 }
 0x4fc   : > { %v4423_v53 = vxor.u32 2147483648, %v4417_v2  ;;  %v4427_v32 = vsel %vm4425_vm2, %v4426_v16, %v4417_v2  ;;  %v4016_v3 = vand.u32 65535, %v4012_v39  ;;  %v4017_v25 = vshrl.u32 %v4012_v39, 16 }
 0x4fd   : > { %v4217_v60 = vsel %vm4215_vm9, %v4216_v47, %v4212_v48  ;;  %v4041_v31 = vmul.u32 %v4039_v46, %v9001_v44  ;;  %v9100_v50 = vor.u32 %v8988_v56, %v8966_v37  ;;  %v3831_v20 = vshrl.u32 %v11176_v40, %v8830_v36 }
 0x4fe   : > { %v4424_v51 = vsel %vm4422_vm3, %v4409_v41, %v4423_v53  ;;  %v4218_v27 = vadd.s32 %v4217_v60, %v4213_v5  ;;  %v4019_v55 = vmul.u32 %v4017_v25, %v9001_v44  ;;  %v4020_v42 = vmul.u32 %v4016_v3, %v9021_v21 }
 0x4ff   : > { %v4428_v45 = vsel %vm4421_vm5, %v4424_v51, %v4427_v32  ;;  %v4002_v12 = vsel %vm4000_vm4, %v3990_v49, 2102212464  ;;  %v4042_v9 = vmul.u32 %v4038_v22, %v9021_v21  ;;  %v4044_v41 = vshll.u32 %v4041_v31, 16 }
 0x500   : > { %v4429_v57 = vsel %vm4418_vm6, nan, %v4428_v45  ;;  %v4219_v24 = vadd.s32 536870912, %v4218_v27  ;;  %v4018_v37 = vmul.u32 %v4016_v3, %v9001_v44  ;;  %v4021_v56 = vmul.u32 %v4017_v25, %v9021_v21 }
 0x501   : > { %4520 = vmatpush.msra.mxu2 %v4429_v57  ;;  %v4022_v17 = vshll.u32 %v4019_v55, 16  ;;  %v4040_v19 = vmul.u32 %v4038_v22, %v9001_v44  ;;  %v4024_v10 = vshll.u32 %v4020_v42, 16  ;;  %v4043_v14 = vmul.u32 %v4039_v46, %v9021_v21 }
 0x502   : > { %v9114_v18 = vshrl.u32 %v4219_v24, 30  ;;  %v4046_v2 = vshll.u32 %v4042_v9, 16  ;;  %v4001_v29 = vsel %vm3997_vm8, %v3981_v61, %v9049_v43  ;;  %v4003_v59 = vsel %vm3999_vm7, %v9052_v0, %v4002_v12 }
 0x503   : > { %vm4026_vm14 = vc.u32 %v4018_v37, %v4022_v17  ;;  %v4028_v16 = vadd.s32 %v4022_v17, %v4018_v37  ;;  %vm4048_vm11 = vc.u32 %v4040_v19, %v4044_v41  ;;  %v4050_v49 = vadd.s32 %v4044_v41, %v4040_v19 }
 0x504   : > { %v4221_v48 = vshll.u32 %v9114_v18, 30  ;;  %v4027_v52 = vsel %vm4026_vm14, 1, %v11183_v54  ;;  %v4049_v44 = vsel %vm4048_vm11, 1, %v11183_v54  ;;  %v4023_v62 = vshrl.u32 %v4019_v55, 16 }
 0x505   : > { %v4029_v53 = vadd.s32 %v4027_v52, %v4021_v56  ;;  %vm4030_vm4 = vc.u32 %v4028_v16, %v4024_v10  ;;  %v4051_v5 = vadd.s32 %v4049_v44, %v4043_v14  ;;  %vm4052_vm1 = vc.u32 %v4050_v49, %v4046_v2 }
 0x506   : > { %v4222_v21 = vsub.s32 %v4218_v27, %v4221_v48  ;;  %v4031_v32 = vsel %vm4030_vm4, 1, %v11183_v54  ;;  %v4053_v47 = vsel %vm4052_vm1, 1, %v11183_v54  ;;  %v4045_v43 = vshrl.u32 %v4041_v31, 16 }
 0x507   : > { %v4033_v23 = vadd.s32 %v4031_v32, %v4029_v53  ;;  %v4055_v51 = vadd.s32 %v4053_v47, %v4051_v5  ;;  %vm3690_vm15 = vcmp.lt.s32.totalorder %v8871_v1, 4  ;;  %v4025_v22 = vshrl.u32 %v4020_v42, 16 }
 0x508   : > { %vm4223_vm2 = vcmp.lt.s32.totalorder %v4222_v21, 0  ;;  %v4224_v39 = vsub.s32 0, %v4222_v21  ;;  %v4047_v46 = vshrl.u32 %v4042_v9, 16  ;;  %v3833_v3 = vshll.u32 %v11176_v40, %v8803_v6 }
 0x509   : > { %v4034_v45 = vadd.s32 %v4033_v23, %v4023_v62  ;;  %v4056_v60 = vadd.s32 %v4055_v51, %v4045_v43  ;;  %v3834_v0 = vshrl.u32 %v11177_v38, %v8830_v36  ;;  %v4004_v57 = vsel %vm3998_vm13, %v4001_v29, %v4003_v59 }
 0x50a   : > { %v4225_v25 = vsel %vm4223_vm2, %v4224_v39, %v4222_v21  ;;  %v9135_v27 = vadd.s32 %v4050_v49, %v4046_v2  ;;  %v9138_v31 = vor.u32 %v3831_v20, %v8970_v63  ;;  %v3686_v6 = vor.u32 %v8890_v11, %v8882_v28  ;;  %v11261_v2 = vld [vmem:[#allocation32_spill] sm:$0xff] }
 0x50b   : > { %v4226_v61 = vclz %v4225_v25  ;;  %v9140_v55 = vadd.s32 %v4034_v45, %v4025_v22  ;;  %v4057_v42 = vadd.s32 %v4056_v60, %v4047_v46  ;;  %v3835_v24 = vor.u32 %v3834_v0, %v3833_v3 }
 0x50c   : > { %v3851_v12 = vsel %vm3845_vm12, %v8954_v15, 920167782  ;;  %v3818_v35 = vor.u32 8388608, %v8962_v13  ;;  %vm3844_vm3 = vcmp.lt.s32.totalorder %v8873_v4, 3  ;;  %vm3842_vm5 = vcmp.lt.s32.totalorder %v8873_v4, 1 }
 0x50d   : > { %v6014_v9 = vadd.s32 4294967294, %v4226_v61  ;;  %vm4060_vm10 = vc.u32 %v9140_v55, %v9135_v27  ;;  %v3856_v63 = vsel %vm3844_vm3, %v8954_v15, %v8916_v33  ;;  %v4244_v28 = vsub.s32 4, %v9114_v18 }
 0x50e   : > { %v4058_v11 = vmul.u32 %v8980_v26, %v4004_v57  ;;  %v4061_v20 = vadd.s32 1, %v4057_v42  ;;  %v3854_v13 = vsel %vm3842_vm5, %v9138_v31, %v3835_v24  ;;  %vm3843_vm8 = vcmp.lt.s32.totalorder %v8873_v4, 2 }
 0x50f   : > { %vm6015_vm6 = vcmp.lt.s32.totalorder %v6014_v9, 0  ;;  %v3850_v41 = vsel %vm3842_vm5, %v9100_v50, %v9138_v31  ;;  %v3852_v15 = vsel %vm3844_vm3, %v3835_v24, %v3851_v12  ;;  %v3857_v26 = vsel %vm3843_vm8, %v3854_v13, %v3856_v63 }
 0x510   : > { %v4229_v33 = vsel %vm6015_vm6, 0, %v6014_v9  ;;  %v4062_v37 = vsel %vm4060_vm10, %v4061_v20, %v4057_v42  ;;  %v9170_v56 = vshll.u32 %v3818_v35, 8  ;;  %v9175_v17 = vsel %vm3690_vm15, %v8894_v58, 920167782 }
 0x511   : > { %v4214_v19 = vadd.s32 %v9062_v30, %v9060_v34  ;;  %v4230_v10 = vsub.s32 32, %v4229_v33  ;;  %v4234_v14 = vsub.s32 4294967266, %v4229_v33  ;;  %vm4122_vm7 = vcmp.lt.s32.totalorder %v11261_v2, 0 }
 0x512   : > { %v4063_v16 = vadd.s32 %v4062_v37, %v4058_v11  ;;  %v3826_v49 = vshrl.u32 %v11178_v7, %v8830_v36  ;;  %v3853_v48 = vsel %vm3843_vm8, %v3850_v41, %v3852_v15  ;;  %v4231_v29 = vshll.u32 %v4222_v21, %v4229_v33 }
 0x513   : > { %v4232_v52 = vshrl.u32 %v4214_v19, %v4230_v10  ;;  %v4235_v44 = vadd.s32 127, %v4234_v14  ;;  %v3861_v53 = vand.u32 65535, %v3857_v26  ;;  %v4245_v5 = vsel %vm4122_vm7, %v4244_v28, %v9114_v18  ;;  %v11265_v28 = vld [vmem:[#allocation26_spill] sm:$0xff] }
 0x514   : > { %v4064_v34 = vadd.s32 536870912, %v4063_v16  ;;  %v3859_v30 = vand.u32 65535, %v9170_v56  ;;  %v3862_v59 = vshrl.u32 %v3857_v26, 16  ;;  %v3860_v62 = vshrl.u32 %v9170_v56, 16 }
 0x515   : > { %v4233_v32 = vor.u32 %v4232_v52, %v4231_v29  ;;  %v4236_v47 = vshll.u32 %v4235_v44, 23  ;;  %v3884_v36 = vshrl.u32 %v3853_v48, 16  ;;  %v9191_v23 = vsel %vm3690_vm15, %v3686_v6, 1326507024 }
 0x516   : > { %v11262_v21 = vand.u32 2147483647, %v11261_v2  ;;  %v4065_v18 = vshrl.u32 %v4064_v34, 30  ;;  %v3864_v51 = vmul.u32 %v3862_v59, %v3859_v30  ;;  %v3846_v46 = vsel %vm3842_vm5, %v3826_v49, %v9100_v50 }
 0x517   : > { %v4237_v39 = vor.u32 4788187, %v4236_v47  ;;  %v3865_v45 = vmul.u32 %v3861_v53, %v3860_v62  ;;  %v3847_v3 = vsel %vm3845_vm12, %v3835_v24, 2102212464  ;;  %v3863_v0 = vmul.u32 %v3861_v53, %v3859_v30 }
 0x518   : > { %vm9195_vm13 = vcmp.le.f32.partialorder %v11262_v21, 0.7853982  ;;  %v4066_v60 = vshll.u32 %v4065_v18, 30  ;;  %v3867_v25 = vshll.u32 %v3864_v51, 16  ;;  %v4240_v61 = vcvt.s32.f32 %v4233_v32 }
 0x519   : > { %v4247_v22 = vsel %vm9195_vm13, 0, %v4245_v5  ;;  %v4238_v57 = vand.u32 2147483647, %v4237_v39  ;;  %v3883_v42 = vand.u32 65535, %v3853_v48  ;;  %v9206_v6 = vmul.u32 %v3884_v36, %v3859_v30 }
 0x51a   : > { %v9208_v12 = vsub.s32 %v4063_v16, %v4066_v60  ;;  %v3866_v35 = vmul.u32 %v3862_v59, %v3860_v62  ;;  %vm3871_vm9 = vc.u32 %v3863_v0, %v3867_v25  ;;  %v3873_v9 = vadd.s32 %v3867_v25, %v3863_v0 }
 0x51b   : > { %v4241_v63 = vmul.f32 %v4240_v61, %v4238_v57  ;;  %vm3967_vm14 = vcmp.lt.s32.totalorder %v11265_v28, 0  ;;  %v3869_v50 = vshll.u32 %v3865_v45, 16  ;;  %v3872_v11 = vsel %vm3871_vm9, 1, %v11183_v54  ;;  %v11269_v61 = vld [vmem:[#allocation17_spill] sm:$0xff] }
 0x51c   : > { %v3889_v24 = vshll.u32 %v9206_v6, 16  ;;  %v4264_v20 = vadd.s32 3, %v4247_v22  ;;  %vm4068_vm12 = vcmp.lt.s32.totalorder %v9208_v12, 0  ;;  %v4069_v13 = vsub.s32 0, %v9208_v12 }
 0x51d   : > { %v3874_v41 = vadd.s32 %v3872_v11, %v3866_v35  ;;  %v4242_v15 = vxor.u32 2147483648, %v4241_v63  ;;  %v4059_v33 = vadd.s32 %v9135_v27, %v9140_v55  ;;  %vm3875_vm11 = vc.u32 %v3873_v9, %v3869_v50 }
 0x51e   : > { %v3885_v37 = vmul.u32 %v3883_v42, %v3859_v30  ;;  %v4070_v26 = vsel %vm4068_vm12, %v4069_v13, %v9208_v12  ;;  %v3848_v19 = vsel %vm3844_vm3, %v9138_v31, %v3847_v3  ;;  %v3876_v10 = vsel %vm3875_vm11, 1, %v11183_v54 }
 0x51f   : > { %v3887_v14 = vmul.u32 %v3883_v42, %v3860_v62  ;;  %v4243_v16 = vsel %vm4122_vm7, %v4242_v15, %v4241_v63  ;;  %v11266_v49 = vand.u32 2147483647, %v11265_v28  ;;  %v4071_v27 = vclz %v4070_v26 }
 0x520   : > { %v3878_v55 = vadd.s32 %v3876_v10, %v3874_v41  ;;  %vm3893_vm1 = vc.u32 %v3885_v37, %v3889_v24  ;;  %v4246_v29 = vsel %vm9195_vm13, %v11261_v2, %v4243_v16  ;;  %v9233_v31 = vand.u32 3, %v4264_v20 }
 0x521   : > { %vm9226_vm4 = vcmp.le.f32.partialorder %v11266_v49, 0.7853982  ;;  %v4089_v52 = vsub.s32 4, %v4065_v18  ;;  %v3868_v44 = vshrl.u32 %v3864_v51, 16  ;;  %v4248_v53 = vmul.f32 %v4246_v29, %v4246_v29 }
 0x522   : > { %v6011_v5 = vadd.s32 4294967294, %v4071_v27  ;;  %v3888_v34 = vmul.u32 %v3884_v36, %v3860_v62  ;;  %v3894_v30 = vsel %vm3893_vm1, 1, %v11183_v54  ;;  %v3849_v59 = vsel %vm3843_vm8, %v3846_v46, %v3848_v19  ;;  %v11271_v27 = vld [vmem:[#allocation7_spill] sm:$0xff] }
 0x523   : > { %v3879_v32 = vadd.s32 %v3878_v55, %v3868_v44  ;;  %v3891_v47 = vshll.u32 %v3887_v14, 16  ;;  %v3895_v21 = vadd.s32 %v3889_v24, %v3885_v37  ;;  %v4249_v39 = vmul.f32 -0.001358992, %v4248_v53 }
 0x524   : > { %v4256_v22 = vmul.f32 -0.00019511016, %v4248_v53  ;;  %vm6012_vm2 = vcmp.lt.s32.totalorder %v6011_v5, 0  ;;  %v3896_v43 = vadd.s32 %v3894_v30, %v3888_v34  ;;  %v4090_v3 = vsel %vm3967_vm14, %v4089_v52, %v4065_v18 }
 0x525   : > { %v4074_v60 = vsel %vm6012_vm2, 0, %v6011_v5  ;;  %v3870_v51 = vshrl.u32 %v3865_v45, 16  ;;  %vm3897_vm3 = vc.u32 %v3895_v21, %v3891_v47  ;;  %v4250_v0 = vadd.f32 0.041655596, %v4249_v39 }
 0x526   : > { %v4257_v62 = vadd.f32 0.008332121, %v4256_v22  ;;  %v4075_v36 = vsub.s32 32, %v4074_v60  ;;  %v3890_v25 = vshrl.u32 %v9206_v6, 16  ;;  %v4079_v4 = vsub.s32 4294967266, %v4074_v60 }
 0x527   : > { %v9241_v46 = vadd.s32 %v3879_v32, %v3870_v51  ;;  %v3898_v57 = vsel %vm3897_vm3, 1, %v11183_v54  ;;  %v3655_v42 = vand.u32 2147483647, %v11269_v61  ;;  %v4251_v35 = vmul.f32 %v4250_v0, %v4248_v53 }
 0x528   : > { %v4258_v9 = vmul.f32 %v4257_v62, %v4248_v53  ;;  %v4077_v63 = vshrl.u32 %v4059_v33, %v4075_v36  ;;  %v3900_v50 = vadd.s32 %v3898_v57, %v3896_v43  ;;  %v4076_v18 = vshll.u32 %v9208_v12, %v4074_v60 }
 0x529   : > { %v4080_v45 = vadd.s32 127, %v4079_v4  ;;  %v4092_v11 = vsel %vm9226_vm4, 0, %v4090_v3  ;;  %v9248_v24 = vadd.s32 %v3895_v21, %v3891_v47  ;;  %v4252_v6 = vadd.f32 -0.4999988, %v4251_v35 }
 0x52a   : > { %v4259_v20 = vadd.f32 -0.16666654, %v4258_v9  ;;  %v3892_v13 = vshrl.u32 %v3887_v14, 16  ;;  %v3901_v41 = vadd.s32 %v3900_v50, %v3890_v25  ;;  %v4078_v15 = vor.u32 %v4077_v63, %v4076_v18  ;;  %v11270_v14 = vld [vmem:[#allocation24_spill] sm:$0xff] }
 0x52b   : > { %v4081_v37 = vshll.u32 %v4080_v45, 23  ;;  %v3903_v26 = vmul.u32 %v9170_v56, %v3849_v59  ;;  %vm3905_vm10 = vc.u32 %v9241_v46, %v9248_v24  ;;  %v4253_v33 = vmul.f32 %v4252_v6, %v4248_v53 }
 0x52c   : > { %v4260_v19 = vmul.f32 %v4259_v20, %v4248_v53  ;;  %vm4266_vm5 = vcmp.lt.s32.totalorder %v9233_v31, 2  ;;  %v3902_v12 = vadd.s32 %v3901_v41, %v3892_v13  ;;  %v3662_v10 = vand.u32 8388607, %v3655_v42  ;;  %v11272_v13 = vld [vmem:[#allocation22_spill] sm:$0xff] }
 0x52d   : > { %vm4263_vm6 = vweird.f32 %v11261_v2  ;;  %v4082_v16 = vor.u32 4788187, %v4081_v37  ;;  %v3672_v49 = vshll.u32 %v11178_v7, %v11270_v14  ;;  %v3673_v56 = vshrl.u32 %v11181_v8, %v11271_v27  ;;  %v11273_v41 = vld [vmem:[#allocation10_spill] sm:$0xff] }
 0x52e   : > { %v3676_v55 = vshrl.u32 %v11176_v40, %v11271_v27  ;;  %v4254_v52 = vadd.f32 1.0, %v4253_v33  ;;  %v4261_v44 = vadd.f32 1.0, %v4260_v19  ;;  %v3906_v53 = vadd.s32 1, %v3902_v12  ;;  %v11274_v37 = vld [vmem:[#allocation18_spill] sm:$0xff] }
 0x52f   : > { %v3675_v5 = vshll.u32 %v11181_v8, %v11270_v14  ;;  %v4083_v34 = vand.u32 2147483647, %v4082_v16  ;;  %v4085_v30 = vcvt.s32.f32 %v4078_v15  ;;  %v3678_v59 = vshll.u32 %v11176_v40, %v11270_v14 }
 0x530   : > { %v3679_v32 = vshrl.u32 %v11177_v38, %v11271_v27  ;;  %v4262_v47 = vmul.f32 %v4261_v44, %v4246_v29  ;;  %v4271_v21 = vxor.u32 2147483648, %v4254_v52  ;;  %v3907_v39 = vsel %vm3905_vm10, %v3906_v53, %v3902_v12 }
 0x531   : > { %v9272_v22 = vor.u32 %v3676_v55, %v3675_v5  ;;  %vm4267_vm8 = vcmp.eq.s32.totalorder %v9233_v31, 0  ;;  %v4086_v43 = vmul.f32 %v4085_v30, %v4083_v34  ;;  %v3908_v60 = vadd.s32 %v3907_v39, %v3903_v26 }
 0x532   : > { %v3680_v3 = vor.u32 %v3679_v32, %v3678_v59  ;;  %v4268_v51 = vxor.u32 2147483648, %v4262_v47  ;;  %vm4270_vm7 = vcmp.eq.s32.totalorder %v9233_v31, 2  ;;  %v4109_v0 = vadd.s32 3, %v4092_v11 }
 0x533   : > { %v3674_v62 = vor.u32 %v3673_v56, %v3672_v49  ;;  %v4087_v36 = vxor.u32 2147483648, %v4086_v43  ;;  %v3909_v25 = vadd.s32 536870912, %v3908_v60  ;;  %v3663_v29 = vor.u32 8388608, %v3662_v10 }
 0x534   : > { %vm3687_vm13 = vcmp.lt.s32.totalorder %v8871_v1, 1  ;;  %v4269_v4 = vsel %vm4267_vm8, %v4254_v52, %v4268_v51  ;;  %v4272_v57 = vsel %vm4270_vm7, %v4271_v21, %v4262_v47  ;;  %vm3688_vm9 = vcmp.lt.s32.totalorder %v8871_v1, 2 }
 0x535   : > { %v3699_v35 = vsel %vm3687_vm13, %v9272_v22, %v3680_v3  ;;  %v4273_v9 = vsel %vm4266_vm5, %v4269_v4, %v4272_v57  ;;  %v4088_v63 = vsel %vm3967_vm14, %v4087_v36, %v4086_v43  ;;  %v9285_v50 = vshrl.u32 %v3909_v25, 30 }
 0x536   : > { %vm3689_vm12 = vcmp.lt.s32.totalorder %v8871_v1, 3  ;;  %v4274_v18 = vsel %vm4263_vm6, nan, %v4273_v9  ;;  %v9293_v45 = vsel %vm9226_vm4, %v11265_v28, %v4088_v63  ;;  %v3695_v31 = vsel %vm3687_vm13, %v3674_v62, %v9272_v22  ;;  %v11282_v1 = vld [vmem:[#allocation30_spill] sm:$0xff] }
 0x537   : > { %v3701_v11 = vsel %vm3689_vm12, %v8894_v58, %v9191_v23  ;;  %4521 = vmatpush.msra.mxu2 %v4274_v18  ;;  %v4093_v6 = vmul.f32 %v9293_v45, %v9293_v45  ;;  %v3911_v2 = vshll.u32 %v9285_v50, 30  ;;  %v3697_v48 = vsel %vm3689_vm12, %v3680_v3, %v9175_v17  ;;  %v11275_v23 = vld [vmem:[#allocation6_spill] sm:$0xff] }
 0x538   : > { %v3702_v20 = vsel %vm3688_vm9, %v3699_v35, %v3701_v11  ;;  %v3531_v15 = vor.u32 %v11273_v41, %v11272_v13  ;;  %vm3535_vm14 = vcmp.lt.s32.totalorder %v11274_v37, 4  ;;  %v9313_v26 = vshll.u32 %v3663_v29, 8 }
 0x539   : > { %v3707_v58 = vshrl.u32 %v3702_v20, 16  ;;  %v9318_v33 = vsel %vm3535_vm14, %v11275_v23, 920167782  ;;  %v4094_v19 = vmul.f32 -0.001358992, %v4093_v6  ;;  %v9320_v10 = vsub.s32 %v3908_v60, %v3911_v2  ;;  %v11276_v2 = vld [vmem:[#allocation13_spill] sm:$0xff] }
 0x53a   : > { %v4101_v12 = vmul.f32 -0.00019511016, %v4093_v6  ;;  %v9322_v17 = vand.u32 3, %v4109_v0  ;;  %v9326_v16 = vsel %vm3688_vm9, %v3695_v31, %v3697_v48  ;;  %v3704_v14 = vand.u32 65535, %v9313_v26 }
 0x53b   : > { %v3706_v49 = vand.u32 65535, %v3702_v20  ;;  %v4095_v56 = vadd.f32 0.041655596, %v4094_v19  ;;  %vm3913_vm11 = vcmp.lt.s32.totalorder %v9320_v10, 0  ;;  %v3914_v52 = vsub.s32 0, %v9320_v10 }
 0x53c   : > { %v4102_v55 = vadd.f32 0.008332121, %v4101_v12  ;;  %v9333_v44 = vsel %vm3535_vm14, %v3531_v15, 1326507024  ;;  %v3904_v53 = vadd.s32 %v9248_v24, %v9241_v46  ;;  %v3705_v5 = vshrl.u32 %v9313_v26, 16 }
 0x53d   : > { %v3709_v34 = vmul.u32 %v3707_v58, %v3704_v14  ;;  %v4096_v30 = vmul.f32 %v4095_v56, %v4093_v6  ;;  %v3915_v32 = vsel %vm3913_vm11, %v3914_v52, %v9320_v10  ;;  %v3671_v47 = vshrl.u32 %v11178_v7, %v11271_v27 }
 0x53e   : > { %v4103_v59 = vmul.f32 %v4102_v55, %v4093_v6  ;;  %v3916_v21 = vclz %v3915_v32  ;;  %v9341_v39 = vmul.u32 %v3706_v49, %v3705_v5  ;;  %v3729_v60 = vshrl.u32 %v9326_v16, 16 }
 0x53f   : > { %v3712_v43 = vshll.u32 %v3709_v34, 16  ;;  %v4097_v51 = vadd.f32 -0.4999988, %v4096_v30  ;;  %vm4115_vm4 = vcmp.eq.s32.totalorder %v9322_v17, 2  ;;  %v3691_v46 = vsel %vm3687_vm13, %v3671_v47, %v3674_v62 }
 0x540   : > { %v4104_v0 = vadd.f32 -0.16666654, %v4103_v59  ;;  %v3708_v24 = vmul.u32 %v3706_v49, %v3704_v14  ;;  %vm4112_vm1 = vcmp.eq.s32.totalorder %v9322_v17, 0  ;;  %v6008_v36 = vadd.s32 4294967294, %v3916_v21 }
 0x541   : > { %v3692_v27 = vsel %vm3690_vm15, %v3680_v3, 2102212464  ;;  %v3711_v25 = vmul.u32 %v3707_v58, %v3705_v5  ;;  %v3728_v29 = vand.u32 65535, %v9326_v16  ;;  %v4098_v4 = vmul.f32 %v4097_v51, %v4093_v6 }
 0x542   : > { %v4105_v57 = vmul.f32 %v4104_v0, %v4093_v6  ;;  %vm4111_vm2 = vcmp.lt.s32.totalorder %v9322_v17, 2  ;;  %vm3716_vm3 = vc.u32 %v3708_v24, %v3712_v43  ;;  %v3718_v35 = vadd.s32 %v3712_v43, %v3708_v24 }
 0x543   : > { %vm4108_vm10 = vweird.f32 %v11265_v28  ;;  %vm6009_vm5 = vcmp.lt.s32.totalorder %v6008_v36, 0  ;;  %v3714_v62 = vshll.u32 %v9341_v39, 16  ;;  %v3717_v9 = vsel %vm3716_vm3, 1, %v11183_v54 }
 0x544   : > { %v3731_v63 = vmul.u32 %v3729_v60, %v3704_v14  ;;  %v4099_v18 = vadd.f32 1.0, %v4098_v4  ;;  %v4106_v31 = vadd.f32 1.0, %v4105_v57  ;;  %v3919_v3 = vsel %vm6009_vm5, 0, %v6008_v36 }
 0x545   : > { %v3719_v11 = vadd.s32 %v3717_v9, %v3711_v25  ;;  %vm3812_vm15 = vcmp.lt.s32.totalorder %v11276_v2, 0  ;;  %v3920_v48 = vsub.s32 32, %v3919_v3  ;;  %v3924_v6 = vsub.s32 4294967266, %v3919_v3 }
 0x546   : > { %v3693_v20 = vsel %vm3689_vm12, %v9272_v22, %v3692_v27  ;;  %vm3720_vm6 = vc.u32 %v3718_v35, %v3714_v62  ;;  %v4107_v13 = vmul.f32 %v4106_v31, %v9293_v45  ;;  %v4116_v41 = vxor.u32 2147483648, %v4099_v18 }
 0x547   : > { %v3721_v15 = vsel %vm3720_vm6, 1, %v11183_v54  ;;  %v3732_v58 = vmul.u32 %v3728_v29, %v3705_v5  ;;  %v3921_v19 = vshll.u32 %v9320_v10, %v3919_v3  ;;  %v3922_v12 = vshrl.u32 %v3904_v53, %v3920_v48 }
 0x548   : > { %v3925_v16 = vadd.s32 127, %v3924_v6  ;;  %v3723_v49 = vadd.s32 %v3721_v15, %v3719_v11  ;;  %v4113_v56 = vxor.u32 2147483648, %v4107_v13  ;;  %v3934_v55 = vsub.s32 4, %v9285_v50  ;;  %v11281_v11 = vld [vmem:[#allocation20_spill] sm:$0xff] }
 0x549   : > { %v3730_v52 = vmul.u32 %v3728_v29, %v3704_v14  ;;  %v3734_v30 = vshll.u32 %v3731_v63, 16  ;;  %v4117_v22 = vsel %vm4115_vm4, %v4116_v41, %v4107_v13  ;;  %v3923_v59 = vor.u32 %v3922_v12, %v3921_v19 }
 0x54a   : > { %v3926_v32 = vshll.u32 %v3925_v16, 23  ;;  %v3713_v45 = vshrl.u32 %v3709_v34, 16  ;;  %v4114_v47 = vsel %vm4112_vm1, %v4099_v18, %v4113_v56  ;;  %v3736_v21 = vshll.u32 %v3732_v58, 16 }
 0x54b   : > { %vm3738_vm8 = vc.u32 %v3730_v52, %v3734_v30  ;;  %v3740_v10 = vadd.s32 %v3734_v30, %v3730_v52  ;;  %v4118_v53 = vsel %vm4111_vm2, %v4114_v47, %v4117_v22  ;;  %v3733_v0 = vmul.u32 %v3729_v60, %v3705_v5 }
 0x54c   : > { %v3927_v43 = vor.u32 4788187, %v3926_v32  ;;  %v3724_v51 = vadd.s32 %v3723_v49, %v3713_v45  ;;  %v4119_v14 = vsel %vm4108_vm10, nan, %v4118_v53  ;;  %v3715_v24 = vshrl.u32 %v9341_v39, 16  ;;  %v11280_v39 = vld [vmem:[#allocation28_spill] sm:$0xff] }
 0x54d   : > { %v3739_v36 = vsel %vm3738_vm8, 1, %v11183_v54  ;;  %vm3742_vm7 = vc.u32 %v3740_v10, %v3736_v21  ;;  %4522 = vmatpush.msra.mxu2 %v4119_v14  ;;  %v3930_v27 = vcvt.s32.f32 %v3923_v59  ;;  %v11277_v17 = vand.u32 2147483647, %v11276_v2  ;;  %v11283_v53 = vld [vmem:[#allocation16_spill] sm:$0xff] }
 0x54e   : > { %v3928_v34 = vand.u32 2147483647, %v3927_v43  ;;  %v3741_v25 = vadd.s32 %v3739_v36, %v3733_v0  ;;  %v3743_v29 = vsel %vm3742_vm7, 1, %v11183_v54  ;;  %v3935_v28 = vsel %vm3812_vm15, %v3934_v55, %v9285_v50  ;;  %v11284_v43 = vld [vmem:[#allocation19_spill] sm:$0xff] }
 0x54f   : > { %vm9376_vm13 = vcmp.le.f32.partialorder %v11277_v17, 0.7853982  ;;  %v3694_v5 = vsel %vm3688_vm9, %v3691_v46, %v3693_v20  ;;  %v3500_v60 = vand.u32 2147483647, %v11280_v39  ;;  %v9386_v35 = vadd.s32 %v3724_v51, %v3715_v24  ;;  %v11285_v17 = vld [vmem:[#allocation12_spill] sm:$0xff] }
 0x550   : > { %v3931_v57 = vmul.f32 %v3930_v27, %v3928_v34  ;;  %v3735_v62 = vshrl.u32 %v3731_v63, 16  ;;  %v3745_v9 = vadd.s32 %v3743_v29, %v3741_v25  ;;  %v3737_v18 = vshrl.u32 %v3732_v58, 16 }
 0x551   : > { %v9388_v31 = vadd.s32 %v3740_v10, %v3736_v21  ;;  %v3507_v3 = vand.u32 8388607, %v3500_v60  ;;  %v3518_v48 = vshrl.u32 %v11181_v8, %v11281_v11  ;;  %v3520_v46 = vshll.u32 %v11181_v8, %v11282_v1 }
 0x552   : > { %v3932_v50 = vxor.u32 2147483648, %v3931_v57  ;;  %v3746_v6 = vadd.s32 %v3745_v9, %v3735_v62  ;;  %v3521_v20 = vshrl.u32 %v11176_v40, %v11281_v11  ;;  %v3937_v63 = vsel %vm9376_vm13, 0, %v3935_v28 }
 0x553   : > { %v3517_v13 = vshll.u32 %v11178_v7, %v11282_v1  ;;  %v3523_v41 = vshll.u32 %v11176_v40, %v11282_v1  ;;  %v3524_v15 = vshrl.u32 %v11177_v38, %v11281_v11  ;;  %vm3750_vm9 = vc.u32 %v9386_v35, %v9388_v31 }
 0x554   : > { %v3933_v58 = vsel %vm3812_vm15, %v3932_v50, %v3931_v57  ;;  %v3747_v19 = vadd.s32 %v3746_v6, %v3737_v18  ;;  %v9410_v12 = vor.u32 %v3521_v20, %v3520_v46  ;;  %v3508_v49 = vor.u32 8388608, %v3507_v3  ;;  %v11286_v57 = vld [vmem:[#allocation8_spill] sm:$0xff]  ;;  %v11288_v18 = vld [vmem:[#allocation21_spill] sm:$0xff] }
 0x555   : > { %v3936_v16 = vsel %vm9376_vm13, %v11276_v2, %v3933_v58  ;;  %v9415_v56 = vor.u32 %v3518_v48, %v3517_v13  ;;  %v3525_v55 = vor.u32 %v3524_v15, %v3523_v41  ;;  %vm3532_vm12 = vcmp.lt.s32.totalorder %v11274_v37, 1 }
 0x556   : > { %v3938_v52 = vmul.f32 %v3936_v16, %v3936_v16  ;;  %v3751_v30 = vadd.s32 1, %v3747_v19  ;;  %vm3534_vm11 = vcmp.lt.s32.totalorder %v11274_v37, 3  ;;  %v3954_v22 = vadd.s32 3, %v3937_v63 }
 0x557   : > { %v3748_v59 = vmul.u32 %v9313_v26, %v3694_v5  ;;  %v3544_v32 = vsel %vm3532_vm12, %v9410_v12, %v3525_v55  ;;  %v3546_v45 = vsel %vm3534_vm11, %v11275_v23, %v9333_v44  ;;  %vm3533_vm4 = vcmp.lt.s32.totalorder %v11274_v37, 2 }
 0x558   : > { %v3939_v47 = vmul.f32 -0.001358992, %v3938_v52  ;;  %v3946_v21 = vmul.f32 -0.00019511016, %v3938_v52  ;;  %v3752_v10 = vsel %vm3750_vm9, %v3751_v30, %v3747_v19  ;;  %v3376_v26 = vor.u32 %v11284_v43, %v11283_v53 }
 0x559   : > { %v3753_v51 = vadd.s32 %v3752_v10, %v3748_v59  ;;  %v3540_v0 = vsel %vm3532_vm12, %v9415_v56, %v9410_v12  ;;  %v3547_v23 = vsel %vm3533_vm4, %v3544_v32, %v3546_v45  ;;  %v3542_v24 = vsel %vm3534_vm11, %v3525_v55, %v9318_v33 }
 0x55a   : > { %v3940_v44 = vadd.f32 0.041655596, %v3939_v47  ;;  %v3947_v14 = vadd.f32 0.008332121, %v3946_v21  ;;  %v9442_v36 = vshll.u32 %v3508_v49, 8  ;;  %v3955_v34 = vand.u32 3, %v3954_v22 }
 0x55b   : > { %v3754_v27 = vadd.s32 536870912, %v3753_v51  ;;  %v3551_v25 = vand.u32 65535, %v3547_v23  ;;  %v3552_v29 = vshrl.u32 %v3547_v23, 16  ;;  %vm3380_vm1 = vcmp.lt.s32.totalorder %v11285_v17, 4 }
 0x55c   : > { %v3941_v4 = vmul.f32 %v3940_v44, %v3938_v52  ;;  %v3948_v28 = vmul.f32 %v3947_v14, %v3938_v52  ;;  %v3549_v5 = vand.u32 65535, %v9442_v36  ;;  %v11287_v62 = vmov 1326507024  }
 0x55d   : > { %v9448_v9 = vshrl.u32 %v11287_v62, %v11286_v57  ;;  %v9453_v33 = vsel %vm3380_vm1, %v11288_v18, 920167782  ;;  %v9455_v3 = vshrl.u32 %v3754_v27, 30  ;;  %v9459_v48 = vsel %vm3533_vm4, %v3540_v0, %v3542_v24 }
 0x55e   : > { %v3942_v50 = vadd.f32 -0.4999988, %v3941_v4  ;;  %v3949_v6 = vadd.f32 -0.16666654, %v3948_v28  ;;  %v3550_v1 = vshrl.u32 %v9442_v36, 16  ;;  %v9462_v46 = vmul.u32 %v3552_v29, %v3549_v5 }
 0x55f   : > { %v9466_v20 = vsel %vm3380_vm1, %v3376_v26, 1326507024  ;;  %vm3957_vm2 = vcmp.eq.s32.totalorder %v3955_v34, 0  ;;  %v3756_v63 = vshll.u32 %v9455_v3, 30  ;;  %v3553_v13 = vmul.u32 %v3551_v25, %v3549_v5 }
 0x560   : > { %v3943_v41 = vmul.f32 %v3942_v50, %v3938_v52  ;;  %v3950_v15 = vmul.f32 %v3949_v6, %v3938_v52  ;;  %vm3956_vm3 = vcmp.lt.s32.totalorder %v3955_v34, 2  ;;  %v9469_v58 = vmul.u32 %v3551_v25, %v3550_v1  ;;  %v11289_v25 = vld [vmem:[#allocation9_spill] sm:$0xff] }
 0x561   : > { %v3557_v19 = vshll.u32 %v9462_v46, 16  ;;  %vm3953_vm10 = vweird.f32 %v11276_v2  ;;  %vm3960_vm5 = vcmp.eq.s32.totalorder %v3955_v34, 2  ;;  %v9473_v49 = vsub.s32 %v3753_v51, %v3756_v63 }
 0x562   : > { %v3537_v30 = vsel %vm3535_vm14, %v3525_v55, 2102212464  ;;  %v3574_v22 = vshrl.u32 %v9459_v48, 16  ;;  %v3944_v59 = vadd.f32 1.0, %v3943_v41  ;;  %v3951_v32 = vadd.f32 1.0, %v3950_v15 }
 0x563   : > { %vm3561_vm15 = vc.u32 %v3553_v13, %v3557_v19  ;;  %v3573_v52 = vand.u32 65535, %v9459_v48  ;;  %vm3758_vm6 = vcmp.lt.s32.totalorder %v9473_v49, 0  ;;  %v3759_v45 = vsub.s32 0, %v9473_v49 }
 0x564   : > { %v3556_v47 = vmul.u32 %v3552_v29, %v3550_v1  ;;  %v3562_v21 = vsel %vm3561_vm15, 1, %v11183_v54  ;;  %v3952_v10 = vmul.f32 %v3951_v32, %v3936_v16  ;;  %v3961_v53 = vxor.u32 2147483648, %v3944_v59 }
 0x565   : > { %v3559_v43 = vshll.u32 %v9469_v58, 16  ;;  %v3563_v26 = vadd.s32 %v3557_v19, %v3553_v13  ;;  %v3760_v55 = vsel %vm3758_vm6, %v3759_v45, %v9473_v49  ;;  %v3516_v51 = vshrl.u32 %v11178_v7, %v11281_v11 }
 0x566   : > { %v3564_v0 = vadd.s32 %v3562_v21, %v3556_v47  ;;  %v3576_v23 = vmul.u32 %v3574_v22, %v3549_v5  ;;  %v3958_v44 = vxor.u32 2147483648, %v3952_v10  ;;  %vm3657_vm14 = vcmp.lt.s32.totalorder %v11269_v61, 0 }
 0x567   : > { %v3749_v14 = vadd.s32 %v9388_v31, %v9386_v35  ;;  %v3761_v24 = vclz %v3760_v55  ;;  %vm3565_vm8 = vc.u32 %v3563_v26, %v3559_v43  ;;  %v3536_v16 = vsel %vm3532_vm12, %v3516_v51, %v9415_v56 }
 0x568   : > { %v3538_v27 = vsel %vm3534_vm11, %v9410_v12, %v3537_v30  ;;  %v3566_v11 = vsel %vm3565_vm8, 1, %v11183_v54  ;;  %v3345_v29 = vand.u32 2147483647, %v11289_v25  ;;  %v3959_v4 = vsel %vm3957_vm2, %v3944_v59, %v3958_v44 }
 0x569   : > { %v3962_v28 = vsel %vm3960_vm5, %v3961_v53, %v3952_v10  ;;  %v6005_v48 = vadd.s32 4294967294, %v3761_v24  ;;  %v3577_v35 = vmul.u32 %v3573_v52, %v3550_v1  ;;  %v3568_v50 = vadd.s32 %v3566_v11, %v3564_v0  ;;  %v11292_v0 = vld [vmem:[#allocation31_spill] sm:$0xff] }
 0x56a   : > { %v3963_v31 = vsel %vm3956_vm3, %v3959_v4, %v3962_v28  ;;  %v3575_v6 = vmul.u32 %v3573_v52, %v3549_v5  ;;  %v3579_v63 = vshll.u32 %v3576_v23, 16  ;;  %v3779_v12 = vsub.s32 4, %v9455_v3 }
 0x56b   : > { %v3964_v56 = vsel %vm3953_vm10, nan, %v3963_v31  ;;  %vm6006_vm7 = vcmp.lt.s32.totalorder %v6005_v48, 0  ;;  %v3558_v13 = vshrl.u32 %v9462_v46, 16  ;;  %v3581_v15 = vshll.u32 %v3577_v35, 16 }
 0x56c   : > { %4523 = vmatpush.msra.mxu2 %v3964_v56  ;;  %v3764_v41 = vsel %vm6006_vm7, 0, %v6005_v48  ;;  %vm3583_vm13 = vc.u32 %v3575_v6, %v3579_v63  ;;  %v3585_v19 = vadd.s32 %v3579_v63, %v3575_v6  ;;  %v3539_v34 = vsel %vm3533_vm4, %v3536_v16, %v3538_v27 }
 0x56d   : > { %v3765_v30 = vsub.s32 32, %v3764_v41  ;;  %v3769_v59 = vsub.s32 4294967266, %v3764_v41  ;;  %v3578_v5 = vmul.u32 %v3574_v22, %v3550_v1  ;;  %v3766_v32 = vshll.u32 %v9473_v49, %v3764_v41 }
 0x56e   : > { %v3569_v2 = vadd.s32 %v3568_v50, %v3558_v13  ;;  %v3584_v52 = vsel %vm3583_vm13, 1, %v11183_v54  ;;  %vm3587_vm9 = vc.u32 %v3585_v19, %v3581_v15  ;;  %vm9511_vm12 = vcmp.le.f32.partialorder %v3655_v42, 0.7853982 }
 0x56f   : > { %v3767_v45 = vshrl.u32 %v3749_v14, %v3765_v30  ;;  %v3770_v47 = vadd.s32 127, %v3769_v59  ;;  %v3586_v46 = vadd.s32 %v3584_v52, %v3578_v5  ;;  %v3588_v21 = vsel %vm3587_vm9, 1, %v11183_v54  ;;  %v11293_v14 = vld [vmem:[#allocation14_spill] sm:$0xff] }
 0x570   : > { %v3780_v37 = vsel %vm3657_vm14, %v3779_v12, %v9455_v3  ;;  %v3560_v1 = vshrl.u32 %v9469_v58, 16  ;;  %v3580_v49 = vshrl.u32 %v3576_v23, 16  ;;  %v3352_v22 = vand.u32 8388607, %v3345_v29 }
 0x571   : > { %v3768_v53 = vor.u32 %v3767_v45, %v3766_v32  ;;  %v3771_v43 = vshll.u32 %v3770_v47, 23  ;;  %v3582_v26 = vshrl.u32 %v3577_v35, 16  ;;  %v3590_v55 = vadd.s32 %v3588_v21, %v3586_v46 }
 0x572   : > { %v9521_v51 = vadd.s32 %v3569_v2, %v3560_v1  ;;  %v3353_v42 = vor.u32 8388608, %v3352_v22  ;;  %v3362_v44 = vshll.u32 %v11178_v7, %v11292_v0  ;;  %v3363_v24 = vshrl.u32 %v11181_v8, %v11293_v14  ;;  %v11296_v22 = vld [vmem:[#allocation23_spill] sm:$0xff] }
 0x573   : > { %v3772_v3 = vor.u32 4788187, %v3771_v43  ;;  %v3591_v16 = vadd.s32 %v3590_v55, %v3580_v49  ;;  %v3365_v58 = vshll.u32 %v11181_v8, %v11292_v0  ;;  %v3366_v23 = vshrl.u32 %v11176_v40, %v11293_v14  ;;  %v11297_v43 = vld [vmem:[#allocation25_spill] sm:$0xff] }
 0x574   : > { %v9531_v27 = vadd.s32 %v3585_v19, %v3581_v15  ;;  %v9533_v11 = vor.u32 %v3363_v24, %v3362_v44  ;;  %v3368_v4 = vshll.u32 %v11176_v40, %v11292_v0  ;;  %v3369_v28 = vshrl.u32 %v11177_v38, %v11293_v14 }
 0x575   : > { %v3773_v48 = vand.u32 2147483647, %v3772_v3  ;;  %v3775_v35 = vcvt.s32.f32 %v3768_v53  ;;  %v3592_v31 = vadd.s32 %v3591_v16, %v3582_v26  ;;  %v9539_v50 = vor.u32 %v3366_v23, %v3365_v58 }
 0x576   : > { %vm3595_vm11 = vc.u32 %v9521_v51, %v9531_v27  ;;  %v3370_v6 = vor.u32 %v3369_v28, %v3368_v4  ;;  %vm3379_vm4 = vcmp.lt.s32.totalorder %v11285_v17, 3  ;;  %v9544_v63 = vshll.u32 %v3353_v42, 8 }
 0x577   : > { %v3776_v56 = vmul.f32 %v3775_v35, %v3773_v48  ;;  %v3596_v12 = vadd.s32 1, %v3592_v31  ;;  %vm3377_vm2 = vcmp.lt.s32.totalorder %v11285_v17, 1  ;;  %v3391_v13 = vsel %vm3379_vm4, %v11288_v18, %v9466_v20  ;;  %v11295_v20 = vld [vmem:[#allocation27_spill] sm:$0xff] }
 0x578   : > { %v3593_v41 = vmul.u32 %v9442_v36, %v3539_v34  ;;  %v3385_v15 = vsel %vm3377_vm2, %v9533_v11, %v9539_v50  ;;  %v3387_v19 = vsel %vm3379_vm4, %v3370_v6, %v9453_v33  ;;  %v3389_v30 = vsel %vm3377_vm2, %v9539_v50, %v3370_v6  ;;  %v11294_v36 = vld [vmem:[#allocation15_spill] sm:$0xff] }
 0x579   : > { %v3777_v59 = vxor.u32 2147483648, %v3776_v56  ;;  %v3782_v5 = vsel %vm9511_vm12, 0, %v3780_v37  ;;  %v3597_v18 = vsel %vm3595_vm11, %v3596_v12, %v3592_v31  ;;  %vm3378_vm3 = vcmp.lt.s32.totalorder %v11285_v17, 2 }
 0x57a   : > { %v9567_v34 = vor.u32 %v11295_v20, %v11294_v36  ;;  %v3598_v32 = vadd.s32 %v3597_v18, %v3593_v41  ;;  %v3392_v2 = vsel %vm3378_vm3, %v3389_v30, %v3391_v13  ;;  %v3394_v33 = vand.u32 65535, %v9544_v63 }
 0x57b   : > { %v3778_v52 = vsel %vm3657_vm14, %v3777_v59, %v3776_v56  ;;  %v9576_v45 = vsel %vm3378_vm3, %v3385_v15, %v3387_v19  ;;  %v3396_v47 = vand.u32 65535, %v3392_v2  ;;  %v3397_v46 = vshrl.u32 %v3392_v2, 16 }
 0x57c   : > { %v9581_v21 = vsel %vm9511_vm12, %v11269_v61, %v3778_v52  ;;  %v3799_v37 = vadd.s32 3, %v3782_v5  ;;  %v3599_v1 = vadd.s32 536870912, %v3598_v32  ;;  %v3395_v49 = vshrl.u32 %v9544_v63, 16 }
 0x57d   : > { %v3221_v53 = vor.u32 %v9448_v9, %v11296_v22  ;;  %vm3225_vm10 = vcmp.lt.s32.totalorder %v11297_v43, 4  ;;  %v3783_v26 = vmul.f32 %v9581_v21, %v9581_v21  ;;  %v3399_v55 = vmul.u32 %v3397_v46, %v3394_v33 }
 0x57e   : > { %v9592_v42 = vsel %vm3225_vm10, %v9567_v34, 920167782  ;;  %v9594_v10 = vshrl.u32 %v3599_v1, 30  ;;  %v9596_v0 = vmul.u32 %v3396_v47, %v3395_v49  ;;  %v3419_v44 = vshrl.u32 %v9576_v45, 16 }
 0x57f   : > { %v3784_v24 = vmul.f32 -0.001358992, %v3783_v26  ;;  %v3791_v3 = vmul.f32 -0.00019511016, %v3783_v26  ;;  %v3398_v9 = vmul.u32 %v3396_v47, %v3394_v33  ;;  %v3402_v16 = vshll.u32 %v3399_v55, 16 }
 0x580   : > { %v9599_v58 = vand.u32 3, %v3799_v37  ;;  %v3601_v23 = vshll.u32 %v9594_v10, 30  ;;  %v3401_v4 = vmul.u32 %v3397_v46, %v3395_v49  ;;  %v3418_v28 = vand.u32 65535, %v9576_v45 }
 0x581   : > { %v3785_v48 = vadd.f32 0.041655596, %v3784_v24  ;;  %v3792_v35 = vadd.f32 0.008332121, %v3791_v3  ;;  %vm3406_vm5 = vc.u32 %v3398_v9, %v3402_v16  ;;  %v3408_v31 = vadd.s32 %v3402_v16, %v3398_v9 }
 0x582   : > { %v9603_v56 = vsub.s32 %v3598_v32, %v3601_v23  ;;  %v3404_v12 = vshll.u32 %v9596_v0, 16  ;;  %v3407_v13 = vsel %vm3406_vm5, 1, %v11183_v54  ;;  %v9607_v41 = vmul.u32 %v3419_v44, %v3394_v33 }
 0x583   : > { %v9611_v15 = vsel %vm3225_vm10, %v3221_v53, 1326507024  ;;  %v3786_v19 = vmul.f32 %v3785_v48, %v3783_v26  ;;  %v3793_v30 = vmul.f32 %v3792_v35, %v3783_v26  ;;  %v3409_v59 = vadd.s32 %v3407_v13, %v3401_v4 }
 0x584   : > { %vm3603_vm15 = vcmp.lt.s32.totalorder %v9603_v56, 0  ;;  %v3604_v5 = vsub.s32 0, %v9603_v56  ;;  %v3382_v18 = vsel %vm3380_vm1, %v3370_v6, 2102212464  ;;  %vm3410_vm6 = vc.u32 %v3408_v31, %v3404_v12 }
 0x585   : > { %v3787_v36 = vadd.f32 -0.4999988, %v3786_v19  ;;  %v3794_v20 = vadd.f32 -0.16666654, %v3793_v30  ;;  %v3361_v32 = vshrl.u32 %v11178_v7, %v11293_v14  ;;  %v3411_v2 = vsel %vm3410_vm6, 1, %v11183_v54 }
 0x586   : > { %vm3802_vm14 = vcmp.eq.s32.totalorder %v9599_v58, 0  ;;  %vm3805_vm8 = vcmp.eq.s32.totalorder %v9599_v58, 2  ;;  %v3605_v52 = vsel %vm3603_vm15, %v3604_v5, %v9603_v56  ;;  %v3413_v45 = vadd.s32 %v3411_v2, %v3409_v59 }
 0x587   : > { %v3422_v47 = vmul.u32 %v3418_v28, %v3395_v49  ;;  %v3424_v46 = vshll.u32 %v9607_v41, 16  ;;  %v3788_v37 = vmul.f32 %v3787_v36, %v3783_v26  ;;  %v3795_v6 = vmul.f32 %v3794_v20, %v3783_v26  ;;  %v11300_v20 = vld [vmem:[#allocation11_spill] sm:$0xff] }
 0x588   : > { %vm3801_vm1 = vcmp.lt.s32.totalorder %v9599_v58, 2  ;;  %v3594_v1 = vadd.s32 %v9531_v27, %v9521_v51  ;;  %v3606_v14 = vclz %v3605_v52  ;;  %vm3798_vm7 = vweird.f32 %v11269_v61 }
 0x589   : > { %v3381_v22 = vsel %vm3377_vm2, %v3361_v32, %v9533_v11  ;;  %v3383_v53 = vsel %vm3379_vm4, %v9539_v50, %v3382_v18  ;;  %v3403_v24 = vshrl.u32 %v3399_v55, 16  ;;  %v3420_v3 = vmul.u32 %v3418_v28, %v3394_v33 }
 0x58a   : > { %v3789_v9 = vadd.f32 1.0, %v3788_v37  ;;  %v3796_v26 = vadd.f32 1.0, %v3795_v6  ;;  %v6002_v16 = vadd.s32 4294967294, %v3606_v14  ;;  %v3423_v23 = vmul.u32 %v3419_v44, %v3395_v49  ;;  %v11301_v14 = vld [vmem:[#allocation29_spill] sm:$0xff] }
 0x58b   : > { %vm3502_vm13 = vcmp.lt.s32.totalorder %v11280_v39, 0  ;;  %v3414_v51 = vadd.s32 %v3413_v45, %v3403_v24  ;;  %v3426_v27 = vshll.u32 %v3422_v47, 16  ;;  %vm3428_vm9 = vc.u32 %v3420_v3, %v3424_v46 }
 0x58c   : > { %v3430_v4 = vadd.s32 %v3424_v46, %v3420_v3  ;;  %v3797_v48 = vmul.f32 %v3796_v26, %v9581_v21  ;;  %v3806_v35 = vxor.u32 2147483648, %v3789_v9  ;;  %vm6003_vm12 = vcmp.lt.s32.totalorder %v6002_v16, 0 }
 0x58d   : > { %v3429_v11 = vsel %vm3428_vm9, 1, %v11183_v54  ;;  %v3609_v31 = vsel %vm6003_vm12, 0, %v6002_v16  ;;  %v3405_v50 = vshrl.u32 %v9596_v0, 16  ;;  %vm9640_vm4 = vcmp.le.f32.partialorder %v3500_v60, 0.7853982 }
 0x58e   : > { %v3431_v33 = vadd.s32 %v3429_v11, %v3423_v23  ;;  %vm3432_vm11 = vc.u32 %v3430_v4, %v3426_v27  ;;  %v3803_v55 = vxor.u32 2147483648, %v3797_v48  ;;  %v3610_v44 = vsub.s32 32, %v3609_v31 }
 0x58f   : > { %v3624_v28 = vsub.s32 4, %v9594_v10  ;;  %v3384_v21 = vsel %vm3378_vm3, %v3381_v22, %v3383_v53  ;;  %v3614_v12 = vsub.s32 4294967266, %v3609_v31  ;;  %v9647_v13 = vadd.s32 %v3414_v51, %v3405_v50 }
 0x590   : > { %v3425_v0 = vshrl.u32 %v9607_v41, 16  ;;  %v3433_v19 = vsel %vm3432_vm11, 1, %v11183_v54  ;;  %v3804_v30 = vsel %vm3802_vm14, %v3789_v9, %v3803_v55  ;;  %v3807_v60 = vsel %vm3805_vm8, %v3806_v35, %v3797_v48 }
 0x591   : > { %v3612_v59 = vshrl.u32 %v3594_v1, %v3610_v44  ;;  %v3435_v5 = vadd.s32 %v3433_v19, %v3431_v33  ;;  %v3808_v18 = vsel %vm3801_vm1, %v3804_v30, %v3807_v60  ;;  %v3611_v17 = vshll.u32 %v9603_v56, %v3609_v31 }
 0x592   : > { %v3615_v36 = vadd.s32 127, %v3614_v12  ;;  %v3190_v32 = vand.u32 2147483647, %v11300_v20  ;;  %v3809_v41 = vsel %vm3798_vm7, nan, %v3808_v18  ;;  %v3427_v2 = vshrl.u32 %v3422_v47, 16 }
 0x593   : > { %v9661_v52 = vadd.s32 %v3430_v4, %v3426_v27  ;;  %v3436_v45 = vadd.s32 %v3435_v5, %v3425_v0  ;;  %4524 = vmatpush.msra.mxu2 %v3809_v41  ;;  %v3613_v46 = vor.u32 %v3612_v59, %v3611_v17  ;;  %v3438_v6 = vmul.u32 %v9544_v63, %v3384_v21 }
 0x594   : > { %v3616_v37 = vshll.u32 %v3615_v36, 23  ;;  %v3197_v58 = vand.u32 8388607, %v3190_v32  ;;  %v3625_v56 = vsel %vm3502_vm13, %v3624_v28, %v9594_v10  ;;  %v3208_v61 = vshrl.u32 %v11181_v8, %v11286_v57 }
 0x595   : > { %v3437_v1 = vadd.s32 %v3436_v45, %v3427_v2  ;;  %vm3440_vm2 = vc.u32 %v9647_v13, %v9661_v52  ;;  %v3207_v22 = vshll.u32 %v11178_v7, %v11301_v14  ;;  %v3210_v63 = vshll.u32 %v11181_v8, %v11301_v14 }
 0x596   : > { %v3617_v47 = vor.u32 4788187, %v3616_v37  ;;  %v3211_v53 = vshrl.u32 %v11176_v40, %v11286_v57  ;;  %v3198_v3 = vor.u32 8388608, %v3197_v58  ;;  %v3213_v10 = vshll.u32 %v11176_v40, %v11301_v14 }
 0x597   : > { %v3441_v24 = vadd.s32 1, %v3437_v1  ;;  %v3214_v9 = vshrl.u32 %v11177_v38, %v11286_v57  ;;  %v3620_v16 = vcvt.s32.f32 %v3613_v46  ;;  %v3627_v23 = vsel %vm9640_vm4, 0, %v3625_v56 }
 0x598   : > { %v3618_v26 = vand.u32 2147483647, %v3617_v47  ;;  %v9685_v51 = vor.u32 %v3211_v53, %v3210_v63  ;;  %v9687_v4 = vor.u32 %v3208_v61, %v3207_v22  ;;  %vm3224_vm3 = vcmp.lt.s32.totalorder %v11297_v43, 3 }
 0x599   : > { %v3442_v27 = vsel %vm3440_vm2, %v3441_v24, %v3437_v1  ;;  %v9689_v48 = vor.u32 %v3214_v9, %v3213_v10  ;;  %vm3222_vm5 = vcmp.lt.s32.totalorder %v11297_v43, 1  ;;  %v3236_v31 = vsel %vm3224_vm3, %v9567_v34, %v9611_v15 }
 0x59a   : > { %v3621_v35 = vmul.f32 %v3620_v16, %v3618_v26  ;;  %v3443_v11 = vadd.s32 %v3442_v27, %v3438_v6  ;;  %v9701_v33 = vshll.u32 %v3198_v3, 8  ;;  %vm3223_vm15 = vcmp.lt.s32.totalorder %v11297_v43, 2 }
 0x59b   : > { %v3234_v50 = vsel %vm3222_vm5, %v9685_v51, %v9689_v48  ;;  %v3644_v28 = vadd.s32 3, %v3627_v23  ;;  %v3230_v21 = vsel %vm3222_vm5, %v9687_v4, %v9685_v51  ;;  %v3232_v34 = vsel %vm3224_vm3, %v9689_v48, %v9592_v42 }
 0x59c   : > { %v3622_v55 = vxor.u32 2147483648, %v3621_v35  ;;  %v3444_v44 = vadd.s32 536870912, %v3443_v11  ;;  %v3237_v15 = vsel %vm3223_vm15, %v3234_v50, %v3236_v31  ;;  %v3239_v59 = vand.u32 65535, %v9701_v33 }
 0x59d   : > { %v3241_v19 = vand.u32 65535, %v3237_v15  ;;  %v3242_v30 = vshrl.u32 %v3237_v15, 16  ;;  %v3240_v5 = vshrl.u32 %v9701_v33, 16  ;;  %v3233_v17 = vsel %vm3223_vm15, %v3230_v21, %v3232_v34 }
 0x59e   : > { %v3623_v12 = vsel %vm3502_vm13, %v3622_v55, %v3621_v35  ;;  %v9716_v0 = vshrl.u32 %v3444_v44, 30  ;;  %v9728_v46 = vand.u32 3, %v3644_v28  ;;  %v3263_v58 = vand.u32 65535, %v3233_v17 }
 0x59f   : > { %v3626_v60 = vsel %vm9640_vm4, %v11280_v39, %v3623_v12  ;;  %v3244_v36 = vmul.u32 %v3242_v30, %v3239_v59  ;;  %v9726_v41 = vmul.u32 %v3241_v19, %v3240_v5  ;;  %v3243_v49 = vmul.u32 %v3241_v19, %v3239_v59 }
 0x5a0   : > { %v3628_v18 = vmul.f32 %v3626_v60, %v3626_v60  ;;  %v3446_v42 = vshll.u32 %v9716_v0, 30  ;;  %v3264_v56 = vshrl.u32 %v3233_v17, 16  ;;  %v3246_v14 = vmul.u32 %v3242_v30, %v3240_v5 }
 0x5a1   : > { %v3247_v6 = vshll.u32 %v3244_v36, 16  ;;  %v3249_v22 = vshll.u32 %v9726_v41, 16  ;;  %vm3647_vm1 = vcmp.eq.s32.totalorder %v9728_v46, 0  ;;  %vm3650_vm7 = vcmp.eq.s32.totalorder %v9728_v46, 2 }
 0x5a2   : > { %v3629_v2 = vmul.f32 -0.001358992, %v3628_v18  ;;  %v3636_v45 = vmul.f32 -0.00019511016, %v3628_v18  ;;  %v3447_v37 = vsub.s32 %v3443_v11, %v3446_v42  ;;  %v3266_v27 = vmul.u32 %v3264_v56, %v3239_v59 }
 0x5a3   : > { %vm3251_vm14 = vc.u32 %v3243_v49, %v3247_v6  ;;  %v3253_v63 = vadd.s32 %v3247_v6, %v3243_v49  ;;  %vm3646_vm13 = vcmp.lt.s32.totalorder %v9728_v46, 2  ;;  %v3439_v55 = vadd.s32 %v9661_v52, %v9647_v13 }
 0x5a4   : > { %v3630_v1 = vadd.f32 0.041655596, %v3629_v2  ;;  %v3637_v61 = vadd.f32 0.008332121, %v3636_v45  ;;  %vm3448_vm6 = vcmp.lt.s32.totalorder %v3447_v37, 0  ;;  %v3449_v47 = vsub.s32 0, %v3447_v37 }
 0x5a5   : > { %v3252_v10 = vsel %vm3251_vm14, 1, %v11183_v54  ;;  %vm3255_vm8 = vc.u32 %v3253_v63, %v3249_v22  ;;  %v3267_v44 = vmul.u32 %v3263_v58, %v3240_v5  ;;  %vm3643_vm9 = vweird.f32 %v11280_v39 }
 0x5a6   : > { %v3631_v53 = vmul.f32 %v3630_v1, %v3628_v18  ;;  %v3638_v24 = vmul.f32 %v3637_v61, %v3628_v18  ;;  %v3450_v3 = vsel %vm3448_vm6, %v3449_v47, %v3447_v37  ;;  %v3254_v23 = vadd.s32 %v3252_v10, %v3246_v14 }
 0x5a7   : > { %v3451_v9 = vclz %v3450_v3  ;;  %v3256_v11 = vsel %vm3255_vm8, 1, %v11183_v54  ;;  %v3206_v28 = vshrl.u32 %v11178_v7, %v11286_v57  ;;  %v3265_v21 = vmul.u32 %v3263_v58, %v3239_v59 }
 0x5a8   : > { %v3632_v26 = vadd.f32 -0.4999988, %v3631_v53  ;;  %v3639_v16 = vadd.f32 -0.16666654, %v3638_v24  ;;  %v3269_v34 = vshll.u32 %v3266_v27, 16  ;;  %v3258_v30 = vadd.s32 %v3256_v11, %v3254_v23 }
 0x5a9   : > { %v5999_v35 = vadd.s32 4294967294, %v3451_v9  ;;  %v3248_v17 = vshrl.u32 %v3244_v36, 16  ;;  %v3268_v2 = vmul.u32 %v3264_v56, %v3240_v5  ;;  %v3271_v52 = vshll.u32 %v3267_v44, 16 }
 0x5aa   : > { %v3633_v31 = vmul.f32 %v3632_v26, %v3628_v18  ;;  %v3640_v50 = vmul.f32 %v3639_v16, %v3628_v18  ;;  %vm3273_vm11 = vc.u32 %v3265_v21, %v3269_v34  ;;  %v3275_v61 = vadd.s32 %v3269_v34, %v3265_v21 }
 0x5ab   : > { %vm6000_vm12 = vcmp.lt.s32.totalorder %v5999_v35, 0  ;;  %v3227_v57 = vsel %vm3225_vm10, %v9689_v48, 2102212464  ;;  %v3259_v59 = vadd.s32 %v3258_v30, %v3248_v17  ;;  %v3274_v58 = vsel %vm3273_vm11, 1, %v11183_v54 }
 0x5ac   : > { %v3634_v15 = vadd.f32 1.0, %v3633_v31  ;;  %v3641_v12 = vadd.f32 1.0, %v3640_v50  ;;  %v3454_v19 = vsel %vm6000_vm12, 0, %v5999_v35  ;;  %v3276_v36 = vadd.s32 %v3274_v58, %v3268_v2 }
 0x5ad   : > { %v3455_v42 = vsub.s32 32, %v3454_v19  ;;  %v3459_v18 = vsub.s32 4294967266, %v3454_v19  ;;  %v3456_v13 = vshll.u32 %v3447_v37, %v3454_v19  ;;  %vm3277_vm4 = vc.u32 %v3275_v61, %v3271_v52 }
 0x5ae   : > { %v3642_v45 = vmul.f32 %v3641_v12, %v3626_v60  ;;  %v3651_v49 = vxor.u32 2147483648, %v3634_v15  ;;  %v3250_v37 = vshrl.u32 %v9726_v41, 16  ;;  %v3278_v56 = vsel %vm3277_vm4, 1, %v11183_v54 }
 0x5af   : > { %v3457_v6 = vshrl.u32 %v3439_v55, %v3455_v42  ;;  %v3460_v1 = vadd.s32 127, %v3459_v18  ;;  %v3270_v53 = vshrl.u32 %v3266_v27, 16  ;;  %v3280_v24 = vadd.s32 %v3278_v56, %v3276_v36 }
 0x5b0   : > { %v3648_v47 = vxor.u32 2147483648, %v3642_v45  ;;  %v3652_v5 = vsel %vm3650_vm7, %v3651_v49, %v3642_v45  ;;  %v3226_v10 = vsel %vm3222_vm5, %v3206_v28, %v9687_v4  ;;  %v3228_v9 = vsel %vm3224_vm3, %v9685_v51, %v3227_v57 }
 0x5b1   : > { %v3458_v14 = vor.u32 %v3457_v6, %v3456_v13  ;;  %v3461_v22 = vshll.u32 %v3460_v1, 23  ;;  %v3260_v41 = vadd.s32 %v3259_v59, %v3250_v37  ;;  %v3272_v46 = vshrl.u32 %v3267_v44, 16 }
 0x5b2   : > { %v3649_v60 = vsel %vm3647_vm1, %v3634_v15, %v3648_v47  ;;  %v3281_v23 = vadd.s32 %v3280_v24, %v3270_v53  ;;  %v3279_v35 = vadd.s32 %v3275_v61, %v3271_v52  ;;  %v3229_v39 = vsel %vm3223_vm15, %v3226_v10, %v3228_v9 }
 0x5b3   : > { %v3653_v48 = vsel %vm3646_vm13, %v3649_v60, %v3652_v5  ;;  %v3462_v63 = vor.u32 4788187, %v3461_v22  ;;  %v3465_v16 = vcvt.s32.f32 %v3458_v14  ;;  %vm3347_vm2 = vcmp.lt.s32.totalorder %v11289_v25, 0 }
 0x5b4   : > { %v3654_v3 = vsel %vm3643_vm9, nan, %v3653_v48  ;;  %v3282_v11 = vadd.s32 %v3281_v23, %v3272_v46  ;;  %vm3285_vm10 = vc.u32 %v3260_v41, %v3279_v35  ;;  %v3283_v4 = vmul.u32 %v9701_v33, %v3229_v39 }
 0x5b5   : > { %4525 = vmatpush.msra.mxu2 %v3654_v3  ;;  %v3463_v26 = vand.u32 2147483647, %v3462_v63  ;;  %vm9767_vm3 = vcmp.le.f32.partialorder %v3345_v29, 0.7853982  ;;  %v3469_v44 = vsub.s32 4, %v9716_v0  ;;  %v3284_v37 = vadd.s32 %v3279_v35, %v3260_v41 }
 0x5b6   : > { %v3286_v50 = vadd.s32 1, %v3282_v11  ;;  %vm3488_vm1 = vweird.f32 %v11289_v25  ;;  %vm3192_vm7 = vcmp.lt.s32.totalorder %v11300_v20, 0  ;;  %vm3191_vm13 = vcmp.le.f32.partialorder %v3190_v32, 0.7853982 }
 0x5b7   : > { %v3466_v27 = vmul.f32 %v3465_v16, %v3463_v26  ;;  %v3470_v12 = vsel %vm3347_vm2, %v3469_v44, %v9716_v0  ;;  %vm3333_vm4 = vweird.f32 %v11300_v20 }
 0x5b8   : > { %v3287_v28 = vsel %vm3285_vm10, %v3286_v50, %v3282_v11  ;;  %v3472_v18 = vsel %vm9767_vm3, 0, %v3470_v12 }
 0x5b9   : > { %v3467_v31 = vxor.u32 2147483648, %v3466_v27  ;;  %v3288_v21 = vadd.s32 %v3287_v28, %v3283_v4  ;;  %v3489_v6 = vadd.s32 3, %v3472_v18 }
 0x5bb   : > { %v3468_v55 = vsel %vm3347_vm2, %v3467_v31, %v3466_v27  ;;  %v3289_v15 = vadd.s32 536870912, %v3288_v21  ;;  %v3490_v58 = vand.u32 3, %v3489_v6  ;;  %v6019_v6 = vld [vmem:[%s11002_s3 + $0x80] sm:$0xff] }
 0x5bc   : > { %v3471_v43 = vsel %vm9767_vm3, %v11289_v25, %v3468_v55 }
 0x5bd   : > { %v3473_v34 = vmul.f32 %v3471_v43, %v3471_v43  ;;  %v3290_v30 = vshrl.u32 %v3289_v15, 30  ;;  %vm3491_vm15 = vcmp.lt.s32.totalorder %v3490_v58, 2  ;;  %vm3492_vm14 = vcmp.eq.s32.totalorder %v3490_v58, 0 }
 0x5be   : > { %vm3495_vm8 = vcmp.eq.s32.totalorder %v3490_v58, 2  ;;  %v6026_v58 = vld [vmem:[%s11002_s3 + $0xb8] sm:$0xff] }
 0x5bf   : > { %v3474_v33 = vmul.f32 -0.001358992, %v3473_v34  ;;  %v3481_v19 = vmul.f32 -0.00019511016, %v3473_v34  ;;  %v3291_v17 = vshll.u32 %v3290_v30, 30  ;;  %v3314_v25 = vsub.s32 4, %v3290_v30 }
 0x5c1   : > { %v3475_v29 = vadd.f32 0.041655596, %v3474_v33  ;;  %v3482_v42 = vadd.f32 0.008332121, %v3481_v19  ;;  %v3292_v49 = vsub.s32 %v3288_v21, %v3291_v17  ;;  %v3315_v44 = vsel %vm3192_vm7, %v3314_v25, %v3290_v30 }
 0x5c2   : > { %v3317_v21 = vsel %vm3191_vm13, 0, %v3315_v44 }
 0x5c3   : > { %v3476_v2 = vmul.f32 %v3475_v29, %v3473_v34  ;;  %v3483_v45 = vmul.f32 %v3482_v42, %v3473_v34  ;;  %vm3293_vm5 = vcmp.lt.s32.totalorder %v3292_v49, 0  ;;  %v3294_v1 = vsub.s32 0, %v3292_v49 }
 0x5c4   : > { %v3334_v19 = vadd.s32 3, %v3317_v21 }
 0x5c5   : > { %v3477_v13 = vadd.f32 -0.4999988, %v3476_v2  ;;  %v3484_v52 = vadd.f32 -0.16666654, %v3483_v45  ;;  %v3295_v0 = vsel %vm3293_vm5, %v3294_v1, %v3292_v49 }
 0x5c6   : > { %v3296_v14 = vclz %v3295_v0  ;;  %v3335_v17 = vand.u32 3, %v3334_v19  ;;  %v6023_v0 = vld [vmem:[%s11002_s3 + $0xa0] sm:$0xff] }
 0x5c7   : > { %v3478_v61 = vmul.f32 %v3477_v13, %v3473_v34  ;;  %v3485_v47 = vmul.f32 %v3484_v52, %v3473_v34 }
 0x5c8   : > { %v5996_v60 = vadd.s32 4294967294, %v3296_v14  ;;  %vm3337_vm9 = vcmp.eq.s32.totalorder %v3335_v17, 0  ;;  %vm3340_vm12 = vcmp.eq.s32.totalorder %v3335_v17, 2  ;;  %vm3336_vm11 = vcmp.lt.s32.totalorder %v3335_v17, 2 }
 0x5c9   : > { %v3479_v57 = vadd.f32 1.0, %v3478_v61  ;;  %v3486_v59 = vadd.f32 1.0, %v3485_v47  ;;  %v6020_v61 = vld [vmem:[%s11002_s3 + $0x88] sm:$0xff]  ;;  %v6021_v47 = vld [vmem:[%s11002_s3 + $0x90] sm:$0xff] }
 0x5ca   : > { %vm5997_vm6 = vcmp.lt.s32.totalorder %v5996_v60, 0 }
 0x5cb   : > { %v3487_v22 = vmul.f32 %v3486_v59, %v3471_v43  ;;  %v3496_v36 = vxor.u32 2147483648, %v3479_v57  ;;  %v3299_v56 = vsel %vm5997_vm6, 0, %v5996_v60  ;;  %v6025_v59 = vld [vmem:[%s11002_s3 + $0xb0] sm:$0xff] }
 0x5cc   : > { %v3300_v53 = vsub.s32 32, %v3299_v56  ;;  %v3304_v24 = vsub.s32 4294967266, %v3299_v56  ;;  %v3301_v9 = vshll.u32 %v3292_v49, %v3299_v56 }
 0x5cd   : > { %v3493_v5 = vxor.u32 2147483648, %v3487_v22  ;;  %v3497_v63 = vsel %vm3495_vm8, %v3496_v36, %v3487_v22  ;;  %v4486_v22 = vpop.permute.xlu0 %4485  ;;  %v4481_v36 = vpop.permute.xlu1 %4480 }
 0x5ce   : > { %v3302_v26 = vshrl.u32 %v3284_v37, %v3300_v53  ;;  %v3305_v16 = vadd.s32 127, %v3304_v24 }
 0x5cf   : > { %v3494_v48 = vsel %vm3492_vm14, %v3479_v57, %v3493_v5  ;;  %v6024_v57 = vld [vmem:[%s11002_s3 + $0xa8] sm:$0xff] }
 0x5d0   : > { %v3498_v3 = vsel %vm3491_vm15, %v3494_v48, %v3497_v63  ;;  %v3303_v46 = vor.u32 %v3302_v26, %v3301_v9  ;;  %v3306_v23 = vshll.u32 %v3305_v16, 23  ;;  %v4476_v48 = vpop.permute.xlu2 %4475 }
 0x5d1   : > { %v3499_v10 = vsel %vm3488_vm1, nan, %v3498_v3 }
 0x5d2   : > { %4526 = vmatpush.msra.mxu2 %v3499_v10  ;;  %v3307_v27 = vor.u32 4788187, %v3306_v23  ;;  %v3310_v11 = vcvt.s32.f32 %v3303_v46 }
 0x5d4   : > { %v3308_v39 = vand.u32 2147483647, %v3307_v27 }
 0x5d5   : > { %v4471_v5 = vpop.permute.xlu0 %4470  ;;  %v4466_v56 = vpop.permute.xlu1 %4465 }
 0x5d6   : > { %v3311_v31 = vmul.f32 %v3310_v11, %v3308_v39 }
 0x5d8   : > { %v3312_v41 = vxor.u32 2147483648, %v3311_v31  ;;  %v4461_v23 = vpop.permute.xlu2 %4460 }
 0x5da   : > { %v3313_v35 = vsel %vm3192_vm7, %v3312_v41, %v3311_v31 }
 0x5db   : > { %v3316_v50 = vsel %vm3191_vm13, %v11300_v20, %v3313_v35  ;;  %v6022_v20 = vld [vmem:[%s11002_s3 + $0x98] sm:$0xff] }
 0x5dc   : > { %v3318_v4 = vmul.f32 %v3316_v50, %v3316_v50 }
 0x5dd   : > { %v4456_v53 = vpop.permute.xlu0 %4455  ;;  %v4451_v24 = vpop.permute.xlu1 %4450 }
 0x5de   : > { %v3319_v51 = vmul.f32 -0.001358992, %v3318_v4  ;;  %v3326_v55 = vmul.f32 -0.00019511016, %v3318_v4 }
 0x5e0   : > { %v3320_v28 = vadd.f32 0.041655596, %v3319_v51  ;;  %v3327_v43 = vadd.f32 0.008332121, %v3326_v55 }
 0x5e2   : > { %v3321_v34 = vmul.f32 %v3320_v28, %v3318_v4  ;;  %v3328_v15 = vmul.f32 %v3327_v43, %v3318_v4 }
 0x5e4   : > { %v3322_v12 = vadd.f32 -0.4999988, %v3321_v34  ;;  %v3329_v33 = vadd.f32 -0.16666654, %v3328_v15 }
 0x5e6   : > { %v3323_v29 = vmul.f32 %v3322_v12, %v3318_v4  ;;  %v3330_v42 = vmul.f32 %v3329_v33, %v3318_v4 }
 0x5e8   : > { %v3324_v18 = vadd.f32 1.0, %v3323_v29  ;;  %v3331_v32 = vadd.f32 1.0, %v3330_v42 }
 0x5ea   : > { %v3332_v2 = vmul.f32 %v3331_v32, %v3316_v50  ;;  %v3341_v45 = vxor.u32 2147483648, %v3324_v18 }
 0x5ec   : > { %v3338_v49 = vxor.u32 2147483648, %v3332_v2  ;;  %v3342_v13 = vsel %vm3340_vm12, %v3341_v45, %v3332_v2 }
 0x5ee   : > { %v3339_v30 = vsel %vm3337_vm9, %v3324_v18, %v3338_v49 }
 0x5ef   : > { %v3343_v52 = vsel %vm3336_vm11, %v3339_v30, %v3342_v13 }
 0x5f0   : > { %v3344_v1 = vsel %vm3333_vm4, nan, %v3343_v52 }
 0x5f1   : > { %4527 = vmatpush.msra.mxu2 %v3344_v1 }
 0x5f2   : > { %6035 = vmatmul.msk.f32.vlgmr.msra.gmra.mxu2 %vm1761_vm0, %v6019_v6 }
 0x5fa   : > { %6036 = vmatmul.msk.f32.gmra.mxu2 %vm1761_vm0, %v6020_v61 }
 0x602   : > { %6037 = vmatmul.msk.f32.gmra.mxu2 %vm1761_vm0, %v6021_v47 }
 0x60a   : > { %6038 = vmatmul.msk.f32.gmra.mxu2 %vm1761_vm0, %v6022_v20 }
 0x612   : > { %6039 = vmatmul.msk.f32.gmra.mxu2 %vm1761_vm0, %v6023_v0 }
 0x61a   : > { %6040 = vmatmul.msk.f32.gmra.mxu2 %vm1761_vm0, %v6024_v57 }
 0x622   : > { %6041 = vmatmul.msk.f32.gmra.mxu2 %vm1761_vm0, %v6025_v59 }
 0x62a   : > { %6042 = vmatmul.msk.f32.gmra.mxu2 %vm1761_vm0, %v6026_v58 }
 0x675   : > { %v4529_v14 = vpop.f32.mrf.mxu2 }
 0x676   : > { %v9818_v10 = vadd.f32 %v4529_v14, %v4451_v24 }
 0x678   : > { %11305 = vst [vmem:[#allocation26_spill] sm:$0xff] %v9818_v10  ;;  %v4556_v26 = vand.u32 2139095040, %v9818_v10 }
 0x67a   : > { %v4557_v11 = vshrl.u32 %v4556_v26, 23 }
 0x67c   : > { %v6043_v50 = vadd.s32 4294967169, %v4557_v11 }
 0x67d   : > { %v4532_v60 = vpop.f32.mrf.mxu2 }
 0x67e   : > { %v9816_v3 = vadd.f32 %v4532_v60, %v4456_v53  ;;  %v4563_v21 = vadd.s32 1, %v6043_v50 }
 0x680   : > { %11304 = vst [vmem:[#allocation32_spill] sm:$0xff] %v9816_v3  ;;  %v4711_v9 = vand.u32 2139095040, %v9816_v3  ;;  %vm4564_vm2 = vcmp.gt.s32.totalorder %v4563_v21, 0 }
 0x681   : > { %v4565_v2 = vsel %vm4564_vm2, %v4563_v21, 0 }
 0x682   : > { %v4712_v27 = vshrl.u32 %v4711_v9, 23  ;;  %v9839_v52 = vand.u32 31, %v4565_v2 }
 0x684   : > { %v6046_v35 = vadd.s32 4294967169, %v4712_v27  ;;  %11309 = vst [vmem:[#allocation22_spill] sm:$0xff] %v9839_v52  ;;  %v9847_v57 = vsub.s32 32, %v9839_v52 }
 0x685   : > { %v4535_v37 = vpop.f32.mrf.mxu2 }
 0x686   : > { %v9824_v39 = vadd.f32 %v4535_v37, %v4461_v23  ;;  %v4718_v28 = vadd.s32 1, %v6046_v35  ;;  %11311 = vst [vmem:[#allocation18_spill] sm:$0xff] %v9847_v57 }
 0x688   : > { %11306 = vst [vmem:[#allocation17_spill] sm:$0xff] %v9824_v39  ;;  %v4866_v25 = vand.u32 2139095040, %v9824_v39  ;;  %vm4719_vm10 = vcmp.gt.s32.totalorder %v4718_v28, 0 }
 0x689   : > { %v4720_v32 = vsel %vm4719_vm10, %v4718_v28, 0 }
 0x68a   : > { %v4867_v43 = vshrl.u32 %v4866_v25, 23  ;;  %v9837_v30 = vand.u32 31, %v4720_v32 }
 0x68c   : > { %v6049_v33 = vadd.s32 4294967169, %v4867_v43  ;;  %11308 = vst [vmem:[#allocation7_spill] sm:$0xff] %v9837_v30  ;;  %v9842_v20 = vsub.s32 32, %v9837_v30  ;;  %v4734_v23 = vshll.u32 %v11177_v38, %v9837_v30 }
 0x68d   : > { %v4538_v63 = vpop.f32.mrf.mxu2 }
 0x68e   : > { %v9822_v16 = vadd.f32 %v4538_v63, %v4466_v56  ;;  %v4873_v45 = vadd.s32 1, %v6049_v33  ;;  %11310 = vst [vmem:[#allocation10_spill] sm:$0xff] %v9842_v20  ;;  %v9856_v56 = vshll.u32 %v11177_v38, %v9839_v52 }
 0x690   : > { %v5021_v31 = vand.u32 2139095040, %v9822_v16  ;;  %vm4874_vm5 = vcmp.gt.s32.totalorder %v4873_v45, 0  ;;  %11314 = vst [vmem:[#allocation28_spill] sm:$0xff] %v9856_v56 }
 0x691   : > { %v4875_v59 = vsel %vm4874_vm5, %v4873_v45, 0 }
 0x692   : > { %v5022_v4 = vshrl.u32 %v5021_v31, 23  ;;  %v9860_v63 = vand.u32 31, %v4875_v59  ;;  %v9881_v31 = vshrl.u32 %v4720_v32, 5  ;;  %v9899_v43 = vshrl.u32 %v4875_v59, 5 }
 0x694   : > { %v6052_v34 = vadd.s32 4294967169, %v5022_v4  ;;  %11316 = vst [vmem:[#allocation20_spill] sm:$0xff] %v9860_v63 }
 0x695   : > { %v4541_v46 = vpop.f32.mrf.mxu2  ;;  %11321 = vst [vmem:[#allocation8_spill] sm:$0xff] %v9881_v31 }
 0x696   : > { %v9827_v41 = vadd.f32 %v4541_v46, %v4471_v5  ;;  %v5028_v19 = vadd.s32 1, %v6052_v34  ;;  %v9852_v5 = vshrl.u32 %v4565_v2, 5  ;;  %v9875_v46 = vshrl.u32 %v11287_v62, %v9847_v57  ;;  %11325 = vst [vmem:[#allocation14_spill] sm:$0xff] %v9899_v43 }
 0x698   : > { %11307 = vst [vmem:[#allocation24_spill] sm:$0xff] %v9827_v41  ;;  %v5176_v55 = vand.u32 2139095040, %v9827_v41  ;;  %vm5029_vm3 = vcmp.gt.s32.totalorder %v5028_v19, 0 }
 0x699   : > { %v5030_v1 = vsel %vm5029_vm3, %v5028_v19, 0  ;;  %11313 = vst [vmem:[#allocation13_spill] sm:$0xff] %v9852_v5 }
 0x69a   : > { %v5177_v15 = vshrl.u32 %v5176_v55, 23  ;;  %v9849_v58 = vand.u32 31, %v5030_v1  ;;  %11320 = vst [vmem:[#allocation12_spill] sm:$0xff] %v9875_v46  ;;  %v9895_v55 = vsub.s32 32, %v9860_v63  ;;  %v9933_v45 = vshrl.u32 %v5030_v1, 5 }
 0x69c   : > { %v6055_v42 = vadd.s32 4294967169, %v5177_v15  ;;  %11312 = vst [vmem:[#allocation6_spill] sm:$0xff] %v9849_v58  ;;  %v9871_v26 = vsub.s32 32, %v9849_v58  ;;  %v5044_v33 = vshll.u32 %v11177_v38, %v9849_v58 }
 0x69d   : > { %v4544_v51 = vpop.f32.mrf.mxu2 }
 0x69e   : > { %v9831_v44 = vadd.f32 %v4544_v51, %v4476_v48  ;;  %v5183_v13 = vadd.s32 1, %v6055_v42  ;;  %11319 = vst [vmem:[#allocation19_spill] sm:$0xff] %v9871_v26  ;;  %v9892_v51 = vshrl.u32 %v11287_v62, %v9842_v20  ;;  %v9905_v34 = vshrl.u32 %v11287_v62, %v9871_v26 }
 0x6a0   : > { %v5331_v12 = vand.u32 2139095040, %v9831_v44  ;;  %vm5184_vm15 = vcmp.gt.s32.totalorder %v5183_v13, 0  ;;  %11324 = vst [vmem:[#allocation31_spill] sm:$0xff] %v9892_v51 }
 0x6a1   : > { %v5185_v37 = vsel %vm5184_vm15, %v5183_v13, 0 }
 0x6a2   : > { %v5332_v17 = vshrl.u32 %v5331_v12, 23  ;;  %v9879_v27 = vand.u32 31, %v5185_v37  ;;  %v9909_v12 = vshll.u32 %v11177_v38, %v9860_v63  ;;  %v9941_v59 = vshrl.u32 %v5185_v37, 5 }
 0x6a4   : > { %v6058_v6 = vadd.s32 4294967169, %v5332_v17  ;;  %11326 = vst [vmem:[#allocation15_spill] sm:$0xff] %v9909_v12  ;;  %v9914_v19 = vsub.s32 32, %v9879_v27  ;;  %vm5208_vm10 = vcmp.lt.s32.totalorder %v9941_v59, 4 }
 0x6a5   : > { %v4547_v29 = vpop.f32.mrf.mxu2 }
 0x6a6   : > { %v9834_v18 = vadd.f32 %v4547_v29, %v4481_v36  ;;  %v5338_v14 = vadd.s32 1, %v6058_v6 }
 0x6a8   : > { %v5486_v49 = vand.u32 2139095040, %v9834_v18  ;;  %vm5339_vm6 = vcmp.gt.s32.totalorder %v5338_v14, 0 }
 0x6a9   : > { %v9897_v28 = vsel %vm5339_vm6, %v5338_v14, 0  ;;  %v5199_v14 = vshll.u32 %v11177_v38, %v9879_v27 }
 0x6aa   : > { %v5487_v61 = vshrl.u32 %v5486_v49, 23  ;;  %v9921_v42 = vand.u32 31, %v9897_v28 }
 0x6ac   : > { %v6061_v36 = vadd.s32 4294967169, %v5487_v61 }
 0x6ad   : > { %v4550_v47 = vpop.f32.mrf.mxu2 }
 0x6ae   : > { %v9844_v0 = vadd.f32 %v4550_v47, %v4486_v22  ;;  %v11315_v22 = vmov 920167782   ;;  %v5493_v11 = vadd.s32 1, %v6061_v36 }
 0x6af   : > { %v4735_v48 = vshrl.u32 %v11315_v22, %v9842_v20  ;;  %v9864_v24 = vshrl.u32 %v11315_v22, %v9847_v57  ;;  %v9868_v9 = vshll.u32 %v11315_v22, %v9839_v52  ;;  %v9885_v35 = vshll.u32 %v11315_v22, %v9837_v30 }
 0x6b0   : > { %v5641_v60 = vand.u32 2139095040, %v9844_v0  ;;  %v11097_v50 = vand.u32 2147483647, %v9844_v0  ;;  %v5045_v21 = vshrl.u32 %v11315_v22, %v9871_v26  ;;  %vm5494_vm14 = vcmp.gt.s32.totalorder %v5493_v11, 0 }
 0x6b1   : > { %11317 = vst [vmem:[#allocation30_spill] sm:$0xff] %v9864_v24  ;;  %v9888_v4 = vor.u32 %v4735_v48, %v4734_v23  ;;  %v9918_v29 = vshll.u32 %v11315_v22, %v9849_v58  ;;  %v9927_v17 = vshrl.u32 %v11315_v22, %v9895_v55  ;;  %v9931_v2 = vshll.u32 %v11315_v22, %v9860_v63 }
 0x6b2   : > { %v5642_v53 = vshrl.u32 %v5641_v60, 23  ;;  %11318 = vst [vmem:[#allocation16_spill] sm:$0xff] %v9868_v9  ;;  %v5645_v32 = vand.u32 8388607, %v11097_v50  ;;  %v9935_v13 = vor.u32 %v5045_v21, %v5044_v33  ;;  %v9939_v61 = vsel %vm5494_vm14, %v5493_v11, 0 }
 0x6b3   : > { %11322 = vst [vmem:[#allocation21_spill] sm:$0xff] %v9885_v35  ;;  %v5200_v36 = vshrl.u32 %v11315_v22, %v9914_v19  ;;  %v9949_v1 = vshll.u32 %v11315_v22, %v9879_v27  ;;  %v9953_v60 = vshrl.u32 %v11287_v62, %v9914_v19  ;;  %v9956_v48 = vsub.s32 32, %v9921_v42 }
 0x6b4   : > { %v6064_v25 = vadd.s32 4294967169, %v5642_v53  ;;  %11323 = vst [vmem:[#allocation9_spill] sm:$0xff] %v9888_v4  ;;  %v5646_v37 = vor.u32 8388608, %v5645_v32  ;;  %v9961_v23 = vand.u32 31, %v9939_v61  ;;  %vm5640_vm6 = vcmp.lt.s32.totalorder %v9844_v0, 0 }
 0x6b5   : > { %11327 = vst [vmem:[#allocation27_spill] sm:$0xff] %v9927_v17  ;;  %v5355_v24 = vshrl.u32 %v11315_v22, %v9956_v48 }
 0x6b6   : > { %v5648_v15 = vadd.s32 1, %v6064_v25  ;;  %11328 = vst [vmem:[#allocation23_spill] sm:$0xff] %v9931_v2  ;;  %v9982_v9 = vshll.u32 %v5646_v37, 8 }
 0x6b8   : > { %vm5649_vm8 = vcmp.gt.s32.totalorder %v5648_v15, 0 }
 0x6b9   : > { %v5650_v49 = vsel %vm5649_vm8, %v5648_v15, 0 }
 0x6ba   : > { %v5652_v47 = vand.u32 31, %v5650_v49  ;;  %v9963_v11 = vshrl.u32 %v5650_v49, 5 }
 0x6bc   : > { %v9958_v53 = vsub.s32 32, %v5652_v47  ;;  %v5664_v25 = vshll.u32 %v11177_v38, %v5652_v47  ;;  %v5667_v21 = vshll.u32 %v11315_v22, %v5652_v47  ;;  %v5655_v6 = vshll.u32 %v11178_v7, %v5652_v47 }
 0x6bd   : > { %v5658_v50 = vshll.u32 %v11181_v8, %v5652_v47  ;;  %v5661_v52 = vshll.u32 %v11176_v40, %v5652_v47  ;;  %vm5673_vm1 = vcmp.lt.s32.totalorder %v9963_v11, 4  ;;  %vm5670_vm7 = vcmp.lt.s32.totalorder %v9963_v11, 1 }
 0x6be   : > { %v5665_v15 = vshrl.u32 %v11315_v22, %v9958_v53  ;;  %v5668_v33 = vshrl.u32 %v11287_v62, %v9958_v53  ;;  %v5656_v32 = vshrl.u32 %v11181_v8, %v9958_v53  ;;  %v5659_v49 = vshrl.u32 %v11176_v40, %v9958_v53 }
 0x6bf   : > { %v5662_v57 = vshrl.u32 %v11177_v38, %v9958_v53  ;;  %vm5672_vm13 = vcmp.lt.s32.totalorder %v9963_v11, 3  ;;  %vm5671_vm9 = vcmp.lt.s32.totalorder %v9963_v11, 2 }
 0x6c0   : > { %v5666_v10 = vor.u32 %v5665_v15, %v5664_v25  ;;  %v5669_v5 = vor.u32 %v5668_v33, %v5667_v21  ;;  %v9980_v46 = vor.u32 %v5656_v32, %v5655_v6  ;;  %v5660_v56 = vor.u32 %v5659_v49, %v5658_v50 }
 0x6c1   : > { %v5663_v20 = vor.u32 %v5662_v57, %v5661_v52  ;;  %v10002_v57 = vsub.s32 32, %v9961_v23  ;;  %v5687_v25 = vand.u32 65535, %v9982_v9  ;;  %v5688_v15 = vshrl.u32 %v9982_v9, 16 }
 0x6c2   : > { %v5679_v30 = vsel %vm5673_vm1, %v5666_v10, 920167782  ;;  %v5683_v47 = vsel %vm5673_vm1, %v5669_v5, 1326507024  ;;  %v5678_v6 = vsel %vm5670_vm7, %v9980_v46, %v5660_v56  ;;  %v10012_v32 = vor.u32 %v5200_v36, %v5199_v14 }
 0x6c3   : > { %v5680_v50 = vsel %vm5672_vm13, %v5663_v20, %v5679_v30  ;;  %v5682_v52 = vsel %vm5670_vm7, %v5660_v56, %v5663_v20  ;;  %v5684_v37 = vsel %vm5672_vm13, %v5666_v10, %v5683_v47  ;;  %v5354_v10 = vshll.u32 %v11177_v38, %v9921_v42 }
 0x6c4   : > { %v5681_v5 = vsel %vm5671_vm9, %v5678_v6, %v5680_v50  ;;  %v5685_v21 = vsel %vm5671_vm9, %v5682_v52, %v5684_v37  ;;  %v10017_v6 = vshrl.u32 %v9897_v28, 5  ;;  %v10023_v52 = vshll.u32 %v11315_v22, %v9921_v42 }
 0x6c5   : > { %v5711_v30 = vand.u32 65535, %v5681_v5  ;;  %v5712_v33 = vshrl.u32 %v5681_v5, 16  ;;  %v5689_v3 = vand.u32 65535, %v5685_v21  ;;  %v5690_v4 = vshrl.u32 %v5685_v21, 16 }
 0x6c6   : > { %v10027_v14 = vshrl.u32 %v11287_v62, %v9956_v48  ;;  %v10029_v37 = vor.u32 %v5355_v24, %v5354_v10  ;;  %v5510_v28 = vshrl.u32 %v11315_v22, %v10002_v57  ;;  %v11122_v24 = vand.u32 2147483647, %v9831_v44 }
 0x6c7   : > { %v5714_v47 = vmul.u32 %v5712_v33, %v5687_v25  ;;  %v5715_v50 = vmul.u32 %v5711_v30, %v5688_v15  ;;  %v5692_v36 = vmul.u32 %v5690_v4, %v5687_v25  ;;  %v5693_v5 = vmul.u32 %v5689_v3, %v5688_v15 }
 0x6c8   : > { %v5713_v21 = vmul.u32 %v5711_v30, %v5687_v25  ;;  %v5691_v31 = vmul.u32 %v5689_v3, %v5687_v25  ;;  %v5694_v51 = vmul.u32 %v5690_v4, %v5688_v15  ;;  %v5716_v63 = vmul.u32 %v5712_v33, %v5688_v15 }
 0x6c9   : > { %v5717_v49 = vshll.u32 %v5714_v47, 16  ;;  %v5695_v35 = vshll.u32 %v5692_v36, 16  ;;  %v5697_v39 = vshll.u32 %v5693_v5, 16  ;;  %v5719_v43 = vshll.u32 %v5715_v50, 16 }
 0x6ca   : > { %v5675_v10 = vsel %vm5673_vm1, %v5663_v20, 2102212464  ;;  %vm5363_vm2 = vcmp.lt.s32.totalorder %v10017_v6, 4  ;;  %v5654_v3 = vshrl.u32 %v11178_v7, %v9958_v53  ;;  %v5718_v25 = vshrl.u32 %v5714_v47, 16 }
 0x6cb   : > { %vm5721_vm12 = vc.u32 %v5713_v21, %v5717_v49  ;;  %v5723_v2 = vadd.s32 %v5717_v49, %v5713_v21  ;;  %vm5699_vm11 = vc.u32 %v5691_v31, %v5695_v35  ;;  %v5701_v17 = vadd.s32 %v5695_v35, %v5691_v31 }
 0x6cc   : > { %v5722_v12 = vsel %vm5721_vm12, 1, %v11183_v54  ;;  %v5700_v30 = vsel %vm5699_vm11, 1, %v11183_v54  ;;  %v5335_v20 = vand.u32 8388607, %v11122_v24  ;;  %v5696_v33 = vshrl.u32 %v5692_v36, 16 }
 0x6cd   : > { %v5724_v58 = vadd.s32 %v5722_v12, %v5716_v63  ;;  %vm5725_vm4 = vc.u32 %v5723_v2, %v5719_v43  ;;  %v5702_v4 = vadd.s32 %v5700_v30, %v5694_v51  ;;  %vm5703_vm3 = vc.u32 %v5701_v17, %v5697_v39 }
 0x6ce   : > { %v5726_v31 = vsel %vm5725_vm4, 1, %v11183_v54  ;;  %v5704_v35 = vsel %vm5703_vm3, 1, %v11183_v54  ;;  %v5674_v63 = vsel %vm5670_vm7, %v5654_v3, %v9980_v46  ;;  %v5676_v12 = vsel %vm5672_vm13, %v5660_v56, %v5675_v10 }
 0x6cf   : > { %v5728_v15 = vadd.s32 %v5726_v31, %v5724_v58  ;;  %v5706_v53 = vadd.s32 %v5704_v35, %v5702_v4  ;;  %v5513_v39 = vshrl.u32 %v11287_v62, %v10002_v57  ;;  %v5720_v51 = vshrl.u32 %v5715_v50, 16 }
 0x6d0   : > { %v11121_v49 = vand.u32 2147483647, %v9827_v41  ;;  %v5359_v58 = vor.u32 %v10027_v14, %v10023_v52  ;;  %v5698_v47 = vshrl.u32 %v5693_v5, 16  ;;  %v5336_v30 = vor.u32 8388608, %v5335_v20 }
 0x6d1   : > { %v5729_v17 = vadd.s32 %v5728_v15, %v5718_v25  ;;  %v5707_v21 = vadd.s32 %v5706_v53, %v5696_v33  ;;  %v5509_v46 = vshll.u32 %v11177_v38, %v9961_v23  ;;  %v5512_v56 = vshll.u32 %v11315_v22, %v9961_v23 }
 0x6d2   : > { %v5677_v36 = vsel %vm5671_vm9, %v5674_v63, %v5676_v12  ;;  %v10063_v50 = vshrl.u32 %v9939_v61, 5  ;;  %v5727_v4 = vadd.s32 %v5723_v2, %v5719_v43  ;;  %v11123_v52 = vand.u32 2147483647, %v9834_v18 }
 0x6d3   : > { %v5730_v10 = vadd.s32 %v5729_v17, %v5720_v51  ;;  %v5708_v3 = vadd.s32 %v5707_v21, %v5698_v47  ;;  %v10066_v14 = vor.u32 %v5510_v28, %v5509_v46  ;;  %v5514_v5 = vor.u32 %v5513_v39, %v5512_v56 }
 0x6d4   : > { %v10070_v35 = vand.u32 8388607, %v11121_v49  ;;  %v5731_v22 = vmul.u32 %v9982_v9, %v5677_v36  ;;  %v5490_v11 = vand.u32 8388607, %v11123_v52  ;;  %v10075_v61 = vshll.u32 %v5336_v30, 8 }
 0x6d5   : > { %v5734_v31 = vadd.s32 1, %v5730_v10  ;;  %vm5733_vm5 = vc.u32 %v5708_v3, %v5727_v4  ;;  %v10080_v43 = vsel %vm5208_vm10, %v10012_v32, 920167782  ;;  %v11329_v2 = vor.u32 %v9953_v60, %v9949_v1 }
 0x6d6   : > { %v10092_v9 = vsel %vm5363_vm2, %v10029_v37, 920167782  ;;  %v10096_v15 = vsel %vm5363_vm2, %v5359_v58, 1326507024  ;;  %vm5518_vm15 = vcmp.lt.s32.totalorder %v10063_v50, 4  ;;  %v5491_v1 = vor.u32 8388608, %v5490_v11 }
 0x6d7   : > { %v10087_v28 = vsel %vm5208_vm10, %v11329_v2, 1326507024  ;;  %v5735_v25 = vsel %vm5733_vm5, %v5734_v31, %v5730_v10  ;;  %v5524_v60 = vsel %vm5518_vm15, %v10066_v14, 920167782  ;;  %v10105_v63 = vsel %vm5518_vm15, %v5514_v5, 1326507024 }
 0x6d8   : > { %v5736_v20 = vadd.s32 %v5735_v25, %v5731_v22  ;;  %v5190_v33 = vshll.u32 %v11178_v7, %v9879_v27  ;;  %v10111_v39 = vand.u32 65535, %v10075_v61  ;;  %v5193_v51 = vshll.u32 %v11181_v8, %v9879_v27 }
 0x6d9   : > { %v5196_v17 = vshll.u32 %v11176_v40, %v9879_v27  ;;  %v10117_v58 = vadd.s32 %v5727_v4, %v5708_v3  ;;  %v10120_v47 = vshrl.u32 %v10075_v61, 16  ;;  %v5191_v21 = vshrl.u32 %v11181_v8, %v9914_v19 }
 0x6da   : > { %v5737_v53 = vadd.s32 536870912, %v5736_v20  ;;  %v5194_v30 = vshrl.u32 %v11176_v40, %v9914_v19  ;;  %v10126_v56 = vshll.u32 %v5491_v1, 8  ;;  %v5346_v36 = vshrl.u32 %v11181_v8, %v9956_v48 }
 0x6db   : > { %v5352_v27 = vshrl.u32 %v11177_v38, %v9956_v48  ;;  %v11330_v10 = vand.u32 2147483647, %v9844_v0  ;;  %v5345_v4 = vshll.u32 %v11178_v7, %v9921_v42  ;;  %v5348_v5 = vshll.u32 %v11181_v8, %v9921_v42 }
 0x6dc   : > { %v5738_v46 = vshrl.u32 %v5737_v53, 30  ;;  %v5349_v31 = vshrl.u32 %v11176_v40, %v9956_v48  ;;  %v5197_v22 = vshrl.u32 %v11177_v38, %v9914_v19  ;;  %v5351_v25 = vshll.u32 %v11176_v40, %v9921_v42 }
 0x6dd   : > { %vm10134_vm14 = vcmp.le.f32.partialorder %v11330_v10, 0.7853982  ;;  %vm5360_vm8 = vcmp.lt.s32.totalorder %v10017_v6, 1  ;;  %v5344_v1 = vshrl.u32 %v11178_v7, %v9956_v48  ;;  %vm5362_vm1 = vcmp.lt.s32.totalorder %v10017_v6, 3 }
 0x6de   : > { %v5739_v11 = vshll.u32 %v5738_v46, 30  ;;  %v5762_v2 = vsub.s32 4, %v5738_v46  ;;  %v10152_v53 = vor.u32 %v5191_v21, %v5190_v33  ;;  %v10154_v10 = vor.u32 %v5194_v30, %v5193_v51 }
 0x6df   : > { %v10157_v24 = vand.u32 65535, %v10126_v56  ;;  %v5347_v52 = vor.u32 %v5346_v36, %v5345_v4  ;;  %v5353_v12 = vor.u32 %v5352_v27, %v5351_v25  ;;  %vm5361_vm7 = vcmp.lt.s32.totalorder %v10017_v6, 2 }
 0x6e0   : > { %v5740_v49 = vsub.s32 %v5736_v20, %v5739_v11  ;;  %v10162_v42 = vsel %vm5640_vm6, %v5762_v2, %v5738_v46  ;;  %v10165_v48 = vshrl.u32 %v10126_v56, 16  ;;  %v5350_v41 = vor.u32 %v5349_v31, %v5348_v5 }
 0x6e1   : > { %v10167_v33 = vor.u32 %v5197_v22, %v5196_v17  ;;  %v5500_v20 = vshll.u32 %v11178_v7, %v9961_v23  ;;  %v5501_v21 = vshrl.u32 %v11181_v8, %v10002_v57  ;;  %v5503_v30 = vshll.u32 %v11181_v8, %v9961_v23 }
 0x6e2   : > { %vm5741_vm13 = vcmp.lt.s32.totalorder %v5740_v49, 0  ;;  %v5742_v51 = vsub.s32 0, %v5740_v49  ;;  %v5504_v46 = vshrl.u32 %v11176_v40, %v10002_v57  ;;  %v5506_v36 = vshll.u32 %v11176_v40, %v9961_v23 }
 0x6e3   : > { %v5507_v17 = vshrl.u32 %v11177_v38, %v10002_v57  ;;  %v5502_v4 = vor.u32 %v5501_v21, %v5500_v20  ;;  %v10183_v5 = vsel %vm5360_vm8, %v5344_v1, %v5347_v52  ;;  %v5365_v31 = vsel %vm5363_vm2, %v5353_v12, 2102212464 }
 0x6e4   : > { %v5743_v27 = vsel %vm5741_vm13, %v5742_v51, %v5740_v49  ;;  %v5505_v11 = vor.u32 %v5504_v46, %v5503_v30  ;;  %v5368_v25 = vsel %vm5360_vm8, %v5347_v52, %v5350_v41  ;;  %v5765_v23 = vsel %vm10134_vm14, 0, %v10162_v42 }
 0x6e5   : > { %v5744_v22 = vclz %v5743_v27  ;;  %v5508_v2 = vor.u32 %v5507_v17, %v5506_v36  ;;  %vm5515_vm9 = vcmp.lt.s32.totalorder %v10063_v50, 1  ;;  %vm5517_vm12 = vcmp.lt.s32.totalorder %v10063_v50, 3 }
 0x6e6   : > { %v5370_v1 = vsel %vm5362_vm1, %v5353_v12, %v10092_v9  ;;  %vm5516_vm11 = vcmp.lt.s32.totalorder %v10063_v50, 2  ;;  %v5523_v20 = vsel %vm5515_vm9, %v5502_v4, %v5505_v11  ;;  %v5499_v42 = vshrl.u32 %v11178_v7, %v10002_v57 }
 0x6e7   : > { %v6065_v51 = vadd.s32 4294967294, %v5744_v22  ;;  %v5525_v52 = vsel %vm5517_vm12, %v5508_v2, %v5524_v60  ;;  %v5527_v21 = vsel %vm5515_vm9, %v5505_v11, %v5508_v2  ;;  %v5529_v9 = vsel %vm5517_vm12, %v10066_v14, %v10105_v63 }
 0x6e8   : > { %v10212_v30 = vsel %vm5362_vm1, %v5350_v41, %v5365_v31  ;;  %v5526_v46 = vsel %vm5516_vm11, %v5523_v20, %v5525_v52  ;;  %v5530_v60 = vsel %vm5516_vm11, %v5527_v21, %v5529_v9  ;;  %v10220_v57 = vsel %vm5361_vm7, %v5368_v25, %v5370_v1 }
 0x6e9   : > { %vm6066_vm4 = vcmp.lt.s32.totalorder %v6065_v51, 0  ;;  %v5534_v17 = vand.u32 65535, %v5530_v60  ;;  %v5535_v27 = vshrl.u32 %v5530_v60, 16  ;;  %v5372_v14 = vsel %vm5360_vm8, %v5350_v41, %v5353_v12 }
 0x6ea   : > { %v5747_v36 = vsel %vm6066_vm4, 0, %v6065_v51  ;;  %v5519_v22 = vsel %vm5515_vm9, %v5499_v42, %v5502_v4  ;;  %v5520_v20 = vsel %vm5518_vm15, %v5508_v2, 2102212464  ;;  %v5556_v25 = vand.u32 65535, %v5526_v46 }
 0x6eb   : > { %v5748_v63 = vsub.s32 32, %v5747_v36  ;;  %v5752_v31 = vsub.s32 4294967266, %v5747_v36  ;;  %v5537_v52 = vmul.u32 %v5535_v27, %v10157_v24  ;;  %v5538_v21 = vmul.u32 %v5534_v17, %v10165_v48 }
 0x6ec   : > { %v5374_v1 = vsel %vm5362_vm1, %v10029_v37, %v10096_v15  ;;  %v5749_v51 = vshll.u32 %v5740_v49, %v5747_v36  ;;  %v5521_v4 = vsel %vm5517_vm12, %v5505_v11, %v5520_v20  ;;  %v5536_v2 = vmul.u32 %v5534_v17, %v10157_v24 }
 0x6ed   : > { %v5750_v41 = vshrl.u32 %v10117_v58, %v5748_v63  ;;  %v5753_v12 = vadd.s32 127, %v5752_v31  ;;  %v5540_v42 = vshll.u32 %v5537_v52, 16  ;;  %v5402_v60 = vshrl.u32 %v10220_v57, 16 }
 0x6ee   : > { %v5539_v40 = vmul.u32 %v5535_v27, %v10165_v48  ;;  %v5557_v26 = vshrl.u32 %v5526_v46, 16  ;;  %v5542_v37 = vshll.u32 %v5538_v21, 16  ;;  %v5560_v15 = vmul.u32 %v5556_v25, %v10165_v48 }
 0x6ef   : > { %v5751_v8 = vor.u32 %v5750_v41, %v5749_v51  ;;  %v5754_v38 = vshll.u32 %v5753_v12, 23  ;;  %vm5544_vm2 = vc.u32 %v5536_v2, %v5540_v42  ;;  %v5546_v49 = vadd.s32 %v5540_v42, %v5536_v2 }
 0x6f0   : > { %v10242_v36 = vadd.s32 3, %v5765_v23  ;;  %v5545_v11 = vsel %vm5544_vm2, 1, %v11183_v54  ;;  %v5559_v17 = vmul.u32 %v5557_v26, %v10157_v24  ;;  %v5541_v63 = vshrl.u32 %v5537_v52, 16 }
 0x6f1   : > { %v5755_v58 = vor.u32 4788187, %v5754_v38  ;;  %v5547_v31 = vadd.s32 %v5545_v11, %v5539_v40  ;;  %vm5548_vm3 = vc.u32 %v5546_v49, %v5542_v37  ;;  %v5558_v20 = vmul.u32 %v5556_v25, %v10157_v24 }
 0x6f2   : > { %v5758_v27 = vcvt.s32.f32 %v5751_v8  ;;  %v5549_v46 = vsel %vm5548_vm3, 1, %v11183_v54  ;;  %v5562_v41 = vshll.u32 %v5559_v17, 16  ;;  %v5561_v2 = vmul.u32 %v5557_v26, %v10165_v48 }
 0x6f3   : > { %v5756_v51 = vand.u32 2147483647, %v5755_v58  ;;  %v5551_v12 = vadd.s32 %v5549_v46, %v5547_v31  ;;  %v5564_v38 = vshll.u32 %v5560_v15, 16  ;;  %v5375_v23 = vsel %vm5361_vm7, %v5372_v14, %v5374_v1 }
 0x6f4   : > { %vm5566_vm5 = vc.u32 %v5558_v20, %v5562_v41  ;;  %v5568_v9 = vadd.s32 %v5562_v41, %v5558_v20  ;;  %v5379_v52 = vand.u32 65535, %v5375_v23  ;;  %v5522_v40 = vsel %vm5516_vm11, %v5519_v22, %v5521_v4 }
 0x6f5   : > { %v5759_v42 = vmul.f32 %v5758_v27, %v5756_v51  ;;  %v5552_v24 = vadd.s32 %v5551_v12, %v5541_v63  ;;  %v5567_v8 = vsel %vm5566_vm5, 1, %v11183_v54  ;;  %v5380_v25 = vshrl.u32 %v5375_v23, 16 }
 0x6f6   : > { %v5543_v49 = vshrl.u32 %v5538_v21, 16  ;;  %v5569_v58 = vadd.s32 %v5567_v8, %v5561_v2  ;;  %vm5570_vm15 = vc.u32 %v5568_v9, %v5564_v38  ;;  %v5563_v26 = vshrl.u32 %v5559_v17, 16 }
 0x6f7   : > { %v5760_v37 = vxor.u32 2147483648, %v5759_v42  ;;  %v5565_v48 = vshrl.u32 %v5560_v15, 16  ;;  %v5571_v11 = vsel %vm5570_vm15, 1, %v11183_v54  ;;  %v5382_v14 = vmul.u32 %v5380_v25, %v10111_v39 }
 0x6f8   : > { %v5573_v31 = vadd.s32 %v5571_v11, %v5569_v58  ;;  %v5576_v50 = vmul.u32 %v10126_v56, %v5522_v40  ;;  %v5383_v22 = vmul.u32 %v5379_v52, %v10120_v47  ;;  %v10265_v4 = vadd.s32 %v5552_v24, %v5543_v49 }
 0x6f9   : > { %v5761_v1 = vsel %vm5640_vm6, %v5760_v37, %v5759_v42  ;;  %v5381_v15 = vmul.u32 %v5379_v52, %v10111_v39  ;;  %v5385_v17 = vshll.u32 %v5382_v14, 16  ;;  %v10270_v20 = vadd.s32 %v5568_v9, %v5564_v38 }
 0x6fa   : > { %v10263_v21 = vsel %vm10134_vm14, %v9844_v0, %v5761_v1  ;;  %v5574_v51 = vadd.s32 %v5573_v31, %v5563_v26  ;;  %v5384_v56 = vmul.u32 %v5380_v25, %v10120_v47  ;;  %v5387_v27 = vshll.u32 %v5383_v22, 16 }
 0x6fb   : > { %v5766_v63 = vmul.f32 %v10263_v21, %v10263_v21  ;;  %vm5389_vm6 = vc.u32 %v5381_v15, %v5385_v17  ;;  %v5391_v46 = vadd.s32 %v5385_v17, %v5381_v15  ;;  %v5404_v3 = vmul.u32 %v5402_v60, %v10111_v39 }
 0x6fc   : > { %v5575_v2 = vadd.s32 %v5574_v51, %v5565_v48  ;;  %v5390_v23 = vsel %vm5389_vm6, 1, %v11183_v54  ;;  %vm5578_vm14 = vc.u32 %v10265_v4, %v10270_v20  ;;  %v11333_v38 = vand.u32 65535, %v10220_v57 }
 0x6fd   : > { %v5767_v41 = vmul.f32 -0.001358992, %v5766_v63  ;;  %v5774_v12 = vmul.f32 -0.00019511016, %v5766_v63  ;;  %v5392_v9 = vadd.s32 %v5390_v23, %v5384_v56  ;;  %vm5393_vm8 = vc.u32 %v5391_v46, %v5387_v27 }
 0x6fe   : > { %v5405_v42 = vmul.u32 %v11333_v38, %v10120_v47  ;;  %v5579_v24 = vadd.s32 1, %v5575_v2  ;;  %v5394_v8 = vsel %vm5393_vm8, 1, %v11183_v54  ;;  %v5386_v25 = vshrl.u32 %v5382_v14, 16 }
 0x6ff   : > { %v5768_v52 = vadd.f32 0.041655596, %v5767_v41  ;;  %v5775_v40 = vadd.f32 0.008332121, %v5774_v12  ;;  %v5396_v37 = vadd.s32 %v5394_v8, %v5392_v9  ;;  %v11334_v49 = vmov %v11333_v38 }
 0x700   : > { %v5403_v58 = vmul.u32 %v11334_v49, %v10111_v39  ;;  %v5407_v26 = vshll.u32 %v5404_v3, 16  ;;  %v5580_v1 = vsel %vm5578_vm14, %v5579_v24, %v5575_v2  ;;  %v5406_v31 = vmul.u32 %v5402_v60, %v10120_v47 }
 0x701   : > { %v5769_v48 = vmul.f32 %v5768_v52, %v5766_v63  ;;  %v5776_v11 = vmul.f32 %v5775_v40, %v5766_v63  ;;  %v5581_v15 = vadd.s32 %v5580_v1, %v5576_v50  ;;  %v5409_v17 = vshll.u32 %v5405_v42, 16 }
 0x702   : > { %vm5411_vm1 = vc.u32 %v5403_v58, %v5407_v26  ;;  %v5413_v51 = vadd.s32 %v5407_v26, %v5403_v58  ;;  %vm5205_vm13 = vcmp.lt.s32.totalorder %v9941_v59, 1  ;;  %v5397_v27 = vadd.s32 %v5396_v37, %v5386_v25 }
 0x703   : > { %v5770_v14 = vadd.f32 -0.4999988, %v5769_v48  ;;  %v5777_v56 = vadd.f32 -0.16666654, %v5776_v11  ;;  %v5412_v46 = vsel %vm5411_vm1, 1, %v11183_v54  ;;  %v5783_v39 = vand.u32 3, %v10242_v36 }
 0x704   : > { %v5582_v41 = vadd.s32 536870912, %v5581_v15  ;;  %v5414_v12 = vadd.s32 %v5412_v46, %v5406_v31  ;;  %vm5415_vm9 = vc.u32 %v5413_v51, %v5409_v17  ;;  %v5388_v57 = vshrl.u32 %v5383_v22, 16 }
 0x705   : > { %v5771_v2 = vmul.f32 %v5770_v14, %v5766_v63  ;;  %v5778_v23 = vmul.f32 %v5777_v56, %v5766_v63  ;;  %v5416_v47 = vsel %vm5415_vm9, 1, %v11183_v54  ;;  %vm5781_vm12 = vweird.f32 %v9844_v0 }
 0x706   : > { %v10294_v60 = vshrl.u32 %v5582_v41, 30  ;;  %v5408_v50 = vshrl.u32 %v5404_v3, 16  ;;  %v5418_v9 = vadd.s32 %v5416_v47, %v5414_v12  ;;  %vm5206_vm11 = vcmp.lt.s32.totalorder %v9941_v59, 2 }
 0x707   : > { %vm5053_vm4 = vcmp.lt.s32.totalorder %v9933_v45, 4  ;;  %v5772_v38 = vadd.f32 1.0, %v5771_v2  ;;  %v5779_v36 = vadd.f32 1.0, %v5778_v23  ;;  %v10298_v52 = vadd.s32 %v5397_v27, %v5388_v57 }
 0x708   : > { %vm5207_vm2 = vcmp.lt.s32.totalorder %v9941_v59, 3  ;;  %v5584_v22 = vshll.u32 %v10294_v60, 30  ;;  %v5367_v63 = vsel %vm5361_vm7, %v10183_v5, %v10212_v30  ;;  %v5410_v40 = vshrl.u32 %v5405_v42, 16 }
 0x709   : > { %v5419_v3 = vadd.s32 %v5418_v9, %v5408_v50  ;;  %v5780_v24 = vmul.f32 %v5779_v36, %v10263_v21  ;;  %vm5784_vm3 = vcmp.lt.s32.totalorder %v5783_v39, 2  ;;  %v5789_v8 = vxor.u32 2147483648, %v5772_v38 }
 0x70a   : > { %v10307_v25 = vadd.s32 %v5413_v51, %v5409_v17  ;;  %vm5785_vm5 = vcmp.eq.s32.totalorder %v5783_v39, 0  ;;  %vm5788_vm15 = vcmp.eq.s32.totalorder %v5783_v39, 2  ;;  %v5585_v37 = vsub.s32 %v5581_v15, %v5584_v22 }
 0x70b   : > { %v5420_v49 = vadd.s32 %v5419_v3, %v5410_v40  ;;  %v5786_v58 = vxor.u32 2147483648, %v5780_v24  ;;  %v5421_v26 = vmul.u32 %v10075_v61, %v5367_v63  ;;  %v5213_v6 = vsel %vm5205_vm13, %v10152_v53, %v10154_v10 }
 0x70c   : > { %vm5423_vm6 = vc.u32 %v10298_v52, %v10307_v25  ;;  %vm5586_vm7 = vcmp.lt.s32.totalorder %v5585_v37, 0  ;;  %v5587_v5 = vsub.s32 0, %v5585_v37  ;;  %v5215_v21 = vsel %vm5207_vm2, %v10167_v33, %v10080_v43 }
 0x70d   : > { %v5424_v30 = vadd.s32 1, %v5420_v49  ;;  %v5787_v42 = vsel %vm5785_vm5, %v5772_v38, %v5786_v58  ;;  %v5790_v48 = vsel %vm5788_vm15, %v5789_v8, %v5780_v24  ;;  %v5217_v61 = vsel %vm5205_vm13, %v10154_v10, %v10167_v33 }
 0x70e   : > { %v5219_v11 = vsel %vm5207_vm2, %v10012_v32, %v10087_v28  ;;  %v5791_v1 = vsel %vm5784_vm3, %v5787_v42, %v5790_v48  ;;  %v5588_v31 = vsel %vm5586_vm7, %v5587_v5, %v5585_v37  ;;  %v11335_v17 = vor.u32 8388608, %v10070_v35 }
 0x70f   : > { %v5425_v15 = vsel %vm5423_vm6, %v5424_v30, %v5420_v49  ;;  %v5792_v43 = vsel %vm5781_vm12, nan, %v5791_v1  ;;  %v5589_v14 = vclz %v5588_v31  ;;  %v5220_v27 = vsel %vm5206_vm11, %v5217_v61, %v5219_v11 }
 0x710   : > { %v10331_v51 = vshll.u32 %v11335_v17, 8  ;;  %v5426_v56 = vadd.s32 %v5425_v15, %v5421_v26  ;;  %v10339_v46 = vshrl.u32 %v11287_v62, %v9895_v55  ;;  %v10344_v32 = vsel %vm5053_vm4, %v9935_v13, 920167782  ;;  %5812 = vmatpush.msra.mxu3 %v5792_v43 }
 0x711   : > { %v11336_v35 = vor.u32 %v9905_v34, %v9918_v29  ;;  %vm5485_vm14 = vcmp.lt.s32.totalorder %v9834_v18, 0  ;;  %v6062_v28 = vadd.s32 4294967294, %v5589_v14  ;;  %v5216_v62 = vsel %vm5206_vm11, %v5213_v6, %v5215_v21 }
 0x712   : > { %v5427_v39 = vadd.s32 536870912, %v5426_v56  ;;  %v5224_v41 = vand.u32 65535, %v5220_v27  ;;  %v5607_v12 = vsub.s32 4, %v10294_v60  ;;  %v5222_v2 = vand.u32 65535, %v10331_v51 }
 0x713   : > { %v10351_v0 = vsel %vm5053_vm4, %v11336_v35, 1326507024  ;;  %v5223_v23 = vshrl.u32 %v10331_v51, 16  ;;  %v5225_v34 = vshrl.u32 %v5220_v27, 16  ;;  %v11337_v29 = vand.u32 2147483647, %v9834_v18 }
 0x714   : > { %vm6063_vm1 = vcmp.lt.s32.totalorder %v6062_v28, 0  ;;  %v10365_v47 = vshrl.u32 %v5427_v39, 30  ;;  %v5189_v50 = vshrl.u32 %v11178_v7, %v9914_v19  ;;  %v5247_v22 = vshrl.u32 %v5216_v62, 16 }
 0x715   : > { %vm10361_vm8 = vcmp.le.f32.partialorder %v11337_v29, 0.7853982  ;;  %v5592_v9 = vsel %vm6063_vm1, 0, %v6062_v28  ;;  %v5227_v38 = vmul.u32 %v5225_v34, %v5222_v2  ;;  %v10369_v36 = vmul.u32 %v5224_v41, %v5223_v23 }
 0x716   : > { %v5577_v63 = vadd.s32 %v10270_v20, %v10265_v4  ;;  %v5593_v40 = vsub.s32 32, %v5592_v9  ;;  %v5597_v3 = vsub.s32 4294967266, %v5592_v9  ;;  %v5429_v24 = vshll.u32 %v10365_v47, 30 }
 0x717   : > { %v5608_v8 = vsel %vm5485_vm14, %v5607_v12, %v10294_v60  ;;  %v5226_v49 = vmul.u32 %v5224_v41, %v5222_v2  ;;  %v5230_v58 = vshll.u32 %v5227_v38, 16  ;;  %v5246_v26 = vand.u32 65535, %v5216_v62 }
 0x718   : > { %v5594_v19 = vshll.u32 %v5585_v37, %v5592_v9  ;;  %v5595_v6 = vshrl.u32 %v5577_v63, %v5593_v40  ;;  %v5598_v5 = vadd.s32 127, %v5597_v3  ;;  %v5430_v30 = vsub.s32 %v5426_v56, %v5429_v24 }
 0x719   : > { %v5232_v21 = vshll.u32 %v10369_v36, 16  ;;  %vm5234_vm9 = vc.u32 %v5226_v49, %v5230_v58  ;;  %v5236_v42 = vadd.s32 %v5230_v58, %v5226_v49  ;;  %v10378_v4 = vmul.u32 %v5247_v22, %v5222_v2 }
 0x71a   : > { %v5596_v20 = vor.u32 %v5595_v6, %v5594_v19  ;;  %v5599_v48 = vshll.u32 %v5598_v5, 23  ;;  %vm5431_vm12 = vcmp.lt.s32.totalorder %v5430_v30, 0  ;;  %v5432_v61 = vsub.s32 0, %v5430_v30 }
 0x71b   : > { %v5209_v60 = vsel %vm5205_vm13, %v5189_v50, %v10152_v53  ;;  %v5229_v11 = vmul.u32 %v5225_v34, %v5223_v23  ;;  %v5235_v37 = vsel %vm5234_vm9, 1, %v11183_v54  ;;  %vm5238_vm3 = vc.u32 %v5236_v42, %v5232_v21 }
 0x71c   : > { %v5600_v1 = vor.u32 4788187, %v5599_v48  ;;  %v5422_v31 = vadd.s32 %v10307_v25, %v10298_v52  ;;  %v5433_v15 = vsel %vm5431_vm12, %v5432_v61, %v5430_v30  ;;  %v5210_v17 = vsel %vm5208_vm10, %v10167_v33, 2102212464 }
 0x71d   : > { %v5610_v43 = vsel %vm10361_vm8, 0, %v5608_v8  ;;  %vm5330_vm5 = vcmp.lt.s32.totalorder %v9831_v44, 0  ;;  %v5434_v14 = vclz %v5433_v15  ;;  %v5237_v53 = vadd.s32 %v5235_v37, %v5229_v11 }
 0x71e   : > { %v5239_v56 = vsel %vm5238_vm3, 1, %v11183_v54  ;;  %v5601_v27 = vand.u32 2147483647, %v5600_v1  ;;  %v5603_v35 = vcvt.s32.f32 %v5596_v20  ;;  %v5250_v28 = vmul.u32 %v5246_v26, %v5223_v23 }
 0x71f   : > { %v5252_v39 = vshll.u32 %v10378_v4, 16  ;;  %v6059_v52 = vadd.s32 4294967294, %v5434_v14  ;;  %v5211_v25 = vsel %vm5207_vm2, %v10154_v10, %v5210_v17  ;;  %v5241_v33 = vadd.s32 %v5239_v56, %v5237_v53 }
 0x720   : > { %v5248_v62 = vmul.u32 %v5246_v26, %v5222_v2  ;;  %v5604_v41 = vmul.f32 %v5603_v35, %v5601_v27  ;;  %v5627_v12 = vadd.s32 3, %v5610_v43  ;;  %v11340_v34 = vand.u32 2147483647, %v9831_v44 }
 0x721   : > { %v5452_v50 = vsub.s32 4, %v10365_v47  ;;  %v5231_v9 = vshrl.u32 %v5227_v38, 16  ;;  %vm6060_vm13 = vcmp.lt.s32.totalorder %v6059_v52, 0  ;;  %v5251_v63 = vmul.u32 %v5247_v22, %v5223_v23 }
 0x722   : > { %vm10399_vm10 = vcmp.le.f32.partialorder %v11340_v34, 0.7853982  ;;  %vm5256_vm15 = vc.u32 %v5248_v62, %v5252_v39  ;;  %v5258_v40 = vadd.s32 %v5252_v39, %v5248_v62  ;;  %v5605_v3 = vxor.u32 2147483648, %v5604_v41 }
 0x723   : > { %v5437_v24 = vsel %vm6060_vm13, 0, %v6059_v52  ;;  %v5254_v10 = vshll.u32 %v5250_v28, 16  ;;  %v5257_v2 = vsel %vm5256_vm15, 1, %v11183_v54  ;;  %v5233_v58 = vshrl.u32 %v10369_v36, 16 }
 0x724   : > { %v5438_v8 = vsub.s32 32, %v5437_v24  ;;  %v5442_v49 = vsub.s32 4294967266, %v5437_v24  ;;  %v5242_v26 = vadd.s32 %v5241_v33, %v5231_v9  ;;  %v5606_v19 = vsel %vm5485_vm14, %v5605_v3, %v5604_v41  ;;  %v11343_v41 = vld [vmem:[#allocation19_spill] sm:$0xff] }
 0x725   : > { %v5439_v6 = vshll.u32 %v5430_v30, %v5437_v24  ;;  %v5259_v5 = vadd.s32 %v5257_v2, %v5251_v63  ;;  %vm5260_vm2 = vc.u32 %v5258_v40, %v5254_v10  ;;  %v10411_v23 = vsel %vm10361_vm8, %v9834_v18, %v5606_v19 }
 0x726   : > { %v5440_v38 = vshrl.u32 %v5422_v31, %v5438_v8  ;;  %v5443_v22 = vadd.s32 127, %v5442_v49  ;;  %v5261_v21 = vsel %vm5260_vm2, 1, %v11183_v54  ;;  %v5611_v42 = vmul.f32 %v10411_v23, %v10411_v23  ;;  %v11347_v8 = vld [vmem:[#allocation6_spill] sm:$0xff] }
 0x727   : > { %v5453_v36 = vsel %vm5330_vm5, %v5452_v50, %v10365_v47  ;;  %v5253_v30 = vshrl.u32 %v10378_v4, 16  ;;  %v5263_v20 = vadd.s32 %v5261_v21, %v5259_v5  ;;  %v5212_v57 = vsel %vm5206_vm11, %v5209_v60, %v5211_v25 }
 0x728   : > { %v5441_v48 = vor.u32 %v5440_v38, %v5439_v6  ;;  %v5444_v61 = vshll.u32 %v5443_v22, 23  ;;  %v10422_v11 = vadd.s32 %v5242_v26, %v5233_v58  ;;  %v5612_v37 = vmul.f32 -0.001358992, %v5611_v42 }
 0x729   : > { %v5619_v1 = vmul.f32 -0.00019511016, %v5611_v42  ;;  %v5255_v31 = vshrl.u32 %v5250_v28, 16  ;;  %v5264_v15 = vadd.s32 %v5263_v20, %v5253_v30  ;;  %v5455_v43 = vsel %vm10399_vm10, 0, %v5453_v36 }
 0x72a   : > { %v5445_v17 = vor.u32 4788187, %v5444_v61  ;;  %v10426_v14 = vadd.s32 %v5258_v40, %v5254_v10  ;;  %v5018_v47 = vand.u32 2147483647, %v9822_v16  ;;  %v5613_v4 = vadd.f32 0.041655596, %v5612_v37 }
 0x72b   : > { %v5620_v53 = vadd.f32 0.008332121, %v5619_v1  ;;  %v10429_v56 = vand.u32 3, %v5627_v12  ;;  %v5265_v59 = vadd.s32 %v5264_v15, %v5255_v31  ;;  %v5448_v27 = vcvt.s32.f32 %v5441_v48 }
 0x72c   : > { %v5446_v60 = vand.u32 2147483647, %v5445_v17  ;;  %v5266_v35 = vmul.u32 %v10331_v51, %v5212_v57  ;;  %vm5268_vm11 = vc.u32 %v10422_v11, %v10426_v14  ;;  %v5614_v28 = vmul.f32 %v5613_v4, %v5611_v42 }
 0x72d   : > { %v5621_v39 = vmul.f32 %v5620_v53, %v5611_v42  ;;  %v5472_v52 = vadd.s32 3, %v5455_v43  ;;  %v5269_v25 = vadd.s32 1, %v5265_v59  ;;  %v5025_v62 = vand.u32 8388607, %v5018_v47 }
 0x72e   : > { %v5449_v33 = vmul.f32 %v5448_v27, %v5446_v60  ;;  %v11344_v34 = vmov 2131351028   ;;  %v11345_v50 = vmov 2102212464   ;;  %v5615_v63 = vadd.f32 -0.4999988, %v5614_v28 }
 0x72f   : > { %v5039_v12 = vshrl.u32 %v11344_v34, %v11343_v41  ;;  %v5042_v9 = vshrl.u32 %v11345_v50, %v11343_v41  ;;  %v5622_v40 = vadd.f32 -0.16666654, %v5621_v39  ;;  %v5270_v51 = vsel %vm5268_vm11, %v5269_v25, %v5265_v59 }
 0x730   : > { %v11346_v3 = vmov 2475754826   ;;  %vm5630_vm6 = vcmp.eq.s32.totalorder %v10429_v56, 0  ;;  %v5450_v10 = vxor.u32 2147483648, %v5449_v33  ;;  %v5271_v2 = vadd.s32 %v5270_v51, %v5266_v35 }
 0x731   : > { %v5036_v24 = vshrl.u32 %v11346_v3, %v11343_v41  ;;  %v5038_v49 = vshll.u32 %v11346_v3, %v11347_v8  ;;  %v5041_v58 = vshll.u32 %v11344_v34, %v11347_v8  ;;  %v5616_v26 = vmul.f32 %v5615_v63, %v5611_v42 }
 0x732   : > { %v5623_v19 = vmul.f32 %v5622_v40, %v5611_v42  ;;  %vm5629_vm7 = vcmp.lt.s32.totalorder %v10429_v56, 2  ;;  %vm5633_vm14 = vcmp.eq.s32.totalorder %v10429_v56, 2  ;;  %v5035_v6 = vshll.u32 %v11178_v7, %v11347_v8 }
 0x733   : > { %vm5626_vm8 = vweird.f32 %v9834_v18  ;;  %v5451_v5 = vsel %vm5330_vm5, %v5450_v10, %v5449_v33  ;;  %v5272_v38 = vadd.s32 536870912, %v5271_v2  ;;  %v10454_v22 = vor.u32 %v5039_v12, %v5038_v49 }
 0x734   : > { %v5043_v21 = vor.u32 %v5042_v9, %v5041_v58  ;;  %v5617_v36 = vadd.f32 1.0, %v5616_v26  ;;  %v5624_v30 = vadd.f32 1.0, %v5623_v19  ;;  %v10459_v42 = vsel %vm10399_vm10, %v9831_v44, %v5451_v5  ;;  %v11350_v9 = vld [vmem:[#allocation23_spill] sm:$0xff]  ;;  %v11351_v5 = vld [vmem:[#allocation24_spill] sm:$0xff] }
 0x735   : > { %v10461_v20 = vor.u32 %v5036_v24, %v5035_v6  ;;  %v5456_v48 = vmul.f32 %v10459_v42, %v10459_v42  ;;  %v10465_v61 = vand.u32 3, %v5472_v52  ;;  %v10467_v57 = vshrl.u32 %v5272_v38, 30 }
 0x736   : > { %v5026_v37 = vor.u32 8388608, %v5025_v62  ;;  %v5625_v1 = vmul.f32 %v5624_v30, %v10411_v23  ;;  %v5634_v31 = vxor.u32 2147483648, %v5617_v36  ;;  %vm5050_vm1 = vcmp.lt.s32.totalorder %v9933_v45, 1  ;;  %v11348_v62 = vld [vmem:[#allocation15_spill] sm:$0xff] }
 0x737   : > { %vm5052_vm9 = vcmp.lt.s32.totalorder %v9933_v45, 3  ;;  %v5457_v29 = vmul.f32 -0.001358992, %v5456_v48  ;;  %v5464_v15 = vmul.f32 -0.00019511016, %v5456_v48  ;;  %v5274_v17 = vshll.u32 %v10467_v57, 30 }
 0x738   : > { %v5062_v43 = vsel %vm5050_vm1, %v10454_v22, %v5043_v21  ;;  %v5631_v4 = vxor.u32 2147483648, %v5625_v1  ;;  %vm5051_vm12 = vcmp.lt.s32.totalorder %v9933_v45, 2  ;;  %v5058_v23 = vsel %vm5050_vm1, %v10461_v20, %v10454_v22 }
 0x739   : > { %v5064_v53 = vsel %vm5052_vm9, %v9935_v13, %v10351_v0  ;;  %v5458_v59 = vadd.f32 0.041655596, %v5457_v29  ;;  %v5465_v60 = vadd.f32 0.008332121, %v5464_v15  ;;  %v10485_v27 = vsub.s32 %v5271_v2, %v5274_v17 }
 0x73a   : > { %v5060_v35 = vsel %vm5052_vm9, %v5043_v21, %v10344_v32  ;;  %v5632_v28 = vsel %vm5630_vm6, %v5617_v36, %v5631_v4  ;;  %v5635_v39 = vsel %vm5633_vm14, %v5634_v31, %v5625_v1  ;;  %v5065_v52 = vsel %vm5051_vm12, %v5062_v43, %v5064_v53  ;;  %v11349_v32 = vld [vmem:[#allocation27_spill] sm:$0xff] }
 0x73b   : > { %v10496_v25 = vshll.u32 %v5026_v37, 8  ;;  %v5636_v13 = vsel %vm5629_vm7, %v5632_v28, %v5635_v39  ;;  %v5459_v0 = vmul.f32 %v5458_v59, %v5456_v48  ;;  %v5466_v33 = vmul.f32 %v5465_v60, %v5456_v48 }
 0x73c   : > { %vm5276_vm3 = vcmp.lt.s32.totalorder %v10485_v27, 0  ;;  %v10503_v12 = vor.u32 %v11349_v32, %v11348_v62  ;;  %v4894_v63 = vor.u32 %v10339_v46, %v11350_v9  ;;  %v5637_v40 = vsel %vm5626_vm8, nan, %v5636_v13 }
 0x73d   : > { %v5277_v51 = vsub.s32 0, %v10485_v27  ;;  %5813 = vmatpush.msra.mxu3 %v5637_v40  ;;  %v5460_v24 = vadd.f32 -0.4999988, %v5459_v0  ;;  %v5467_v56 = vadd.f32 -0.16666654, %v5466_v33  ;;  %vm5478_vm5 = vcmp.eq.s32.totalorder %v10465_v61, 2 }
 0x73e   : > { %v5069_v10 = vand.u32 65535, %v5065_v52  ;;  %vm5475_vm10 = vcmp.eq.s32.totalorder %v10465_v61, 0  ;;  %v5061_v8 = vsel %vm5051_vm12, %v5058_v23, %v5060_v35  ;;  %v5067_v49 = vand.u32 65535, %v10496_v25 }
 0x73f   : > { %v5278_v2 = vsel %vm5276_vm3, %v5277_v51, %v10485_v27  ;;  %v5070_v58 = vshrl.u32 %v5065_v52, 16  ;;  %v5461_v18 = vmul.f32 %v5460_v24, %v5456_v48  ;;  %v5468_v26 = vmul.f32 %v5467_v56, %v5456_v48 }
 0x740   : > { %vm5474_vm13 = vcmp.lt.s32.totalorder %v10465_v61, 2  ;;  %v5279_v19 = vclz %v5278_v2  ;;  %v5068_v6 = vshrl.u32 %v10496_v25, 16  ;;  %vm5471_vm15 = vweird.f32 %v9831_v44 }
 0x741   : > { %vm5175_vm2 = vcmp.lt.s32.totalorder %v11351_v5, 0  ;;  %v5267_v38 = vadd.s32 %v10426_v14, %v10422_v11  ;;  %v5034_v36 = vshrl.u32 %v11178_v7, %v11343_v41  ;;  %v5055_v30 = vsel %vm5053_vm4, %v5043_v21, 2102212464 }
 0x742   : > { %v5072_v37 = vmul.u32 %v5070_v58, %v5067_v49  ;;  %v5462_v48 = vadd.f32 1.0, %v5461_v18  ;;  %v5469_v1 = vadd.f32 1.0, %v5468_v26  ;;  %v6056_v31 = vadd.s32 4294967294, %v5279_v19 }
 0x743   : > { %v5073_v29 = vmul.u32 %v5069_v10, %v5068_v6  ;;  %v5297_v15 = vsub.s32 4, %v10467_v57  ;;  %v5071_v17 = vmul.u32 %v5069_v10, %v5067_v49  ;;  %v5091_v4 = vand.u32 65535, %v5061_v8 }
 0x744   : > { %v5075_v43 = vshll.u32 %v5072_v37, 16  ;;  %v5470_v23 = vmul.f32 %v5469_v1, %v10459_v42  ;;  %v5479_v53 = vxor.u32 2147483648, %v5462_v48  ;;  %vm6057_vm11 = vcmp.lt.s32.totalorder %v6056_v31, 0  ;;  %v11355_v42 = vld [vmem:[#allocation14_spill] sm:$0xff] }
 0x745   : > { %v5092_v11 = vshrl.u32 %v5061_v8, 16  ;;  %v11352_v14 = vand.u32 2147483647, %v11351_v5  ;;  %v5282_v21 = vsel %vm6057_vm11, 0, %v6056_v31  ;;  %v5077_v59 = vshll.u32 %v5073_v29, 16 }
 0x746   : > { %vm5079_vm4 = vc.u32 %v5071_v17, %v5075_v43  ;;  %v5081_v60 = vadd.s32 %v5075_v43, %v5071_v17  ;;  %v5476_v35 = vxor.u32 2147483648, %v5470_v23  ;;  %v5480_v28 = vsel %vm5478_vm5, %v5479_v53, %v5470_v23 }
 0x747   : > { %vm10530_vm6 = vcmp.le.f32.partialorder %v11352_v14, 0.7853982  ;;  %v5283_v39 = vsub.s32 32, %v5282_v21  ;;  %v5074_v52 = vmul.u32 %v5070_v58, %v5068_v6  ;;  %vm4898_vm7 = vcmp.lt.s32.totalorder %v11355_v42, 4 }
 0x748   : > { %v5284_v13 = vshll.u32 %v10485_v27, %v5282_v21  ;;  %v5287_v0 = vsub.s32 4294967266, %v5282_v21  ;;  %v5080_v33 = vsel %vm5079_vm4, 1, %v11183_v54  ;;  %vm5083_vm14 = vc.u32 %v5081_v60, %v5077_v59 }
 0x749   : > { %v5477_v62 = vsel %vm5475_vm10, %v5462_v48, %v5476_v35  ;;  %v5285_v32 = vshrl.u32 %v5267_v38, %v5283_v39  ;;  %v5082_v40 = vadd.s32 %v5080_v33, %v5074_v52  ;;  %v5084_v51 = vsel %vm5083_vm14, 1, %v11183_v54 }
 0x74a   : > { %v5481_v24 = vsel %vm5474_vm13, %v5477_v62, %v5480_v28  ;;  %v5288_v56 = vadd.s32 127, %v5287_v0  ;;  %v5094_v10 = vmul.u32 %v5092_v11, %v5067_v49  ;;  %v5095_v2 = vmul.u32 %v5091_v4, %v5068_v6 }
 0x74b   : > { %v5482_v27 = vsel %vm5471_vm15, nan, %v5481_v24  ;;  %v5298_v8 = vsel %vm5175_vm2, %v5297_v15, %v10467_v57  ;;  %v5076_v58 = vshrl.u32 %v5072_v37, 16  ;;  %v5086_v18 = vadd.s32 %v5084_v51, %v5082_v40 }
 0x74c   : > { %5814 = vmatpush.msra.mxu3 %v5482_v27  ;;  %v5286_v26 = vor.u32 %v5285_v32, %v5284_v13  ;;  %v5289_v19 = vshll.u32 %v5288_v56, 23  ;;  %v5093_v38 = vmul.u32 %v5091_v4, %v5067_v49  ;;  %v5097_v48 = vshll.u32 %v5094_v10, 16  ;;  %v11356_v4 = vld [vmem:[#allocation17_spill] sm:$0xff] }
 0x74d   : > { %v5054_v61 = vsel %vm5050_vm1, %v5034_v36, %v10461_v20  ;;  %v5056_v44 = vsel %vm5052_vm9, %v10454_v22, %v5055_v30  ;;  %v5096_v1 = vmul.u32 %v5092_v11, %v5068_v6  ;;  %v5099_v31 = vshll.u32 %v5095_v2, 16 }
 0x74e   : > { %v5290_v17 = vor.u32 4788187, %v5289_v19  ;;  %v5087_v43 = vadd.s32 %v5086_v18, %v5076_v58  ;;  %vm5101_vm8 = vc.u32 %v5093_v38, %v5097_v48  ;;  %v5103_v57 = vadd.s32 %v5097_v48, %v5093_v38 }
 0x74f   : > { %v5300_v37 = vsel %vm10530_vm6, 0, %v5298_v8  ;;  %v5078_v15 = vshrl.u32 %v5073_v29, 16  ;;  %v5102_v49 = vsel %vm5101_vm8, 1, %v11183_v54  ;;  %v4863_v23 = vand.u32 2147483647, %v11356_v4 }
 0x750   : > { %v5291_v53 = vand.u32 2147483647, %v5290_v17  ;;  %v5293_v20 = vcvt.s32.f32 %v5286_v26  ;;  %v5104_v36 = vadd.s32 %v5102_v49, %v5096_v1  ;;  %vm5105_vm1 = vc.u32 %v5103_v57, %v5099_v31 }
 0x751   : > { %v4908_v22 = vsel %vm4898_vm7, %v4894_v63, 1326507024  ;;  %v5057_v6 = vsel %vm5051_vm12, %v5054_v61, %v5056_v44  ;;  %v5106_v30 = vsel %vm5105_vm1, 1, %v11183_v54  ;;  %v4870_v29 = vand.u32 8388607, %v4863_v23  ;;  %v11357_v63 = vld [vmem:[#allocation20_spill] sm:$0xff] }
 0x752   : > { %v5294_v11 = vmul.f32 %v5293_v20, %v5291_v53  ;;  %v10569_v14 = vadd.s32 %v5087_v43, %v5078_v15  ;;  %v5098_v21 = vshrl.u32 %v5094_v10, 16  ;;  %v5108_v59 = vadd.s32 %v5106_v30, %v5104_v36  ;;  %v11358_v61 = vld [vmem:[#allocation21_spill] sm:$0xff]  ;;  %v11359_v44 = vld [vmem:[#allocation31_spill] sm:$0xff]  ;;  %v11360_v36 = vld [vmem:[#allocation8_spill] sm:$0xff] }
 0x753   : > { %v5317_v60 = vadd.s32 3, %v5300_v37  ;;  %v5100_v35 = vshrl.u32 %v5095_v2, 16  ;;  %v10571_v28 = vadd.s32 %v5103_v57, %v5099_v31  ;;  %v4881_v46 = vshrl.u32 %v11346_v3, %v9895_v55 }
 0x754   : > { %v5295_v9 = vxor.u32 2147483648, %v5294_v11  ;;  %v5109_v45 = vadd.s32 %v5108_v59, %v5098_v21  ;;  %v4883_v39 = vshll.u32 %v11346_v3, %v11357_v63  ;;  %v4884_v52 = vshrl.u32 %v11344_v34, %v9895_v55 }
 0x755   : > { %v4871_v13 = vor.u32 8388608, %v4870_v29  ;;  %v4880_v0 = vshll.u32 %v11178_v7, %v11357_v63  ;;  %v4886_v33 = vshll.u32 %v11344_v34, %v11357_v63  ;;  %v4887_v62 = vshrl.u32 %v11345_v50, %v9895_v55  ;;  %v11361_v29 = vld [vmem:[#allocation9_spill] sm:$0xff] }
 0x756   : > { %v5296_v32 = vsel %vm5175_vm2, %v5295_v9, %v5294_v11  ;;  %v5110_v40 = vadd.s32 %v5109_v45, %v5100_v35  ;;  %vm5113_vm9 = vc.u32 %v10569_v14, %v10571_v28  ;;  %v10589_v51 = vor.u32 %v4884_v52, %v4883_v39 }
 0x757   : > { %v10594_v24 = vsel %vm10530_vm6, %v11351_v5, %v5296_v32  ;;  %v10596_v56 = vor.u32 %v4881_v46, %v4880_v0  ;;  %v4888_v10 = vor.u32 %v4887_v62, %v4886_v33  ;;  %vm4897_vm12 = vcmp.lt.s32.totalorder %v11355_v42, 3 }
 0x758   : > { %v5301_v2 = vmul.f32 %v10594_v24, %v10594_v24  ;;  %v5114_v27 = vadd.s32 1, %v5110_v40  ;;  %vm4895_vm3 = vcmp.lt.s32.totalorder %v11355_v42, 1  ;;  %v4909_v8 = vsel %vm4897_vm12, %v10503_v12, %v4908_v22 }
 0x759   : > { %v4904_v41 = vsel %vm4898_vm7, %v10503_v12, 920167782  ;;  %v5111_v58 = vmul.u32 %v10496_v25, %v5057_v6  ;;  %v4907_v18 = vsel %vm4895_vm3, %v10589_v51, %v4888_v10  ;;  %v10612_v26 = vshll.u32 %v4871_v13, 8 }
 0x75a   : > { %v5302_v19 = vmul.f32 -0.001358992, %v5301_v2  ;;  %v5309_v38 = vmul.f32 -0.00019511016, %v5301_v2  ;;  %v5115_v48 = vsel %vm5113_vm9, %v5114_v27, %v5110_v40  ;;  %vm4896_vm5 = vcmp.lt.s32.totalorder %v11355_v42, 2  ;;  %v11365_v42 = vld [vmem:[#allocation7_spill] sm:$0xff] }
 0x75b   : > { %v4739_v1 = vor.u32 %v11359_v44, %v11358_v61  ;;  %v10620_v12 = vand.u32 3, %v5317_v60  ;;  %v5116_v25 = vadd.s32 %v5115_v48, %v5111_v58  ;;  %v4910_v31 = vsel %vm4896_vm5, %v4907_v18, %v4909_v8 }
 0x75c   : > { %v5303_v17 = vadd.f32 0.041655596, %v5302_v19  ;;  %v5310_v43 = vadd.f32 0.008332121, %v5309_v38  ;;  %v4903_v57 = vsel %vm4895_vm3, %v10596_v56, %v10589_v51  ;;  %v4905_v37 = vsel %vm4897_vm12, %v4888_v10, %v4904_v41 }
 0x75d   : > { %v5117_v15 = vadd.s32 536870912, %v5116_v25  ;;  %v4912_v49 = vand.u32 65535, %v10612_v26  ;;  %v4914_v53 = vand.u32 65535, %v4910_v31  ;;  %v4915_v20 = vshrl.u32 %v4910_v31, 16 }
 0x75e   : > { %vm4743_vm10 = vcmp.lt.s32.totalorder %v11360_v36, 4  ;;  %v5304_v22 = vmul.f32 %v5303_v17, %v5301_v2  ;;  %v5311_v6 = vmul.f32 %v5310_v43, %v5301_v2  ;;  %v4913_v30 = vshrl.u32 %v10612_v26, 16 }
 0x75f   : > { %v10636_v11 = vsel %vm4743_vm10, %v11361_v29, 920167782  ;;  %v10638_v21 = vshrl.u32 %v5117_v15, 30  ;;  %v4906_v59 = vsel %vm4896_vm5, %v4903_v57, %v4905_v37  ;;  %v4917_v60 = vmul.u32 %v4915_v20, %v4912_v49 }
 0x760   : > { %v10644_v35 = vsel %vm4743_vm10, %v4739_v1, 1326507024  ;;  %v5305_v46 = vadd.f32 -0.4999988, %v5304_v22  ;;  %v5312_v9 = vadd.f32 -0.16666654, %v5311_v6  ;;  %v10646_v45 = vmul.u32 %v4914_v53, %v4913_v30 }
 0x761   : > { %vm5320_vm13 = vcmp.eq.s32.totalorder %v10620_v12, 0  ;;  %v5119_v63 = vshll.u32 %v10638_v21, 30  ;;  %v4879_v39 = vshrl.u32 %v11178_v7, %v9895_v55  ;;  %v4916_v52 = vmul.u32 %v4914_v53, %v4912_v49 }
 0x762   : > { %v4920_v13 = vshll.u32 %v4917_v60, 16  ;;  %v5306_v0 = vmul.f32 %v5305_v46, %v5301_v2  ;;  %v5313_v33 = vmul.f32 %v5312_v9, %v5301_v2  ;;  %vm5319_vm15 = vcmp.lt.s32.totalorder %v10620_v12, 2 }
 0x763   : > { %v4936_v62 = vand.u32 65535, %v4906_v59  ;;  %v4937_v32 = vshrl.u32 %v4906_v59, 16  ;;  %vm5316_vm2 = vweird.f32 %v11351_v5  ;;  %v10654_v40 = vsub.s32 %v5116_v25, %v5119_v63 }
 0x764   : > { %v4919_v27 = vmul.u32 %v4915_v20, %v4913_v30  ;;  %vm4924_vm11 = vc.u32 %v4916_v52, %v4920_v13  ;;  %v4926_v8 = vadd.s32 %v4920_v13, %v4916_v52  ;;  %v5307_v41 = vadd.f32 1.0, %v5306_v0  ;;  %v11362_v13 = vld [vmem:[#allocation32_spill] sm:$0xff] }
 0x765   : > { %v5314_v58 = vadd.f32 1.0, %v5313_v33  ;;  %v4922_v18 = vshll.u32 %v10646_v45, 16  ;;  %v4925_v55 = vsel %vm4924_vm11, 1, %v11183_v54  ;;  %vm5121_vm6 = vcmp.lt.s32.totalorder %v10654_v40, 0 }
 0x766   : > { %v5122_v2 = vsub.s32 0, %v10654_v40  ;;  %v4900_v19 = vsel %vm4898_vm7, %v4888_v10, 2102212464  ;;  %v4927_v38 = vadd.s32 %v4925_v55, %v4919_v27  ;;  %v5324_v61 = vxor.u32 2147483648, %v5307_v41 }
 0x767   : > { %v5315_v48 = vmul.f32 %v5314_v58, %v10594_v24  ;;  %vm5020_vm4 = vcmp.lt.s32.totalorder %v9822_v16, 0  ;;  %vm4928_vm14 = vc.u32 %v4926_v8, %v4922_v18  ;;  %v4939_v44 = vmul.u32 %v4937_v32, %v4912_v49 }
 0x768   : > { %vm5323_vm8 = vcmp.eq.s32.totalorder %v10620_v12, 2  ;;  %v5123_v1 = vsel %vm5121_vm6, %v5122_v2, %v10654_v40  ;;  %v4899_v25 = vsel %vm4895_vm3, %v4879_v39, %v10596_v56  ;;  %v4929_v31 = vsel %vm4928_vm14, 1, %v11183_v54 }
 0x769   : > { %v5321_v17 = vxor.u32 2147483648, %v5315_v48  ;;  %v5124_v10 = vclz %v5123_v1  ;;  %v4931_v43 = vadd.s32 %v4929_v31, %v4927_v38  ;;  %v4940_v57 = vmul.u32 %v4936_v62, %v4913_v30 }
 0x76a   : > { %v5142_v24 = vsub.s32 4, %v10638_v21  ;;  %v4901_v37 = vsel %vm4897_vm12, %v10589_v51, %v4900_v19  ;;  %v4921_v15 = vshrl.u32 %v4917_v60, 16  ;;  %v4938_v53 = vmul.u32 %v4936_v62, %v4912_v49 }
 0x76b   : > { %v5322_v20 = vsel %vm5320_vm13, %v5307_v41, %v5321_v17  ;;  %v5325_v22 = vsel %vm5323_vm8, %v5324_v61, %v5315_v48  ;;  %v6053_v6 = vadd.s32 4294967294, %v5124_v10  ;;  %v4942_v56 = vshll.u32 %v4939_v44, 16  ;;  %v11366_v61 = vld [vmem:[#allocation10_spill] sm:$0xff] }
 0x76c   : > { %v5326_v59 = vsel %vm5319_vm15, %v5322_v20, %v5325_v22  ;;  %v4923_v46 = vshrl.u32 %v10646_v45, 16  ;;  %v4932_v9 = vadd.s32 %v4931_v43, %v4921_v15  ;;  %v4941_v63 = vmul.u32 %v4937_v32, %v4913_v30 }
 0x76d   : > { %v5327_v39 = vsel %vm5316_vm2, nan, %v5326_v59  ;;  %vm6054_vm7 = vcmp.lt.s32.totalorder %v6053_v6, 0  ;;  %v4944_v51 = vshll.u32 %v4940_v57, 16  ;;  %vm4946_vm1 = vc.u32 %v4938_v53, %v4942_v56 }
 0x76e   : > { %5815 = vmatpush.msra.mxu3 %v5327_v39  ;;  %v5127_v49 = vsel %vm6054_vm7, 0, %v6053_v6  ;;  %v4947_v60 = vsel %vm4946_vm1, 1, %v11183_v54  ;;  %v4948_v52 = vadd.s32 %v4942_v56, %v4938_v53  ;;  %v4708_v0 = vand.u32 2147483647, %v11362_v13  ;;  %v11368_v39 = vld [vmem:[#allocation30_spill] sm:$0xff] }
 0x76f   : > { %v5112_v12 = vadd.s32 %v10571_v28, %v10569_v14  ;;  %v5128_v33 = vsub.s32 32, %v5127_v49  ;;  %v5132_v45 = vsub.s32 4294967266, %v5127_v49  ;;  %v4949_v62 = vadd.s32 %v4947_v60, %v4941_v63  ;;  %v11367_v63 = vld [vmem:[#allocation28_spill] sm:$0xff] }
 0x770   : > { %vm10687_vm9 = vcmp.le.f32.partialorder %v5018_v47, 0.7853982  ;;  %v5143_v30 = vsel %vm5020_vm4, %v5142_v24, %v10638_v21  ;;  %v4902_v32 = vsel %vm4896_vm5, %v4899_v25, %v4901_v37  ;;  %v10696_v27 = vadd.s32 %v4932_v9, %v4923_v46 }
 0x771   : > { %vm4950_vm12 = vc.u32 %v4948_v52, %v4944_v51  ;;  %v5129_v14 = vshll.u32 %v10654_v40, %v5127_v49  ;;  %v5130_v28 = vshrl.u32 %v5112_v12, %v5128_v33  ;;  %v5133_v8 = vadd.s32 127, %v5132_v45  ;;  %v11369_v12 = vld [vmem:[#allocation16_spill] sm:$0xff] }
 0x772   : > { %v4951_v41 = vsel %vm4950_vm12, 1, %v11183_v54  ;;  %v4943_v47 = vshrl.u32 %v4939_v44, 16  ;;  %v4945_v58 = vshrl.u32 %v4940_v57, 16  ;;  %v4715_v55 = vand.u32 8388607, %v4708_v0  ;;  %v11370_v33 = vld [vmem:[#allocation12_spill] sm:$0xff] }
 0x773   : > { %v4953_v18 = vadd.s32 %v4951_v41, %v4949_v62  ;;  %v5131_v2 = vor.u32 %v5130_v28, %v5129_v14  ;;  %v5134_v21 = vshll.u32 %v5133_v8, 23  ;;  %v4952_v19 = vadd.s32 %v4948_v52, %v4944_v51  ;;  %v11371_v41 = vld [vmem:[#allocation13_spill] sm:$0xff] }
 0x774   : > { %v4725_v38 = vshll.u32 %v11178_v7, %v11365_v42  ;;  %v4726_v40 = vshrl.u32 %v11346_v3, %v11366_v61  ;;  %v4728_v1 = vshll.u32 %v11346_v3, %v11365_v42  ;;  %v4729_v44 = vshrl.u32 %v11344_v34, %v11366_v61 }
 0x775   : > { %v4954_v48 = vadd.s32 %v4953_v18, %v4943_v47  ;;  %v5135_v25 = vor.u32 4788187, %v5134_v21  ;;  %vm4958_vm3 = vc.u32 %v10696_v27, %v4952_v19  ;;  %v4731_v31 = vshll.u32 %v11344_v34, %v11365_v42 }
 0x776   : > { %v4732_v17 = vshrl.u32 %v11345_v50, %v11366_v61  ;;  %v4716_v43 = vor.u32 8388608, %v4715_v55  ;;  %v4727_v57 = vor.u32 %v4726_v40, %v4725_v38  ;;  %v10715_v24 = vor.u32 %v4729_v44, %v4728_v1 }
 0x777   : > { %v4955_v10 = vadd.s32 %v4954_v48, %v4945_v58  ;;  %v5136_v37 = vand.u32 2147483647, %v5135_v25  ;;  %v5138_v15 = vcvt.s32.f32 %v5131_v2  ;;  %vm4742_vm5 = vcmp.lt.s32.totalorder %v11360_v36, 3 }
 0x778   : > { %v4733_v53 = vor.u32 %v4732_v17, %v4731_v31  ;;  %v4956_v20 = vmul.u32 %v10612_v26, %v4902_v32  ;;  %vm4740_vm13 = vcmp.lt.s32.totalorder %v11360_v36, 1  ;;  %v4754_v6 = vsel %vm4742_vm5, %v11361_v29, %v10644_v35 }
 0x779   : > { %v4959_v22 = vadd.s32 1, %v4955_v10  ;;  %v5139_v56 = vmul.f32 %v5138_v15, %v5136_v37  ;;  %v5145_v59 = vsel %vm10687_vm9, 0, %v5143_v30  ;;  %vm4741_vm15 = vcmp.lt.s32.totalorder %v11360_v36, 2 }
 0x77a   : > { %v4752_v46 = vsel %vm4740_vm13, %v10715_v24, %v4733_v53  ;;  %v4748_v9 = vsel %vm4740_vm13, %v4727_v57, %v10715_v24  ;;  %v4750_v29 = vsel %vm4742_vm5, %v4733_v53, %v10636_v11  ;;  %v10742_v51 = vor.u32 %v11368_v39, %v11367_v63 }
 0x77b   : > { %v4960_v26 = vsel %vm4958_vm3, %v4959_v22, %v4955_v10  ;;  %v4755_v35 = vsel %vm4741_vm15, %v4752_v46, %v4754_v6  ;;  %v5140_v49 = vxor.u32 2147483648, %v5139_v56  ;;  %v10744_v52 = vshll.u32 %v4716_v43, 8 }
 0x77c   : > { %v4961_v60 = vadd.s32 %v4960_v26, %v4956_v20  ;;  %v4584_v45 = vor.u32 %v11370_v33, %v11369_v12  ;;  %v5162_v62 = vadd.s32 3, %v5145_v59  ;;  %v4759_v30 = vand.u32 65535, %v4755_v35 }
 0x77d   : > { %v4760_v32 = vshrl.u32 %v4755_v35, 16  ;;  %v5141_v11 = vsel %vm5020_vm4, %v5140_v49, %v5139_v56  ;;  %v10752_v28 = vsel %vm4741_vm15, %v4748_v9, %v4750_v29  ;;  %v4757_v8 = vand.u32 65535, %v10744_v52 }
 0x77e   : > { %v4962_v14 = vadd.s32 536870912, %v4961_v60  ;;  %vm4588_vm2 = vcmp.lt.s32.totalorder %v11371_v41, 4  ;;  %v10759_v47 = vsel %vm10687_vm9, %v9822_v16, %v5141_v11  ;;  %v4758_v58 = vshrl.u32 %v10744_v52, 16 }
 0x77f   : > { %v10765_v18 = vsel %vm4588_vm2, %v10742_v51, 920167782  ;;  %v5146_v55 = vmul.f32 %v10759_v47, %v10759_v47  ;;  %v4762_v21 = vmul.u32 %v4760_v32, %v4757_v8  ;;  %v10773_v42 = vsel %vm4588_vm2, %v4584_v45, 1326507024 }
 0x780   : > { %v10769_v2 = vshrl.u32 %v4962_v14, 30  ;;  %v10775_v5 = vand.u32 3, %v5162_v62  ;;  %v10777_v38 = vmul.u32 %v4759_v30, %v4758_v58  ;;  %v4782_v48 = vshrl.u32 %v10752_v28, 16  ;;  %v11372_v14 = vld [vmem:[#allocation26_spill] sm:$0xff] }
 0x781   : > { %v5147_v40 = vmul.f32 -0.001358992, %v5146_v55  ;;  %v5154_v1 = vmul.f32 -0.00019511016, %v5146_v55  ;;  %v10781_v44 = vadd.s32 %v4952_v19, %v10696_v27  ;;  %v4724_v31 = vshrl.u32 %v11178_v7, %v11366_v61 }
 0x782   : > { %v4964_v25 = vshll.u32 %v10769_v2, 30  ;;  %v4761_v17 = vmul.u32 %v4759_v30, %v4757_v8  ;;  %v4765_v10 = vshll.u32 %v4762_v21, 16  ;;  %v4781_v43 = vand.u32 65535, %v10752_v28 }
 0x783   : > { %v5148_v37 = vadd.f32 0.041655596, %v5147_v40  ;;  %v5155_v15 = vadd.f32 0.008332121, %v5154_v1  ;;  %v4764_v22 = vmul.u32 %v4760_v32, %v4758_v58  ;;  %v4767_v6 = vshll.u32 %v10777_v38, 16 }
 0x784   : > { %v10787_v20 = vsub.s32 %v4961_v60, %v4964_v25  ;;  %vm4769_vm11 = vc.u32 %v4761_v17, %v4765_v10  ;;  %v4771_v56 = vadd.s32 %v4765_v10, %v4761_v17  ;;  %v10790_v27 = vmul.u32 %v4782_v48, %v4757_v8 }
 0x785   : > { %v5149_v19 = vmul.f32 %v5148_v37, %v5146_v55  ;;  %v5156_v59 = vmul.f32 %v5155_v15, %v5146_v55  ;;  %v10796_v46 = vsel %vm4740_vm13, %v4724_v31, %v4727_v57  ;;  %v4745_v26 = vsel %vm4743_vm10, %v4733_v53, 2102212464 }
 0x786   : > { %vm4966_vm6 = vcmp.lt.s32.totalorder %v10787_v20, 0  ;;  %v4967_v61 = vsub.s32 0, %v10787_v20  ;;  %v4770_v9 = vsel %vm4769_vm11, 1, %v11183_v54  ;;  %vm4773_vm4 = vc.u32 %v4771_v56, %v4767_v6 }
 0x787   : > { %v5150_v29 = vadd.f32 -0.4999988, %v5149_v19  ;;  %v5157_v35 = vadd.f32 -0.16666654, %v5156_v59  ;;  %v4772_v39 = vadd.s32 %v4770_v9, %v4764_v22  ;;  %vm5165_vm14 = vcmp.eq.s32.totalorder %v10775_v5, 0 }
 0x788   : > { %v4968_v63 = vsel %vm4966_vm6, %v4967_v61, %v10787_v20  ;;  %vm5168_vm8 = vcmp.eq.s32.totalorder %v10775_v5, 2  ;;  %v4766_v60 = vshrl.u32 %v4762_v21, 16  ;;  %v4774_v57 = vsel %vm4773_vm4, 1, %v11183_v54 }
 0x789   : > { %v4969_v49 = vclz %v4968_v63  ;;  %v4787_v12 = vshll.u32 %v10790_v27, 16  ;;  %v5151_v33 = vmul.f32 %v5150_v29, %v5146_v55  ;;  %v5158_v53 = vmul.f32 %v5157_v35, %v5146_v55 }
 0x78a   : > { %vm5164_vm10 = vcmp.lt.s32.totalorder %v10775_v5, 2  ;;  %v4776_v45 = vadd.s32 %v4774_v57, %v4772_v39  ;;  %v4785_v62 = vmul.u32 %v4781_v43, %v4758_v58  ;;  %vm5161_vm7 = vweird.f32 %v9822_v16 }
 0x78b   : > { %v6050_v30 = vadd.s32 4294967294, %v4969_v49  ;;  %v4746_v32 = vsel %vm4742_vm5, %v10715_v24, %v4745_v26  ;;  %v4783_v11 = vmul.u32 %v4781_v43, %v4757_v8  ;;  %v4553_v28 = vand.u32 2147483647, %v11372_v14 }
 0x78c   : > { %v5152_v21 = vadd.f32 1.0, %v5151_v33  ;;  %v5159_v40 = vadd.f32 1.0, %v5158_v53  ;;  %vm4865_vm1 = vcmp.lt.s32.totalorder %v11356_v4, 0  ;;  %v4768_v55 = vshrl.u32 %v10777_v38, 16  ;;  %v11373_v33 = vld [vmem:[#allocation18_spill] sm:$0xff] }
 0x78d   : > { %v4777_v1 = vadd.s32 %v4776_v45, %v4766_v60  ;;  %vm6051_vm9 = vcmp.lt.s32.totalorder %v6050_v30, 0  ;;  %v4786_v25 = vmul.u32 %v4782_v48, %v4758_v58  ;;  %vm4791_vm12 = vc.u32 %v4783_v11, %v4787_v12  ;;  %v11374_v45 = vld [vmem:[#allocation22_spill] sm:$0xff] }
 0x78e   : > { %v4793_v31 = vadd.s32 %v4787_v12, %v4783_v11  ;;  %v5160_v17 = vmul.f32 %v5159_v40, %v10759_v47  ;;  %v5169_v10 = vxor.u32 2147483648, %v5152_v21  ;;  %v4972_v37 = vsel %vm6051_vm9, 0, %v6050_v30 }
 0x78f   : > { %v4789_v15 = vshll.u32 %v4785_v62, 16  ;;  %v4973_v24 = vsub.s32 32, %v4972_v37  ;;  %v4977_v8 = vsub.s32 4294967266, %v4972_v37  ;;  %v4987_v43 = vsub.s32 4, %v10769_v2 }
 0x790   : > { %v4792_v22 = vsel %vm4791_vm12, 1, %v11183_v54  ;;  %v5166_v6 = vxor.u32 2147483648, %v5160_v17  ;;  %v10817_v56 = vadd.s32 %v4777_v1, %v4768_v55  ;;  %v4974_v58 = vshll.u32 %v10787_v20, %v4972_v37 }
 0x791   : > { %v4794_v38 = vadd.s32 %v4792_v22, %v4786_v25  ;;  %vm4795_vm3 = vc.u32 %v4793_v31, %v4789_v15  ;;  %v4975_v48 = vshrl.u32 %v10781_v44, %v4973_v24  ;;  %v4978_v19 = vadd.s32 127, %v4977_v8 }
 0x792   : > { %v4796_v47 = vsel %vm4795_vm3, 1, %v11183_v54  ;;  %v5167_v59 = vsel %vm5165_vm14, %v5152_v21, %v5166_v6  ;;  %v5170_v61 = vsel %vm5168_vm8, %v5169_v10, %v5160_v17  ;;  %v4788_v26 = vshrl.u32 %v10790_v27, 16 }
 0x793   : > { %v4798_v9 = vadd.s32 %v4796_v47, %v4794_v38  ;;  %v5171_v29 = vsel %vm5164_vm10, %v5167_v59, %v5170_v61  ;;  %v4976_v35 = vor.u32 %v4975_v48, %v4974_v58  ;;  %v4979_v63 = vshll.u32 %v4978_v19, 23 }
 0x794   : > { %v10829_v20 = vadd.s32 %v4793_v31, %v4789_v15  ;;  %v5172_v44 = vsel %vm5161_vm7, nan, %v5171_v29  ;;  %v4790_v39 = vshrl.u32 %v4785_v62, 16  ;;  %v4560_v60 = vand.u32 8388607, %v4553_v28 }
 0x795   : > { %v4799_v49 = vadd.s32 %v4798_v9, %v4788_v26  ;;  %5816 = vmatpush.msra.mxu3 %v5172_v44  ;;  %v4980_v57 = vor.u32 4788187, %v4979_v63  ;;  %v4988_v27 = vsel %vm4865_vm1, %v4987_v43, %v10769_v2  ;;  %v4747_v5 = vsel %vm4741_vm15, %v10796_v46, %v4746_v32 }
 0x796   : > { %vm4803_vm5 = vc.u32 %v10817_v56, %v10829_v20  ;;  %v4983_v16 = vcvt.s32.f32 %v4976_v35  ;;  %v4571_v53 = vshrl.u32 %v11346_v3, %v11373_v33  ;;  %v4573_v62 = vshll.u32 %v11346_v3, %v11374_v45 }
 0x797   : > { %v4800_v12 = vadd.s32 %v4799_v49, %v4790_v39  ;;  %v4981_v30 = vand.u32 2147483647, %v4980_v57  ;;  %v4574_v11 = vshrl.u32 %v11344_v34, %v11373_v33  ;;  %v4576_v2 = vshll.u32 %v11344_v34, %v11374_v45 }
 0x798   : > { %v4577_v36 = vshrl.u32 %v11345_v50, %v11373_v33  ;;  %vm10855_vm13 = vcmp.le.f32.partialorder %v4863_v23, 0.7853982  ;;  %v4561_v21 = vor.u32 8388608, %v4560_v60  ;;  %v4570_v3 = vshll.u32 %v11178_v7, %v11374_v45 }
 0x799   : > { %v4804_v32 = vadd.s32 1, %v4800_v12  ;;  %v4984_v40 = vmul.f32 %v4983_v16, %v4981_v30  ;;  %v4801_v55 = vmul.u32 %v10744_v52, %v4747_v5  ;;  %v10862_v1 = vor.u32 %v4574_v11, %v4573_v62 }
 0x79a   : > { %v10864_v34 = vor.u32 %v4577_v36, %v4576_v2  ;;  %v4990_v50 = vsel %vm10855_vm13, 0, %v4988_v27  ;;  %v10871_v25 = vor.u32 %v4571_v53, %v4570_v3  ;;  %vm4587_vm15 = vcmp.lt.s32.totalorder %v11371_v41, 3 }
 0x79b   : > { %v4805_v23 = vsel %vm4803_vm5, %v4804_v32, %v4800_v12  ;;  %v4985_v31 = vxor.u32 2147483648, %v4984_v40  ;;  %vm4585_vm11 = vcmp.lt.s32.totalorder %v11371_v41, 1  ;;  %v4599_v52 = vsel %vm4587_vm15, %v10742_v51, %v10773_v42 }
 0x79c   : > { %v4806_v17 = vadd.s32 %v4805_v23, %v4801_v55  ;;  %v4597_v10 = vsel %vm4585_vm11, %v10862_v1, %v10864_v34  ;;  %v10883_v37 = vshll.u32 %v4561_v21, 8  ;;  %v5007_v24 = vadd.s32 3, %v4990_v50 }
 0x79d   : > { %v4986_v15 = vsel %vm4865_vm1, %v4985_v31, %v4984_v40  ;;  %vm4586_vm6 = vcmp.lt.s32.totalorder %v11371_v41, 2  ;;  %v4593_v51 = vsel %vm4585_vm11, %v10871_v25, %v10862_v1  ;;  %v4595_v42 = vsel %vm4587_vm15, %v10864_v34, %v10765_v18 }
 0x79e   : > { %v4807_v8 = vadd.s32 536870912, %v4806_v17  ;;  %v4989_v43 = vsel %vm10855_vm13, %v11356_v4, %v4986_v15  ;;  %v4600_v22 = vsel %vm4586_vm6, %v4597_v10, %v4599_v52  ;;  %v4602_v19 = vand.u32 65535, %v10883_v37 }
 0x79f   : > { %v4991_v6 = vmul.f32 %v4989_v43, %v4989_v43  ;;  %v4604_v58 = vand.u32 65535, %v4600_v22  ;;  %v4605_v48 = vshrl.u32 %v4600_v22, 16  ;;  %v4603_v47 = vshrl.u32 %v10883_v37, 16 }
 0x7a0   : > { %v10901_v38 = vshrl.u32 %v4807_v8, 30  ;;  %v4596_v9 = vsel %vm4586_vm6, %v4593_v51, %v4595_v42  ;;  %v5008_v44 = vand.u32 3, %v5007_v24  ;;  %vm5006_vm7 = vweird.f32 %v11356_v4 }
 0x7a1   : > { %v4992_v59 = vmul.f32 -0.001358992, %v4991_v6  ;;  %v4999_v61 = vmul.f32 -0.00019511016, %v4991_v6  ;;  %v4607_v18 = vmul.u32 %v4605_v48, %v4602_v19  ;;  %v10908_v29 = vmul.u32 %v4604_v58, %v4603_v47 }
 0x7a2   : > { %v4809_v26 = vshll.u32 %v10901_v38, 30  ;;  %v4606_v49 = vmul.u32 %v4604_v58, %v4602_v19  ;;  %v4626_v57 = vand.u32 65535, %v4596_v9  ;;  %v4627_v27 = vshrl.u32 %v4596_v9, 16 }
 0x7a3   : > { %v4993_v35 = vadd.f32 0.041655596, %v4992_v59  ;;  %v5000_v63 = vadd.f32 0.008332121, %v4999_v61  ;;  %v4610_v60 = vshll.u32 %v4607_v18, 16  ;;  %v4609_v53 = vmul.u32 %v4605_v48, %v4603_v47 }
 0x7a4   : > { %v4810_v39 = vsub.s32 %v4806_v17, %v4809_v26  ;;  %v4612_v45 = vshll.u32 %v10908_v29, 16  ;;  %vm5009_vm10 = vcmp.lt.s32.totalorder %v5008_v44, 2  ;;  %v4629_v40 = vmul.u32 %v4627_v27, %v4602_v19 }
 0x7a5   : > { %v4994_v5 = vmul.f32 %v4993_v35, %v4991_v6  ;;  %v5001_v16 = vmul.f32 %v5000_v63, %v4991_v6  ;;  %vm4614_vm14 = vc.u32 %v4606_v49, %v4610_v60  ;;  %v4616_v62 = vadd.s32 %v4610_v60, %v4606_v49 }
 0x7a6   : > { %vm4811_vm4 = vcmp.lt.s32.totalorder %v4810_v39, 0  ;;  %v4812_v12 = vsub.s32 0, %v4810_v39  ;;  %v4615_v36 = vsel %vm4614_vm14, 1, %v11183_v54  ;;  %vm5010_vm1 = vcmp.eq.s32.totalorder %v5008_v44, 0 }
 0x7a7   : > { %v4995_v30 = vadd.f32 -0.4999988, %v4994_v5  ;;  %v5002_v11 = vadd.f32 -0.16666654, %v5001_v16  ;;  %vm4618_vm8 = vc.u32 %v4616_v62, %v4612_v45  ;;  %v4617_v3 = vadd.s32 %v4615_v36, %v4609_v53 }
 0x7a8   : > { %v4813_v2 = vsel %vm4811_vm4, %v4812_v12, %v4810_v39  ;;  %vm5013_vm9 = vcmp.eq.s32.totalorder %v5008_v44, 2  ;;  %v4619_v50 = vsel %vm4618_vm8, 1, %v11183_v54  ;;  %v4802_v17 = vadd.s32 %v10829_v20, %v10817_v56 }
 0x7a9   : > { %v4814_v46 = vclz %v4813_v2  ;;  %v4996_v32 = vmul.f32 %v4995_v30, %v4991_v6  ;;  %v5003_v21 = vmul.f32 %v5002_v11, %v4991_v6  ;;  %v4630_v52 = vmul.u32 %v4626_v57, %v4603_v47 }
 0x7aa   : > { %v4590_v10 = vsel %vm4588_vm2, %v10864_v34, 2102212464  ;;  %v4628_v15 = vmul.u32 %v4626_v57, %v4602_v19  ;;  %v4632_v24 = vshll.u32 %v4629_v40, 16  ;;  %v4621_v22 = vadd.s32 %v4619_v50, %v4617_v3 }
 0x7ab   : > { %v6047_v55 = vadd.s32 4294967294, %v4814_v46  ;;  %v4997_v23 = vadd.f32 1.0, %v4996_v32  ;;  %v5004_v31 = vadd.f32 1.0, %v5003_v21  ;;  %v4611_v48 = vshrl.u32 %v4607_v18, 16 }
 0x7ac   : > { %v4631_v59 = vmul.u32 %v4627_v27, %v4603_v47  ;;  %v4634_v9 = vshll.u32 %v4630_v52, 16  ;;  %vm4636_vm3 = vc.u32 %v4628_v15, %v4632_v24  ;;  %v4638_v63 = vadd.s32 %v4632_v24, %v4628_v15 }
 0x7ad   : > { %vm6048_vm12 = vcmp.lt.s32.totalorder %v6047_v55, 0  ;;  %v5005_v8 = vmul.f32 %v5004_v31, %v4989_v43  ;;  %v5014_v51 = vxor.u32 2147483648, %v4997_v23  ;;  %v4637_v35 = vsel %vm4636_vm3, 1, %v11183_v54 }
 0x7ae   : > { %v4817_v42 = vsel %vm6048_vm12, 0, %v6047_v55  ;;  %v4622_v19 = vadd.s32 %v4621_v22, %v4611_v48  ;;  %v4639_v49 = vadd.s32 %v4637_v35, %v4631_v59  ;;  %vm4640_vm2 = vc.u32 %v4638_v63, %v4634_v9 }
 0x7af   : > { %v4818_v6 = vsub.s32 32, %v4817_v42  ;;  %v4822_v58 = vsub.s32 4294967266, %v4817_v42  ;;  %v5011_v61 = vxor.u32 2147483648, %v5005_v8  ;;  %v4819_v26 = vshll.u32 %v4810_v39, %v4817_v42 }
 0x7b0   : > { %v5015_v43 = vsel %vm5013_vm9, %v5014_v51, %v5005_v8  ;;  %v4569_v39 = vshrl.u32 %v11178_v7, %v11373_v33  ;;  %v4613_v27 = vshrl.u32 %v10908_v29, 16  ;;  %v4641_v5 = vsel %vm4640_vm2, 1, %v11183_v54 }
 0x7b1   : > { %v4820_v56 = vshrl.u32 %v4802_v17, %v4818_v6  ;;  %v4823_v20 = vadd.s32 127, %v4822_v58  ;;  %v5012_v34 = vsel %vm5010_vm1, %v4997_v23, %v5011_v61  ;;  %v4633_v12 = vshrl.u32 %v4629_v40, 16 }
 0x7b2   : > { %v5016_v60 = vsel %vm5009_vm10, %v5012_v34, %v5015_v43  ;;  %v4643_v53 = vadd.s32 %v4641_v5, %v4639_v49  ;;  %v4589_v44 = vsel %vm4585_vm11, %v4569_v39, %v10871_v25  ;;  %v4591_v4 = vsel %vm4587_vm15, %v10862_v1, %v4590_v10 }
 0x7b3   : > { %v4821_v57 = vor.u32 %v4820_v56, %v4819_v26  ;;  %v4824_v18 = vshll.u32 %v4823_v20, 23  ;;  %v5017_v47 = vsel %vm5006_vm7, nan, %v5016_v60  ;;  %v4623_v45 = vadd.s32 %v4622_v19, %v4613_v27 }
 0x7b4   : > { %5817 = vmatpush.msra.mxu3 %v5017_v47  ;;  %v4635_v7 = vshrl.u32 %v4630_v52, 16  ;;  %v4644_v33 = vadd.s32 %v4643_v53, %v4633_v12  ;;  %v4642_v29 = vadd.s32 %v4638_v63, %v4634_v9  ;;  %v4592_v54 = vsel %vm4586_vm6, %v4589_v44, %v4591_v4 }
 0x7b5   : > { %v4825_v16 = vor.u32 4788187, %v4824_v18  ;;  %v4828_v30 = vcvt.s32.f32 %v4821_v57  ;;  %vm4710_vm13 = vcmp.lt.s32.totalorder %v11362_v13, 0  ;;  %v4646_v25 = vmul.u32 %v10883_v37, %v4592_v54 }
 0x7b6   : > { %v4645_v2 = vadd.s32 %v4644_v33, %v4635_v7  ;;  %vm4648_vm5 = vc.u32 %v4623_v45, %v4642_v29  ;;  %vm10941_vm15 = vcmp.le.f32.partialorder %v4708_v0, 0.7853982  ;;  %v4832_v21 = vsub.s32 4, %v10901_v38 }
 0x7b7   : > { %v4826_v62 = vand.u32 2147483647, %v4825_v16  ;;  %v4647_v43 = vadd.s32 %v4642_v29, %v4623_v45  ;;  %vm4851_vm10 = vweird.f32 %v11362_v13  ;;  %vm4555_vm7 = vcmp.lt.s32.totalorder %v11372_v14, 0 }
 0x7b8   : > { %v4649_v46 = vadd.s32 1, %v4645_v2  ;;  %v4833_v23 = vsel %vm4710_vm13, %v4832_v21, %v10901_v38  ;;  %vm4554_vm1 = vcmp.le.f32.partialorder %v4553_v28, 0.7853982  ;;  %vm4696_vm2 = vweird.f32 %v11372_v14 }
 0x7b9   : > { %v4829_v11 = vmul.f32 %v4828_v30, %v4826_v62  ;;  %v4835_v10 = vsel %vm10941_vm15, 0, %v4833_v23 }
 0x7ba   : > { %v4650_v3 = vsel %vm4648_vm5, %v4649_v46, %v4645_v2  ;;  %v4852_v6 = vadd.s32 3, %v4835_v10 }
 0x7bb   : > { %v4830_v36 = vxor.u32 2147483648, %v4829_v11  ;;  %v4651_v40 = vadd.s32 %v4650_v3, %v4646_v25 }
 0x7bc   : > { %v4853_v9 = vand.u32 3, %v4852_v6 }
 0x7bd   : > { %v4831_v32 = vsel %vm4710_vm13, %v4830_v36, %v4829_v11  ;;  %v4652_v50 = vadd.s32 536870912, %v4651_v40 }
 0x7be   : > { %v4834_v41 = vsel %vm10941_vm15, %v11362_v13, %v4831_v32  ;;  %vm4854_vm6 = vcmp.lt.s32.totalorder %v4853_v9, 2  ;;  %vm4855_vm14 = vcmp.eq.s32.totalorder %v4853_v9, 0  ;;  %vm4858_vm8 = vcmp.eq.s32.totalorder %v4853_v9, 2 }
 0x7bf   : > { %v4836_v55 = vmul.f32 %v4834_v41, %v4834_v41  ;;  %v4653_v17 = vshrl.u32 %v4652_v50, 30 }
 0x7c1   : > { %v4837_v37 = vmul.f32 -0.001358992, %v4836_v55  ;;  %v4844_v31 = vmul.f32 -0.00019511016, %v4836_v55  ;;  %v4654_v15 = vshll.u32 %v4653_v17, 30  ;;  %v4677_v13 = vsub.s32 4, %v4653_v17 }
 0x7c3   : > { %v4838_v0 = vadd.f32 0.041655596, %v4837_v37  ;;  %v4845_v52 = vadd.f32 0.008332121, %v4844_v31  ;;  %v4655_v51 = vsub.s32 %v4651_v40, %v4654_v15  ;;  %v4678_v2 = vsel %vm4555_vm7, %v4677_v13, %v4653_v17  ;;  %v5793_v15 = vld [vmem:[%s11004_s5] sm:$0x1] }
 0x7c4   : > { %v4680_v25 = vsel %vm4554_vm1, 0, %v4678_v2 }
 0x7c5   : > { %v4839_v24 = vmul.f32 %v4838_v0, %v4836_v55  ;;  %v4846_v8 = vmul.f32 %v4845_v52, %v4836_v55  ;;  %vm4656_vm11 = vcmp.lt.s32.totalorder %v4655_v51, 0  ;;  %v4657_v58 = vsub.s32 0, %v4655_v51 }
 0x7c7   : > { %v4840_v42 = vadd.f32 -0.4999988, %v4839_v24  ;;  %v4847_v22 = vadd.f32 -0.16666654, %v4846_v8  ;;  %v4658_v38 = vsel %vm4656_vm11, %v4657_v58, %v4655_v51  ;;  %v5798_v8 = vpop.permute.xlu2 %5797 }
 0x7c8   : > { %v4659_v56 = vclz %v4658_v38 }
 0x7c9   : > { %v4841_v48 = vmul.f32 %v4840_v42, %v4836_v55  ;;  %v4848_v59 = vmul.f32 %v4847_v22, %v4836_v55 }
 0x7ca   : > { %v6044_v63 = vadd.s32 4294967294, %v4659_v56 }
 0x7cb   : > { %v4842_v61 = vadd.f32 1.0, %v4841_v48  ;;  %v4849_v26 = vadd.f32 1.0, %v4848_v59 }
 0x7cc   : > { %vm6045_vm4 = vcmp.lt.s32.totalorder %v6044_v63, 0 }
 0x7cd   : > { %v4850_v20 = vmul.f32 %v4849_v26, %v4834_v41  ;;  %v4859_v35 = vxor.u32 2147483648, %v4842_v61  ;;  %v4662_v19 = vsel %vm6045_vm4, 0, %v6044_v63  ;;  %v4697_v41 = vadd.s32 3, %v4680_v25 }
 0x7ce   : > { %v4663_v57 = vsub.s32 32, %v4662_v19  ;;  %v4667_v18 = vsub.s32 4294967266, %v4662_v19  ;;  %v4664_v27 = vshll.u32 %v4655_v51, %v4662_v19 }
 0x7cf   : > { %v4856_v34 = vxor.u32 2147483648, %v4850_v20  ;;  %v4860_v60 = vsel %vm4858_vm8, %v4859_v35, %v4850_v20  ;;  %v4698_v23 = vand.u32 3, %v4697_v41 }
 0x7d0   : > { %v4665_v5 = vshrl.u32 %v4647_v43, %v4663_v57  ;;  %v4668_v16 = vadd.s32 127, %v4667_v18 }
 0x7d1   : > { %v4857_v49 = vsel %vm4855_vm14, %v4842_v61, %v4856_v34  ;;  %vm4700_vm9 = vcmp.eq.s32.totalorder %v4698_v23, 0  ;;  %vm4703_vm12 = vcmp.eq.s32.totalorder %v4698_v23, 2  ;;  %vm4699_vm3 = vcmp.lt.s32.totalorder %v4698_v23, 2 }
 0x7d2   : > { %v4861_v47 = vsel %vm4854_vm6, %v4857_v49, %v4860_v60  ;;  %v4666_v12 = vor.u32 %v4665_v5, %v4664_v27  ;;  %v4669_v53 = vshll.u32 %v4668_v16, 23 }
 0x7d3   : > { %v4862_v39 = vsel %vm4851_vm10, nan, %v4861_v47 }
 0x7d4   : > { %5818 = vmatpush.msra.mxu3 %v4862_v39  ;;  %v4670_v44 = vor.u32 4788187, %v4669_v53  ;;  %v4673_v62 = vcvt.s32.f32 %v4666_v12 }
 0x7d6   : > { %v4671_v4 = vand.u32 2147483647, %v4670_v44 }
 0x7d8   : > { %v4674_v30 = vmul.f32 %v4673_v62, %v4671_v4 }
 0x7da   : > { %v4675_v45 = vxor.u32 2147483648, %v4674_v30 }
 0x7dc   : > { %v4676_v7 = vsel %vm4555_vm7, %v4675_v45, %v4674_v30 }
 0x7dd   : > { %v4679_v33 = vsel %vm4554_vm1, %v11372_v14, %v4676_v7  ;;  %v5800_v14 = vperm.slane %v5798_v8, 0 }
 0x7de   : > { %v4681_v29 = vmul.f32 %v4679_v33, %v4679_v33 }
 0x7e0   : > { %v4682_v11 = vmul.f32 -0.001358992, %v4681_v29  ;;  %v4689_v54 = vmul.f32 -0.00019511016, %v4681_v29 }
 0x7e2   : > { %v4683_v36 = vadd.f32 0.041655596, %v4682_v11  ;;  %v4690_v46 = vadd.f32 0.008332121, %v4689_v54 }
 0x7e4   : > { %v4684_v1 = vmul.f32 %v4683_v36, %v4681_v29  ;;  %v4691_v32 = vmul.f32 %v4690_v46, %v4681_v29 }
 0x7e6   : > { %v4685_v21 = vadd.f32 -0.4999988, %v4684_v1  ;;  %v4692_v3 = vadd.f32 -0.16666654, %v4691_v32 }
 0x7e8   : > { %v4686_v40 = vmul.f32 %v4685_v21, %v4681_v29  ;;  %v4693_v55 = vmul.f32 %v4692_v3, %v4681_v29 }
 0x7ea   : > { %v4687_v50 = vadd.f32 1.0, %v4686_v40  ;;  %v4694_v28 = vadd.f32 1.0, %v4693_v55 }
 0x7ec   : > { %v4695_v37 = vmul.f32 %v4694_v28, %v4679_v33  ;;  %v4704_v31 = vxor.u32 2147483648, %v4687_v50 }
 0x7ee   : > { %v4701_v0 = vxor.u32 2147483648, %v4695_v37  ;;  %v4705_v52 = vsel %vm4703_vm12, %v4704_v31, %v4695_v37 }
 0x7f0   : > { %v4702_v17 = vsel %vm4700_vm9, %v4687_v50, %v4701_v0 }
 0x7f1   : > { %v4706_v10 = vsel %vm4699_vm3, %v4702_v17, %v4705_v52 }
 0x7f2   : > { %v4707_v24 = vsel %vm4696_vm2, nan, %v4706_v10 }
 0x7f3   : > { %5819 = vmatpush.msra.mxu3 %v4707_v24 }
 0x7f4   : > { %6067 = vmatmul.msk.f32.vlgmr.msra.gmra.mxu3 %vm1761_vm0, %v5793_v15 }
 0x877   : > { %v5821_v51 = vpop.f32.mrf.mxu3 }
 0x878   : > { %v5822_v42 = vadd.f32 %v5821_v51, %v5800_v14 }
 0x87a   : > { %5824 = vst [vmem:[%s292_s17] sm:$0x1] %v5822_v42 }
 0x87b   : > { %6172 = shalt.err (!%p6169_p5)
}
 0x87c   : > { %6070 = dma.vmem_to_hbm [thread:$0]  (%p6316_p4), %s5838_s18, 16, %s5840_s19, %s5826_s20  }
 0x87d PF: > { %p6076_p6 = scmp.ge.s32.totalorder %s6223_s8, 2  ;;  %s5851_s11 = sand.u32 1, %s6203_s26  }
 0x87e   : > { %s5852_s13 = scalar_lea.sflag [#allocation4], %s5851_s11 }
 0x87f   : > { %p6073_p7 = pnand %p6076_p6, %p6323_p8 }
 0x881   : > { %p6074_p9 = pneg %p6073_p7 }
 0x883   : > { %6198 = dma.done.wait (%p6074_p9), %s5852_s13, 16  }
 0x884   : > { %6200 = vsyncadd (%p6074_p9), %s5852_s13, 4294967280  ;;  %s22_s8 = sadd.s32 1, %s6223_s8   ;;  %s11379_s26 = smov %s6207_s27 }
 0x885   : > { %p19_p10 = scmp.ge.s32.totalorder %s22_s8, 4   ;;  %s11380_s27 = smov %s6211_s28 }
 0x886   : > { %s11381_s28 = smov %s6329_s15  ;;  %s11382_s29 = smov %s6219_s30 }
 0x887   : > { %s11383_s30 = smov %s11385_s10  ;;  %21 = sbr.rel (!%p19_p10) target bundleno = 7 (0x7), region = 88 }
 0x88c   :  { %5857 = vsyncpa [#allocation4], 1 }
 0x88d   :  { %5859 = vsyncpa [#allocation4 + $0x1], 1 }

</bundles_post_ra>
